<compile_context>
chip_gen: v5e
topology: v5e:2x2
jax: 0.10.0
libtpu: 0.0.40
codegen_flags: <defaults>
</compile_context>

<pallas_src>
import functools

import jax
import jax.numpy as jnp
from jax.experimental import pallas as pl
from jax.experimental.pallas import tpu as pltpu

LANE = 128


def _round_up(x, m):
    return (x + m - 1) // m * m


def _full_spec(shape):
    return pl.BlockSpec(shape, lambda i: (0,) * len(shape))


# --------------------------- Pallas kernels ---------------------------------

def _mm_bias_act_kernel(x_ref, w_ref, b_ref, o_ref, *, act):
    # act(x @ w + bias); bias broadcast over rows; f32 accumulate + f32 epilogue.
    acc = jnp.dot(x_ref[...], w_ref[...], preferred_element_type=jnp.float32)
    acc = acc + b_ref[...]
    if act == "relu":
        acc = jnp.maximum(acc, 0.0)
    elif act == "tanh":
        acc = jnp.tanh(acc)
    o_ref[...] = acc.astype(o_ref.dtype)


def _mm_bias_res_relu_kernel(x_ref, w_ref, b_ref, r_ref, o_ref):
    # relu(x @ w + bias + residual); residual add rides free VPU slots under the MXU.
    acc = jnp.dot(x_ref[...], w_ref[...], preferred_element_type=jnp.float32)
    acc = acc + b_ref[...] + r_ref[...].astype(jnp.float32)
    o_ref[...] = jnp.maximum(acc, 0.0).astype(o_ref.dtype)


def _fc_chain_kernel(x_ref, w1_ref, b1_ref, w2_ref, b2_ref, w3_ref, b3_ref,
                     x1_ref, x2_ref):
    # Fused fc1(relu) -> fc2(tanh) -> fc3; all weights + intermediates in VMEM.
    h = jnp.dot(x_ref[...], w1_ref[...], preferred_element_type=jnp.float32)
    h = jnp.maximum(h + b1_ref[...], 0.0)
    x1 = jnp.dot(h.astype(jnp.bfloat16), w2_ref[...],
                 preferred_element_type=jnp.float32)
    x1 = jnp.tanh(x1 + b2_ref[...])
    x2 = jnp.dot(x1.astype(jnp.bfloat16), w3_ref[...],
                 preferred_element_type=jnp.float32)
    x1_ref[...] = x1
    x2_ref[...] = x2 + b3_ref[...]


# --------------------------- Kernel wrappers ---------------------------------

def matmul_bias_act(x, w, bias, act="none", residual=None,
                    out_dtype=jnp.bfloat16):
    """act(x @ w + bias [+ residual]).  x:(M,K), w:(K',N) pre-padded bf16,
    bias:(1,N) f32.  Single full-array block (everything fits VMEM easily).
    When `residual` is given the activation is relu (fused residual add)."""
    M, K = x.shape
    Kw, N = w.shape
    Mp = _round_up(M, 8)
    if K != Kw:
        x = jnp.pad(x, ((0, 0), (0, Kw - K)))
    if Mp != M:
        x = jnp.pad(x, ((0, Mp - M), (0, 0)))
        if residual is not None:
            residual = jnp.pad(residual, ((0, Mp - M), (0, 0)))
    cp = pltpu.CompilerParams(dimension_semantics=("arbitrary",))
    if residual is None:
        out = pl.pallas_call(
            functools.partial(_mm_bias_act_kernel, act=act),
            out_shape=jax.ShapeDtypeStruct((Mp, N), out_dtype),
            grid=(1,),
            in_specs=[_full_spec((Mp, Kw)), _full_spec((Kw, N)),
                      _full_spec((1, N))],
            out_specs=_full_spec((Mp, N)),
            compiler_params=cp,
        )(x, w, bias)
    else:
        out = pl.pallas_call(
            _mm_bias_res_relu_kernel,
            out_shape=jax.ShapeDtypeStruct((Mp, N), out_dtype),
            grid=(1,),
            in_specs=[_full_spec((Mp, Kw)), _full_spec((Kw, N)),
                      _full_spec((1, N)), _full_spec((Mp, N))],
            out_specs=_full_spec((Mp, N)),
            compiler_params=cp,
        )(x, w, bias, residual)
    if Mp != M:
        out = out[:M]
    return out


def fc_chain(x, prep):
    """Fused fc1(relu) -> fc2(tanh) -> fc3 in one pallas_call, two outputs."""
    w1, b1 = prep["fc1"]["w"], prep["fc1"]["b"]
    w2, b2 = prep["fc2"]["w"], prep["fc2"]["b"]
    w3, b3 = prep["fc3"]["w"], prep["fc3"]["b"]
    B, K = x.shape
    Mp = _round_up(B, 8)
    xp = x
    if K != w1.shape[0]:
        xp = jnp.pad(xp, ((0, 0), (0, w1.shape[0] - K)))
    if Mp != B:
        xp = jnp.pad(xp, ((0, Mp - B), (0, 0)))
    xp = xp.astype(jnp.bfloat16)
    n2, n3 = w2.shape[1], w3.shape[1]
    x1p, x2p = pl.pallas_call(
        _fc_chain_kernel,
        out_shape=(jax.ShapeDtypeStruct((Mp, n2), jnp.float32),
                   jax.ShapeDtypeStruct((Mp, n3), jnp.float32)),
        grid=(1,),
        in_specs=[_full_spec((Mp, w1.shape[0])),
                  _full_spec(w1.shape), _full_spec(b1.shape),
                  _full_spec(w2.shape), _full_spec(b2.shape),
                  _full_spec(w3.shape), _full_spec(b3.shape)],
        out_specs=(_full_spec((Mp, n2)), _full_spec((Mp, n3))),
        compiler_params=pltpu.CompilerParams(
            dimension_semantics=("arbitrary",)),
    )(xp, w1, b1, w2, b2, w3, b3)
    return x1p[:B], x2p[:B]


# --------------------------- JAX glue ----------------------------------------

def _im2col(x, kh, kw, stride=1, pad=0):
    # x: NHWC -> (B*oh*ow, kh*kw*C), patch position outer, channel inner.
    # TODO(synk): replace with an in-kernel kh*kw accumulation loop if batch /
    # resolution ever grows enough for this XLA glue to dominate HBM traffic.
    if pad:
        x = jnp.pad(x, ((0, 0), (pad, pad), (pad, pad), (0, 0)))
    B, H, W, C = x.shape
    oh = (H - kh) // stride + 1
    ow = (W - kw) // stride + 1
    cols = []
    for i in range(kh):
        for j in range(kw):
            cols.append(x[:, i:i + (oh - 1) * stride + 1:stride,
                          j:j + (ow - 1) * stride + 1:stride, :])
    p = jnp.stack(cols, axis=3)  # (B, oh, ow, kh*kw, C)
    return p.reshape(B * oh * ow, kh * kw * C), (B, oh, ow)


def conv_bn_act(x, layer, act="none", pad=0, stride=1, residual=None):
    """x: NHWC (channels lane-padded); layer: prepped {w,b} with eval-mode BN
    folded in.  Output: NHWC with 128-lane-padded channels, bf16."""
    wm, bias = layer["w"], layer["b"]
    cols, (B, oh, ow) = _im2col(x, 3, 3, stride=stride, pad=pad)
    cols = cols.astype(jnp.bfloat16)
    res = None
    if residual is not None:
        res = residual.reshape(B * oh * ow, wm.shape[1])
    out = matmul_bias_act(cols, wm, bias, act=act, residual=res)
    return out.reshape(B, oh, ow, wm.shape[1])


def maxpool2(x):  # NHWC, 2x2 stride 2
    B, H, W, C = x.shape
    return x.reshape(B, H // 2, 2, W // 2, 2, C).max(axis=(2, 4))


def avgpool2(x):  # NHWC, 2x2 stride 2 (adaptive-pool stand-in)
    B, H, W, C = x.shape
    y = x.reshape(B, H // 2, 2, W // 2, 2, C).astype(jnp.float32)
    return y.mean(axis=(2, 4)).astype(x.dtype)


# --------------------------- Parameters --------------------------------------

def init_params(key, in_features=32, out_features=16):
    C = in_features
    keys = iter(jax.random.split(key, 40))

    def nrm(shape, scale=0.05):
        return scale * jax.random.normal(next(keys), shape, jnp.float32)

    def bn_params(c):
        gamma = 1.0 + 0.1 * jax.random.normal(next(keys), (c,), jnp.float32)
        beta = 0.1 * jax.random.normal(next(keys), (c,), jnp.float32)
        mean = 0.05 * jax.random.normal(next(keys), (c,), jnp.float32)
        var = 1.0 + 0.1 * jnp.abs(jax.random.normal(next(keys), (c,), jnp.float32))
        return (gamma, beta, mean, var)

    p = {}
    # scaled-down resnet18-style "features" backbone (stem + one basic block)
    p["stem_w"] = nrm((C, 3, 3, 3)); p["stem_b"] = nrm((C,)); p["stem_bn"] = bn_params(C)
    p["blk_w1"] = nrm((C, C, 3, 3)); p["blk_b1"] = nrm((C,)); p["blk_bn1"] = bn_params(C)
    p["blk_w2"] = nrm((C, C, 3, 3)); p["blk_b2"] = nrm((C,)); p["blk_bn2"] = bn_params(C)
    # declared heads of CustomResnet4
    p["c1_w"] = nrm((2 * C, C, 3, 3)); p["c1_b"] = nrm((2 * C,)); p["c1_bn"] = bn_params(2 * C)
    p["c2_w"] = nrm((4 * C, 2 * C, 3, 3)); p["c2_b"] = nrm((4 * C,)); p["c2_bn"] = bn_params(4 * C)
    p["fc1_w"] = nrm((1024, 4 * C)); p["fc1_b"] = nrm((1024,))
    p["fc2_w"] = nrm((256, 1024)); p["fc2_b"] = nrm((256,))
    p["fc3_w"] = nrm((out_features, 256)); p["fc3_b"] = nrm((out_features,))
    return p


def prepare_params(params, in_features=32, out_features=16):
    """Fold eval-mode BN into the conv weights/bias, transpose and lane-pad all
    weight matrices to MXU-friendly (Kp, 128k) bf16 — once, outside the forward
    path.  Padded weight rows/columns are zero so padded activation lanes stay
    exactly zero through the whole network."""
    C = in_features
    Cp = _round_up(C, LANE)

    def conv_prep(w, b, bn, cin_pad):
        gamma, beta, mean, var = bn
        s = gamma / jnp.sqrt(var + 1e-5)
        bias = (b - mean) * s + beta
        cout, cin, kh, kw = w.shape
        cout_pad = _round_up(cout, LANE)
        wf = w * s[:, None, None, None]                 # fold BN scale along Cout
        wt = jnp.transpose(wf, (2, 3, 1, 0))            # (kh, kw, cin, cout)
        wp = jnp.zeros((kh, kw, cin_pad, cout_pad), jnp.float32)
        wp = wp.at[:, :, :cin, :cout].set(wt)
        K = kh * kw * cin_pad
        Kp = _round_up(K, LANE)
        wm = jnp.pad(wp.reshape(K, cout_pad), ((0, Kp - K), (0, 0)))
        bp = jnp.zeros((1, cout_pad), jnp.float32).at[0, :cout].set(bias)
        return {"w": wm.astype(jnp.bfloat16), "b": bp}

    def fc_prep(w, b):
        nout, kin = w.shape
        kin_pad = _round_up(kin, LANE)
        nout_pad = _round_up(nout, LANE)
        wp = jnp.zeros((kin_pad, nout_pad), jnp.float32).at[:kin, :nout].set(w.T)
        bp = jnp.zeros((1, nout_pad), jnp.float32).at[0, :nout].set(b)
        return {"w": wp.astype(jnp.bfloat16), "b": bp}

    return {
        "stem": conv_prep(params["stem_w"], params["stem_b"], params["stem_bn"], cin_pad=3),
        "blk1": conv_prep(params["blk_w1"], params["blk_b1"], params["blk_bn1"], cin_pad=Cp),
        "blk2": conv_prep(params["blk_w2"], params["blk_b2"], params["blk_bn2"], cin_pad=Cp),
        "c1": conv_prep(params["c1_w"], params["c1_b"], params["c1_bn"], cin_pad=Cp),
        "c2": conv_prep(params["c2_w"], params["c2_b"], params["c2_bn"],
                        cin_pad=_round_up(2 * C, LANE)),
        "fc1": fc_prep(params["fc1_w"], params["fc1_b"]),
        "fc2": fc_prep(params["fc2_w"], params["fc2_b"]),
        "fc3": fc_prep(params["fc3_w"], params["fc3_b"]),
    }


# --------------------------- Forward ------------------------------------------

def custom_resnet4_forward(prep, x_nchw, *, out_features=16):
    x = jnp.transpose(x_nchw, (0, 2, 3, 1))               # NCHW -> NHWC

    # ---- self.features: scaled-down resnet18-style backbone -------------------
    # TODO(synk): the real pretrained resnet18 backbone (8 basic blocks,
    # pretrained weights) is stood in by a stem + one residual block here.
    x = conv_bn_act(x, prep["stem"], act="relu", pad=1)    # (B, 24, 24, 128)
    x = maxpool2(x)                                        # (B, 12, 12, 128)
    idn = x
    y = conv_bn_act(x, prep["blk1"], act="relu", pad=1)
    # residual add + ReLU fused into the second conv's matmul epilogue
    x = conv_bn_act(y, prep["blk2"], act="relu", pad=1, residual=idn)
    # TODO(synk): resnet18's AdaptiveAvgPool2d((1,1)) would leave a 1x1 map on
    # which the following 3x3 *valid* conv is impossible; we pool to 6x6, the
    # only spatial size consistent with fc1's declared in-dim of in_features*4.
    x = avgpool2(x)                                        # (B, 6, 6, 128)

    # ---- conv1: Conv(C->2C,k3) + Dropout(p=0) + BN + MaxPool2 + Tanh ----------
    # tanh fused into the conv epilogue (tanh is monotonic: tanh∘maxpool == maxpool∘tanh)
    x = conv_bn_act(x, prep["c1"], act="tanh", pad=0)      # (B, 4, 4, 128)
    x = maxpool2(x)                                        # (B, 2, 2, 128)

    # ---- conv2: Conv(2C->4C,k3,pad1) + Dropout(p=0) + BN + MaxPool2 + Tanh ----
    x = conv_bn_act(x, prep["c2"], act="tanh", pad=1)      # (B, 2, 2, 128)
    x = maxpool2(x)                                        # (B, 1, 1, 128)

    # flatten: spatial is 1x1 and 4C == 128 fills the lanes exactly.
    x = x.reshape(x.shape[0], -1)                          # (B, 128)

    # ---- fused fc1(relu) -> fc2(tanh) -> fc3 ----------------------------------
    # TODO(synk): reference declares fc2 = Linear(in_features, 256), which is
    # dimensionally inconsistent with fc1's 1024-d output; fc2 here takes 1024.
    x1, x2 = fc_chain(x, prep)                             # (B, 256), (B, 128)
    return x1, x2[:, :out_features]


# --------------------------- Main ---------------------------------------------

if __name__ == "__main__":
    key = jax.random.PRNGKey(0)
    pkey, xkey = jax.random.split(key)
    params = init_params(pkey, in_features=32, out_features=16)
    prep = prepare_params(params, in_features=32, out_features=16)
    x = jax.random.normal(xkey, (2, 3, 24, 24), jnp.float32)  # NCHW, like PyTorch

    fwd = jax.jit(functools.partial(custom_resnet4_forward, out_features=16))
    x1, x2 = fwd(prep, x)
    jax.block_until_ready((x1, x2))

    assert x1.shape == (2, 256), x1.shape
    assert x2.shape == (2, 16), x2.shape
    assert jnp.all(jnp.isfinite(x1)) and jnp.all(jnp.isfinite(x2))
    print("KERNEL_OK")
</pallas_src>

<mosaic_0001>
module attributes {stable_mosaic.version = 11 : i64} {
  func.func @_mm_bias_act_kernel(%arg0: i32, %arg1: memref<1152x128xbf16, #tpu.memory_space<vmem>>, %arg2: memref<128x128xbf16, #tpu.memory_space<vmem>>, %arg3: memref<1x128xf32, #tpu.memory_space<vmem>>, %arg4: memref<1152x128xbf16, #tpu.memory_space<vmem>>) attributes {dimension_semantics = [#tpu.dimension_semantics<arbitrary>], iteration_bounds = array<i64: 1>, scalar_prefetch = 0 : i64, scratch_operands = 0 : i64, tpu.core_type = #tpu.core_type<tc>, window_params = [{pipeline_mode = #tpu.pipeline_mode<synchronous>, transform_indices = @transform_0, window_bounds = array<i64: 1152, 128>}, {pipeline_mode = #tpu.pipeline_mode<synchronous>, transform_indices = @transform_1, window_bounds = array<i64: 128, 128>}, {pipeline_mode = #tpu.pipeline_mode<synchronous>, transform_indices = @transform_2, window_bounds = array<i64: 1, 128>}, {pipeline_mode = #tpu.pipeline_mode<synchronous>, transform_indices = @transform_3, window_bounds = array<i64: 1152, 128>}]} {
    %c0 = arith.constant 0 : index
    %c0_0 = arith.constant 0 : index
    %0 = vector.load %arg1[%c0, %c0_0] : memref<1152x128xbf16, #tpu.memory_space<vmem>>, vector<1152x128xbf16>
    %c0_1 = arith.constant 0 : index
    %c0_2 = arith.constant 0 : index
    %1 = vector.load %arg2[%c0_1, %c0_2] : memref<128x128xbf16, #tpu.memory_space<vmem>>, vector<128x128xbf16>
    %cst = arith.constant dense<0.000000e+00> : vector<1152x128xf32>
    %2 = tpu.matmul %0, %1, %cst {dimension_numbers = #tpu.dot_dimension_numbers<[1], [0], [0], [1], [0, 0, 1, 1], [], []>} : vector<1152x128xbf16>, vector<128x128xbf16>, vector<1152x128xf32> -> vector<1152x128xf32>
    %c0_3 = arith.constant 0 : index
    %c0_4 = arith.constant 0 : index
    %3 = vector.load %arg3[%c0_3, %c0_4] : memref<1x128xf32, #tpu.memory_space<vmem>>, vector<1x128xf32>
    %4 = vector.broadcast %3 : vector<1x128xf32> to vector<1152x128xf32>
    %5 = arith.addf %2, %4 : vector<1152x128xf32>
    %cst_5 = arith.constant 0.000000e+00 : f32
    %6 = vector.broadcast %cst_5 : f32 to vector<1152x128xf32>
    %7 = arith.maximumf %5, %6 : vector<1152x128xf32>
    %8 = arith.truncf %7 : vector<1152x128xf32> to vector<1152x128xbf16>
    %c0_6 = arith.constant 0 : index
    %c0_7 = arith.constant 0 : index
    %9 = vector.load %arg4[%c0_6, %c0_7] : memref<1152x128xbf16, #tpu.memory_space<vmem>>, vector<1152x128xbf16>
    tpu.vector_store %arg4[%c0_6, %c0_7], %8 {strides = array<i32>} : memref<1152x128xbf16, #tpu.memory_space<vmem>>, vector<1152x128xbf16>,
    return
  }
  func.func @transform_0(%arg0: i32) -> (i32, i32) {
    %c0_i32 = arith.constant 0 : i32
    %c0_i32_0 = arith.constant 0 : i32
    %c0_i32_1 = arith.constant 0 : i32
    return %c0_i32, %c0_i32_0 : i32, i32
  }
  func.func @transform_1(%arg0: i32) -> (i32, i32) {
    %c0_i32 = arith.constant 0 : i32
    %c0_i32_0 = arith.constant 0 : i32
    %c0_i32_1 = arith.constant 0 : i32
    return %c0_i32, %c0_i32_0 : i32, i32
  }
  func.func @transform_2(%arg0: i32) -> (i32, i32) {
    %c0_i32 = arith.constant 0 : i32
    %c0_i32_0 = arith.constant 0 : i32
    %c0_i32_1 = arith.constant 0 : i32
    return %c0_i32, %c0_i32_0 : i32, i32
  }
  func.func @transform_3(%arg0: i32) -> (i32, i32) {
    %c0_i32 = arith.constant 0 : i32
    %c0_i32_0 = arith.constant 0 : i32
    %c0_i32_1 = arith.constant 0 : i32
    return %c0_i32, %c0_i32_0 : i32, i32
  }
}

module attributes {stable_mosaic.version = 11 : i64} {
  func.func @_mm_bias_act_kernel(%arg0: i32, %arg1: memref<288x1152xbf16, #tpu.memory_space<vmem>>, %arg2: memref<1152x128xbf16, #tpu.memory_space<vmem>>, %arg3: memref<1x128xf32, #tpu.memory_space<vmem>>, %arg4: memref<288x128xbf16, #tpu.memory_space<vmem>>) attributes {dimension_semantics = [#tpu.dimension_semantics<arbitrary>], iteration_bounds = array<i64: 1>, scalar_prefetch = 0 : i64, scratch_operands = 0 : i64, tpu.core_type = #tpu.core_type<tc>, window_params = [{pipeline_mode = #tpu.pipeline_mode<synchronous>, transform_indices = @transform_0, window_bounds = array<i64: 288, 1152>}, {pipeline_mode = #tpu.pipeline_mode<synchronous>, transform_indices = @transform_1, window_bounds = array<i64: 1152, 128>}, {pipeline_mode = #tpu.pipeline_mode<synchronous>, transform_indices = @transform_2, window_bounds = array<i64: 1, 128>}, {pipeline_mode = #tpu.pipeline_mode<synchronous>, transform_indices = @transform_3, window_bounds = array<i64: 288, 128>}]} {
    %c0 = arith.constant 0 : index
    %c0_0 = arith.constant 0 : index
    %0 = vector.load %arg1[%c0, %c0_0] : memref<288x1152xbf16, #tpu.memory_space<vmem>>, vector<288x1152xbf16>
    %c0_1 = arith.constant 0 : index
    %c0_2 = arith.constant 0 : index
    %1 = vector.load %arg2[%c0_1, %c0_2] : memref<1152x128xbf16, #tpu.memory_space<vmem>>, vector<1152x128xbf16>
    %cst = arith.constant dense<0.000000e+00> : vector<288x128xf32>
    %2 = tpu.matmul %0, %1, %cst {dimension_numbers = #tpu.dot_dimension_numbers<[1], [0], [0], [1], [0, 0, 1, 1], [], []>} : vector<288x1152xbf16>, vector<1152x128xbf16>, vector<288x128xf32> -> vector<288x128xf32>
    %c0_3 = arith.constant 0 : index
    %c0_4 = arith.constant 0 : index
    %3 = vector.load %arg3[%c0_3, %c0_4] : memref<1x128xf32, #tpu.memory_space<vmem>>, vector<1x128xf32>
    %4 = vector.broadcast %3 : vector<1x128xf32> to vector<288x128xf32>
    %5 = arith.addf %2, %4 : vector<288x128xf32>
    %cst_5 = arith.constant 0.000000e+00 : f32
    %6 = vector.broadcast %cst_5 : f32 to vector<288x128xf32>
    %7 = arith.maximumf %5, %6 : vector<288x128xf32>
    %8 = arith.truncf %7 : vector<288x128xf32> to vector<288x128xbf16>
    %c0_6 = arith.constant 0 : index
    %c0_7 = arith.constant 0 : index
    %9 = vector.load %arg4[%c0_6, %c0_7] : memref<288x128xbf16, #tpu.memory_space<vmem>>, vector<288x128xbf16>
    tpu.vector_store %arg4[%c0_6, %c0_7], %8 {strides = array<i32>} : memref<288x128xbf16, #tpu.memory_space<vmem>>, vector<288x128xbf16>,
    return
  }
  func.func @transform_0(%arg0: i32) -> (i32, i32) {
    %c0_i32 = arith.constant 0 : i32
    %c0_i32_0 = arith.constant 0 : i32
    %c0_i32_1 = arith.constant 0 : i32
    return %c0_i32, %c0_i32_0 : i32, i32
  }
  func.func @transform_1(%arg0: i32) -> (i32, i32) {
    %c0_i32 = arith.constant 0 : i32
    %c0_i32_0 = arith.constant 0 : i32
    %c0_i32_1 = arith.constant 0 : i32
    return %c0_i32, %c0_i32_0 : i32, i32
  }
  func.func @transform_2(%arg0: i32) -> (i32, i32) {
    %c0_i32 = arith.constant 0 : i32
    %c0_i32_0 = arith.constant 0 : i32
    %c0_i32_1 = arith.constant 0 : i32
    return %c0_i32, %c0_i32_0 : i32, i32
  }
  func.func @transform_3(%arg0: i32) -> (i32, i32) {
    %c0_i32 = arith.constant 0 : i32
    %c0_i32_0 = arith.constant 0 : i32
    %c0_i32_1 = arith.constant 0 : i32
    return %c0_i32, %c0_i32_0 : i32, i32
  }
}

module attributes {stable_mosaic.version = 11 : i64} {
  func.func @_mm_bias_res_relu_kernel(%arg0: i32, %arg1: memref<288x1152xbf16, #tpu.memory_space<vmem>>, %arg2: memref<1152x128xbf16, #tpu.memory_space<vmem>>, %arg3: memref<1x128xf32, #tpu.memory_space<vmem>>, %arg4: memref<288x128xbf16, #tpu.memory_space<vmem>>, %arg5: memref<288x128xbf16, #tpu.memory_space<vmem>>) attributes {dimension_semantics = [#tpu.dimension_semantics<arbitrary>], iteration_bounds = array<i64: 1>, scalar_prefetch = 0 : i64, scratch_operands = 0 : i64, tpu.core_type = #tpu.core_type<tc>, window_params = [{pipeline_mode = #tpu.pipeline_mode<synchronous>, transform_indices = @transform_0, window_bounds = array<i64: 288, 1152>}, {pipeline_mode = #tpu.pipeline_mode<synchronous>, transform_indices = @transform_1, window_bounds = array<i64: 1152, 128>}, {pipeline_mode = #tpu.pipeline_mode<synchronous>, transform_indices = @transform_2, window_bounds = array<i64: 1, 128>}, {pipeline_mode = #tpu.pipeline_mode<synchronous>, transform_indices = @transform_3, window_bounds = array<i64: 288, 128>}, {pipeline_mode = #tpu.pipeline_mode<synchronous>, transform_indices = @transform_4, window_bounds = array<i64: 288, 128>}]} {
    %c0 = arith.constant 0 : index
    %c0_0 = arith.constant 0 : index
    %0 = vector.load %arg1[%c0, %c0_0] : memref<288x1152xbf16, #tpu.memory_space<vmem>>, vector<288x1152xbf16>
    %c0_1 = arith.constant 0 : index
    %c0_2 = arith.constant 0 : index
    %1 = vector.load %arg2[%c0_1, %c0_2] : memref<1152x128xbf16, #tpu.memory_space<vmem>>, vector<1152x128xbf16>
    %cst = arith.constant dense<0.000000e+00> : vector<288x128xf32>
    %2 = tpu.matmul %0, %1, %cst {dimension_numbers = #tpu.dot_dimension_numbers<[1], [0], [0], [1], [0, 0, 1, 1], [], []>} : vector<288x1152xbf16>, vector<1152x128xbf16>, vector<288x128xf32> -> vector<288x128xf32>
    %c0_3 = arith.constant 0 : index
    %c0_4 = arith.constant 0 : index
    %3 = vector.load %arg3[%c0_3, %c0_4] : memref<1x128xf32, #tpu.memory_space<vmem>>, vector<1x128xf32>
    %4 = vector.broadcast %3 : vector<1x128xf32> to vector<288x128xf32>
    %5 = arith.addf %2, %4 : vector<288x128xf32>
    %c0_5 = arith.constant 0 : index
    %c0_6 = arith.constant 0 : index
    %6 = vector.load %arg4[%c0_5, %c0_6] : memref<288x128xbf16, #tpu.memory_space<vmem>>, vector<288x128xbf16>
    %7 = arith.extf %6 : vector<288x128xbf16> to vector<288x128xf32>
    %8 = arith.addf %5, %7 : vector<288x128xf32>
    %cst_7 = arith.constant 0.000000e+00 : f32
    %9 = vector.broadcast %cst_7 : f32 to vector<288x128xf32>
    %10 = arith.maximumf %8, %9 : vector<288x128xf32>
    %11 = arith.truncf %10 : vector<288x128xf32> to vector<288x128xbf16>
    %c0_8 = arith.constant 0 : index
    %c0_9 = arith.constant 0 : index
    %12 = vector.load %arg5[%c0_8, %c0_9] : memref<288x128xbf16, #tpu.memory_space<vmem>>, vector<288x128xbf16>
    tpu.vector_store %arg5[%c0_8, %c0_9], %11 {strides = array<i32>} : memref<288x128xbf16, #tpu.memory_space<vmem>>, vector<288x128xbf16>,
    return
  }
  func.func @transform_0(%arg0: i32) -> (i32, i32) {
    %c0_i32 = arith.constant 0 : i32
    %c0_i32_0 = arith.constant 0 : i32
    %c0_i32_1 = arith.constant 0 : i32
    return %c0_i32, %c0_i32_0 : i32, i32
  }
  func.func @transform_1(%arg0: i32) -> (i32, i32) {
    %c0_i32 = arith.constant 0 : i32
    %c0_i32_0 = arith.constant 0 : i32
    %c0_i32_1 = arith.constant 0 : i32
    return %c0_i32, %c0_i32_0 : i32, i32
  }
  func.func @transform_2(%arg0: i32) -> (i32, i32) {
    %c0_i32 = arith.constant 0 : i32
    %c0_i32_0 = arith.constant 0 : i32
    %c0_i32_1 = arith.constant 0 : i32
    return %c0_i32, %c0_i32_0 : i32, i32
  }
  func.func @transform_3(%arg0: i32) -> (i32, i32) {
    %c0_i32 = arith.constant 0 : i32
    %c0_i32_0 = arith.constant 0 : i32
    %c0_i32_1 = arith.constant 0 : i32
    return %c0_i32, %c0_i32_0 : i32, i32
  }
  func.func @transform_4(%arg0: i32) -> (i32, i32) {
    %c0_i32 = arith.constant 0 : i32
    %c0_i32_0 = arith.constant 0 : i32
    %c0_i32_1 = arith.constant 0 : i32
    return %c0_i32, %c0_i32_0 : i32, i32
  }
}

module attributes {stable_mosaic.version = 11 : i64} {
  func.func @_mm_bias_act_kernel(%arg0: i32, %arg1: memref<32x1152xbf16, #tpu.memory_space<vmem>>, %arg2: memref<1152x128xbf16, #tpu.memory_space<vmem>>, %arg3: memref<1x128xf32, #tpu.memory_space<vmem>>, %arg4: memref<32x128xbf16, #tpu.memory_space<vmem>>) attributes {dimension_semantics = [#tpu.dimension_semantics<arbitrary>], iteration_bounds = array<i64: 1>, scalar_prefetch = 0 : i64, scratch_operands = 0 : i64, tpu.core_type = #tpu.core_type<tc>, window_params = [{pipeline_mode = #tpu.pipeline_mode<synchronous>, transform_indices = @transform_0, window_bounds = array<i64: 32, 1152>}, {pipeline_mode = #tpu.pipeline_mode<synchronous>, transform_indices = @transform_1, window_bounds = array<i64: 1152, 128>}, {pipeline_mode = #tpu.pipeline_mode<synchronous>, transform_indices = @transform_2, window_bounds = array<i64: 1, 128>}, {pipeline_mode = #tpu.pipeline_mode<synchronous>, transform_indices = @transform_3, window_bounds = array<i64: 32, 128>}]} {
    %c0 = arith.constant 0 : index
    %c0_0 = arith.constant 0 : index
    %0 = vector.load %arg1[%c0, %c0_0] : memref<32x1152xbf16, #tpu.memory_space<vmem>>, vector<32x1152xbf16>
    %c0_1 = arith.constant 0 : index
    %c0_2 = arith.constant 0 : index
    %1 = vector.load %arg2[%c0_1, %c0_2] : memref<1152x128xbf16, #tpu.memory_space<vmem>>, vector<1152x128xbf16>
    %cst = arith.constant dense<0.000000e+00> : vector<32x128xf32>
    %2 = tpu.matmul %0, %1, %cst {dimension_numbers = #tpu.dot_dimension_numbers<[1], [0], [0], [1], [0, 0, 1, 1], [], []>} : vector<32x1152xbf16>, vector<1152x128xbf16>, vector<32x128xf32> -> vector<32x128xf32>
    %c0_3 = arith.constant 0 : index
    %c0_4 = arith.constant 0 : index
    %3 = vector.load %arg3[%c0_3, %c0_4] : memref<1x128xf32, #tpu.memory_space<vmem>>, vector<1x128xf32>
    %4 = vector.broadcast %3 : vector<1x128xf32> to vector<32x128xf32>
    %5 = arith.addf %2, %4 : vector<32x128xf32>
    %6 = math.tanh %5 : vector<32x128xf32>
    %7 = arith.truncf %6 : vector<32x128xf32> to vector<32x128xbf16>
    %c0_5 = arith.constant 0 : index
    %c0_6 = arith.constant 0 : index
    %8 = vector.load %arg4[%c0_5, %c0_6] : memref<32x128xbf16, #tpu.memory_space<vmem>>, vector<32x128xbf16>
    tpu.vector_store %arg4[%c0_5, %c0_6], %7 {strides = array<i32>} : memref<32x128xbf16, #tpu.memory_space<vmem>>, vector<32x128xbf16>,
    return
  }
  func.func @transform_0(%arg0: i32) -> (i32, i32) {
    %c0_i32 = arith.constant 0 : i32
    %c0_i32_0 = arith.constant 0 : i32
    %c0_i32_1 = arith.constant 0 : i32
    return %c0_i32, %c0_i32_0 : i32, i32
  }
  func.func @transform_1(%arg0: i32) -> (i32, i32) {
    %c0_i32 = arith.constant 0 : i32
    %c0_i32_0 = arith.constant 0 : i32
    %c0_i32_1 = arith.constant 0 : i32
    return %c0_i32, %c0_i32_0 : i32, i32
  }
  func.func @transform_2(%arg0: i32) -> (i32, i32) {
    %c0_i32 = arith.constant 0 : i32
    %c0_i32_0 = arith.constant 0 : i32
    %c0_i32_1 = arith.constant 0 : i32
    return %c0_i32, %c0_i32_0 : i32, i32
  }
  func.func @transform_3(%arg0: i32) -> (i32, i32) {
    %c0_i32 = arith.constant 0 : i32
    %c0_i32_0 = arith.constant 0 : i32
    %c0_i32_1 = arith.constant 0 : i32
    return %c0_i32, %c0_i32_0 : i32, i32
  }
}

module attributes {stable_mosaic.version = 11 : i64} {
  func.func @_fc_chain_kernel(%arg0: i32, %arg1: memref<8x128xbf16, #tpu.memory_space<vmem>>, %arg2: memref<128x1024xbf16, #tpu.memory_space<vmem>>, %arg3: memref<1x1024xf32, #tpu.memory_space<vmem>>, %arg4: memref<1024x256xbf16, #tpu.memory_space<vmem>>, %arg5: memref<1x256xf32, #tpu.memory_space<vmem>>, %arg6: memref<256x128xbf16, #tpu.memory_space<vmem>>, %arg7: memref<1x128xf32, #tpu.memory_space<vmem>>, %arg8: memref<8x256xf32, #tpu.memory_space<vmem>>, %arg9: memref<8x128xf32, #tpu.memory_space<vmem>>) attributes {dimension_semantics = [#tpu.dimension_semantics<arbitrary>], iteration_bounds = array<i64: 1>, scalar_prefetch = 0 : i64, scratch_operands = 0 : i64, tpu.core_type = #tpu.core_type<tc>, window_params = [{pipeline_mode = #tpu.pipeline_mode<synchronous>, transform_indices = @transform_0, window_bounds = array<i64: 8, 128>}, {pipeline_mode = #tpu.pipeline_mode<synchronous>, transform_indices = @transform_1, window_bounds = array<i64: 128, 1024>}, {pipeline_mode = #tpu.pipeline_mode<synchronous>, transform_indices = @transform_2, window_bounds = array<i64: 1, 1024>}, {pipeline_mode = #tpu.pipeline_mode<synchronous>, transform_indices = @transform_3, window_bounds = array<i64: 1024, 256>}, {pipeline_mode = #tpu.pipeline_mode<synchronous>, transform_indices = @transform_4, window_bounds = array<i64: 1, 256>}, {pipeline_mode = #tpu.pipeline_mode<synchronous>, transform_indices = @transform_5, window_bounds = array<i64: 256, 128>}, {pipeline_mode = #tpu.pipeline_mode<synchronous>, transform_indices = @transform_6, window_bounds = array<i64: 1, 128>}, {pipeline_mode = #tpu.pipeline_mode<synchronous>, transform_indices = @transform_7, window_bounds = array<i64: 8, 256>}, {pipeline_mode = #tpu.pipeline_mode<synchronous>, transform_indices = @transform_8, window_bounds = array<i64: 8, 128>}]} {
    %c0 = arith.constant 0 : index
    %c0_0 = arith.constant 0 : index
    %0 = vector.load %arg1[%c0, %c0_0] : memref<8x128xbf16, #tpu.memory_space<vmem>>, vector<8x128xbf16>
    %c0_1 = arith.constant 0 : index
    %c0_2 = arith.constant 0 : index
    %1 = vector.load %arg2[%c0_1, %c0_2] : memref<128x1024xbf16, #tpu.memory_space<vmem>>, vector<128x1024xbf16>
    %cst = arith.constant dense<0.000000e+00> : vector<8x1024xf32>
    %2 = tpu.matmul %0, %1, %cst {dimension_numbers = #tpu.dot_dimension_numbers<[1], [0], [0], [1], [0, 0, 1, 1], [], []>} : vector<8x128xbf16>, vector<128x1024xbf16>, vector<8x1024xf32> -> vector<8x1024xf32>
    %c0_3 = arith.constant 0 : index
    %c0_4 = arith.constant 0 : index
    %3 = vector.load %arg3[%c0_3, %c0_4] : memref<1x1024xf32, #tpu.memory_space<vmem>>, vector<1x1024xf32>
    %4 = vector.broadcast %3 : vector<1x1024xf32> to vector<8x1024xf32>
    %5 = arith.addf %2, %4 : vector<8x1024xf32>
    %cst_5 = arith.constant 0.000000e+00 : f32
    %6 = vector.broadcast %cst_5 : f32 to vector<8x1024xf32>
    %7 = arith.maximumf %5, %6 : vector<8x1024xf32>
    %8 = arith.truncf %7 : vector<8x1024xf32> to vector<8x1024xbf16>
    %c0_6 = arith.constant 0 : index
    %c0_7 = arith.constant 0 : index
    %9 = vector.load %arg4[%c0_6, %c0_7] : memref<1024x256xbf16, #tpu.memory_space<vmem>>, vector<1024x256xbf16>
    %cst_8 = arith.constant dense<0.000000e+00> : vector<8x256xf32>
    %10 = tpu.matmul %8, %9, %cst_8 {dimension_numbers = #tpu.dot_dimension_numbers<[1], [0], [0], [1], [0, 0, 1, 1], [], []>} : vector<8x1024xbf16>, vector<1024x256xbf16>, vector<8x256xf32> -> vector<8x256xf32>
    %c0_9 = arith.constant 0 : index
    %c0_10 = arith.constant 0 : index
    %11 = vector.load %arg5[%c0_9, %c0_10] : memref<1x256xf32, #tpu.memory_space<vmem>>, vector<1x256xf32>
    %12 = vector.broadcast %11 : vector<1x256xf32> to vector<8x256xf32>
    %13 = arith.addf %10, %12 : vector<8x256xf32>
    %14 = math.tanh %13 : vector<8x256xf32>
    %15 = arith.truncf %14 : vector<8x256xf32> to vector<8x256xbf16>
    %c0_11 = arith.constant 0 : index
    %c0_12 = arith.constant 0 : index
    %16 = vector.load %arg6[%c0_11, %c0_12] : memref<256x128xbf16, #tpu.memory_space<vmem>>, vector<256x128xbf16>
    %cst_13 = arith.constant dense<0.000000e+00> : vector<8x128xf32>
    %17 = tpu.matmul %15, %16, %cst_13 {dimension_numbers = #tpu.dot_dimension_numbers<[1], [0], [0], [1], [0, 0, 1, 1], [], []>} : vector<8x256xbf16>, vector<256x128xbf16>, vector<8x128xf32> -> vector<8x128xf32>
    %c0_14 = arith.constant 0 : index
    %c0_15 = arith.constant 0 : index
    %18 = vector.load %arg8[%c0_14, %c0_15] : memref<8x256xf32, #tpu.memory_space<vmem>>, vector<8x256xf32>
    tpu.vector_store %arg8[%c0_14, %c0_15], %14 {strides = array<i32>} : memref<8x256xf32, #tpu.memory_space<vmem>>, vector<8x256xf32>,
    %c0_16 = arith.constant 0 : index
    %c0_17 = arith.constant 0 : index
    %19 = vector.load %arg7[%c0_16, %c0_17] : memref<1x128xf32, #tpu.memory_space<vmem>>, vector<1x128xf32>
    %20 = vector.broadcast %19 : vector<1x128xf32> to vector<8x128xf32>
    %21 = arith.addf %17, %20 : vector<8x128xf32>
    %c0_18 = arith.constant 0 : index
    %c0_19 = arith.constant 0 : index
    %22 = vector.load %arg9[%c0_18, %c0_19] : memref<8x128xf32, #tpu.memory_space<vmem>>, vector<8x128xf32>
    tpu.vector_store %arg9[%c0_18, %c0_19], %21 {strides = array<i32>} : memref<8x128xf32, #tpu.memory_space<vmem>>, vector<8x128xf32>,
    return
  }
  func.func @transform_0(%arg0: i32) -> (i32, i32) {
    %c0_i32 = arith.constant 0 : i32
    %c0_i32_0 = arith.constant 0 : i32
    %c0_i32_1 = arith.constant 0 : i32
    return %c0_i32, %c0_i32_0 : i32, i32
  }
  func.func @transform_1(%arg0: i32) -> (i32, i32) {
    %c0_i32 = arith.constant 0 : i32
    %c0_i32_0 = arith.constant 0 : i32
    %c0_i32_1 = arith.constant 0 : i32
    return %c0_i32, %c0_i32_0 : i32, i32
  }
  func.func @transform_2(%arg0: i32) -> (i32, i32) {
    %c0_i32 = arith.constant 0 : i32
    %c0_i32_0 = arith.constant 0 : i32
    %c0_i32_1 = arith.constant 0 : i32
    return %c0_i32, %c0_i32_0 : i32, i32
  }
  func.func @transform_3(%arg0: i32) -> (i32, i32) {
    %c0_i32 = arith.constant 0 : i32
    %c0_i32_0 = arith.constant 0 : i32
    %c0_i32_1 = arith.constant 0 : i32
    return %c0_i32, %c0_i32_0 : i32, i32
  }
  func.func @transform_4(%arg0: i32) -> (i32, i32) {
    %c0_i32 = arith.constant 0 : i32
    %c0_i32_0 = arith.constant 0 : i32
    %c0_i32_1 = arith.constant 0 : i32
    return %c0_i32, %c0_i32_0 : i32, i32
  }
  func.func @transform_5(%arg0: i32) -> (i32, i32) {
    %c0_i32 = arith.constant 0 : i32
    %c0_i32_0 = arith.constant 0 : i32
    %c0_i32_1 = arith.constant 0 : i32
    return %c0_i32, %c0_i32_0 : i32, i32
  }
  func.func @transform_6(%arg0: i32) -> (i32, i32) {
    %c0_i32 = arith.constant 0 : i32
    %c0_i32_0 = arith.constant 0 : i32
    %c0_i32_1 = arith.constant 0 : i32
    return %c0_i32, %c0_i32_0 : i32, i32
  }
  func.func @transform_7(%arg0: i32) -> (i32, i32) {
    %c0_i32 = arith.constant 0 : i32
    %c0_i32_0 = arith.constant 0 : i32
    %c0_i32_1 = arith.constant 0 : i32
    return %c0_i32, %c0_i32_0 : i32, i32
  }
  func.func @transform_8(%arg0: i32) -> (i32, i32) {
    %c0_i32 = arith.constant 0 : i32
    %c0_i32_0 = arith.constant 0 : i32
    %c0_i32_1 = arith.constant 0 : i32
    return %c0_i32, %c0_i32_0 : i32, i32
  }
}

module attributes {stable_mosaic.version = 11 : i64} {
  func.func @_mm_bias_act_kernel(%arg0: i32, %arg1: memref<8x1152xbf16, #tpu.memory_space<vmem>>, %arg2: memref<1152x128xbf16, #tpu.memory_space<vmem>>, %arg3: memref<1x128xf32, #tpu.memory_space<vmem>>, %arg4: memref<8x128xbf16, #tpu.memory_space<vmem>>) attributes {dimension_semantics = [#tpu.dimension_semantics<arbitrary>], iteration_bounds = array<i64: 1>, scalar_prefetch = 0 : i64, scratch_operands = 0 : i64, tpu.core_type = #tpu.core_type<tc>, window_params = [{pipeline_mode = #tpu.pipeline_mode<synchronous>, transform_indices = @transform_0, window_bounds = array<i64: 8, 1152>}, {pipeline_mode = #tpu.pipeline_mode<synchronous>, transform_indices = @transform_1, window_bounds = array<i64: 1152, 128>}, {pipeline_mode = #tpu.pipeline_mode<synchronous>, transform_indices = @transform_2, window_bounds = array<i64: 1, 128>}, {pipeline_mode = #tpu.pipeline_mode<synchronous>, transform_indices = @transform_3, window_bounds = array<i64: 8, 128>}]} {
    %c0 = arith.constant 0 : index
    %c0_0 = arith.constant 0 : index
    %0 = vector.load %arg1[%c0, %c0_0] : memref<8x1152xbf16, #tpu.memory_space<vmem>>, vector<8x1152xbf16>
    %c0_1 = arith.constant 0 : index
    %c0_2 = arith.constant 0 : index
    %1 = vector.load %arg2[%c0_1, %c0_2] : memref<1152x128xbf16, #tpu.memory_space<vmem>>, vector<1152x128xbf16>
    %cst = arith.constant dense<0.000000e+00> : vector<8x128xf32>
    %2 = tpu.matmul %0, %1, %cst {dimension_numbers = #tpu.dot_dimension_numbers<[1], [0], [0], [1], [0, 0, 1, 1], [], []>} : vector<8x1152xbf16>, vector<1152x128xbf16>, vector<8x128xf32> -> vector<8x128xf32>
    %c0_3 = arith.constant 0 : index
    %c0_4 = arith.constant 0 : index
    %3 = vector.load %arg3[%c0_3, %c0_4] : memref<1x128xf32, #tpu.memory_space<vmem>>, vector<1x128xf32>
    %4 = vector.broadcast %3 : vector<1x128xf32> to vector<8x128xf32>
    %5 = arith.addf %2, %4 : vector<8x128xf32>
    %6 = math.tanh %5 : vector<8x128xf32>
    %7 = arith.truncf %6 : vector<8x128xf32> to vector<8x128xbf16>
    %c0_5 = arith.constant 0 : index
    %c0_6 = arith.constant 0 : index
    %8 = vector.load %arg4[%c0_5, %c0_6] : memref<8x128xbf16, #tpu.memory_space<vmem>>, vector<8x128xbf16>
    tpu.vector_store %arg4[%c0_5, %c0_6], %7 {strides = array<i32>} : memref<8x128xbf16, #tpu.memory_space<vmem>>, vector<8x128xbf16>,
    return
  }
  func.func @transform_0(%arg0: i32) -> (i32, i32) {
    %c0_i32 = arith.constant 0 : i32
    %c0_i32_0 = arith.constant 0 : i32
    %c0_i32_1 = arith.constant 0 : i32
    return %c0_i32, %c0_i32_0 : i32, i32
  }
  func.func @transform_1(%arg0: i32) -> (i32, i32) {
    %c0_i32 = arith.constant 0 : i32
    %c0_i32_0 = arith.constant 0 : i32
    %c0_i32_1 = arith.constant 0 : i32
    return %c0_i32, %c0_i32_0 : i32, i32
  }
  func.func @transform_2(%arg0: i32) -> (i32, i32) {
    %c0_i32 = arith.constant 0 : i32
    %c0_i32_0 = arith.constant 0 : i32
    %c0_i32_1 = arith.constant 0 : i32
    return %c0_i32, %c0_i32_0 : i32, i32
  }
  func.func @transform_3(%arg0: i32) -> (i32, i32) {
    %c0_i32 = arith.constant 0 : i32
    %c0_i32_0 = arith.constant 0 : i32
    %c0_i32_1 = arith.constant 0 : i32
    return %c0_i32, %c0_i32_0 : i32, i32
  }
}

</mosaic_0001>

<bundles_post_ra>
// kernel: custom_resnet4_forward.6
= control target key start
LH: loop header
LB: loop body
LE: loop exit
PB: predicated region body
PF: predicated region fallthrough
CT: control target
= control target key end

     0   :  { %s2950_s1 = inlined_call_operand.vmem [shape: bf16[128,128], index: 1, kind: input, shape index: {}]   ;;  %s2951_s2 = inlined_call_operand.vmem [shape: f32[1,128], index: 2, kind: input, shape index: {}]   ;;  %s2952_s0 = inlined_call_operand.vmem [shape: bf16[1152,128], index: 0, kind: input, shape index: {}]   ;;  %s2953_s3 = inlined_call_operand.vmem [shape: bf16[1152,128], index: 3, kind: output, shape index: {}]  }
   0x1   :  { %v1862_v0 = vld [vmem:[%s2950_s1 + $0x38] sm:$0xff]  ;;  %v1861_v1 = vld [vmem:[%s2950_s1 + $0x30] sm:$0xff]  ;;  %v1860_v2 = vld [vmem:[%s2950_s1 + $0x28] sm:$0xff] }
   0x2   :  { %658 = vmatpush.bf16.msra.mxu0 %v1862_v0  ;;  %2294 = vmatpush.bf16.msra.mxu1 %v1862_v0  ;;  %v1859_v3 = vld [vmem:[%s2950_s1 + $0x20] sm:$0xff]  ;;  %v1858_v4 = vld [vmem:[%s2950_s1 + $0x18] sm:$0xff]  ;;  %v1857_v5 = vld [vmem:[%s2950_s1 + $0x10] sm:$0xff] }
   0x3   :  { %2295 = vmatpush.bf16.msra.mxu2 %v1862_v0  ;;  %2296 = vmatpush.bf16.msra.mxu3 %v1862_v0  ;;  %v1856_v6 = vld [vmem:[%s2950_s1 + $0x8] sm:$0xff]  ;;  %v1855_v7 = vld [vmem:[%s2950_s1] sm:$0xff]  ;;  %v1801_v9 = vld [vmem:[%s2952_s0 + $0x90] sm:$0xff] }
   0x4   :  { %v1783_v8 = vld [vmem:[%s2952_s0] sm:$0xff]  ;;  %v1837_v11 = vld [vmem:[%s2952_s0 + $0x1b0] sm:$0xff]  ;;  %v1784_v12 = vld [vmem:[%s2952_s0 + $0x8] sm:$0xff] }
   0x5   :  { %v1819_v10 = vld [vmem:[%s2952_s0 + $0x120] sm:$0xff]  ;;  %v1802_v13 = vld [vmem:[%s2952_s0 + $0x98] sm:$0xff]  ;;  %v1820_v14 = vld [vmem:[%s2952_s0 + $0x128] sm:$0xff] }
   0x6   :  { %659 = vmatpush.bf16.msra.mxu0 %v1861_v1  ;;  %2297 = vmatpush.bf16.msra.mxu1 %v1861_v1  ;;  %v1838_v15 = vld [vmem:[%s2952_s0 + $0x1b8] sm:$0xff]  ;;  %v1785_v16 = vld [vmem:[%s2952_s0 + $0x10] sm:$0xff]  ;;  %v1803_v17 = vld [vmem:[%s2952_s0 + $0xa0] sm:$0xff] }
   0x7   :  { %2298 = vmatpush.bf16.msra.mxu2 %v1861_v1  ;;  %2299 = vmatpush.bf16.msra.mxu3 %v1861_v1  ;;  %v1821_v18 = vld [vmem:[%s2952_s0 + $0x130] sm:$0xff]  ;;  %v1839_v19 = vld [vmem:[%s2952_s0 + $0x1c0] sm:$0xff]  ;;  %v1786_v20 = vld [vmem:[%s2952_s0 + $0x18] sm:$0xff] }
   0x8   :  { %v1804_v21 = vld [vmem:[%s2952_s0 + $0xa8] sm:$0xff]  ;;  %v1822_v22 = vld [vmem:[%s2952_s0 + $0x138] sm:$0xff]  ;;  %v1787_v24 = vld [vmem:[%s2952_s0 + $0x20] sm:$0xff] }
   0x9   :  { %v1840_v23 = vld [vmem:[%s2952_s0 + $0x1c8] sm:$0xff]  ;;  %v1805_v25 = vld [vmem:[%s2952_s0 + $0xb0] sm:$0xff]  ;;  %v1823_v26 = vld [vmem:[%s2952_s0 + $0x140] sm:$0xff] }
   0xa   :  { %660 = vmatpush.bf16.msra.mxu0 %v1860_v2  ;;  %2300 = vmatpush.bf16.msra.mxu1 %v1860_v2  ;;  %v1841_v27 = vld [vmem:[%s2952_s0 + $0x1d0] sm:$0xff]  ;;  %v1788_v28 = vld [vmem:[%s2952_s0 + $0x28] sm:$0xff]  ;;  %v1806_v29 = vld [vmem:[%s2952_s0 + $0xb8] sm:$0xff] }
   0xb   :  { %2301 = vmatpush.bf16.msra.mxu2 %v1860_v2  ;;  %2302 = vmatpush.bf16.msra.mxu3 %v1860_v2  ;;  %v1824_v30 = vld [vmem:[%s2952_s0 + $0x148] sm:$0xff]  ;;  %v1842_v31 = vld [vmem:[%s2952_s0 + $0x1d8] sm:$0xff]  ;;  %v1789_v32 = vld [vmem:[%s2952_s0 + $0x30] sm:$0xff] }
   0xc   :  { %v1807_v33 = vld [vmem:[%s2952_s0 + $0xc0] sm:$0xff]  ;;  %v1825_v34 = vld [vmem:[%s2952_s0 + $0x150] sm:$0xff]  ;;  %v1790_v36 = vld [vmem:[%s2952_s0 + $0x38] sm:$0xff] }
   0xd   :  { %v1843_v35 = vld [vmem:[%s2952_s0 + $0x1e0] sm:$0xff]  ;;  %v1808_v37 = vld [vmem:[%s2952_s0 + $0xc8] sm:$0xff]  ;;  %v1826_v38 = vld [vmem:[%s2952_s0 + $0x158] sm:$0xff] }
   0xe   :  { %661 = vmatpush.bf16.msra.mxu0 %v1859_v3  ;;  %2303 = vmatpush.bf16.msra.mxu1 %v1859_v3  ;;  %v1844_v39 = vld [vmem:[%s2952_s0 + $0x1e8] sm:$0xff]  ;;  %v1791_v40 = vld [vmem:[%s2952_s0 + $0x40] sm:$0xff]  ;;  %v1809_v41 = vld [vmem:[%s2952_s0 + $0xd0] sm:$0xff] }
   0xf   :  { %2304 = vmatpush.bf16.msra.mxu2 %v1859_v3  ;;  %2305 = vmatpush.bf16.msra.mxu3 %v1859_v3  ;;  %v1827_v44 = vld [vmem:[%s2952_s0 + $0x160] sm:$0xff]  ;;  %v1845_v45 = vld [vmem:[%s2952_s0 + $0x1f0] sm:$0xff]  ;;  %v1792_v1 = vld [vmem:[%s2952_s0 + $0x48] sm:$0xff] }
  0x10   :  { %v2475_v46 = vld [vmem:[%s2951_s2] ss:$0 sm:$0xff]  ;;  %v1810_v2 = vld [vmem:[%s2952_s0 + $0xd8] sm:$0xff] }
  0x12   :  { %662 = vmatpush.bf16.msra.mxu0 %v1858_v4  ;;  %2306 = vmatpush.bf16.msra.mxu1 %v1858_v4 }
  0x13   :  { %2307 = vmatpush.bf16.msra.mxu2 %v1858_v4  ;;  %2308 = vmatpush.bf16.msra.mxu3 %v1858_v4 }
  0x16   :  { %663 = vmatpush.bf16.msra.mxu0 %v1857_v5  ;;  %2309 = vmatpush.bf16.msra.mxu1 %v1857_v5 }
  0x17   :  { %2310 = vmatpush.bf16.msra.mxu2 %v1857_v5  ;;  %2311 = vmatpush.bf16.msra.mxu3 %v1857_v5 }
  0x1a   :  { %664 = vmatpush.bf16.msra.mxu0 %v1856_v6  ;;  %2312 = vmatpush.bf16.msra.mxu1 %v1856_v6 }
  0x1b   :  { %2313 = vmatpush.bf16.msra.mxu2 %v1856_v6  ;;  %2314 = vmatpush.bf16.msra.mxu3 %v1856_v6 }
  0x1e   :  { %665 = vmatpush.bf16.msra.mxu0 %v1855_v7  ;;  %2315 = vmatpush.bf16.msra.mxu1 %v1855_v7 }
  0x1f   :  { %2316 = vmatpush.bf16.msra.mxu2 %v1855_v7  ;;  %2317 = vmatpush.bf16.msra.mxu3 %v1855_v7  ;;  %v1828_v7 = vld [vmem:[%s2952_s0 + $0x168] sm:$0xff] }
  0x21   :  { %666 = vmatmul.bf16.vlgmr.msra.gmra.mxu0 %v1783_v8  ;;  %756 = vmatmul.bf16.vlgmr.msra.gmra.mxu1 %v1801_v9  ;;  %v1846_v8 = vld [vmem:[%s2952_s0 + $0x1f8] sm:$0xff] }
  0x22   :  { %846 = vmatmul.bf16.vlgmr.msra.gmra.mxu2 %v1819_v10  ;;  %936 = vmatmul.bf16.vlgmr.msra.gmra.mxu3 %v1837_v11 }
  0x31   :  { %671 = vmatmul.bf16.gmra.mxu0 %v1784_v12  ;;  %761 = vmatmul.bf16.gmra.mxu1 %v1802_v13 }
  0x32   :  { %851 = vmatmul.bf16.gmra.mxu2 %v1820_v14  ;;  %941 = vmatmul.bf16.gmra.mxu3 %v1838_v15 }
  0x41   :  { %676 = vmatmul.bf16.gmra.mxu0 %v1785_v16  ;;  %766 = vmatmul.bf16.gmra.mxu1 %v1803_v17 }
  0x42   :  { %856 = vmatmul.bf16.gmra.mxu2 %v1821_v18  ;;  %946 = vmatmul.bf16.gmra.mxu3 %v1839_v19 }
  0x51   :  { %681 = vmatmul.bf16.gmra.mxu0 %v1786_v20  ;;  %771 = vmatmul.bf16.gmra.mxu1 %v1804_v21 }
  0x52   :  { %861 = vmatmul.bf16.gmra.mxu2 %v1822_v22  ;;  %951 = vmatmul.bf16.gmra.mxu3 %v1840_v23 }
  0x61   :  { %686 = vmatmul.bf16.gmra.mxu0 %v1787_v24  ;;  %776 = vmatmul.bf16.gmra.mxu1 %v1805_v25 }
  0x62   :  { %866 = vmatmul.bf16.gmra.mxu2 %v1823_v26  ;;  %956 = vmatmul.bf16.gmra.mxu3 %v1841_v27 }
  0x71   :  { %691 = vmatmul.bf16.gmra.mxu0 %v1788_v28  ;;  %781 = vmatmul.bf16.gmra.mxu1 %v1806_v29 }
  0x72   :  { %871 = vmatmul.bf16.gmra.mxu2 %v1824_v30  ;;  %961 = vmatmul.bf16.gmra.mxu3 %v1842_v31 }
  0x81   :  { %696 = vmatmul.bf16.gmra.mxu0 %v1789_v32  ;;  %786 = vmatmul.bf16.gmra.mxu1 %v1807_v33  ;;  %v1793_v33 = vld [vmem:[%s2952_s0 + $0x50] sm:$0xff] }
  0x82   :  { %876 = vmatmul.bf16.gmra.mxu2 %v1825_v34  ;;  %966 = vmatmul.bf16.gmra.mxu3 %v1843_v35  ;;  %v1811_v34 = vld [vmem:[%s2952_s0 + $0xe0] sm:$0xff] }
  0x91   :  { %701 = vmatmul.bf16.gmra.mxu0 %v1790_v36  ;;  %791 = vmatmul.bf16.gmra.mxu1 %v1808_v37 }
  0x92   :  { %881 = vmatmul.bf16.gmra.mxu2 %v1826_v38  ;;  %971 = vmatmul.bf16.gmra.mxu3 %v1844_v39  ;;  %v1829_v39 = vld [vmem:[%s2952_s0 + $0x170] sm:$0xff] }
  0x9e   :  { %v667_v42 = vpop.f32.mrf.mxu0  ;;  %v757_v43 = vpop.f32.mrf.mxu1 }
  0x9f   :  { %v668_v47 = vadd.f32 %v2475_v46, %v667_v42  ;;  %v758_v48 = vadd.f32 %v2475_v46, %v757_v43 }
  0xa1   :  { %706 = vmatmul.bf16.gmra.mxu0 %v1791_v40  ;;  %796 = vmatmul.bf16.gmra.mxu1 %v1809_v41  ;;  %v1027_v55 = vmax.f32 %v668_v47, 0.0  ;;  %v1063_v56 = vmax.f32 %v758_v48, 0.0  ;;  %v1847_v40 = vld [vmem:[%s2952_s0 + $0x200] sm:$0xff] }
  0xa2   :  { %886 = vmatmul.bf16.gmra.mxu2 %v1827_v44  ;;  %976 = vmatmul.bf16.gmra.mxu3 %v1845_v45 }
  0xa5   :  { %v847_v49 = vpop.f32.mrf.mxu2  ;;  %v937_v50 = vpop.f32.mrf.mxu3 }
  0xa6   :  { %v669_v51 = vpop.f32.mrf.mxu0  ;;  %v759_v52 = vpop.f32.mrf.mxu1  ;;  %v848_v61 = vadd.f32 %v2475_v46, %v847_v49  ;;  %v938_v62 = vadd.f32 %v2475_v46, %v937_v50 }
  0xa7   :  { %v670_v53 = vadd.f32 %v2475_v46, %v669_v51  ;;  %v760_v54 = vadd.f32 %v2475_v46, %v759_v52 }
  0xa8   :  { %v1099_v9 = vmax.f32 %v848_v61, 0.0  ;;  %v1135_v10 = vmax.f32 %v938_v62, 0.0 }
  0xa9   :  { %v1028_v57 = vmax.f32 %v670_v53, 0.0  ;;  %v1064_v58 = vmax.f32 %v760_v54, 0.0 }
  0xab   :  { %v1866_v59 = vpack.c.bf16 %v1028_v57, %v1027_v55  ;;  %v1956_v60 = vpack.c.bf16 %v1064_v58, %v1063_v56 }
  0xad   :  { %1867 = vst [vmem:[%s2953_s3] sm:$0xff] %v1866_v59   ;;  %v849_v63 = vpop.f32.mrf.mxu2  ;;  %v939_v0 = vpop.f32.mrf.mxu3 }
  0xae   :  { %2240 = vst [vmem:[%s2953_s3 + $0x90] sm:$0xff] %v1956_v60   ;;  %v850_v3 = vadd.f32 %v2475_v46, %v849_v63  ;;  %v940_v4 = vadd.f32 %v2475_v46, %v939_v0  ;;  %v672_v5 = vpop.f32.mrf.mxu0  ;;  %v762_v6 = vpop.f32.mrf.mxu1 }
  0xaf   :  { %v673_v15 = vadd.f32 %v2475_v46, %v672_v5  ;;  %v763_v16 = vadd.f32 %v2475_v46, %v762_v6 }
  0xb0   :  { %v1100_v11 = vmax.f32 %v850_v3, 0.0  ;;  %v1136_v12 = vmax.f32 %v940_v4, 0.0  ;;  %v1812_v3 = vld [vmem:[%s2952_s0 + $0xe8] sm:$0xff] }
  0xb1   :  { %711 = vmatmul.bf16.gmra.mxu0 %v1792_v1  ;;  %801 = vmatmul.bf16.gmra.mxu1 %v1810_v2  ;;  %v1029_v23 = vmax.f32 %v673_v15, 0.0  ;;  %v1065_v24 = vmax.f32 %v763_v16, 0.0  ;;  %v1794_v2 = vld [vmem:[%s2952_s0 + $0x58] sm:$0xff] }
  0xb2   :  { %v2046_v13 = vpack.c.bf16 %v1100_v11, %v1099_v9  ;;  %v2136_v14 = vpack.c.bf16 %v1136_v12, %v1135_v10  ;;  %891 = vmatmul.bf16.gmra.mxu2 %v1828_v7  ;;  %981 = vmatmul.bf16.gmra.mxu3 %v1846_v8  ;;  %v1830_v8 = vld [vmem:[%s2952_s0 + $0x178] sm:$0xff]  ;;  %v1848_v9 = vld [vmem:[%s2952_s0 + $0x208] sm:$0xff] }
  0xb4   :  { %2258 = vst [vmem:[%s2953_s3 + $0x120] sm:$0xff] %v2046_v13  }
  0xb5   :  { %2276 = vst [vmem:[%s2953_s3 + $0x1b0] sm:$0xff] %v2136_v14   ;;  %v852_v17 = vpop.f32.mrf.mxu2  ;;  %v942_v18 = vpop.f32.mrf.mxu3 }
  0xb6   :  { %v674_v19 = vpop.f32.mrf.mxu0  ;;  %v764_v20 = vpop.f32.mrf.mxu1  ;;  %v853_v29 = vadd.f32 %v2475_v46, %v852_v17  ;;  %v943_v30 = vadd.f32 %v2475_v46, %v942_v18 }
  0xb7   :  { %v675_v21 = vadd.f32 %v2475_v46, %v674_v19  ;;  %v765_v22 = vadd.f32 %v2475_v46, %v764_v20 }
  0xb8   :  { %v1101_v41 = vmax.f32 %v853_v29, 0.0  ;;  %v1137_v42 = vmax.f32 %v943_v30, 0.0 }
  0xb9   :  { %v1030_v25 = vmax.f32 %v675_v21, 0.0  ;;  %v1066_v26 = vmax.f32 %v765_v22, 0.0 }
  0xbb   :  { %v1871_v27 = vpack.c.bf16 %v1030_v25, %v1029_v23  ;;  %v1961_v28 = vpack.c.bf16 %v1066_v26, %v1065_v24 }
  0xbd   :  { %2223 = vst [vmem:[%s2953_s3 + $0x8] sm:$0xff] %v1871_v27   ;;  %v854_v31 = vpop.f32.mrf.mxu2  ;;  %v944_v32 = vpop.f32.mrf.mxu3 }
  0xbe   :  { %2241 = vst [vmem:[%s2953_s3 + $0x98] sm:$0xff] %v1961_v28   ;;  %v855_v35 = vadd.f32 %v2475_v46, %v854_v31  ;;  %v945_v36 = vadd.f32 %v2475_v46, %v944_v32  ;;  %v677_v37 = vpop.f32.mrf.mxu0  ;;  %v767_v38 = vpop.f32.mrf.mxu1 }
  0xbf   :  { %v678_v48 = vadd.f32 %v2475_v46, %v677_v37  ;;  %v768_v49 = vadd.f32 %v2475_v46, %v767_v38 }
  0xc0   :  { %v1102_v43 = vmax.f32 %v855_v35, 0.0  ;;  %v1138_v44 = vmax.f32 %v945_v36, 0.0  ;;  %v1813_v35 = vld [vmem:[%s2952_s0 + $0xf0] sm:$0xff] }
  0xc1   :  { %716 = vmatmul.bf16.gmra.mxu0 %v1793_v33  ;;  %806 = vmatmul.bf16.gmra.mxu1 %v1811_v34  ;;  %v1031_v56 = vmax.f32 %v678_v48, 0.0  ;;  %v1067_v57 = vmax.f32 %v768_v49, 0.0  ;;  %v1795_v34 = vld [vmem:[%s2952_s0 + $0x60] sm:$0xff] }
  0xc2   :  { %v2051_v45 = vpack.c.bf16 %v1102_v43, %v1101_v41  ;;  %v2141_v47 = vpack.c.bf16 %v1138_v44, %v1137_v42  ;;  %896 = vmatmul.bf16.gmra.mxu2 %v1829_v39  ;;  %986 = vmatmul.bf16.gmra.mxu3 %v1847_v40  ;;  %v1831_v40 = vld [vmem:[%s2952_s0 + $0x180] sm:$0xff]  ;;  %v1849_v41 = vld [vmem:[%s2952_s0 + $0x210] sm:$0xff] }
  0xc4   :  { %2259 = vst [vmem:[%s2953_s3 + $0x128] sm:$0xff] %v2051_v45  }
  0xc5   :  { %2277 = vst [vmem:[%s2953_s3 + $0x1b8] sm:$0xff] %v2141_v47   ;;  %v857_v50 = vpop.f32.mrf.mxu2  ;;  %v947_v51 = vpop.f32.mrf.mxu3 }
  0xc6   :  { %v679_v52 = vpop.f32.mrf.mxu0  ;;  %v769_v53 = vpop.f32.mrf.mxu1  ;;  %v858_v62 = vadd.f32 %v2475_v46, %v857_v50  ;;  %v948_v63 = vadd.f32 %v2475_v46, %v947_v51 }
  0xc7   :  { %v680_v54 = vadd.f32 %v2475_v46, %v679_v52  ;;  %v770_v55 = vadd.f32 %v2475_v46, %v769_v53 }
  0xc8   :  { %v1103_v10 = vmax.f32 %v858_v62, 0.0  ;;  %v1139_v11 = vmax.f32 %v948_v63, 0.0 }
  0xc9   :  { %v1032_v58 = vmax.f32 %v680_v54, 0.0  ;;  %v1068_v59 = vmax.f32 %v770_v55, 0.0 }
  0xcb   :  { %v1876_v60 = vpack.c.bf16 %v1032_v58, %v1031_v56  ;;  %v1966_v61 = vpack.c.bf16 %v1068_v59, %v1067_v57 }
  0xcd   :  { %2224 = vst [vmem:[%s2953_s3 + $0x10] sm:$0xff] %v1876_v60   ;;  %v859_v0 = vpop.f32.mrf.mxu2  ;;  %v949_v1 = vpop.f32.mrf.mxu3 }
  0xce   :  { %2242 = vst [vmem:[%s2953_s3 + $0xa0] sm:$0xff] %v1966_v61   ;;  %v860_v4 = vadd.f32 %v2475_v46, %v859_v0  ;;  %v950_v5 = vadd.f32 %v2475_v46, %v949_v1  ;;  %v682_v6 = vpop.f32.mrf.mxu0  ;;  %v772_v7 = vpop.f32.mrf.mxu1 }
  0xcf   :  { %v683_v16 = vadd.f32 %v2475_v46, %v682_v6  ;;  %v773_v17 = vadd.f32 %v2475_v46, %v772_v7 }
  0xd0   :  { %v1104_v12 = vmax.f32 %v860_v4, 0.0  ;;  %v1140_v13 = vmax.f32 %v950_v5, 0.0  ;;  %v1814_v4 = vld [vmem:[%s2952_s0 + $0xf8] sm:$0xff] }
  0xd1   :  { %721 = vmatmul.bf16.gmra.mxu0 %v1794_v2  ;;  %811 = vmatmul.bf16.gmra.mxu1 %v1812_v3  ;;  %v1033_v24 = vmax.f32 %v683_v16, 0.0  ;;  %v1069_v25 = vmax.f32 %v773_v17, 0.0  ;;  %v1796_v3 = vld [vmem:[%s2952_s0 + $0x68] sm:$0xff] }
  0xd2   :  { %v2056_v14 = vpack.c.bf16 %v1104_v12, %v1103_v10  ;;  %v2146_v15 = vpack.c.bf16 %v1140_v13, %v1139_v11  ;;  %901 = vmatmul.bf16.gmra.mxu2 %v1830_v8  ;;  %991 = vmatmul.bf16.gmra.mxu3 %v1848_v9  ;;  %v1832_v9 = vld [vmem:[%s2952_s0 + $0x188] sm:$0xff]  ;;  %v1850_v10 = vld [vmem:[%s2952_s0 + $0x218] sm:$0xff] }
  0xd4   :  { %2260 = vst [vmem:[%s2953_s3 + $0x130] sm:$0xff] %v2056_v14  }
  0xd5   :  { %2278 = vst [vmem:[%s2953_s3 + $0x1c0] sm:$0xff] %v2146_v15   ;;  %v862_v18 = vpop.f32.mrf.mxu2  ;;  %v952_v19 = vpop.f32.mrf.mxu3 }
  0xd6   :  { %v684_v20 = vpop.f32.mrf.mxu0  ;;  %v774_v21 = vpop.f32.mrf.mxu1  ;;  %v863_v30 = vadd.f32 %v2475_v46, %v862_v18  ;;  %v953_v31 = vadd.f32 %v2475_v46, %v952_v19 }
  0xd7   :  { %v685_v22 = vadd.f32 %v2475_v46, %v684_v20  ;;  %v775_v23 = vadd.f32 %v2475_v46, %v774_v21 }
  0xd8   :  { %v1105_v42 = vmax.f32 %v863_v30, 0.0  ;;  %v1141_v43 = vmax.f32 %v953_v31, 0.0 }
  0xd9   :  { %v1034_v26 = vmax.f32 %v685_v22, 0.0  ;;  %v1070_v27 = vmax.f32 %v775_v23, 0.0 }
  0xdb   :  { %v1881_v28 = vpack.c.bf16 %v1034_v26, %v1033_v24  ;;  %v1971_v29 = vpack.c.bf16 %v1070_v27, %v1069_v25 }
  0xdd   :  { %2225 = vst [vmem:[%s2953_s3 + $0x18] sm:$0xff] %v1881_v28   ;;  %v864_v32 = vpop.f32.mrf.mxu2  ;;  %v954_v33 = vpop.f32.mrf.mxu3 }
  0xde   :  { %2243 = vst [vmem:[%s2953_s3 + $0xa8] sm:$0xff] %v1971_v29   ;;  %v865_v36 = vadd.f32 %v2475_v46, %v864_v32  ;;  %v955_v37 = vadd.f32 %v2475_v46, %v954_v33  ;;  %v687_v38 = vpop.f32.mrf.mxu0  ;;  %v777_v39 = vpop.f32.mrf.mxu1 }
  0xdf   :  { %v688_v49 = vadd.f32 %v2475_v46, %v687_v38  ;;  %v778_v50 = vadd.f32 %v2475_v46, %v777_v39 }
  0xe0   :  { %v1106_v44 = vmax.f32 %v865_v36, 0.0  ;;  %v1142_v45 = vmax.f32 %v955_v37, 0.0  ;;  %v1815_v36 = vld [vmem:[%s2952_s0 + $0x100] sm:$0xff] }
  0xe1   :  { %726 = vmatmul.bf16.gmra.mxu0 %v1795_v34  ;;  %816 = vmatmul.bf16.gmra.mxu1 %v1813_v35  ;;  %v1035_v57 = vmax.f32 %v688_v49, 0.0  ;;  %v1071_v58 = vmax.f32 %v778_v50, 0.0  ;;  %v1797_v35 = vld [vmem:[%s2952_s0 + $0x70] sm:$0xff] }
  0xe2   :  { %v2061_v47 = vpack.c.bf16 %v1106_v44, %v1105_v42  ;;  %v2151_v48 = vpack.c.bf16 %v1142_v45, %v1141_v43  ;;  %906 = vmatmul.bf16.gmra.mxu2 %v1831_v40  ;;  %996 = vmatmul.bf16.gmra.mxu3 %v1849_v41  ;;  %v1833_v41 = vld [vmem:[%s2952_s0 + $0x190] sm:$0xff]  ;;  %v1851_v42 = vld [vmem:[%s2952_s0 + $0x220] sm:$0xff] }
  0xe4   :  { %2261 = vst [vmem:[%s2953_s3 + $0x138] sm:$0xff] %v2061_v47  }
  0xe5   :  { %2279 = vst [vmem:[%s2953_s3 + $0x1c8] sm:$0xff] %v2151_v48   ;;  %v867_v51 = vpop.f32.mrf.mxu2  ;;  %v957_v52 = vpop.f32.mrf.mxu3 }
  0xe6   :  { %v689_v53 = vpop.f32.mrf.mxu0  ;;  %v779_v54 = vpop.f32.mrf.mxu1  ;;  %v868_v63 = vadd.f32 %v2475_v46, %v867_v51  ;;  %v958_v0 = vadd.f32 %v2475_v46, %v957_v52 }
  0xe7   :  { %v690_v55 = vadd.f32 %v2475_v46, %v689_v53  ;;  %v780_v56 = vadd.f32 %v2475_v46, %v779_v54 }
  0xe8   :  { %v1107_v11 = vmax.f32 %v868_v63, 0.0  ;;  %v1143_v12 = vmax.f32 %v958_v0, 0.0 }
  0xe9   :  { %v1036_v59 = vmax.f32 %v690_v55, 0.0  ;;  %v1072_v60 = vmax.f32 %v780_v56, 0.0 }
  0xeb   :  { %v1886_v61 = vpack.c.bf16 %v1036_v59, %v1035_v57  ;;  %v1976_v62 = vpack.c.bf16 %v1072_v60, %v1071_v58 }
  0xed   :  { %2226 = vst [vmem:[%s2953_s3 + $0x20] sm:$0xff] %v1886_v61   ;;  %v869_v1 = vpop.f32.mrf.mxu2  ;;  %v959_v2 = vpop.f32.mrf.mxu3 }
  0xee   :  { %2244 = vst [vmem:[%s2953_s3 + $0xb0] sm:$0xff] %v1976_v62   ;;  %v870_v5 = vadd.f32 %v2475_v46, %v869_v1  ;;  %v960_v6 = vadd.f32 %v2475_v46, %v959_v2  ;;  %v692_v7 = vpop.f32.mrf.mxu0  ;;  %v782_v8 = vpop.f32.mrf.mxu1 }
  0xef   :  { %v693_v17 = vadd.f32 %v2475_v46, %v692_v7  ;;  %v783_v18 = vadd.f32 %v2475_v46, %v782_v8 }
  0xf0   :  { %v1108_v13 = vmax.f32 %v870_v5, 0.0  ;;  %v1144_v14 = vmax.f32 %v960_v6, 0.0  ;;  %v1816_v5 = vld [vmem:[%s2952_s0 + $0x108] sm:$0xff] }
  0xf1   :  { %731 = vmatmul.bf16.gmra.mxu0 %v1796_v3  ;;  %821 = vmatmul.bf16.gmra.mxu1 %v1814_v4  ;;  %v1037_v25 = vmax.f32 %v693_v17, 0.0  ;;  %v1073_v26 = vmax.f32 %v783_v18, 0.0  ;;  %v1798_v4 = vld [vmem:[%s2952_s0 + $0x78] sm:$0xff] }
  0xf2   :  { %v2066_v15 = vpack.c.bf16 %v1108_v13, %v1107_v11  ;;  %v2156_v16 = vpack.c.bf16 %v1144_v14, %v1143_v12  ;;  %911 = vmatmul.bf16.gmra.mxu2 %v1832_v9  ;;  %1001 = vmatmul.bf16.gmra.mxu3 %v1850_v10  ;;  %v1834_v10 = vld [vmem:[%s2952_s0 + $0x198] sm:$0xff]  ;;  %v1852_v11 = vld [vmem:[%s2952_s0 + $0x228] sm:$0xff] }
  0xf4   :  { %2262 = vst [vmem:[%s2953_s3 + $0x140] sm:$0xff] %v2066_v15  }
  0xf5   :  { %2280 = vst [vmem:[%s2953_s3 + $0x1d0] sm:$0xff] %v2156_v16   ;;  %v872_v19 = vpop.f32.mrf.mxu2  ;;  %v962_v20 = vpop.f32.mrf.mxu3 }
  0xf6   :  { %v694_v21 = vpop.f32.mrf.mxu0  ;;  %v784_v22 = vpop.f32.mrf.mxu1  ;;  %v873_v31 = vadd.f32 %v2475_v46, %v872_v19  ;;  %v963_v32 = vadd.f32 %v2475_v46, %v962_v20 }
  0xf7   :  { %v695_v23 = vadd.f32 %v2475_v46, %v694_v21  ;;  %v785_v24 = vadd.f32 %v2475_v46, %v784_v22 }
  0xf8   :  { %v1109_v43 = vmax.f32 %v873_v31, 0.0  ;;  %v1145_v44 = vmax.f32 %v963_v32, 0.0 }
  0xf9   :  { %v1038_v27 = vmax.f32 %v695_v23, 0.0  ;;  %v1074_v28 = vmax.f32 %v785_v24, 0.0 }
  0xfb   :  { %v1891_v29 = vpack.c.bf16 %v1038_v27, %v1037_v25  ;;  %v1981_v30 = vpack.c.bf16 %v1074_v28, %v1073_v26 }
  0xfd   :  { %2227 = vst [vmem:[%s2953_s3 + $0x28] sm:$0xff] %v1891_v29   ;;  %v874_v33 = vpop.f32.mrf.mxu2  ;;  %v964_v34 = vpop.f32.mrf.mxu3 }
  0xfe   :  { %2245 = vst [vmem:[%s2953_s3 + $0xb8] sm:$0xff] %v1981_v30   ;;  %v875_v37 = vadd.f32 %v2475_v46, %v874_v33  ;;  %v965_v38 = vadd.f32 %v2475_v46, %v964_v34  ;;  %v697_v39 = vpop.f32.mrf.mxu0  ;;  %v787_v40 = vpop.f32.mrf.mxu1 }
  0xff   :  { %v698_v50 = vadd.f32 %v2475_v46, %v697_v39  ;;  %v788_v51 = vadd.f32 %v2475_v46, %v787_v40 }
 0x100   :  { %v1110_v45 = vmax.f32 %v875_v37, 0.0  ;;  %v1146_v47 = vmax.f32 %v965_v38, 0.0  ;;  %v1817_v37 = vld [vmem:[%s2952_s0 + $0x110] sm:$0xff] }
 0x101   :  { %736 = vmatmul.bf16.gmra.mxu0 %v1797_v35  ;;  %826 = vmatmul.bf16.gmra.mxu1 %v1815_v36  ;;  %v1039_v58 = vmax.f32 %v698_v50, 0.0  ;;  %v1075_v59 = vmax.f32 %v788_v51, 0.0  ;;  %v1799_v36 = vld [vmem:[%s2952_s0 + $0x80] sm:$0xff] }
 0x102   :  { %v2071_v48 = vpack.c.bf16 %v1110_v45, %v1109_v43  ;;  %v2161_v49 = vpack.c.bf16 %v1146_v47, %v1145_v44  ;;  %916 = vmatmul.bf16.gmra.mxu2 %v1833_v41  ;;  %1006 = vmatmul.bf16.gmra.mxu3 %v1851_v42  ;;  %v1835_v42 = vld [vmem:[%s2952_s0 + $0x1a0] sm:$0xff]  ;;  %v1853_v43 = vld [vmem:[%s2952_s0 + $0x230] sm:$0xff] }
 0x104   :  { %2263 = vst [vmem:[%s2953_s3 + $0x148] sm:$0xff] %v2071_v48  }
 0x105   :  { %2281 = vst [vmem:[%s2953_s3 + $0x1d8] sm:$0xff] %v2161_v49   ;;  %v877_v52 = vpop.f32.mrf.mxu2  ;;  %v967_v53 = vpop.f32.mrf.mxu3 }
 0x106   :  { %v699_v54 = vpop.f32.mrf.mxu0  ;;  %v789_v55 = vpop.f32.mrf.mxu1  ;;  %v878_v0 = vadd.f32 %v2475_v46, %v877_v52  ;;  %v968_v1 = vadd.f32 %v2475_v46, %v967_v53 }
 0x107   :  { %v700_v56 = vadd.f32 %v2475_v46, %v699_v54  ;;  %v790_v57 = vadd.f32 %v2475_v46, %v789_v55 }
 0x108   :  { %v1111_v12 = vmax.f32 %v878_v0, 0.0  ;;  %v1147_v13 = vmax.f32 %v968_v1, 0.0 }
 0x109   :  { %v1040_v60 = vmax.f32 %v700_v56, 0.0  ;;  %v1076_v61 = vmax.f32 %v790_v57, 0.0 }
 0x10b   :  { %v1896_v62 = vpack.c.bf16 %v1040_v60, %v1039_v58  ;;  %v1986_v63 = vpack.c.bf16 %v1076_v61, %v1075_v59 }
 0x10d   :  { %2228 = vst [vmem:[%s2953_s3 + $0x30] sm:$0xff] %v1896_v62   ;;  %v879_v2 = vpop.f32.mrf.mxu2  ;;  %v969_v3 = vpop.f32.mrf.mxu3 }
 0x10e   :  { %2246 = vst [vmem:[%s2953_s3 + $0xc0] sm:$0xff] %v1986_v63   ;;  %v880_v6 = vadd.f32 %v2475_v46, %v879_v2  ;;  %v970_v7 = vadd.f32 %v2475_v46, %v969_v3  ;;  %v702_v8 = vpop.f32.mrf.mxu0  ;;  %v792_v9 = vpop.f32.mrf.mxu1 }
 0x10f   :  { %v703_v18 = vadd.f32 %v2475_v46, %v702_v8  ;;  %v793_v19 = vadd.f32 %v2475_v46, %v792_v9 }
 0x110   :  { %v1112_v14 = vmax.f32 %v880_v6, 0.0  ;;  %v1148_v15 = vmax.f32 %v970_v7, 0.0  ;;  %v1818_v6 = vld [vmem:[%s2952_s0 + $0x118] sm:$0xff] }
 0x111   :  { %741 = vmatmul.bf16.gmra.mxu0 %v1798_v4  ;;  %831 = vmatmul.bf16.gmra.mxu1 %v1816_v5  ;;  %v1041_v26 = vmax.f32 %v703_v18, 0.0  ;;  %v1077_v27 = vmax.f32 %v793_v19, 0.0  ;;  %v1800_v5 = vld [vmem:[%s2952_s0 + $0x88] sm:$0xff] }
 0x112   :  { %v2076_v16 = vpack.c.bf16 %v1112_v14, %v1111_v12  ;;  %v2166_v17 = vpack.c.bf16 %v1148_v15, %v1147_v13  ;;  %921 = vmatmul.bf16.gmra.mxu2 %v1834_v10  ;;  %1011 = vmatmul.bf16.gmra.mxu3 %v1852_v11  ;;  %v1836_v11 = vld [vmem:[%s2952_s0 + $0x1a8] sm:$0xff]  ;;  %v1854_v12 = vld [vmem:[%s2952_s0 + $0x238] sm:$0xff] }
 0x114   :  { %2264 = vst [vmem:[%s2953_s3 + $0x150] sm:$0xff] %v2076_v16  }
 0x115   :  { %2282 = vst [vmem:[%s2953_s3 + $0x1e0] sm:$0xff] %v2166_v17   ;;  %v882_v20 = vpop.f32.mrf.mxu2  ;;  %v972_v21 = vpop.f32.mrf.mxu3 }
 0x116   :  { %v704_v22 = vpop.f32.mrf.mxu0  ;;  %v794_v23 = vpop.f32.mrf.mxu1  ;;  %v883_v32 = vadd.f32 %v2475_v46, %v882_v20  ;;  %v973_v33 = vadd.f32 %v2475_v46, %v972_v21 }
 0x117   :  { %v705_v24 = vadd.f32 %v2475_v46, %v704_v22  ;;  %v795_v25 = vadd.f32 %v2475_v46, %v794_v23 }
 0x118   :  { %v1113_v44 = vmax.f32 %v883_v32, 0.0  ;;  %v1149_v45 = vmax.f32 %v973_v33, 0.0 }
 0x119   :  { %v1042_v28 = vmax.f32 %v705_v24, 0.0  ;;  %v1078_v29 = vmax.f32 %v795_v25, 0.0 }
 0x11b   :  { %v1901_v30 = vpack.c.bf16 %v1042_v28, %v1041_v26  ;;  %v1991_v31 = vpack.c.bf16 %v1078_v29, %v1077_v27 }
 0x11d   :  { %2229 = vst [vmem:[%s2953_s3 + $0x38] sm:$0xff] %v1901_v30   ;;  %v884_v34 = vpop.f32.mrf.mxu2  ;;  %v974_v35 = vpop.f32.mrf.mxu3 }
 0x11e   :  { %2247 = vst [vmem:[%s2953_s3 + $0xc8] sm:$0xff] %v1991_v31   ;;  %v885_v38 = vadd.f32 %v2475_v46, %v884_v34  ;;  %v975_v39 = vadd.f32 %v2475_v46, %v974_v35  ;;  %v707_v40 = vpop.f32.mrf.mxu0  ;;  %v797_v41 = vpop.f32.mrf.mxu1 }
 0x11f   :  { %v708_v51 = vadd.f32 %v2475_v46, %v707_v40  ;;  %v798_v52 = vadd.f32 %v2475_v46, %v797_v41 }
 0x120   :  { %v1114_v47 = vmax.f32 %v885_v38, 0.0  ;;  %v1150_v48 = vmax.f32 %v975_v39, 0.0 }
 0x121   :  { %746 = vmatmul.bf16.gmra.mxu0 %v1799_v36  ;;  %836 = vmatmul.bf16.gmra.mxu1 %v1817_v37  ;;  %v1043_v59 = vmax.f32 %v708_v51, 0.0  ;;  %v1079_v60 = vmax.f32 %v798_v52, 0.0 }
 0x122   :  { %v2081_v49 = vpack.c.bf16 %v1114_v47, %v1113_v44  ;;  %v2171_v50 = vpack.c.bf16 %v1150_v48, %v1149_v45  ;;  %926 = vmatmul.bf16.gmra.mxu2 %v1835_v42  ;;  %1016 = vmatmul.bf16.gmra.mxu3 %v1853_v43 }
 0x124   :  { %2265 = vst [vmem:[%s2953_s3 + $0x158] sm:$0xff] %v2081_v49  }
 0x125   :  { %2283 = vst [vmem:[%s2953_s3 + $0x1e8] sm:$0xff] %v2171_v50   ;;  %v887_v53 = vpop.f32.mrf.mxu2  ;;  %v977_v54 = vpop.f32.mrf.mxu3 }
 0x126   :  { %v709_v55 = vpop.f32.mrf.mxu0  ;;  %v799_v56 = vpop.f32.mrf.mxu1  ;;  %v888_v1 = vadd.f32 %v2475_v46, %v887_v53  ;;  %v978_v2 = vadd.f32 %v2475_v46, %v977_v54 }
 0x127   :  { %v710_v57 = vadd.f32 %v2475_v46, %v709_v55  ;;  %v800_v58 = vadd.f32 %v2475_v46, %v799_v56 }
 0x128   :  { %v1115_v13 = vmax.f32 %v888_v1, 0.0  ;;  %v1151_v14 = vmax.f32 %v978_v2, 0.0 }
 0x129   :  { %v1044_v61 = vmax.f32 %v710_v57, 0.0  ;;  %v1080_v62 = vmax.f32 %v800_v58, 0.0 }
 0x12b   :  { %v1906_v63 = vpack.c.bf16 %v1044_v61, %v1043_v59  ;;  %v1996_v0 = vpack.c.bf16 %v1080_v62, %v1079_v60 }
 0x12d   :  { %2230 = vst [vmem:[%s2953_s3 + $0x40] sm:$0xff] %v1906_v63   ;;  %v889_v3 = vpop.f32.mrf.mxu2  ;;  %v979_v4 = vpop.f32.mrf.mxu3 }
 0x12e   :  { %2248 = vst [vmem:[%s2953_s3 + $0xd0] sm:$0xff] %v1996_v0   ;;  %v890_v7 = vadd.f32 %v2475_v46, %v889_v3  ;;  %v980_v8 = vadd.f32 %v2475_v46, %v979_v4  ;;  %v712_v9 = vpop.f32.mrf.mxu0  ;;  %v802_v10 = vpop.f32.mrf.mxu1 }
 0x12f   :  { %v713_v19 = vadd.f32 %v2475_v46, %v712_v9  ;;  %v803_v20 = vadd.f32 %v2475_v46, %v802_v10 }
 0x130   :  { %v1116_v15 = vmax.f32 %v890_v7, 0.0  ;;  %v1152_v16 = vmax.f32 %v980_v8, 0.0 }
 0x131   :  { %751 = vmatmul.bf16.gmra.mxu0 %v1800_v5  ;;  %841 = vmatmul.bf16.gmra.mxu1 %v1818_v6  ;;  %v1045_v27 = vmax.f32 %v713_v19, 0.0  ;;  %v1081_v28 = vmax.f32 %v803_v20, 0.0 }
 0x132   :  { %v2086_v17 = vpack.c.bf16 %v1116_v15, %v1115_v13  ;;  %v2176_v18 = vpack.c.bf16 %v1152_v16, %v1151_v14  ;;  %931 = vmatmul.bf16.gmra.mxu2 %v1836_v11  ;;  %1021 = vmatmul.bf16.gmra.mxu3 %v1854_v12 }
 0x134   :  { %2266 = vst [vmem:[%s2953_s3 + $0x160] sm:$0xff] %v2086_v17  }
 0x135   :  { %2284 = vst [vmem:[%s2953_s3 + $0x1f0] sm:$0xff] %v2176_v18   ;;  %v892_v21 = vpop.f32.mrf.mxu2  ;;  %v982_v22 = vpop.f32.mrf.mxu3 }
 0x136   :  { %v714_v23 = vpop.f32.mrf.mxu0  ;;  %v804_v24 = vpop.f32.mrf.mxu1  ;;  %v893_v33 = vadd.f32 %v2475_v46, %v892_v21  ;;  %v983_v34 = vadd.f32 %v2475_v46, %v982_v22 }
 0x137   :  { %v715_v25 = vadd.f32 %v2475_v46, %v714_v23  ;;  %v805_v26 = vadd.f32 %v2475_v46, %v804_v24 }
 0x138   :  { %v1117_v41 = vmax.f32 %v893_v33, 0.0  ;;  %v1153_v42 = vmax.f32 %v983_v34, 0.0 }
 0x139   :  { %v1046_v29 = vmax.f32 %v715_v25, 0.0  ;;  %v1082_v30 = vmax.f32 %v805_v26, 0.0 }
 0x13b   :  { %v1911_v31 = vpack.c.bf16 %v1046_v29, %v1045_v27  ;;  %v2001_v32 = vpack.c.bf16 %v1082_v30, %v1081_v28 }
 0x13d   :  { %2231 = vst [vmem:[%s2953_s3 + $0x48] sm:$0xff] %v1911_v31   ;;  %v894_v35 = vpop.f32.mrf.mxu2  ;;  %v984_v36 = vpop.f32.mrf.mxu3 }
 0x13e   :  { %2249 = vst [vmem:[%s2953_s3 + $0xd8] sm:$0xff] %v2001_v32   ;;  %v895_v37 = vadd.f32 %v2475_v46, %v894_v35  ;;  %v985_v38 = vadd.f32 %v2475_v46, %v984_v36  ;;  %v717_v39 = vpop.f32.mrf.mxu0  ;;  %v807_v40 = vpop.f32.mrf.mxu1 }
 0x13f   :  { %v718_v48 = vadd.f32 %v2475_v46, %v717_v39  ;;  %v808_v49 = vadd.f32 %v2475_v46, %v807_v40 }
 0x140   :  { %v1118_v43 = vmax.f32 %v895_v37, 0.0  ;;  %v1154_v44 = vmax.f32 %v985_v38, 0.0 }
 0x141   :  { %v1047_v56 = vmax.f32 %v718_v48, 0.0  ;;  %v1083_v57 = vmax.f32 %v808_v49, 0.0 }
 0x142   :  { %v2091_v45 = vpack.c.bf16 %v1118_v43, %v1117_v41  ;;  %v2181_v47 = vpack.c.bf16 %v1154_v44, %v1153_v42 }
 0x144   :  { %2267 = vst [vmem:[%s2953_s3 + $0x168] sm:$0xff] %v2091_v45  }
 0x145   :  { %2285 = vst [vmem:[%s2953_s3 + $0x1f8] sm:$0xff] %v2181_v47   ;;  %v897_v50 = vpop.f32.mrf.mxu2  ;;  %v987_v51 = vpop.f32.mrf.mxu3 }
 0x146   :  { %v719_v52 = vpop.f32.mrf.mxu0  ;;  %v809_v53 = vpop.f32.mrf.mxu1  ;;  %v898_v62 = vadd.f32 %v2475_v46, %v897_v50  ;;  %v988_v63 = vadd.f32 %v2475_v46, %v987_v51 }
 0x147   :  { %v720_v54 = vadd.f32 %v2475_v46, %v719_v52  ;;  %v810_v55 = vadd.f32 %v2475_v46, %v809_v53 }
 0x148   :  { %v1119_v6 = vmax.f32 %v898_v62, 0.0  ;;  %v1155_v7 = vmax.f32 %v988_v63, 0.0 }
 0x149   :  { %v1048_v58 = vmax.f32 %v720_v54, 0.0  ;;  %v1084_v59 = vmax.f32 %v810_v55, 0.0 }
 0x14b   :  { %v1916_v60 = vpack.c.bf16 %v1048_v58, %v1047_v56  ;;  %v2006_v61 = vpack.c.bf16 %v1084_v59, %v1083_v57 }
 0x14d   :  { %2232 = vst [vmem:[%s2953_s3 + $0x50] sm:$0xff] %v1916_v60   ;;  %v899_v0 = vpop.f32.mrf.mxu2  ;;  %v989_v1 = vpop.f32.mrf.mxu3 }
 0x14e   :  { %2250 = vst [vmem:[%s2953_s3 + $0xe0] sm:$0xff] %v2006_v61   ;;  %v900_v2 = vadd.f32 %v2475_v46, %v899_v0  ;;  %v990_v3 = vadd.f32 %v2475_v46, %v989_v1  ;;  %v722_v4 = vpop.f32.mrf.mxu0  ;;  %v812_v5 = vpop.f32.mrf.mxu1 }
 0x14f   :  { %v723_v12 = vadd.f32 %v2475_v46, %v722_v4  ;;  %v813_v13 = vadd.f32 %v2475_v46, %v812_v5 }
 0x150   :  { %v1120_v8 = vmax.f32 %v900_v2, 0.0  ;;  %v1156_v9 = vmax.f32 %v990_v3, 0.0 }
 0x151   :  { %v1049_v20 = vmax.f32 %v723_v12, 0.0  ;;  %v1085_v21 = vmax.f32 %v813_v13, 0.0 }
 0x152   :  { %v2096_v10 = vpack.c.bf16 %v1120_v8, %v1119_v6  ;;  %v2186_v11 = vpack.c.bf16 %v1156_v9, %v1155_v7 }
 0x154   :  { %2268 = vst [vmem:[%s2953_s3 + $0x170] sm:$0xff] %v2096_v10  }
 0x155   :  { %2286 = vst [vmem:[%s2953_s3 + $0x200] sm:$0xff] %v2186_v11   ;;  %v902_v14 = vpop.f32.mrf.mxu2  ;;  %v992_v15 = vpop.f32.mrf.mxu3 }
 0x156   :  { %v724_v16 = vpop.f32.mrf.mxu0  ;;  %v814_v17 = vpop.f32.mrf.mxu1  ;;  %v903_v26 = vadd.f32 %v2475_v46, %v902_v14  ;;  %v993_v27 = vadd.f32 %v2475_v46, %v992_v15 }
 0x157   :  { %v725_v18 = vadd.f32 %v2475_v46, %v724_v16  ;;  %v815_v19 = vadd.f32 %v2475_v46, %v814_v17 }
 0x158   :  { %v1121_v34 = vmax.f32 %v903_v26, 0.0  ;;  %v1157_v35 = vmax.f32 %v993_v27, 0.0 }
 0x159   :  { %v1050_v22 = vmax.f32 %v725_v18, 0.0  ;;  %v1086_v23 = vmax.f32 %v815_v19, 0.0 }
 0x15b   :  { %v1921_v24 = vpack.c.bf16 %v1050_v22, %v1049_v20  ;;  %v2011_v25 = vpack.c.bf16 %v1086_v23, %v1085_v21  ;;  %v2860_v23 = vld [vmem:[%s2951_s2] ss:$0 sm:$0xff] }
 0x15d   :  { %2233 = vst [vmem:[%s2953_s3 + $0x58] sm:$0xff] %v1921_v24   ;;  %v904_v28 = vpop.f32.mrf.mxu2  ;;  %v994_v29 = vpop.f32.mrf.mxu3 }
 0x15e   :  { %2251 = vst [vmem:[%s2953_s3 + $0xe8] sm:$0xff] %v2011_v25   ;;  %v905_v30 = vadd.f32 %v2475_v46, %v904_v28  ;;  %v995_v31 = vadd.f32 %v2475_v46, %v994_v29  ;;  %v727_v32 = vpop.f32.mrf.mxu0  ;;  %v817_v33 = vpop.f32.mrf.mxu1 }
 0x15f   :  { %v728_v40 = vadd.f32 %v2475_v46, %v727_v32  ;;  %v818_v41 = vadd.f32 %v2475_v46, %v817_v33 }
 0x160   :  { %v1122_v36 = vmax.f32 %v905_v30, 0.0  ;;  %v1158_v37 = vmax.f32 %v995_v31, 0.0 }
 0x161   :  { %v1051_v49 = vmax.f32 %v728_v40, 0.0  ;;  %v1087_v50 = vmax.f32 %v818_v41, 0.0 }
 0x162   :  { %v2101_v38 = vpack.c.bf16 %v1122_v36, %v1121_v34  ;;  %v2191_v39 = vpack.c.bf16 %v1158_v37, %v1157_v35 }
 0x164   :  { %2269 = vst [vmem:[%s2953_s3 + $0x178] sm:$0xff] %v2101_v38  }
 0x165   :  { %2287 = vst [vmem:[%s2953_s3 + $0x208] sm:$0xff] %v2191_v39   ;;  %v907_v42 = vpop.f32.mrf.mxu2  ;;  %v997_v43 = vpop.f32.mrf.mxu3 }
 0x166   :  { %v729_v44 = vpop.f32.mrf.mxu0  ;;  %v819_v45 = vpop.f32.mrf.mxu1  ;;  %v908_v55 = vadd.f32 %v2475_v46, %v907_v42  ;;  %v998_v56 = vadd.f32 %v2475_v46, %v997_v43 }
 0x167   :  { %v730_v47 = vadd.f32 %v2475_v46, %v729_v44  ;;  %v820_v48 = vadd.f32 %v2475_v46, %v819_v45 }
 0x168   :  { %v1123_v63 = vmax.f32 %v908_v55, 0.0  ;;  %v1159_v0 = vmax.f32 %v998_v56, 0.0 }
 0x169   :  { %v1052_v51 = vmax.f32 %v730_v47, 0.0  ;;  %v1088_v52 = vmax.f32 %v820_v48, 0.0 }
 0x16b   :  { %v1926_v53 = vpack.c.bf16 %v1052_v51, %v1051_v49  ;;  %v2016_v54 = vpack.c.bf16 %v1088_v52, %v1087_v50 }
 0x16d   :  { %2234 = vst [vmem:[%s2953_s3 + $0x60] sm:$0xff] %v1926_v53   ;;  %v909_v57 = vpop.f32.mrf.mxu2  ;;  %v999_v58 = vpop.f32.mrf.mxu3 }
 0x16e   :  { %2252 = vst [vmem:[%s2953_s3 + $0xf0] sm:$0xff] %v2016_v54   ;;  %v910_v59 = vadd.f32 %v2475_v46, %v909_v57  ;;  %v1000_v60 = vadd.f32 %v2475_v46, %v999_v58  ;;  %v732_v61 = vpop.f32.mrf.mxu0  ;;  %v822_v62 = vpop.f32.mrf.mxu1 }
 0x16f   :  { %v733_v5 = vadd.f32 %v2475_v46, %v732_v61  ;;  %v823_v6 = vadd.f32 %v2475_v46, %v822_v62 }
 0x170   :  { %v1124_v1 = vmax.f32 %v910_v59, 0.0  ;;  %v1160_v2 = vmax.f32 %v1000_v60, 0.0 }
 0x171   :  { %v1053_v13 = vmax.f32 %v733_v5, 0.0  ;;  %v1089_v14 = vmax.f32 %v823_v6, 0.0 }
 0x172   :  { %v2106_v3 = vpack.c.bf16 %v1124_v1, %v1123_v63  ;;  %v2196_v4 = vpack.c.bf16 %v1160_v2, %v1159_v0 }
 0x174   :  { %2270 = vst [vmem:[%s2953_s3 + $0x180] sm:$0xff] %v2106_v3  }
 0x175   :  { %2288 = vst [vmem:[%s2953_s3 + $0x210] sm:$0xff] %v2196_v4   ;;  %v912_v7 = vpop.f32.mrf.mxu2  ;;  %v1002_v8 = vpop.f32.mrf.mxu3 }
 0x176   :  { %v734_v9 = vpop.f32.mrf.mxu0  ;;  %v824_v10 = vpop.f32.mrf.mxu1  ;;  %v913_v19 = vadd.f32 %v2475_v46, %v912_v7  ;;  %v1003_v20 = vadd.f32 %v2475_v46, %v1002_v8 }
 0x177   :  { %v735_v11 = vadd.f32 %v2475_v46, %v734_v9  ;;  %v825_v12 = vadd.f32 %v2475_v46, %v824_v10 }
 0x178   :  { %v1125_v27 = vmax.f32 %v913_v19, 0.0  ;;  %v1161_v28 = vmax.f32 %v1003_v20, 0.0 }
 0x179   :  { %v1054_v15 = vmax.f32 %v735_v11, 0.0  ;;  %v1090_v16 = vmax.f32 %v825_v12, 0.0 }
 0x17b   :  { %v1931_v17 = vpack.c.bf16 %v1054_v15, %v1053_v13  ;;  %v2021_v18 = vpack.c.bf16 %v1090_v16, %v1089_v14 }
 0x17d   :  { %2235 = vst [vmem:[%s2953_s3 + $0x68] sm:$0xff] %v1931_v17   ;;  %v914_v21 = vpop.f32.mrf.mxu2  ;;  %v1004_v22 = vpop.f32.mrf.mxu3 }
 0x17e   :  { %2253 = vst [vmem:[%s2953_s3 + $0xf8] sm:$0xff] %v2021_v18   ;;  %v915_v24 = vadd.f32 %v2860_v23, %v914_v21  ;;  %v1005_v25 = vadd.f32 %v2860_v23, %v1004_v22  ;;  %v737_v46 = vpop.f32.mrf.mxu0  ;;  %v827_v26 = vpop.f32.mrf.mxu1 }
 0x17f   :  { %v738_v33 = vadd.f32 %v2860_v23, %v737_v46  ;;  %v828_v34 = vadd.f32 %v2860_v23, %v827_v26 }
 0x180   :  { %v1126_v29 = vmax.f32 %v915_v24, 0.0  ;;  %v1162_v30 = vmax.f32 %v1005_v25, 0.0 }
 0x181   :  { %v1055_v41 = vmax.f32 %v738_v33, 0.0  ;;  %v1091_v42 = vmax.f32 %v828_v34, 0.0 }
 0x182   :  { %v2111_v31 = vpack.c.bf16 %v1126_v29, %v1125_v27  ;;  %v2201_v32 = vpack.c.bf16 %v1162_v30, %v1161_v28 }
 0x184   :  { %2271 = vst [vmem:[%s2953_s3 + $0x188] sm:$0xff] %v2111_v31  }
 0x185   :  { %2289 = vst [vmem:[%s2953_s3 + $0x218] sm:$0xff] %v2201_v32   ;;  %v917_v35 = vpop.f32.mrf.mxu2  ;;  %v1007_v36 = vpop.f32.mrf.mxu3 }
 0x186   :  { %v739_v37 = vpop.f32.mrf.mxu0  ;;  %v829_v38 = vpop.f32.mrf.mxu1  ;;  %v918_v48 = vadd.f32 %v2860_v23, %v917_v35  ;;  %v1008_v49 = vadd.f32 %v2860_v23, %v1007_v36 }
 0x187   :  { %v740_v39 = vadd.f32 %v2860_v23, %v739_v37  ;;  %v830_v40 = vadd.f32 %v2860_v23, %v829_v38 }
 0x188   :  { %v1127_v56 = vmax.f32 %v918_v48, 0.0  ;;  %v1163_v57 = vmax.f32 %v1008_v49, 0.0 }
 0x189   :  { %v1056_v43 = vmax.f32 %v740_v39, 0.0  ;;  %v1092_v44 = vmax.f32 %v830_v40, 0.0 }
 0x18b   :  { %v1936_v45 = vpack.c.bf16 %v1056_v43, %v1055_v41  ;;  %v2026_v47 = vpack.c.bf16 %v1092_v44, %v1091_v42 }
 0x18d   :  { %2236 = vst [vmem:[%s2953_s3 + $0x70] sm:$0xff] %v1936_v45   ;;  %v919_v50 = vpop.f32.mrf.mxu2  ;;  %v1009_v51 = vpop.f32.mrf.mxu3 }
 0x18e   :  { %2254 = vst [vmem:[%s2953_s3 + $0x100] sm:$0xff] %v2026_v47   ;;  %v920_v52 = vadd.f32 %v2860_v23, %v919_v50  ;;  %v1010_v53 = vadd.f32 %v2860_v23, %v1009_v51  ;;  %v742_v54 = vpop.f32.mrf.mxu0  ;;  %v832_v55 = vpop.f32.mrf.mxu1 }
 0x18f   :  { %v743_v62 = vadd.f32 %v2860_v23, %v742_v54  ;;  %v833_v63 = vadd.f32 %v2860_v23, %v832_v55 }
 0x190   :  { %v1128_v58 = vmax.f32 %v920_v52, 0.0  ;;  %v1164_v59 = vmax.f32 %v1010_v53, 0.0 }
 0x191   :  { %v1057_v6 = vmax.f32 %v743_v62, 0.0  ;;  %v1093_v7 = vmax.f32 %v833_v63, 0.0 }
 0x192   :  { %v2116_v60 = vpack.c.bf16 %v1128_v58, %v1127_v56  ;;  %v2206_v61 = vpack.c.bf16 %v1164_v59, %v1163_v57 }
 0x194   :  { %2272 = vst [vmem:[%s2953_s3 + $0x190] sm:$0xff] %v2116_v60  }
 0x195   :  { %2290 = vst [vmem:[%s2953_s3 + $0x220] sm:$0xff] %v2206_v61   ;;  %v922_v0 = vpop.f32.mrf.mxu2  ;;  %v1012_v1 = vpop.f32.mrf.mxu3 }
 0x196   :  { %v744_v2 = vpop.f32.mrf.mxu0  ;;  %v834_v3 = vpop.f32.mrf.mxu1  ;;  %v923_v12 = vadd.f32 %v2860_v23, %v922_v0  ;;  %v1013_v13 = vadd.f32 %v2860_v23, %v1012_v1 }
 0x197   :  { %v745_v4 = vadd.f32 %v2860_v23, %v744_v2  ;;  %v835_v5 = vadd.f32 %v2860_v23, %v834_v3 }
 0x198   :  { %v1129_v20 = vmax.f32 %v923_v12, 0.0  ;;  %v1165_v21 = vmax.f32 %v1013_v13, 0.0 }
 0x199   :  { %v1058_v8 = vmax.f32 %v745_v4, 0.0  ;;  %v1094_v9 = vmax.f32 %v835_v5, 0.0 }
 0x19b   :  { %v1941_v10 = vpack.c.bf16 %v1058_v8, %v1057_v6  ;;  %v2031_v11 = vpack.c.bf16 %v1094_v9, %v1093_v7 }
 0x19d   :  { %2237 = vst [vmem:[%s2953_s3 + $0x78] sm:$0xff] %v1941_v10   ;;  %v924_v14 = vpop.f32.mrf.mxu2  ;;  %v1014_v15 = vpop.f32.mrf.mxu3 }
 0x19e   :  { %2255 = vst [vmem:[%s2953_s3 + $0x108] sm:$0xff] %v2031_v11   ;;  %v925_v16 = vadd.f32 %v2860_v23, %v924_v14  ;;  %v1015_v17 = vadd.f32 %v2860_v23, %v1014_v15  ;;  %v747_v18 = vpop.f32.mrf.mxu0  ;;  %v837_v19 = vpop.f32.mrf.mxu1 }
 0x19f   :  { %v748_v26 = vadd.f32 %v2860_v23, %v747_v18  ;;  %v838_v27 = vadd.f32 %v2860_v23, %v837_v19 }
 0x1a0   :  { %v1130_v22 = vmax.f32 %v925_v16, 0.0  ;;  %v1166_v24 = vmax.f32 %v1015_v17, 0.0 }
 0x1a1   :  { %v1059_v34 = vmax.f32 %v748_v26, 0.0  ;;  %v1095_v35 = vmax.f32 %v838_v27, 0.0 }
 0x1a2   :  { %v2121_v25 = vpack.c.bf16 %v1130_v22, %v1129_v20  ;;  %v2211_v46 = vpack.c.bf16 %v1166_v24, %v1165_v21 }
 0x1a4   :  { %2273 = vst [vmem:[%s2953_s3 + $0x198] sm:$0xff] %v2121_v25  }
 0x1a5   :  { %2291 = vst [vmem:[%s2953_s3 + $0x228] sm:$0xff] %v2211_v46   ;;  %v927_v28 = vpop.f32.mrf.mxu2  ;;  %v1017_v29 = vpop.f32.mrf.mxu3 }
 0x1a6   :  { %v749_v30 = vpop.f32.mrf.mxu0  ;;  %v839_v31 = vpop.f32.mrf.mxu1  ;;  %v928_v40 = vadd.f32 %v2860_v23, %v927_v28  ;;  %v1018_v41 = vadd.f32 %v2860_v23, %v1017_v29 }
 0x1a7   :  { %v750_v32 = vadd.f32 %v2860_v23, %v749_v30  ;;  %v840_v33 = vadd.f32 %v2860_v23, %v839_v31 }
 0x1a8   :  { %v1131_v49 = vmax.f32 %v928_v40, 0.0  ;;  %v1167_v50 = vmax.f32 %v1018_v41, 0.0 }
 0x1a9   :  { %v1060_v36 = vmax.f32 %v750_v32, 0.0  ;;  %v1096_v37 = vmax.f32 %v840_v33, 0.0 }
 0x1ab   :  { %v1946_v38 = vpack.c.bf16 %v1060_v36, %v1059_v34  ;;  %v2036_v39 = vpack.c.bf16 %v1096_v37, %v1095_v35 }
 0x1ad   :  { %2238 = vst [vmem:[%s2953_s3 + $0x80] sm:$0xff] %v1946_v38   ;;  %v929_v42 = vpop.f32.mrf.mxu2  ;;  %v1019_v43 = vpop.f32.mrf.mxu3 }
 0x1ae   :  { %2256 = vst [vmem:[%s2953_s3 + $0x110] sm:$0xff] %v2036_v39   ;;  %v930_v44 = vadd.f32 %v2860_v23, %v929_v42  ;;  %v1020_v45 = vadd.f32 %v2860_v23, %v1019_v43  ;;  %v752_v47 = vpop.f32.mrf.mxu0  ;;  %v842_v48 = vpop.f32.mrf.mxu1 }
 0x1af   :  { %v753_v55 = vadd.f32 %v2860_v23, %v752_v47  ;;  %v843_v56 = vadd.f32 %v2860_v23, %v842_v48 }
 0x1b0   :  { %v1132_v51 = vmax.f32 %v930_v44, 0.0  ;;  %v1168_v52 = vmax.f32 %v1020_v45, 0.0 }
 0x1b1   :  { %v1061_v63 = vmax.f32 %v753_v55, 0.0  ;;  %v1097_v0 = vmax.f32 %v843_v56, 0.0 }
 0x1b2   :  { %v2126_v53 = vpack.c.bf16 %v1132_v51, %v1131_v49  ;;  %v2216_v54 = vpack.c.bf16 %v1168_v52, %v1167_v50 }
 0x1b4   :  { %2274 = vst [vmem:[%s2953_s3 + $0x1a0] sm:$0xff] %v2126_v53  }
 0x1b5   :  { %2292 = vst [vmem:[%s2953_s3 + $0x230] sm:$0xff] %v2216_v54   ;;  %v932_v57 = vpop.f32.mrf.mxu2  ;;  %v1022_v58 = vpop.f32.mrf.mxu3 }
 0x1b6   :  { %v754_v59 = vpop.f32.mrf.mxu0  ;;  %v844_v60 = vpop.f32.mrf.mxu1  ;;  %v933_v5 = vadd.f32 %v2860_v23, %v932_v57  ;;  %v1023_v6 = vadd.f32 %v2860_v23, %v1022_v58 }
 0x1b7   :  { %v755_v61 = vadd.f32 %v2860_v23, %v754_v59  ;;  %v845_v62 = vadd.f32 %v2860_v23, %v844_v60 }
 0x1b8   :  { %v1133_v11 = vmax.f32 %v933_v5, 0.0  ;;  %v1169_v12 = vmax.f32 %v1023_v6, 0.0 }
 0x1b9   :  { %v1062_v1 = vmax.f32 %v755_v61, 0.0  ;;  %v1098_v2 = vmax.f32 %v845_v62, 0.0 }
 0x1bb   :  { %v1951_v3 = vpack.c.bf16 %v1062_v1, %v1061_v63  ;;  %v2041_v4 = vpack.c.bf16 %v1098_v2, %v1097_v0 }
 0x1bd   :  { %2239 = vst [vmem:[%s2953_s3 + $0x88] sm:$0xff] %v1951_v3   ;;  %v934_v7 = vpop.f32.mrf.mxu2  ;;  %v1024_v8 = vpop.f32.mrf.mxu3 }
 0x1be   :  { %2257 = vst [vmem:[%s2953_s3 + $0x118] sm:$0xff] %v2041_v4   ;;  %v935_v9 = vadd.f32 %v2860_v23, %v934_v7  ;;  %v1025_v10 = vadd.f32 %v2860_v23, %v1024_v8 }
 0x1c0   :  { %v1134_v13 = vmax.f32 %v935_v9, 0.0  ;;  %v1170_v14 = vmax.f32 %v1025_v10, 0.0 }
 0x1c2   :  { %v2131_v15 = vpack.c.bf16 %v1134_v13, %v1133_v11  ;;  %v2221_v16 = vpack.c.bf16 %v1170_v14, %v1169_v12 }
 0x1c4   :  { %2275 = vst [vmem:[%s2953_s3 + $0x1a8] sm:$0xff] %v2131_v15  }
 0x1c5   :  { %2293 = vst [vmem:[%s2953_s3 + $0x238] sm:$0xff] %v2221_v16  }

// kernel: custom_resnet4_forward.7
= control target key start
LH: loop header
LB: loop body
LE: loop exit
PB: predicated region body
PF: predicated region fallthrough
CT: control target
= control target key end

     0   :  { %s5591_s1 = inlined_call_operand.vmem [shape: bf16[1152,128], index: 1, kind: input, shape index: {}]   ;;  %s5592_s2 = inlined_call_operand.vmem [shape: f32[1,128], index: 2, kind: input, shape index: {}]   ;;  %s5593_s0 = inlined_call_operand.vmem [shape: bf16[288,1152], index: 0, kind: input, shape index: {}]   ;;  %s5594_s3 = inlined_call_operand.vmem [shape: bf16[288,128], index: 3, kind: output, shape index: {}]  }
   0x1   :  { %v3710_v0 = vld [vmem:[%s5591_s1 + $0x38] sm:$0xff]  ;;  %v3709_v1 = vld [vmem:[%s5591_s1 + $0x30] sm:$0xff]  ;;  %v3708_v2 = vld [vmem:[%s5591_s1 + $0x28] sm:$0xff] }
   0x2   :  { %3882 = vmatpush.bf16.msra.mxu1 %v3710_v0  ;;  %3883 = vmatpush.bf16.msra.mxu2 %v3710_v0  ;;  %v3707_v3 = vld [vmem:[%s5591_s1 + $0x20] sm:$0xff]  ;;  %v3706_v4 = vld [vmem:[%s5591_s1 + $0x18] sm:$0xff]  ;;  %v3705_v5 = vld [vmem:[%s5591_s1 + $0x10] sm:$0xff] }
   0x3   :  { %1602 = vmatpush.bf16.msra.mxu0 %v3710_v0  ;;  %3884 = vmatpush.bf16.msra.mxu3 %v3710_v0  ;;  %v3704_v6 = vld [vmem:[%s5591_s1 + $0x8] sm:$0xff]  ;;  %v3703_v7 = vld [vmem:[%s5591_s1] sm:$0xff]  ;;  %v2967_v10 = vld [vmem:[%s5593_s0 + $0x2d0] sm:$0xf] }
   0x4   :  { %v2787_v8 = vld [vmem:[%s5593_s0 + $0x168] sm:$0xf]  ;;  %v3590_v9 = vld [vmem:[%s5593_s0 + $0x188] sm:$0xf0]  ;;  %v3635_v11 = vld [vmem:[%s5593_s0 + $0x2f0] sm:$0xf0] }
   0x5   :  { %v3726_v12 = vld [vmem:[%s5591_s1 + $0xb8] sm:$0xff]  ;;  %v2607_v13 = vld [vmem:[%s5593_s0] sm:$0xf]  ;;  %v3545_v14 = vld [vmem:[%s5593_s0 + $0x20] sm:$0xf0]  ;;  %v2788_v17 = vor.u32 %v3590_v9, %v2787_v8  ;;  %v2968_v18 = vor.u32 %v3635_v11, %v2967_v10 }
   0x6   :  { %3885 = vmatpush.bf16.msra.mxu1 %v3709_v1  ;;  %3886 = vmatpush.bf16.msra.mxu2 %v3709_v1  ;;  %v3718_v15 = vld [vmem:[%s5591_s1 + $0x78] sm:$0xff]  ;;  %v2608_v19 = vor.u32 %v3545_v14, %v2607_v13  ;;  %v3725_v22 = vld [vmem:[%s5591_s1 + $0xb0] sm:$0xff]  ;;  %v3724_v27 = vld [vmem:[%s5591_s1 + $0xa8] sm:$0xff] }
   0x7   :  { %1603 = vmatpush.bf16.msra.mxu0 %v3709_v1  ;;  %3887 = vmatpush.bf16.msra.mxu3 %v3709_v1  ;;  %v3742_v16 = vld [vmem:[%s5591_s1 + $0x138] sm:$0xff]  ;;  %v3717_v23 = vld [vmem:[%s5591_s1 + $0x70] sm:$0xff]  ;;  %v3716_v28 = vld [vmem:[%s5591_s1 + $0x68] sm:$0xff] }
   0x8   :  { %v3147_v20 = vld [vmem:[%s5593_s0 + $0x438] sm:$0xf]  ;;  %v3680_v21 = vld [vmem:[%s5593_s0 + $0x458] sm:$0xf0]  ;;  %v3741_v24 = vld [vmem:[%s5591_s1 + $0x130] sm:$0xff] }
   0x9   :  { %v3148_v25 = vor.u32 %v3680_v21, %v3147_v20  ;;  %v3734_v26 = vld [vmem:[%s5591_s1 + $0xf8] sm:$0xff]  ;;  %v3740_v29 = vld [vmem:[%s5591_s1 + $0x128] sm:$0xff]  ;;  %v3733_v30 = vld [vmem:[%s5591_s1 + $0xf0] sm:$0xff] }
   0xa   :  { %3888 = vmatpush.bf16.msra.mxu1 %v3708_v2  ;;  %3889 = vmatpush.bf16.msra.mxu2 %v3708_v2  ;;  %v3723_v31 = vld [vmem:[%s5591_s1 + $0xa0] sm:$0xff]  ;;  %v2823_v34 = vld [vmem:[%s5593_s0 + $0x1b0] sm:$0xf]  ;;  %v3599_v35 = vld [vmem:[%s5593_s0 + $0x1d0] sm:$0xf0] }
   0xb   :  { %1604 = vmatpush.bf16.msra.mxu0 %v3708_v2  ;;  %3890 = vmatpush.bf16.msra.mxu3 %v3708_v2  ;;  %v3715_v32 = vld [vmem:[%s5591_s1 + $0x60] sm:$0xff]  ;;  %v3003_v36 = vld [vmem:[%s5593_s0 + $0x318] sm:$0xf]  ;;  %v3644_v37 = vld [vmem:[%s5593_s0 + $0x338] sm:$0xf0]  ;;  %v2824_v43 = vor.u32 %v3599_v35, %v2823_v34 }
   0xc   :  { %v3739_v33 = vld [vmem:[%s5591_s1 + $0x120] sm:$0xff]  ;;  %v3732_v38 = vld [vmem:[%s5591_s1 + $0xe8] sm:$0xff]  ;;  %v3722_v41 = vld [vmem:[%s5591_s1 + $0x98] sm:$0xff]  ;;  %v3004_v44 = vor.u32 %v3644_v37, %v3003_v36 }
   0xd   :  { %v2643_v39 = vld [vmem:[%s5593_s0 + $0x48] sm:$0xf]  ;;  %v3554_v40 = vld [vmem:[%s5593_s0 + $0x68] sm:$0xf0]  ;;  %v3714_v42 = vld [vmem:[%s5591_s1 + $0x58] sm:$0xff] }
   0xe   :  { %3891 = vmatpush.bf16.msra.mxu1 %v3707_v3  ;;  %3892 = vmatpush.bf16.msra.mxu2 %v3707_v3  ;;  %v2644_v45 = vor.u32 %v3554_v40, %v2643_v39  ;;  %v3183_v46 = vld [vmem:[%s5593_s0 + $0x480] sm:$0xf]  ;;  %v3689_v47 = vld [vmem:[%s5593_s0 + $0x4a0] sm:$0xf0]  ;;  %v3721_v49 = vld [vmem:[%s5591_s1 + $0x90] sm:$0xff] }
   0xf   :  { %1605 = vmatpush.bf16.msra.mxu0 %v3707_v3  ;;  %3893 = vmatpush.bf16.msra.mxu3 %v3707_v3  ;;  %v3184_v48 = vor.u32 %v3689_v47, %v3183_v46  ;;  %v3738_v50 = vld [vmem:[%s5591_s1 + $0x118] sm:$0xff]  ;;  %v3731_v51 = vld [vmem:[%s5591_s1 + $0xe0] sm:$0xff]  ;;  %v3713_v52 = vld [vmem:[%s5591_s1 + $0x50] sm:$0xff] }
  0x10   :  { %v3720_v53 = vld [vmem:[%s5591_s1 + $0x88] sm:$0xff]  ;;  %v3737_v54 = vld [vmem:[%s5591_s1 + $0x110] sm:$0xff]  ;;  %v3730_v55 = vld [vmem:[%s5591_s1 + $0xd8] sm:$0xff] }
  0x11   :  { %v2859_v56 = vld [vmem:[%s5593_s0 + $0x1f8] sm:$0xf]  ;;  %v3608_v57 = vld [vmem:[%s5593_s0 + $0x218] sm:$0xf0]  ;;  %v3039_v58 = vld [vmem:[%s5593_s0 + $0x360] sm:$0xf] }
  0x12   :  { %3894 = vmatpush.bf16.msra.mxu1 %v3706_v4  ;;  %3895 = vmatpush.bf16.msra.mxu2 %v3706_v4  ;;  %v3653_v59 = vld [vmem:[%s5593_s0 + $0x380] sm:$0xf0]  ;;  %v3729_v60 = vld [vmem:[%s5591_s1 + $0xd0] sm:$0xff]  ;;  %v2860_v63 = vor.u32 %v3608_v57, %v2859_v56  ;;  %v3219_v2 = vld [vmem:[%s5593_s0 + $0x4c8] sm:$0xf] }
  0x13   :  { %1606 = vmatpush.bf16.msra.mxu0 %v3706_v4  ;;  %3896 = vmatpush.bf16.msra.mxu3 %v3706_v4  ;;  %v2679_v61 = vld [vmem:[%s5593_s0 + $0x90] sm:$0xf]  ;;  %v3563_v62 = vld [vmem:[%s5593_s0 + $0xb0] sm:$0xf0]  ;;  %v3040_v0 = vor.u32 %v3653_v59, %v3039_v58  ;;  %v3698_v3 = vld [vmem:[%s5593_s0 + $0x4e8] sm:$0xf0] }
  0x14   :  { %v2680_v1 = vor.u32 %v3563_v62, %v2679_v61  ;;  %v3220_v4 = vor.u32 %v3698_v3, %v3219_v2  ;;  %v3736_v8 = vld [vmem:[%s5591_s1 + $0x108] sm:$0xff]  ;;  %v3711_v9 = vld [vmem:[%s5591_s1 + $0x40] sm:$0xff]  ;;  %v3551_v37 = vld [vmem:[%s5593_s0 + $0x54] sm:$0xf] }
  0x15   :  { %v3727_v10 = vld [vmem:[%s5591_s1 + $0xc0] sm:$0xff]  ;;  %v3075_v14 = vld [vmem:[%s5593_s0 + $0x3a8] sm:$0xf]  ;;  %v3542_v21 = vld [vmem:[%s5593_s0 + $0xc] sm:$0xf] }
  0x16   :  { %3897 = vmatpush.bf16.msra.mxu1 %v3705_v5  ;;  %3898 = vmatpush.bf16.msra.mxu2 %v3705_v5  ;;  %v3735_v11 = vld [vmem:[%s5591_s1 + $0x100] sm:$0xff]  ;;  %v2645_v56 = vld [vmem:[%s5593_s0 + $0x6c] sm:$0xf0]  ;;  %v3555_v58 = vld [vmem:[%s5593_s0 + $0x70] sm:$0xf0] }
  0x17   :  { %1607 = vmatpush.bf16.msra.mxu0 %v3705_v5  ;;  %3899 = vmatpush.bf16.msra.mxu3 %v3705_v5  ;;  %v3712_v5 = vld [vmem:[%s5591_s1 + $0x48] sm:$0xff]  ;;  %v3617_v13 = vld [vmem:[%s5593_s0 + $0x260] sm:$0xf0]  ;;  %v2651_v57 = vld [vmem:[%s5593_s0 + $0x50] sm:$0xf] }
  0x18   :  { %v3541_v40 = vld [vmem:[%s5593_s0 + $0x4] sm:$0xf]  ;;  %v2659_v59 = vld [vmem:[%s5593_s0 + $0x58] sm:$0xf]  ;;  %v2652_v62 = vor.u32 %v3555_v58, %v2651_v57  ;;  %v3773_v2 = vld [vmem:[%s5591_s1 + $0x230] sm:$0xff] }
  0x19   :  { %v3586_v58 = vld [vmem:[%s5593_s0 + $0x16c] sm:$0xf] }
  0x1a   :  { %3900 = vmatpush.bf16.msra.mxu1 %v3704_v6  ;;  %3901 = vmatpush.bf16.msra.mxu2 %v3704_v6 }
  0x1b   :  { %1608 = vmatpush.bf16.msra.mxu0 %v3704_v6  ;;  %3902 = vmatpush.bf16.msra.mxu3 %v3704_v6  ;;  %v3728_v6 = vld [vmem:[%s5591_s1 + $0xc8] sm:$0xff] }
  0x1e   :  { %3903 = vmatpush.bf16.msra.mxu1 %v3703_v7  ;;  %3904 = vmatpush.bf16.msra.mxu2 %v3703_v7 }
  0x1f   :  { %1609 = vmatpush.bf16.msra.mxu0 %v3703_v7  ;;  %3905 = vmatpush.bf16.msra.mxu3 %v3703_v7  ;;  %v3719_v7 = vld [vmem:[%s5591_s1 + $0x80] sm:$0xff] }
  0x21   :  { %1635 = vmatmul.bf16.vlgmr.msra.gmra.mxu1 %v2788_v17  ;;  %1660 = vmatmul.bf16.vlgmr.msra.gmra.mxu2 %v2968_v18  ;;  %v3572_v17 = vld [vmem:[%s5593_s0 + $0xf8] sm:$0xf0] }
  0x22   :  { %1800 = vmatpush.bf16.msrb.mxu2 %v3726_v12  ;;  %1701 = vmatpush.bf16.msrb.mxu1 %v3718_v15  ;;  %v2895_v12 = vld [vmem:[%s5593_s0 + $0x240] sm:$0xf]  ;;  %v3662_v15 = vld [vmem:[%s5593_s0 + $0x3c8] sm:$0xf0] }
  0x23   :  { %1998 = vmatpush.bf16.msrb.mxu0 %v3742_v16  ;;  %1685 = vmatmul.bf16.vlgmr.msra.gmra.mxu3 %v3148_v25  ;;  %v2715_v16 = vld [vmem:[%s5593_s0 + $0xd8] sm:$0xf]  ;;  %v2896_v18 = vor.u32 %v3617_v13, %v2895_v12  ;;  %v3578_v13 = vld [vmem:[%s5593_s0 + $0x12c] sm:$0xf] }
  0x24   :  { %1610 = vmatmul.bf16.vlgmr.msra.gmra.mxu0 %v2608_v19  ;;  %1899 = vmatpush.bf16.msrb.mxu3 %v3734_v26  ;;  %v3076_v19 = vor.u32 %v3662_v15, %v3075_v14  ;;  %v2716_v20 = vor.u32 %v3572_v17, %v2715_v16  ;;  %v3766_v25 = vld [vmem:[%s5591_s1 + $0x1f8] sm:$0xff]  ;;  %v2761_v14 = vld [vmem:[%s5593_s0 + $0x14c] sm:$0xf0]  ;;  %v3756_v16 = vld [vmem:[%s5591_s1 + $0x1a8] sm:$0xff] }
  0x25   :  { %v3750_v26 = vld [vmem:[%s5591_s1 + $0x178] sm:$0xff]  ;;  %v2764_v15 = vor.u32 %v3578_v13, %v2761_v14 }
  0x26   :  { %1801 = vmatpush.bf16.msrb.mxu2 %v3725_v22  ;;  %1702 = vmatpush.bf16.msrb.mxu1 %v3717_v23  ;;  %v2617_v22 = vld [vmem:[%s5593_s0 + $0x2c] sm:$0xf0]  ;;  %v3568_v17 = vld [vmem:[%s5593_s0 + $0xdc] sm:$0xf] }
  0x27   :  { %1999 = vmatpush.bf16.msrb.mxu0 %v3741_v24  ;;  %v2620_v23 = vor.u32 %v3542_v21, %v2617_v22  ;;  %v3758_v24 = vld [vmem:[%s5591_s1 + $0x1b8] sm:$0xff]  ;;  %v3573_v21 = vld [vmem:[%s5593_s0 + $0x100] sm:$0xf0]  ;;  %v2731_v22 = vld [vmem:[%s5593_s0 + $0xe8] sm:$0xf] }
  0x28   :  { %1900 = vmatpush.bf16.msrb.mxu3 %v3733_v30  ;;  %v3111_v30 = vld [vmem:[%s5593_s0 + $0x3f0] sm:$0xf] }
  0x2a   :  { %1802 = vmatpush.bf16.msrb.mxu2 %v3724_v27  ;;  %1703 = vmatpush.bf16.msrb.mxu1 %v3716_v28  ;;  %v3774_v27 = vld [vmem:[%s5591_s1 + $0x238] sm:$0xff]  ;;  %v2931_v28 = vld [vmem:[%s5593_s0 + $0x288] sm:$0xf] }
  0x2b   :  { %2000 = vmatpush.bf16.msrb.mxu0 %v3740_v29  ;;  %v3626_v29 = vld [vmem:[%s5593_s0 + $0x2a8] sm:$0xf0] }
  0x2c   :  { %1901 = vmatpush.bf16.msrb.mxu3 %v3732_v38  ;;  %v2932_v34 = vor.u32 %v3626_v29, %v2931_v28  ;;  %v2653_v38 = vld [vmem:[%s5593_s0 + $0x74] sm:$0xf0]  ;;  %v3587_v29 = vld [vmem:[%s5593_s0 + $0x174] sm:$0xf] }
  0x2d   :  { %v2656_v39 = vor.u32 %v3551_v37, %v2653_v38  ;;  %v3577_v38 = vld [vmem:[%s5593_s0 + $0x124] sm:$0xf] }
  0x2e   :  { %1803 = vmatpush.bf16.msrb.mxu2 %v3723_v31  ;;  %1704 = vmatpush.bf16.msrb.mxu1 %v3715_v32  ;;  %v3671_v31 = vld [vmem:[%s5593_s0 + $0x410] sm:$0xf0]  ;;  %v2751_v32 = vld [vmem:[%s5593_s0 + $0x120] sm:$0xf] }
  0x2f   :  { %2001 = vmatpush.bf16.msrb.mxu0 %v3739_v33  ;;  %v3581_v33 = vld [vmem:[%s5593_s0 + $0x140] sm:$0xf0]  ;;  %v3112_v35 = vor.u32 %v3671_v31, %v3111_v30  ;;  %v2797_v30 = vld [vmem:[%s5593_s0 + $0x194] sm:$0xf0] }
  0x30   :  { %1902 = vmatpush.bf16.msrb.mxu3 %v3731_v51  ;;  %v2752_v36 = vor.u32 %v3581_v33, %v2751_v32  ;;  %v2800_v32 = vor.u32 %v3587_v29, %v2797_v30  ;;  %v3772_v33 = vld [vmem:[%s5591_s1 + $0x228] sm:$0xff] }
  0x31   :  { %1640 = vmatmul.bf16.gmra.mxu1 %v2824_v43  ;;  %1665 = vmatmul.bf16.gmra.mxu2 %v3004_v44  ;;  %v3546_v43 = vld [vmem:[%s5593_s0 + $0x28] sm:$0xf0]  ;;  %v2623_v44 = vld [vmem:[%s5593_s0 + $0x10] sm:$0xf] }
  0x32   :  { %1804 = vmatpush.bf16.msrb.mxu2 %v3722_v41  ;;  %1705 = vmatpush.bf16.msrb.mxu1 %v3714_v42  ;;  %v2609_v41 = vld [vmem:[%s5593_s0 + $0x24] sm:$0xf0]  ;;  %v3614_v30 = vld [vmem:[%s5593_s0 + $0x24c] sm:$0xf] }
  0x33   :  { %2002 = vmatpush.bf16.msrb.mxu0 %v3738_v50  ;;  %1690 = vmatmul.bf16.gmra.mxu3 %v3184_v48  ;;  %v2615_v42 = vld [vmem:[%s5593_s0 + $0x8] sm:$0xf]  ;;  %v2612_v46 = vor.u32 %v3541_v40, %v2609_v41  ;;  %v2689_v50 = vld [vmem:[%s5593_s0 + $0xbc] sm:$0xf0]  ;;  %v3582_v41 = vld [vmem:[%s5593_s0 + $0x148] sm:$0xf0] }
  0x34   :  { %1615 = vmatmul.bf16.gmra.mxu0 %v2644_v45  ;;  %1903 = vmatpush.bf16.msrb.mxu3 %v3730_v55  ;;  %v3547_v45 = vld [vmem:[%s5593_s0 + $0x30] sm:$0xf0]  ;;  %v2616_v47 = vor.u32 %v3546_v43, %v2615_v42  ;;  %v3550_v55 = vld [vmem:[%s5593_s0 + $0x4c] sm:$0xf]  ;;  %v2759_v40 = vld [vmem:[%s5593_s0 + $0x128] sm:$0xf] }
  0x35   :  { %v2624_v48 = vor.u32 %v3547_v45, %v2623_v44  ;;  %v2648_v61 = vor.u32 %v3550_v55, %v2645_v56  ;;  %v2767_v42 = vld [vmem:[%s5593_s0 + $0x130] sm:$0xf]  ;;  %v3583_v43 = vld [vmem:[%s5593_s0 + $0x150] sm:$0xf0] }
  0x36   :  { %1805 = vmatpush.bf16.msrb.mxu2 %v3721_v49  ;;  %1706 = vmatpush.bf16.msrb.mxu1 %v3713_v52  ;;  %v3560_v49 = vld [vmem:[%s5593_s0 + $0x9c] sm:$0xf]  ;;  %v3757_v52 = vld [vmem:[%s5591_s1 + $0x1b0] sm:$0xff] }
  0x37   :  { %2003 = vmatpush.bf16.msrb.mxu0 %v3737_v54  ;;  %v2692_v51 = vor.u32 %v3560_v49, %v2689_v50  ;;  %v3749_v54 = vld [vmem:[%s5591_s1 + $0x170] sm:$0xff]  ;;  %v3596_v49 = vld [vmem:[%s5593_s0 + $0x1bc] sm:$0xf]  ;;  %v2833_v50 = vld [vmem:[%s5593_s0 + $0x1dc] sm:$0xf0] }
  0x38   :  { %1904 = vmatpush.bf16.msrb.mxu3 %v3729_v60  ;;  %v3556_v60 = vld [vmem:[%s5593_s0 + $0x78] sm:$0xf0] }
  0x3a   :  { %1806 = vmatpush.bf16.msrb.mxu2 %v3720_v53  ;;  %1707 = vmatpush.bf16.msrb.mxu1 %v3712_v5  ;;  %v3765_v53 = vld [vmem:[%s5591_s1 + $0x1f0] sm:$0xff]  ;;  %v2681_v5 = vld [vmem:[%s5593_s0 + $0xb4] sm:$0xf0] }
  0x3b   :  { %2004 = vmatpush.bf16.msrb.mxu0 %v3736_v8  ;;  %v2695_v8 = vld [vmem:[%s5593_s0 + $0xa0] sm:$0xf] }
  0x3c   :  { %1905 = vmatpush.bf16.msrb.mxu3 %v3728_v6  ;;  %v2687_v6 = vld [vmem:[%s5593_s0 + $0x98] sm:$0xf] }
  0x3e   :  { %1807 = vmatpush.bf16.msrb.mxu2 %v3719_v7  ;;  %1708 = vmatpush.bf16.msrb.mxu1 %v3711_v9  ;;  %v3564_v7 = vld [vmem:[%s5593_s0 + $0xb8] sm:$0xf0]  ;;  %v3565_v9 = vld [vmem:[%s5593_s0 + $0xc0] sm:$0xf0] }
  0x3f   :  { %2005 = vmatpush.bf16.msrb.mxu0 %v3735_v11  ;;  %v2688_v11 = vor.u32 %v3564_v7, %v2687_v6  ;;  %v2696_v12 = vor.u32 %v3565_v9, %v2695_v8  ;;  %v3605_v6 = vld [vmem:[%s5593_s0 + $0x204] sm:$0xf]  ;;  %v2869_v7 = vld [vmem:[%s5593_s0 + $0x224] sm:$0xf0] }
  0x40   :  { %1906 = vmatpush.bf16.msrb.mxu3 %v3727_v10  ;;  %v3763_v9 = vld [vmem:[%s5591_s1 + $0x1e0] sm:$0xff] }
  0x41   :  { %1645 = vmatmul.bf16.gmra.mxu1 %v2860_v63  ;;  %1670 = vmatmul.bf16.gmra.mxu2 %v3040_v0  ;;  %v2660_v63 = vor.u32 %v3556_v60, %v2659_v59  ;;  %v3569_v0 = vld [vmem:[%s5593_s0 + $0xe4] sm:$0xf]  ;;  %v2789_v59 = vld [vmem:[%s5593_s0 + $0x18c] sm:$0xf0] }
  0x42   :  { %2196 = vmatpush.bf16.msra.mxu2 %v3758_v24  ;;  %2097 = vmatpush.bf16.msra.mxu1 %v3750_v26  ;;  %v3748_v26 = vld [vmem:[%s5591_s1 + $0x168] sm:$0xff]  ;;  %v2795_v60 = vld [vmem:[%s5593_s0 + $0x170] sm:$0xf] }
  0x43   :  { %1695 = vmatmul.bf16.gmra.mxu3 %v3220_v4  ;;  %2394 = vmatpush.bf16.msra.mxu0 %v3774_v27  ;;  %v3559_v4 = vld [vmem:[%s5593_s0 + $0x94] sm:$0xf] }
  0x44   :  { %1620 = vmatmul.bf16.gmra.mxu0 %v2680_v1  ;;  %2295 = vmatpush.bf16.msra.mxu3 %v3766_v25  ;;  %v2725_v1 = vld [vmem:[%s5593_s0 + $0x104] sm:$0xf0]  ;;  %v2684_v10 = vor.u32 %v3559_v4, %v2681_v5 }
  0x45   :  { %v2728_v3 = vor.u32 %v3569_v0, %v2725_v1  ;;  %v2792_v1 = vor.u32 %v3586_v58, %v2789_v59 }
  0x46   :  { %2197 = vmatpush.bf16.msra.mxu2 %v3757_v52  ;;  %2098 = vmatpush.bf16.msra.mxu1 %v3749_v54 }
  0x47   :  { %2395 = vmatpush.bf16.msra.mxu0 %v3773_v2 }
  0x48   :  { %2296 = vmatpush.bf16.msra.mxu3 %v3765_v53  ;;  %v2836_v53 = vor.u32 %v3596_v49, %v2833_v50  ;;  %v3609_v49 = vld [vmem:[%s5593_s0 + $0x220] sm:$0xf0]  ;;  %v2875_v50 = vld [vmem:[%s5593_s0 + $0x208] sm:$0xf] }
  0x4a   :  { %2198 = vmatpush.bf16.msra.mxu2 %v3756_v16  ;;  %2099 = vmatpush.bf16.msra.mxu1 %v3748_v26  ;;  %v3771_v16 = vld [vmem:[%s5591_s1 + $0x220] sm:$0xff] }
  0x4b   :  { %2396 = vmatpush.bf16.msra.mxu0 %v3772_v33 }
  0x4f   :  { %2397 = vmatpush.bf16.msra.mxu0 %v3771_v16  ;;  %v3746_v16 = vld [vmem:[%s5591_s1 + $0x158] sm:$0xff] }
  0x51   :  { %1650 = vmatmul.bf16.gmra.mxu1 %v2896_v18  ;;  %1675 = vmatmul.bf16.gmra.mxu2 %v3076_v19  ;;  %v3764_v18 = vld [vmem:[%s5591_s1 + $0x1e8] sm:$0xff]  ;;  %v2717_v19 = vld [vmem:[%s5593_s0 + $0xfc] sm:$0xf0] }
  0x52   :  { %2297 = vmatpush.bf16.msra.mxu3 %v3764_v18  ;;  %v2720_v24 = vor.u32 %v3568_v17, %v2717_v19  ;;  %v3595_v18 = vld [vmem:[%s5593_s0 + $0x1b4] sm:$0xf]  ;;  %v2825_v19 = vld [vmem:[%s5593_s0 + $0x1d4] sm:$0xf0] }
  0x53   :  { %1907 = vmatmul.bf16.vlgmr.msrb.gmra.mxu3 %v2620_v23  ;;  %v3574_v23 = vld [vmem:[%s5593_s0 + $0x108] sm:$0xf0] }
  0x54   :  { %1625 = vmatmul.bf16.gmra.mxu0 %v2716_v20  ;;  %v2723_v20 = vld [vmem:[%s5593_s0 + $0xe0] sm:$0xf]  ;;  %v2732_v28 = vor.u32 %v3574_v23, %v2731_v22  ;;  %v3601_v23 = vld [vmem:[%s5593_s0 + $0x1e0] sm:$0xf0] }
  0x55   :  { %v2724_v25 = vor.u32 %v3573_v21, %v2723_v20  ;;  %v2831_v20 = vld [vmem:[%s5593_s0 + $0x1b8] sm:$0xf]  ;;  %v3600_v21 = vld [vmem:[%s5593_s0 + $0x1d8] sm:$0xf0]  ;;  %v2839_v22 = vld [vmem:[%s5593_s0 + $0x1c0] sm:$0xf] }
  0x56   :  { %2298 = vmatpush.bf16.msra.mxu3 %v3763_v9  ;;  %v2832_v26 = vor.u32 %v3600_v21, %v2831_v20  ;;  %v2840_v29 = vor.u32 %v3601_v23, %v2839_v22  ;;  %v3613_v20 = vld [vmem:[%s5593_s0 + $0x244] sm:$0xf]  ;;  %v2897_v21 = vld [vmem:[%s5593_s0 + $0x264] sm:$0xf0]  ;;  %v3618_v23 = vld [vmem:[%s5593_s0 + $0x268] sm:$0xf0] }
  0x57   :  { %v2903_v22 = vld [vmem:[%s5593_s0 + $0x248] sm:$0xf] }
  0x61   :  { %1655 = vmatmul.bf16.gmra.mxu1 %v2932_v34  ;;  %1680 = vmatmul.bf16.gmra.mxu2 %v3112_v35 }
  0x63   :  { %1912 = vmatmul.bf16.gmra.mxu3 %v2656_v39  ;;  %v2753_v39 = vld [vmem:[%s5593_s0 + $0x144] sm:$0xf0] }
  0x64   :  { %1630 = vmatmul.bf16.gmra.mxu0 %v2752_v36  ;;  %v2756_v45 = vor.u32 %v3577_v38, %v2753_v39 }
  0x71   :  { %1709 = vmatmul.bf16.vlgmr.msrb.gmra.mxu1 %v2612_v46  ;;  %1808 = vmatmul.bf16.vlgmr.msrb.gmra.mxu2 %v2616_v47  ;;  %v2760_v46 = vor.u32 %v3582_v41, %v2759_v40 }
  0x73   :  { %1917 = vmatmul.bf16.gmra.mxu3 %v2692_v51 }
  0x74   :  { %2006 = vmatmul.bf16.vlgmr.msrb.gmra.mxu0 %v2624_v48  ;;  %v2768_v48 = vor.u32 %v3583_v43, %v2767_v42 }
  0x81   :  { %1714 = vmatmul.bf16.gmra.mxu1 %v2648_v61  ;;  %1813 = vmatmul.bf16.gmra.mxu2 %v2652_v62  ;;  %v3591_v61 = vld [vmem:[%s5593_s0 + $0x190] sm:$0xf0]  ;;  %v2803_v62 = vld [vmem:[%s5593_s0 + $0x178] sm:$0xf] }
  0x82   :  { %v2796_v2 = vor.u32 %v3591_v61, %v2795_v60 }
  0x83   :  { %1922 = vmatmul.bf16.gmra.mxu3 %v2728_v3  ;;  %v3755_v3 = vld [vmem:[%s5591_s1 + $0x1a0] sm:$0xff] }
  0x84   :  { %2011 = vmatmul.bf16.gmra.mxu0 %v2660_v63  ;;  %v3592_v63 = vld [vmem:[%s5593_s0 + $0x198] sm:$0xf0]  ;;  %2199 = vmatpush.bf16.msra.mxu2 %v3755_v3 }
  0x85   :  { %v2804_v5 = vor.u32 %v3592_v63, %v2803_v62  ;;  %v3623_v63 = vld [vmem:[%s5593_s0 + $0x294] sm:$0xf] }
  0x91   :  { %1719 = vmatmul.bf16.gmra.mxu1 %v2684_v10  ;;  %1818 = vmatmul.bf16.gmra.mxu2 %v2688_v11  ;;  %v2872_v11 = vor.u32 %v3605_v6, %v2869_v7  ;;  %v3754_v6 = vld [vmem:[%s5591_s1 + $0x198] sm:$0xff] }
  0x92   :  { %v3762_v7 = vld [vmem:[%s5591_s1 + $0x1d8] sm:$0xff]  ;;  %2200 = vmatpush.bf16.msra.mxu2 %v3754_v6 }
  0x93   :  { %1927 = vmatmul.bf16.gmra.mxu3 %v2764_v15 }
  0x94   :  { %2016 = vmatmul.bf16.gmra.mxu0 %v2696_v12  ;;  %v3747_v12 = vld [vmem:[%s5591_s1 + $0x160] sm:$0xff]  ;;  %2299 = vmatpush.bf16.msra.mxu3 %v3762_v7 }
  0x95   :  { %2100 = vmatpush.bf16.msra.mxu1 %v3747_v12 }
  0x99   :  { %2101 = vmatpush.bf16.msra.mxu1 %v3746_v16 }
  0x9e   :  { %v4291_v27 = vpop.f32.mrf.mxu1 }
  0xa1   :  { %v4299_v31 = vpop.f32.mrf.mxu0  ;;  %1724 = vmatmul.bf16.gmra.mxu1 %v2720_v24  ;;  %1823 = vmatmul.bf16.gmra.mxu2 %v2724_v25  ;;  %v2828_v25 = vor.u32 %v3595_v18, %v2825_v19  ;;  %v3770_v19 = vld [vmem:[%s5591_s1 + $0x218] sm:$0xff] }
  0xa2   :  { %2398 = vmatpush.bf16.msra.mxu0 %v3770_v19 }
  0xa3   :  { %1932 = vmatmul.bf16.gmra.mxu3 %v2800_v32  ;;  %v2905_v32 = vld [vmem:[%s5593_s0 + $0x26c] sm:$0xf0] }
  0xa4   :  { %2021 = vmatmul.bf16.gmra.mxu0 %v2732_v28  ;;  %v4304_v34 = vpop.f32.mrf.mxu2  ;;  %v2908_v39 = vor.u32 %v3614_v30, %v2905_v32 }
  0xa6   :  { %v4306_v35 = vpop.f32.mrf.mxu1  ;;  %v4310_v37 = vpop.f32.mrf.mxu3 }
  0xa9   :  { %v4308_v36 = vpop.f32.mrf.mxu0 }
  0xac   :  { %v4330_v44 = vpop.f32.mrf.mxu2 }
  0xae   :  { %v4332_v47 = vpop.f32.mrf.mxu1  ;;  %v4342_v52 = vpop.f32.mrf.mxu3 }
  0xb1   :  { %v4340_v51 = vpop.f32.mrf.mxu0  ;;  %1729 = vmatmul.bf16.gmra.mxu1 %v2756_v45  ;;  %1828 = vmatmul.bf16.gmra.mxu2 %v2760_v46  ;;  %v3604_v45 = vld [vmem:[%s5593_s0 + $0x1fc] sm:$0xf]  ;;  %v2861_v46 = vld [vmem:[%s5593_s0 + $0x21c] sm:$0xf0] }
  0xb2   :  { %v2864_v59 = vor.u32 %v3604_v45, %v2861_v46  ;;  %v2904_v45 = vor.u32 %v3618_v23, %v2903_v22  ;;  %v2933_v22 = vld [vmem:[%s5593_s0 + $0x2ac] sm:$0xf0]  ;;  %v2947_v23 = vld [vmem:[%s5593_s0 + $0x298] sm:$0xf] }
  0xb3   :  { %1937 = vmatmul.bf16.gmra.mxu3 %v2836_v53  ;;  %v3610_v53 = vld [vmem:[%s5593_s0 + $0x228] sm:$0xf0] }
  0xb4   :  { %2026 = vmatmul.bf16.gmra.mxu0 %v2768_v48  ;;  %v4344_v54 = vpop.f32.mrf.mxu2  ;;  %v2867_v48 = vld [vmem:[%s5593_s0 + $0x200] sm:$0xf]  ;;  %v2876_v62 = vor.u32 %v3610_v53, %v2875_v50 }
  0xb5   :  { %v2868_v60 = vor.u32 %v3609_v49, %v2867_v48  ;;  %v3632_v49 = vld [vmem:[%s5593_s0 + $0x2dc] sm:$0xf]  ;;  %v2977_v50 = vld [vmem:[%s5593_s0 + $0x2fc] sm:$0xf0] }
  0xb6   :  { %v4346_v55 = vpop.f32.mrf.mxu1  ;;  %v4350_v57 = vpop.f32.mrf.mxu3 }
  0xb9   :  { %v4348_v56 = vpop.f32.mrf.mxu0 }
  0xbc   :  { %v4370_v0 = vpop.f32.mrf.mxu2 }
  0xbe   :  { %v4375_v4 = vpop.f32.mrf.mxu1  ;;  %v4388_v10 = vpop.f32.mrf.mxu3 }
  0xc1   :  { %v4383_v8 = vpop.f32.mrf.mxu0  ;;  %1734 = vmatmul.bf16.gmra.mxu1 %v2792_v1  ;;  %1833 = vmatmul.bf16.gmra.mxu2 %v2796_v2  ;;  %v2941_v1 = vld [vmem:[%s5593_s0 + $0x2b4] sm:$0xf0] }
  0xc3   :  { %1942 = vmatmul.bf16.gmra.mxu3 %v2872_v11 }
  0xc4   :  { %2031 = vmatmul.bf16.gmra.mxu0 %v2804_v5  ;;  %v4393_v13 = vpop.f32.mrf.mxu2  ;;  %v2944_v5 = vor.u32 %v3623_v63, %v2941_v1 }
  0xc6   :  { %v4395_v14 = vpop.f32.mrf.mxu1  ;;  %v4402_v17 = vpop.f32.mrf.mxu3 }
  0xc9   :  { %v4397_v15 = vpop.f32.mrf.mxu0 }
  0xcc   :  { %v4422_v24 = vpop.f32.mrf.mxu2 }
  0xce   :  { %v4424_v28 = vpop.f32.mrf.mxu1  ;;  %v4434_v38 = vpop.f32.mrf.mxu3 }
  0xd1   :  { %v4432_v33 = vpop.f32.mrf.mxu0  ;;  %1739 = vmatmul.bf16.gmra.mxu1 %v2828_v25  ;;  %1838 = vmatmul.bf16.gmra.mxu2 %v2832_v26  ;;  %v4509_v25 = vld [vmem:[%s5592_s2] ss:$0 sm:$0xff]  ;;  %v2911_v26 = vld [vmem:[%s5593_s0 + $0x250] sm:$0xf] }
  0xd2   :  { %v1612_v32 = vadd.f32 %v4509_v25, %v4299_v31  ;;  %v1614_v63 = vadd.f32 %v4509_v25, %v4308_v36  ;;  %v2939_v36 = vld [vmem:[%s5593_s0 + $0x290] sm:$0xf] }
  0xd3   :  { %1947 = vmatmul.bf16.gmra.mxu3 %v2908_v39  ;;  %v2900_v39 = vor.u32 %v3613_v20, %v2897_v21  ;;  %v3622_v20 = vld [vmem:[%s5593_s0 + $0x28c] sm:$0xf] }
  0xd4   :  { %2036 = vmatmul.bf16.gmra.mxu0 %v2840_v29  ;;  %v4436_v40 = vpop.f32.mrf.mxu2  ;;  %v3619_v29 = vld [vmem:[%s5593_s0 + $0x270] sm:$0xf0] }
  0xd5   :  { %v2912_v48 = vor.u32 %v3619_v29, %v2911_v26  ;;  %v3628_v26 = vld [vmem:[%s5593_s0 + $0x2b8] sm:$0xf0] }
  0xd6   :  { %v4438_v41 = vpop.f32.mrf.mxu1  ;;  %v1908_v43 = vpop.f32.mrf.mxu3 }
  0xd9   :  { %v4440_v42 = vpop.f32.mrf.mxu0 }
  0xdc   :  { %v4460_v58 = vpop.f32.mrf.mxu2 }
  0xde   :  { %v4462_v61 = vpop.f32.mrf.mxu1  ;;  %v4472_v3 = vpop.f32.mrf.mxu3 }
  0xe1   :  { %v4470_v2 = vpop.f32.mrf.mxu0  ;;  %1744 = vmatmul.bf16.gmra.mxu1 %v2864_v59  ;;  %1843 = vmatmul.bf16.gmra.mxu2 %v2868_v60 }
  0xe3   :  { %1952 = vmatmul.bf16.gmra.mxu3 %v2944_v5 }
  0xe4   :  { %2041 = vmatmul.bf16.gmra.mxu0 %v2876_v62  ;;  %v4480_v9 = vpop.f32.mrf.mxu2  ;;  %v2980_v62 = vor.u32 %v3632_v49, %v2977_v50  ;;  %v2948_v49 = vor.u32 %v3628_v26, %v2947_v23  ;;  %v3641_v50 = vld [vmem:[%s5593_s0 + $0x324] sm:$0xf]  ;;  %v3745_v23 = vld [vmem:[%s5591_s1 + $0x150] sm:$0xff] }
  0xe5   :  { %2102 = vmatpush.bf16.msra.mxu1 %v3745_v23  ;;  %v1624_v23 = vadd.f32 %v4509_v25, %v4397_v15  ;;  %v3011_v15 = vld [vmem:[%s5593_s0 + $0x320] sm:$0xf] }
  0xe6   :  { %v4482_v11 = vpop.f32.mrf.mxu1  ;;  %v4489_v18 = vpop.f32.mrf.mxu3 }
  0xe9   :  { %v4484_v12 = vpop.f32.mrf.mxu0 }
  0xec   :  { %v4517_v30 = vpop.f32.mrf.mxu2 }
  0xee   :  { %v1710_v46 = vpop.f32.mrf.mxu1  ;;  %v4527_v60 = vpop.f32.mrf.mxu3 }
  0xef   :  { %v1711_v53 = vadd.f32 %v1710_v46, %v1612_v32  ;;  %v1617_v32 = vadd.f32 %v4509_v25, %v4340_v51 }
  0xf1   :  { %v2007_v59 = vpop.f32.mrf.mxu0  ;;  %1749 = vmatmul.bf16.gmra.mxu1 %v2900_v39  ;;  %1848 = vmatmul.bf16.gmra.mxu2 %v2904_v45  ;;  %v2936_v45 = vor.u32 %v3622_v20, %v2933_v22 }
  0xf3   :  { %1957 = vmatmul.bf16.gmra.mxu3 %v2980_v62 }
  0xf4   :  { %2046 = vmatmul.bf16.gmra.mxu0 %v2912_v48  ;;  %v1809_v31 = vpop.f32.mrf.mxu2 }
  0xf5   :  { %v1810_v1 = vadd.f32 %v1809_v31, %v1711_v53  ;;  %v3013_v53 = vld [vmem:[%s5593_s0 + $0x344] sm:$0xf0] }
  0xf6   :  { %v1712_v5 = vpop.f32.mrf.mxu1  ;;  %v4531_v19 = vpop.f32.mrf.mxu3  ;;  %v3016_v51 = vor.u32 %v3641_v50, %v3013_v53 }
  0xf7   :  { %v1909_v6 = vadd.f32 %v1908_v43, %v1810_v1  ;;  %v1713_v7 = vadd.f32 %v1712_v5, %v1614_v63  ;;  %v3627_v43 = vld [vmem:[%s5593_s0 + $0x2b0] sm:$0xf0] }
  0xf8   :  { %v2940_v46 = vor.u32 %v3627_v43, %v2939_v36  ;;  %v3753_v43 = vld [vmem:[%s5591_s1 + $0x190] sm:$0xff] }
  0xf9   :  { %v2009_v16 = vpop.f32.mrf.mxu0  ;;  %v4536_v21 = vadd.f32 %v2007_v59, %v1909_v6  ;;  %v1619_v6 = vadd.f32 %v4509_v25, %v4348_v56  ;;  %2201 = vmatpush.bf16.msra.mxu2 %v3753_v43 }
  0xfc   :  { %v1811_v29 = vpop.f32.mrf.mxu2 }
  0xfd   :  { %v1812_v39 = vadd.f32 %v1811_v29, %v1713_v7  ;;  %v2969_v29 = vld [vmem:[%s5593_s0 + $0x2f4] sm:$0xf0] }
  0xfe   :  { %v1715_v48 = vpop.f32.mrf.mxu1  ;;  %v4562_v63 = vpop.f32.mrf.mxu3 }
  0xff   :  { %v1911_v59 = vadd.f32 %v4472_v3, %v1812_v39  ;;  %v1716_v62 = vadd.f32 %v1715_v48, %v1617_v32  ;;  %v2975_v32 = vld [vmem:[%s5593_s0 + $0x2d8] sm:$0xf]  ;;  %v3636_v39 = vld [vmem:[%s5593_s0 + $0x2f8] sm:$0xf0] }
 0x101   :  { %v2012_v31 = vpop.f32.mrf.mxu0  ;;  %1754 = vmatmul.bf16.gmra.mxu1 %v2936_v45  ;;  %1853 = vmatmul.bf16.gmra.mxu2 %v2940_v46  ;;  %v4564_v1 = vadd.f32 %v2009_v16, %v1911_v59  ;;  %v3761_v16 = vld [vmem:[%s5591_s1 + $0x1d0] sm:$0xff]  ;;  %v2983_v45 = vld [vmem:[%s5593_s0 + $0x2e0] sm:$0xf]  ;;  %v3637_v46 = vld [vmem:[%s5593_s0 + $0x300] sm:$0xf0]  ;;  %v2976_v59 = vor.u32 %v3636_v39, %v2975_v32 }
 0x102   :  { %2300 = vmatpush.bf16.msra.mxu3 %v3761_v16 }
 0x103   :  { %1962 = vmatmul.bf16.gmra.mxu3 %v3016_v51  ;;  %v3650_v51 = vld [vmem:[%s5593_s0 + $0x36c] sm:$0xf] }
 0x104   :  { %2051 = vmatmul.bf16.gmra.mxu0 %v2948_v49  ;;  %v1814_v5 = vpop.f32.mrf.mxu2  ;;  %v1622_v49 = vadd.f32 %v4509_v25, %v4383_v8  ;;  %v3769_v8 = vld [vmem:[%s5591_s1 + $0x210] sm:$0xff] }
 0x105   :  { %v1815_v7 = vadd.f32 %v1814_v5, %v1716_v62  ;;  %v3049_v5 = vld [vmem:[%s5593_s0 + $0x38c] sm:$0xf0]  ;;  %2399 = vmatpush.bf16.msra.mxu0 %v3769_v8 }
 0x106   :  { %v1717_v20 = vpop.f32.mrf.mxu1  ;;  %v4578_v56 = vpop.f32.mrf.mxu3 }
 0x107   :  { %v1914_v22 = vadd.f32 %v4489_v18, %v1815_v7  ;;  %v1718_v3 = vadd.f32 %v1717_v20, %v1619_v6  ;;  %v3631_v18 = vld [vmem:[%s5593_s0 + $0x2d4] sm:$0xf] }
 0x108   :  { %v2972_v53 = vor.u32 %v3631_v18, %v2969_v29 }
 0x109   :  { %v2014_v36 = vpop.f32.mrf.mxu0  ;;  %v4583_v26 = vadd.f32 %v2012_v31, %v1914_v22  ;;  %v2984_v31 = vor.u32 %v3637_v46, %v2983_v45 }
 0x10c   :  { %v1816_v48 = vpop.f32.mrf.mxu2 }
 0x10d   :  { %v1817_v50 = vadd.f32 %v1816_v48, %v1718_v3  ;;  %v3052_v3 = vor.u32 %v3650_v51, %v3049_v5  ;;  %v3005_v48 = vld [vmem:[%s5593_s0 + $0x33c] sm:$0xf0] }
 0x10e   :  { %v1720_v62 = vpop.f32.mrf.mxu1  ;;  %v4612_v22 = vpop.f32.mrf.mxu3 }
 0x10f   :  { %v1916_v6 = vadd.f32 %v4527_v60, %v1817_v50  ;;  %v1721_v7 = vadd.f32 %v1720_v62, %v1622_v49  ;;  %v3019_v49 = vld [vmem:[%s5593_s0 + $0x328] sm:$0xf]  ;;  %v3646_v50 = vld [vmem:[%s5593_s0 + $0x348] sm:$0xf0] }
 0x111   :  { %v2017_v20 = vpop.f32.mrf.mxu0  ;;  %1759 = vmatmul.bf16.gmra.mxu1 %v2972_v53  ;;  %1858 = vmatmul.bf16.gmra.mxu2 %v2976_v59  ;;  %v4614_v43 = vadd.f32 %v2014_v36, %v1916_v6  ;;  %v3640_v36 = vld [vmem:[%s5593_s0 + $0x31c] sm:$0xf]  ;;  %v1627_v59 = vadd.f32 %v4509_v25, %v4432_v33  ;;  %v3020_v6 = vor.u32 %v3646_v50, %v3019_v49 }
 0x113   :  { %1967 = vmatmul.bf16.gmra.mxu3 %v3052_v3 }
 0x114   :  { %2056 = vmatmul.bf16.gmra.mxu0 %v2984_v31  ;;  %v1819_v16 = vpop.f32.mrf.mxu2  ;;  %v3008_v31 = vor.u32 %v3640_v36, %v3005_v48 }
 0x115   :  { %v1820_v60 = vadd.f32 %v1819_v16, %v1721_v7  ;;  %v3659_v7 = vld [vmem:[%s5593_s0 + $0x3b4] sm:$0xf] }
 0x116   :  { %v1722_v18 = vpop.f32.mrf.mxu1  ;;  %v4619_v45 = vpop.f32.mrf.mxu3 }
 0x117   :  { %v1919_v29 = vadd.f32 %v4531_v19, %v1820_v60  ;;  %v1723_v32 = vadd.f32 %v1722_v18, %v1624_v23  ;;  %v3645_v19 = vld [vmem:[%s5593_s0 + $0x340] sm:$0xf0] }
 0x118   :  { %v3012_v51 = vor.u32 %v3645_v19, %v3011_v15  ;;  %v3752_v19 = vld [vmem:[%s5591_s1 + $0x188] sm:$0xff] }
 0x119   :  { %v2019_v39 = vpop.f32.mrf.mxu0  ;;  %v4624_v46 = vadd.f32 %v2017_v20, %v1919_v29  ;;  %v3085_v20 = vld [vmem:[%s5593_s0 + $0x3d4] sm:$0xf0]  ;;  %v1629_v29 = vadd.f32 %v4509_v25, %v4440_v42  ;;  %v3649_v42 = vld [vmem:[%s5593_s0 + $0x364] sm:$0xf]  ;;  %2202 = vmatpush.bf16.msra.mxu2 %v3752_v19  ;;  %v3768_v19 = vld [vmem:[%s5591_s1 + $0x208] sm:$0xff] }
 0x11a   :  { %v3088_v33 = vor.u32 %v3659_v7, %v3085_v20  ;;  %2400 = vmatpush.bf16.msra.mxu0 %v3768_v19 }
 0x11c   :  { %v1821_v53 = vpop.f32.mrf.mxu2 }
 0x11d   :  { %v1822_v62 = vadd.f32 %v1821_v53, %v1723_v32  ;;  %v3047_v53 = vld [vmem:[%s5593_s0 + $0x368] sm:$0xf] }
 0x11e   :  { %v1725_v5 = vpop.f32.mrf.mxu1  ;;  %v4650_v23 = vpop.f32.mrf.mxu3 }
 0x11f   :  { %v1921_v8 = vadd.f32 %v4562_v63, %v1822_v62  ;;  %v1726_v3 = vadd.f32 %v1725_v5, %v1627_v59  ;;  %v3654_v59 = vld [vmem:[%s5593_s0 + $0x388] sm:$0xf0]  ;;  %v3055_v62 = vld [vmem:[%s5593_s0 + $0x370] sm:$0xf]  ;;  %v1632_v5 = vadd.f32 %v4509_v25, %v4470_v2 }
 0x120   :  { %v3048_v20 = vor.u32 %v3654_v59, %v3047_v53  ;;  %v3744_v2 = vld [vmem:[%s5591_s1 + $0x148] sm:$0xff] }
 0x121   :  { %v2022_v16 = vpop.f32.mrf.mxu0  ;;  %1764 = vmatmul.bf16.gmra.mxu1 %v3008_v31  ;;  %1863 = vmatmul.bf16.gmra.mxu2 %v3012_v51  ;;  %v4652_v60 = vadd.f32 %v2019_v39, %v1921_v8  ;;  %v3760_v39 = vld [vmem:[%s5591_s1 + $0x1c8] sm:$0xff]  ;;  %v3655_v31 = vld [vmem:[%s5593_s0 + $0x390] sm:$0xf0] }
 0x122   :  { %2301 = vmatpush.bf16.msra.mxu3 %v3760_v39  ;;  %2103 = vmatpush.bf16.msra.mxu1 %v3744_v2  ;;  %v1634_v39 = vadd.f32 %v4509_v25, %v4484_v12  ;;  %v3083_v12 = vld [vmem:[%s5593_s0 + $0x3b0] sm:$0xf]  ;;  %v3157_v2 = vld [vmem:[%s5593_s0 + $0x464] sm:$0xf0] }
 0x123   :  { %1972 = vmatmul.bf16.gmra.mxu3 %v3088_v33  ;;  %v3121_v33 = vld [vmem:[%s5593_s0 + $0x41c] sm:$0xf0] }
 0x124   :  { %2061 = vmatmul.bf16.gmra.mxu0 %v3020_v6  ;;  %v1824_v18 = vpop.f32.mrf.mxu2 }
 0x125   :  { %v1825_v32 = vadd.f32 %v1824_v18, %v1726_v3  ;;  %v3056_v3 = vor.u32 %v3655_v31, %v3055_v62  ;;  %v3658_v31 = vld [vmem:[%s5593_s0 + $0x3ac] sm:$0xf] }
 0x126   :  { %v1727_v36 = vpop.f32.mrf.mxu1  ;;  %v4660_v49 = vpop.f32.mrf.mxu3 }
 0x127   :  { %v1924_v48 = vadd.f32 %v4578_v56, %v1825_v32  ;;  %v1728_v63 = vadd.f32 %v1727_v36, %v1629_v29  ;;  %v3041_v56 = vld [vmem:[%s5593_s0 + $0x384] sm:$0xf0] }
 0x128   :  { %v3044_v7 = vor.u32 %v3649_v42, %v3041_v56 }
 0x129   :  { %v2024_v15 = vpop.f32.mrf.mxu0  ;;  %v4668_v50 = vadd.f32 %v2022_v16, %v1924_v48  ;;  %v3668_v16 = vld [vmem:[%s5593_s0 + $0x3fc] sm:$0xf] }
 0x12a   :  { %v3124_v48 = vor.u32 %v3668_v16, %v3121_v33 }
 0x12c   :  { %v1826_v51 = vpop.f32.mrf.mxu2 }
 0x12d   :  { %v1827_v6 = vadd.f32 %v1826_v51, %v1728_v63 }
 0x12e   :  { %v1730_v8 = vpop.f32.mrf.mxu1  ;;  %v4697_v36 = vpop.f32.mrf.mxu3 }
 0x12f   :  { %v1926_v18 = vadd.f32 %v4612_v22, %v1827_v6  ;;  %v1731_v29 = vadd.f32 %v1730_v8, %v1632_v5  ;;  %v3077_v5 = vld [vmem:[%s5593_s0 + $0x3cc] sm:$0xf0]  ;;  %v3091_v6 = vld [vmem:[%s5593_s0 + $0x3b8] sm:$0xf]  ;;  %v1637_v8 = vadd.f32 %v4509_v25, %v4291_v27 }
 0x130   :  { %v3080_v16 = vor.u32 %v3658_v31, %v3077_v5 }
 0x131   :  { %v2027_v32 = vpop.f32.mrf.mxu0  ;;  %1769 = vmatmul.bf16.gmra.mxu1 %v3044_v7  ;;  %1868 = vmatmul.bf16.gmra.mxu2 %v3048_v20  ;;  %v4699_v63 = vadd.f32 %v2024_v15, %v1926_v18  ;;  %v3664_v7 = vld [vmem:[%s5593_s0 + $0x3d8] sm:$0xf0] }
 0x133   :  { %1977 = vmatmul.bf16.gmra.mxu3 %v3124_v48 }
 0x134   :  { %2066 = vmatmul.bf16.gmra.mxu0 %v3056_v3  ;;  %v1829_v22 = vpop.f32.mrf.mxu2 }
 0x135   :  { %v1830_v42 = vadd.f32 %v1829_v22, %v1731_v29  ;;  %v3092_v29 = vor.u32 %v3664_v7, %v3091_v6  ;;  %v3667_v6 = vld [vmem:[%s5593_s0 + $0x3f4] sm:$0xf]  ;;  %v3113_v7 = vld [vmem:[%s5593_s0 + $0x414] sm:$0xf0] }
 0x136   :  { %v1732_v56 = vpop.f32.mrf.mxu1  ;;  %v4707_v15 = vpop.f32.mrf.mxu3 }
 0x137   :  { %v1929_v53 = vadd.f32 %v4619_v45, %v1830_v42  ;;  %v1733_v59 = vadd.f32 %v1732_v56, %v1634_v39  ;;  %v3663_v45 = vld [vmem:[%s5593_s0 + $0x3d0] sm:$0xf0] }
 0x138   :  { %v3084_v33 = vor.u32 %v3663_v45, %v3083_v12 }
 0x139   :  { %v2029_v62 = vpop.f32.mrf.mxu0  ;;  %v4712_v51 = vadd.f32 %v2027_v32, %v1929_v53  ;;  %v3677_v32 = vld [vmem:[%s5593_s0 + $0x444] sm:$0xf]  ;;  %v1639_v53 = vadd.f32 %v4509_v25, %v4306_v35  ;;  %v3119_v35 = vld [vmem:[%s5593_s0 + $0x3f8] sm:$0xf] }
 0x13a   :  { %v3160_v27 = vor.u32 %v3677_v32, %v3157_v2 }
 0x13c   :  { %v1831_v20 = vpop.f32.mrf.mxu2 }
 0x13d   :  { %v1832_v3 = vadd.f32 %v1831_v20, %v1733_v59  ;;  %v3127_v20 = vld [vmem:[%s5593_s0 + $0x400] sm:$0xf] }
 0x13e   :  { %v1735_v18 = vpop.f32.mrf.mxu1  ;;  %v4738_v39 = vpop.f32.mrf.mxu3 }
 0x13f   :  { %v1931_v48 = vadd.f32 %v4650_v23, %v1832_v3  ;;  %v1736_v19 = vadd.f32 %v1735_v18, %v1637_v8  ;;  %v3673_v8 = vld [vmem:[%s5593_s0 + $0x420] sm:$0xf0]  ;;  %v3116_v18 = vor.u32 %v3667_v6, %v3113_v7  ;;  %v1644_v6 = vadd.f32 %v4509_v25, %v4346_v55  ;;  %v3149_v55 = vld [vmem:[%s5593_s0 + $0x45c] sm:$0xf0] }
 0x140   :  { %v3128_v2 = vor.u32 %v3673_v8, %v3127_v20 }
 0x141   :  { %v2032_v22 = vpop.f32.mrf.mxu0  ;;  %1774 = vmatmul.bf16.gmra.mxu1 %v3080_v16  ;;  %1873 = vmatmul.bf16.gmra.mxu2 %v3084_v33  ;;  %v4740_v42 = vadd.f32 %v2029_v62, %v1931_v48  ;;  %v1642_v16 = vadd.f32 %v4509_v25, %v4332_v47  ;;  %v3686_v48 = vld [vmem:[%s5593_s0 + $0x48c] sm:$0xf]  ;;  %v3751_v47 = vld [vmem:[%s5591_s1 + $0x180] sm:$0xff] }
 0x142   :  { %2203 = vmatpush.bf16.msra.mxu2 %v3751_v47 }
 0x143   :  { %1982 = vmatmul.bf16.gmra.mxu3 %v3160_v27 }
 0x144   :  { %2071 = vmatmul.bf16.gmra.mxu0 %v3092_v29  ;;  %v1834_v56 = vpop.f32.mrf.mxu2 }
 0x145   :  { %v1835_v59 = vadd.f32 %v1834_v56, %v1736_v19  ;;  %v3193_v19 = vld [vmem:[%s5593_s0 + $0x4ac] sm:$0xf0] }
 0x146   :  { %v1737_v31 = vpop.f32.mrf.mxu1  ;;  %v4745_v45 = vpop.f32.mrf.mxu3 }
 0x147   :  { %v1934_v5 = vadd.f32 %v4660_v49, %v1835_v59  ;;  %v1738_v23 = vadd.f32 %v1737_v31, %v1639_v53  ;;  %v3672_v49 = vld [vmem:[%s5593_s0 + $0x418] sm:$0xf0]  ;;  %v3759_v53 = vld [vmem:[%s5591_s1 + $0x1c0] sm:$0xff]  ;;  %v3196_v31 = vor.u32 %v3686_v48, %v3193_v19  ;;  %v1647_v48 = vadd.f32 %v4509_v25, %v4375_v4 }
 0x148   :  { %v3120_v29 = vor.u32 %v3672_v49, %v3119_v35  ;;  %2302 = vmatpush.bf16.msra.mxu3 %v3759_v53  ;;  %v3695_v53 = vld [vmem:[%s5593_s0 + $0x4d4] sm:$0xf] }
 0x149   :  { %v2034_v12 = vpop.f32.mrf.mxu0  ;;  %v4750_v62 = vadd.f32 %v2032_v22, %v1934_v5  ;;  %v3743_v5 = vld [vmem:[%s5591_s1 + $0x140] sm:$0xff] }
 0x14a   :  { %2104 = vmatpush.bf16.msra.mxu1 %v3743_v5 }
 0x14c   :  { %v1836_v3 = vpop.f32.mrf.mxu2 }
 0x14d   :  { %v1837_v33 = vadd.f32 %v1836_v3, %v1738_v23 }
 0x14e   :  { %v1740_v32 = vpop.f32.mrf.mxu1  ;;  %v4782_v59 = vpop.f32.mrf.mxu3 }
 0x14f   :  { %v1936_v22 = vadd.f32 %v4697_v36, %v1837_v33  ;;  %v1741_v27 = vadd.f32 %v1740_v32, %v1642_v16  ;;  %v3676_v16 = vld [vmem:[%s5593_s0 + $0x43c] sm:$0xf]  ;;  %v3682_v32 = vld [vmem:[%s5593_s0 + $0x468] sm:$0xf0] }
 0x151   :  { %v2037_v56 = vpop.f32.mrf.mxu0  ;;  %1779 = vmatmul.bf16.gmra.mxu1 %v3116_v18  ;;  %1878 = vmatmul.bf16.gmra.mxu2 %v3120_v29  ;;  %v4787_v36 = vadd.f32 %v2034_v12, %v1936_v22  ;;  %v3767_v12 = vld [vmem:[%s5591_s1 + $0x200] sm:$0xff]  ;;  %v3163_v29 = vld [vmem:[%s5593_s0 + $0x448] sm:$0xf]  ;;  %v3152_v22 = vor.u32 %v3676_v16, %v3149_v55 }
 0x152   :  { %2401 = vmatpush.bf16.msra.mxu0 %v3767_v12  ;;  %v3681_v18 = vld [vmem:[%s5593_s0 + $0x460] sm:$0xf0]  ;;  %v3164_v47 = vor.u32 %v3682_v32, %v3163_v29  ;;  %v3185_v32 = vld [vmem:[%s5593_s0 + $0x4a4] sm:$0xf0] }
 0x153   :  { %1987 = vmatmul.bf16.gmra.mxu3 %v3196_v31  ;;  %v3229_v31 = vld [vmem:[%s5593_s0 + $0x4f4] sm:$0xf0]  ;;  %v3685_v29 = vld [vmem:[%s5593_s0 + $0x484] sm:$0xf] }
 0x154   :  { %2076 = vmatmul.bf16.gmra.mxu0 %v3128_v2  ;;  %v1839_v23 = vpop.f32.mrf.mxu2  ;;  %v3232_v4 = vor.u32 %v3695_v53, %v3229_v31 }
 0x155   :  { %v1840_v7 = vadd.f32 %v1839_v23, %v1741_v27 }
 0x156   :  { %v1742_v35 = vpop.f32.mrf.mxu1  ;;  %v4795_v3 = vpop.f32.mrf.mxu3 }
 0x157   :  { %v1939_v49 = vadd.f32 %v4707_v15, %v1840_v7  ;;  %v1743_v20 = vadd.f32 %v1742_v35, %v1644_v6  ;;  %v3155_v15 = vld [vmem:[%s5593_s0 + $0x440] sm:$0xf] }
 0x158   :  { %v3156_v27 = vor.u32 %v3681_v18, %v3155_v15 }
 0x159   :  { %v2039_v8 = vpop.f32.mrf.mxu0  ;;  %v4800_v33 = vadd.f32 %v2037_v56, %v1939_v49 }
 0x15c   :  { %v1841_v2 = vpop.f32.mrf.mxu2 }
 0x15d   :  { %v1842_v19 = vadd.f32 %v1841_v2, %v1743_v20  ;;  %v1649_v20 = vadd.f32 %v4509_v25, %v4395_v14  ;;  %v3191_v14 = vld [vmem:[%s5593_s0 + $0x488] sm:$0xf]  ;;  %v3199_v2 = vld [vmem:[%s5593_s0 + $0x490] sm:$0xf] }
 0x15e   :  { %v1745_v56 = vpop.f32.mrf.mxu1  ;;  %v4826_v7 = vpop.f32.mrf.mxu3 }
 0x15f   :  { %v1941_v5 = vadd.f32 %v4738_v39, %v1842_v19  ;;  %v1746_v23 = vadd.f32 %v1745_v56, %v1647_v48  ;;  %v3691_v48 = vld [vmem:[%s5593_s0 + $0x4b0] sm:$0xf0]  ;;  %v3188_v56 = vor.u32 %v3685_v29, %v3185_v32 }
 0x160   :  { %v3200_v31 = vor.u32 %v3691_v48, %v3199_v2  ;;  %v3694_v2 = vld [vmem:[%s5593_s0 + $0x4cc] sm:$0xf]  ;;  %v3221_v48 = vld [vmem:[%s5593_s0 + $0x4ec] sm:$0xf0] }
 0x161   :  { %v2042_v6 = vpop.f32.mrf.mxu0  ;;  %1784 = vmatmul.bf16.gmra.mxu1 %v3152_v22  ;;  %1883 = vmatmul.bf16.gmra.mxu2 %v3156_v27  ;;  %v4828_v35 = vadd.f32 %v2039_v8, %v1941_v5  ;;  %v1652_v22 = vadd.f32 %v4509_v25, %v4424_v28  ;;  %v3544_v5 = vld [vmem:[%s5593_s0 + $0x1c] sm:$0xf] }
 0x163   :  { %1992 = vmatmul.bf16.gmra.mxu3 %v3232_v4 }
 0x164   :  { %2081 = vmatmul.bf16.gmra.mxu0 %v3164_v47  ;;  %v1844_v49 = vpop.f32.mrf.mxu2 }
 0x165   :  { %v1845_v12 = vadd.f32 %v1844_v49, %v1746_v23  ;;  %v2633_v23 = vld [vmem:[%s5593_s0 + $0x3c] sm:$0xf0] }
 0x166   :  { %v1747_v16 = vpop.f32.mrf.mxu1  ;;  %v4833_v18 = vpop.f32.mrf.mxu3  ;;  %v2636_v28 = vor.u32 %v3544_v5, %v2633_v23 }
 0x167   :  { %v1944_v55 = vadd.f32 %v4745_v45, %v1845_v12  ;;  %v1748_v39 = vadd.f32 %v1747_v16, %v1649_v20  ;;  %v3690_v45 = vld [vmem:[%s5593_s0 + $0x4a8] sm:$0xf0] }
 0x168   :  { %v3192_v47 = vor.u32 %v3690_v45, %v3191_v14 }
 0x169   :  { %v2044_v15 = vpop.f32.mrf.mxu0  ;;  %v4838_v8 = vadd.f32 %v2042_v6, %v1944_v55  ;;  %v1654_v55 = vadd.f32 %v4509_v25, %v4438_v41  ;;  %v3227_v41 = vld [vmem:[%s5593_s0 + $0x4d0] sm:$0xf] }
 0x16c   :  { %v1846_v19 = vpop.f32.mrf.mxu2 }
 0x16d   :  { %v1847_v27 = vadd.f32 %v1846_v19, %v1748_v39  ;;  %v3235_v19 = vld [vmem:[%s5593_s0 + $0x4d8] sm:$0xf] }
 0x16e   :  { %v1750_v53 = vpop.f32.mrf.mxu1  ;;  %v4864_v20 = vpop.f32.mrf.mxu3 }
 0x16f   :  { %v1946_v6 = vadd.f32 %v4782_v59, %v1847_v27  ;;  %v1751_v4 = vadd.f32 %v1750_v53, %v1652_v22  ;;  %v3700_v22 = vld [vmem:[%s5593_s0 + $0x4f8] sm:$0xf0]  ;;  %v3224_v53 = vor.u32 %v3694_v2, %v3221_v48 }
 0x170   :  { %v3236_v23 = vor.u32 %v3700_v22, %v3235_v19  ;;  %v3543_v19 = vld [vmem:[%s5593_s0 + $0x14] sm:$0xf]  ;;  %v2625_v22 = vld [vmem:[%s5593_s0 + $0x34] sm:$0xf0] }
 0x171   :  { %v2047_v49 = vpop.f32.mrf.mxu0  ;;  %1789 = vmatmul.bf16.gmra.mxu1 %v3188_v56  ;;  %1888 = vmatmul.bf16.gmra.mxu2 %v3192_v47  ;;  %v4866_v12 = vadd.f32 %v2044_v15, %v1946_v6  ;;  %v1657_v56 = vadd.f32 %v4509_v25, %v4462_v61  ;;  %v3553_v6 = vld [vmem:[%s5593_s0 + $0x64] sm:$0xf] }
 0x173   :  { %2303 = vmatmul.bf16.vlgmr.msra.gmra.mxu3 %v2636_v28 }
 0x174   :  { %2086 = vmatmul.bf16.gmra.mxu0 %v3200_v31  ;;  %v1849_v16 = vpop.f32.mrf.mxu2 }
 0x175   :  { %v1850_v39 = vadd.f32 %v1849_v16, %v1751_v4  ;;  %v2669_v4 = vld [vmem:[%s5593_s0 + $0x84] sm:$0xf0] }
 0x176   :  { %v1752_v29 = vpop.f32.mrf.mxu1  ;;  %v4871_v45 = vpop.f32.mrf.mxu3  ;;  %v2672_v61 = vor.u32 %v3553_v6, %v2669_v4 }
 0x177   :  { %v1949_v32 = vadd.f32 %v4795_v3, %v1850_v39  ;;  %v1753_v59 = vadd.f32 %v1752_v29, %v1654_v55  ;;  %v3699_v3 = vld [vmem:[%s5593_s0 + $0x4f0] sm:$0xf0] }
 0x178   :  { %v3228_v31 = vor.u32 %v3699_v3, %v3227_v41 }
 0x179   :  { %v2049_v14 = vpop.f32.mrf.mxu0  ;;  %v4876_v15 = vadd.f32 %v2047_v49, %v1949_v32  ;;  %v1659_v32 = vadd.f32 %v4509_v25, %v4482_v11  ;;  %v2631_v11 = vld [vmem:[%s5593_s0 + $0x18] sm:$0xf] }
 0x17c   :  { %v1851_v27 = vpop.f32.mrf.mxu2 }
 0x17d   :  { %v1852_v47 = vadd.f32 %v1851_v27, %v1753_v59  ;;  %v2639_v27 = vld [vmem:[%s5593_s0 + $0x20] sm:$0xf] }
 0x17e   :  { %v1755_v5 = vpop.f32.mrf.mxu1  ;;  %v4902_v55 = vpop.f32.mrf.mxu3 }
 0x17f   :  { %v1951_v49 = vadd.f32 %v4826_v7, %v1852_v47  ;;  %v1756_v28 = vadd.f32 %v1755_v5, %v1657_v56  ;;  %v3549_v56 = vld [vmem:[%s5593_s0 + $0x40] sm:$0xf0]  ;;  %v2628_v5 = vor.u32 %v3543_v19, %v2625_v22 }
 0x180   :  { %v2640_v4 = vor.u32 %v3549_v56, %v2639_v27  ;;  %v3552_v27 = vld [vmem:[%s5593_s0 + $0x5c] sm:$0xf]  ;;  %v2661_v56 = vld [vmem:[%s5593_s0 + $0x7c] sm:$0xf0] }
 0x181   :  { %v2052_v16 = vpop.f32.mrf.mxu0  ;;  %1794 = vmatmul.bf16.gmra.mxu1 %v3224_v53  ;;  %1893 = vmatmul.bf16.gmra.mxu2 %v3228_v31  ;;  %v4904_v39 = vadd.f32 %v2049_v14, %v1951_v49  ;;  %v1662_v53 = vadd.f32 %v4509_v25, %v4304_v34  ;;  %v3562_v49 = vld [vmem:[%s5593_s0 + $0xac] sm:$0xf] }
 0x183   :  { %2308 = vmatmul.bf16.gmra.mxu3 %v2672_v61 }
 0x184   :  { %2091 = vmatmul.bf16.gmra.mxu0 %v3236_v23  ;;  %v1854_v29 = vpop.f32.mrf.mxu2 }
 0x185   :  { %v1855_v59 = vadd.f32 %v1854_v29, %v1756_v28  ;;  %v2705_v28 = vld [vmem:[%s5593_s0 + $0xcc] sm:$0xf0] }
 0x186   :  { %v1757_v2 = vpop.f32.mrf.mxu1  ;;  %v4909_v3 = vpop.f32.mrf.mxu3  ;;  %v2708_v34 = vor.u32 %v3562_v49, %v2705_v28 }
 0x187   :  { %v1954_v48 = vadd.f32 %v4833_v18, %v1855_v59  ;;  %v1758_v7 = vadd.f32 %v1757_v2, %v1659_v32  ;;  %v3548_v18 = vld [vmem:[%s5593_s0 + $0x38] sm:$0xf0] }
 0x188   :  { %v2632_v23 = vor.u32 %v3548_v18, %v2631_v11 }
 0x189   :  { %v2054_v41 = vpop.f32.mrf.mxu0  ;;  %v4914_v14 = vadd.f32 %v2052_v16, %v1954_v48  ;;  %v1664_v48 = vadd.f32 %v4509_v25, %v4330_v44  ;;  %v2667_v44 = vld [vmem:[%s5593_s0 + $0x60] sm:$0xf] }
 0x18c   :  { %v1856_v47 = vpop.f32.mrf.mxu2 }
 0x18d   :  { %v1857_v31 = vadd.f32 %v1856_v47, %v1758_v7  ;;  %v2675_v47 = vld [vmem:[%s5593_s0 + $0x68] sm:$0xf] }
 0x18e   :  { %v1760_v6 = vpop.f32.mrf.mxu1  ;;  %v4940_v32 = vpop.f32.mrf.mxu3 }
 0x18f   :  { %v1956_v16 = vadd.f32 %v4864_v20, %v1857_v31  ;;  %v1761_v61 = vadd.f32 %v1760_v6, %v1662_v53  ;;  %v3558_v53 = vld [vmem:[%s5593_s0 + $0x88] sm:$0xf0]  ;;  %v2664_v6 = vor.u32 %v3552_v27, %v2661_v56 }
 0x190   :  { %v2676_v28 = vor.u32 %v3558_v53, %v2675_v47  ;;  %v3561_v47 = vld [vmem:[%s5593_s0 + $0xa4] sm:$0xf]  ;;  %v2697_v53 = vld [vmem:[%s5593_s0 + $0xc4] sm:$0xf0] }
 0x191   :  { %v2057_v29 = vpop.f32.mrf.mxu0  ;;  %2105 = vmatmul.bf16.vlgmr.msra.gmra.mxu1 %v2628_v5  ;;  %2204 = vmatmul.bf16.vlgmr.msra.gmra.mxu2 %v2632_v23  ;;  %v4942_v59 = vadd.f32 %v2054_v41, %v1956_v16  ;;  %v1667_v5 = vadd.f32 %v4509_v25, %v4344_v54  ;;  %v3571_v16 = vld [vmem:[%s5593_s0 + $0xf4] sm:$0xf] }
 0x193   :  { %2313 = vmatmul.bf16.gmra.mxu3 %v2708_v34 }
 0x194   :  { %2402 = vmatmul.bf16.vlgmr.msra.gmra.mxu0 %v2640_v4  ;;  %v1859_v2 = vpop.f32.mrf.mxu2 }
 0x195   :  { %v1860_v7 = vadd.f32 %v1859_v2, %v1761_v61  ;;  %v2741_v61 = vld [vmem:[%s5593_s0 + $0x114] sm:$0xf0] }
 0x196   :  { %v1762_v19 = vpop.f32.mrf.mxu1  ;;  %v4947_v18 = vpop.f32.mrf.mxu3  ;;  %v2744_v54 = vor.u32 %v3571_v16, %v2741_v61 }
 0x197   :  { %v1959_v22 = vadd.f32 %v4871_v45, %v1860_v7  ;;  %v1763_v20 = vadd.f32 %v1762_v19, %v1664_v48  ;;  %v3557_v45 = vld [vmem:[%s5593_s0 + $0x80] sm:$0xf0] }
 0x198   :  { %v2668_v4 = vor.u32 %v3557_v45, %v2667_v44 }
 0x199   :  { %v2059_v11 = vpop.f32.mrf.mxu0  ;;  %v4952_v41 = vadd.f32 %v2057_v29, %v1959_v22  ;;  %v1669_v22 = vadd.f32 %v4509_v25, %v4370_v0  ;;  %v2703_v0 = vld [vmem:[%s5593_s0 + $0xa8] sm:$0xf] }
 0x19c   :  { %v1861_v31 = vpop.f32.mrf.mxu2 }
 0x19d   :  { %v1862_v23 = vadd.f32 %v1861_v31, %v1763_v20  ;;  %v2711_v31 = vld [vmem:[%s5593_s0 + $0xb0] sm:$0xf] }
 0x19e   :  { %v1765_v49 = vpop.f32.mrf.mxu1  ;;  %v4978_v48 = vpop.f32.mrf.mxu3 }
 0x19f   :  { %v1961_v29 = vadd.f32 %v4902_v55, %v1862_v23  ;;  %v1766_v34 = vadd.f32 %v1765_v49, %v1667_v5  ;;  %v3567_v5 = vld [vmem:[%s5593_s0 + $0xd0] sm:$0xf0]  ;;  %v2700_v49 = vor.u32 %v3561_v47, %v2697_v53 }
 0x1a0   :  { %v2712_v61 = vor.u32 %v3567_v5, %v2711_v31  ;;  %v3570_v31 = vld [vmem:[%s5593_s0 + $0xec] sm:$0xf]  ;;  %v2733_v5 = vld [vmem:[%s5593_s0 + $0x10c] sm:$0xf0] }
 0x1a1   :  { %v2062_v2 = vpop.f32.mrf.mxu0  ;;  %2110 = vmatmul.bf16.gmra.mxu1 %v2664_v6  ;;  %2209 = vmatmul.bf16.gmra.mxu2 %v2668_v4  ;;  %v4980_v7 = vadd.f32 %v2059_v11, %v1961_v29  ;;  %v1672_v6 = vadd.f32 %v4509_v25, %v4393_v13  ;;  %v3580_v29 = vld [vmem:[%s5593_s0 + $0x13c] sm:$0xf] }
 0x1a3   :  { %2318 = vmatmul.bf16.gmra.mxu3 %v2744_v54 }
 0x1a4   :  { %2407 = vmatmul.bf16.gmra.mxu0 %v2676_v28  ;;  %v1864_v19 = vpop.f32.mrf.mxu2 }
 0x1a5   :  { %v1865_v20 = vadd.f32 %v1864_v19, %v1766_v34  ;;  %v2777_v34 = vld [vmem:[%s5593_s0 + $0x15c] sm:$0xf0] }
 0x1a6   :  { %v1767_v27 = vpop.f32.mrf.mxu1  ;;  %v4985_v45 = vpop.f32.mrf.mxu3  ;;  %v2780_v13 = vor.u32 %v3580_v29, %v2777_v34 }
 0x1a7   :  { %v1964_v56 = vadd.f32 %v4909_v3, %v1865_v20  ;;  %v1768_v55 = vadd.f32 %v1767_v27, %v1669_v22  ;;  %v3566_v3 = vld [vmem:[%s5593_s0 + $0xc8] sm:$0xf0] }
 0x1a8   :  { %v2704_v28 = vor.u32 %v3566_v3, %v2703_v0 }
 0x1a9   :  { %v2064_v44 = vpop.f32.mrf.mxu0  ;;  %v4990_v11 = vadd.f32 %v2062_v2, %v1964_v56  ;;  %v1674_v56 = vadd.f32 %v4509_v25, %v4422_v24  ;;  %v2739_v24 = vld [vmem:[%s5593_s0 + $0xf0] sm:$0xf] }
 0x1ac   :  { %v1866_v23 = vpop.f32.mrf.mxu2 }
 0x1ad   :  { %v1867_v4 = vadd.f32 %v1866_v23, %v1768_v55  ;;  %v2747_v23 = vld [vmem:[%s5593_s0 + $0xf8] sm:$0xf] }
 0x1ae   :  { %v1770_v16 = vpop.f32.mrf.mxu1  ;;  %v5016_v22 = vpop.f32.mrf.mxu3 }
 0x1af   :  { %v1966_v2 = vadd.f32 %v4940_v32, %v1867_v4  ;;  %v1771_v54 = vadd.f32 %v1770_v16, %v1672_v6  ;;  %v3576_v6 = vld [vmem:[%s5593_s0 + $0x118] sm:$0xf0]  ;;  %v2736_v16 = vor.u32 %v3570_v31, %v2733_v5 }
 0x1b0   :  { %v2748_v34 = vor.u32 %v3576_v6, %v2747_v23  ;;  %v3579_v23 = vld [vmem:[%s5593_s0 + $0x134] sm:$0xf]  ;;  %v2769_v6 = vld [vmem:[%s5593_s0 + $0x154] sm:$0xf0] }
 0x1b1   :  { %v2067_v19 = vpop.f32.mrf.mxu0  ;;  %2115 = vmatmul.bf16.gmra.mxu1 %v2700_v49  ;;  %2214 = vmatmul.bf16.gmra.mxu2 %v2704_v28  ;;  %v5018_v20 = vadd.f32 %v2064_v44, %v1966_v2  ;;  %v1677_v49 = vadd.f32 %v4509_v25, %v4436_v40  ;;  %v3589_v2 = vld [vmem:[%s5593_s0 + $0x184] sm:$0xf] }
 0x1b3   :  { %2323 = vmatmul.bf16.gmra.mxu3 %v2780_v13 }
 0x1b4   :  { %2412 = vmatmul.bf16.gmra.mxu0 %v2712_v61  ;;  %v1869_v27 = vpop.f32.mrf.mxu2 }
 0x1b5   :  { %v1870_v55 = vadd.f32 %v1869_v27, %v1771_v54  ;;  %v2813_v54 = vld [vmem:[%s5593_s0 + $0x1a4] sm:$0xf0] }
 0x1b6   :  { %v1772_v47 = vpop.f32.mrf.mxu1  ;;  %v5023_v3 = vpop.f32.mrf.mxu3  ;;  %v2816_v40 = vor.u32 %v3589_v2, %v2813_v54 }
 0x1b7   :  { %v1969_v53 = vadd.f32 %v4947_v18, %v1870_v55  ;;  %v1773_v32 = vadd.f32 %v1772_v47, %v1674_v56  ;;  %v3575_v18 = vld [vmem:[%s5593_s0 + $0x110] sm:$0xf0] }
 0x1b8   :  { %v2740_v61 = vor.u32 %v3575_v18, %v2739_v24 }
 0x1b9   :  { %v2069_v0 = vpop.f32.mrf.mxu0  ;;  %v5028_v44 = vadd.f32 %v2067_v19, %v1969_v53  ;;  %v1679_v53 = vadd.f32 %v4509_v25, %v4460_v58  ;;  %v2775_v58 = vld [vmem:[%s5593_s0 + $0x138] sm:$0xf] }
 0x1bc   :  { %v1871_v4 = vpop.f32.mrf.mxu2 }
 0x1bd   :  { %v1872_v28 = vadd.f32 %v1871_v4, %v1773_v32  ;;  %v2783_v4 = vld [vmem:[%s5593_s0 + $0x140] sm:$0xf] }
 0x1be   :  { %v1775_v29 = vpop.f32.mrf.mxu1  ;;  %v5054_v56 = vpop.f32.mrf.mxu3 }
 0x1bf   :  { %v1971_v19 = vadd.f32 %v4978_v48, %v1872_v28  ;;  %v1776_v13 = vadd.f32 %v1775_v29, %v1677_v49  ;;  %v3585_v49 = vld [vmem:[%s5593_s0 + $0x160] sm:$0xf0]  ;;  %v2772_v29 = vor.u32 %v3579_v23, %v2769_v6 }
 0x1c0   :  { %v2784_v54 = vor.u32 %v3585_v49, %v2783_v4  ;;  %v2805_v49 = vld [vmem:[%s5593_s0 + $0x19c] sm:$0xf0] }
 0x1c1   :  { %v2072_v27 = vpop.f32.mrf.mxu0  ;;  %2120 = vmatmul.bf16.gmra.mxu1 %v2736_v16  ;;  %2219 = vmatmul.bf16.gmra.mxu2 %v2740_v61  ;;  %v5056_v55 = vadd.f32 %v2069_v0, %v1971_v19  ;;  %v1682_v16 = vadd.f32 %v4509_v25, %v4480_v9  ;;  %v3598_v19 = vld [vmem:[%s5593_s0 + $0x1cc] sm:$0xf] }
 0x1c3   :  { %2328 = vmatmul.bf16.gmra.mxu3 %v2816_v40 }
 0x1c4   :  { %2417 = vmatmul.bf16.gmra.mxu0 %v2748_v34  ;;  %v1874_v47 = vpop.f32.mrf.mxu2 }
 0x1c5   :  { %v1875_v32 = vadd.f32 %v1874_v47, %v1776_v13  ;;  %v2849_v13 = vld [vmem:[%s5593_s0 + $0x1ec] sm:$0xf0] }
 0x1c6   :  { %v1777_v31 = vpop.f32.mrf.mxu1  ;;  %v5061_v18 = vpop.f32.mrf.mxu3  ;;  %v2852_v9 = vor.u32 %v3598_v19, %v2849_v13 }
 0x1c7   :  { %v1974_v5 = vadd.f32 %v4985_v45, %v1875_v32  ;;  %v1778_v48 = vadd.f32 %v1777_v31, %v1679_v53  ;;  %v3584_v45 = vld [vmem:[%s5593_s0 + $0x158] sm:$0xf0]  ;;  %v5099_v31 = vld [vmem:[%s5592_s2] ss:$0 sm:$0xff] }
 0x1c8   :  { %v2776_v34 = vor.u32 %v3584_v45, %v2775_v58 }
 0x1c9   :  { %v2074_v24 = vpop.f32.mrf.mxu0  ;;  %v5066_v0 = vadd.f32 %v2072_v27, %v1974_v5  ;;  %v1684_v5 = vadd.f32 %v5099_v31, %v4517_v30  ;;  %v2811_v30 = vld [vmem:[%s5593_s0 + $0x180] sm:$0xf] }
 0x1cc   :  { %v1876_v28 = vpop.f32.mrf.mxu2 }
 0x1cd   :  { %v1877_v61 = vadd.f32 %v1876_v28, %v1778_v48  ;;  %v2819_v28 = vld [vmem:[%s5593_s0 + $0x188] sm:$0xf] }
 0x1ce   :  { %v1780_v2 = vpop.f32.mrf.mxu1  ;;  %v5092_v53 = vpop.f32.mrf.mxu3 }
 0x1cf   :  { %v1976_v27 = vadd.f32 %v5016_v22, %v1877_v61  ;;  %v1781_v40 = vadd.f32 %v1780_v2, %v1682_v16  ;;  %v3594_v16 = vld [vmem:[%s5593_s0 + $0x1a8] sm:$0xf0] }
 0x1d0   :  { %v2820_v13 = vor.u32 %v3594_v16, %v2819_v28  ;;  %v3597_v28 = vld [vmem:[%s5593_s0 + $0x1c4] sm:$0xf]  ;;  %v2841_v16 = vld [vmem:[%s5593_s0 + $0x1e4] sm:$0xf0] }
 0x1d1   :  { %v2077_v47 = vpop.f32.mrf.mxu0  ;;  %2125 = vmatmul.bf16.gmra.mxu1 %v2772_v29  ;;  %2224 = vmatmul.bf16.gmra.mxu2 %v2776_v34  ;;  %v5094_v25 = vadd.f32 %v2074_v24, %v1976_v27  ;;  %v3588_v24 = vld [vmem:[%s5593_s0 + $0x17c] sm:$0xf]  ;;  %v1687_v29 = vadd.f32 %v5099_v31, %v4310_v37  ;;  %v3607_v27 = vld [vmem:[%s5593_s0 + $0x214] sm:$0xf] }
 0x1d2   :  { %v2808_v2 = vor.u32 %v3588_v24, %v2805_v49 }
 0x1d3   :  { %2333 = vmatmul.bf16.gmra.mxu3 %v2852_v9 }
 0x1d4   :  { %2422 = vmatmul.bf16.gmra.mxu0 %v2784_v54  ;;  %v1879_v32 = vpop.f32.mrf.mxu2 }
 0x1d5   :  { %v1880_v22 = vadd.f32 %v1879_v32, %v1781_v40  ;;  %v2885_v40 = vld [vmem:[%s5593_s0 + $0x234] sm:$0xf0] }
 0x1d6   :  { %v1782_v48 = vpop.f32.mrf.mxu1  ;;  %v5104_v45 = vpop.f32.mrf.mxu3  ;;  %v2888_v37 = vor.u32 %v3607_v27, %v2885_v40 }
 0x1d7   :  { %v1979_v23 = vadd.f32 %v5023_v3, %v1880_v22  ;;  %v1783_v6 = vadd.f32 %v1782_v48, %v1684_v5  ;;  %v3593_v3 = vld [vmem:[%s5593_s0 + $0x1a0] sm:$0xf0] }
 0x1d8   :  { %v2812_v54 = vor.u32 %v3593_v3, %v2811_v30 }
 0x1d9   :  { %v2079_v58 = vpop.f32.mrf.mxu0  ;;  %v5109_v4 = vadd.f32 %v2077_v47, %v1979_v23  ;;  %v1689_v23 = vadd.f32 %v5099_v31, %v4342_v52  ;;  %v2847_v52 = vld [vmem:[%s5593_s0 + $0x1c8] sm:$0xf] }
 0x1dc   :  { %v1881_v61 = vpop.f32.mrf.mxu2 }
 0x1dd   :  { %v1882_v34 = vadd.f32 %v1881_v61, %v1783_v6  ;;  %v2855_v61 = vld [vmem:[%s5593_s0 + $0x1d0] sm:$0xf] }
 0x1de   :  { %v1785_v19 = vpop.f32.mrf.mxu1  ;;  %v5135_v5 = vpop.f32.mrf.mxu3 }
 0x1df   :  { %v1981_v47 = vadd.f32 %v5054_v56, %v1882_v34  ;;  %v1786_v9 = vadd.f32 %v1785_v19, %v1687_v29  ;;  %v3603_v29 = vld [vmem:[%s5593_s0 + $0x1f0] sm:$0xf0]  ;;  %v2844_v19 = vor.u32 %v3597_v28, %v2841_v16 }
 0x1e0   :  { %v2856_v40 = vor.u32 %v3603_v29, %v2855_v61  ;;  %v3606_v61 = vld [vmem:[%s5593_s0 + $0x20c] sm:$0xf]  ;;  %v2877_v29 = vld [vmem:[%s5593_s0 + $0x22c] sm:$0xf0] }
 0x1e1   :  { %v2082_v32 = vpop.f32.mrf.mxu0  ;;  %2130 = vmatmul.bf16.gmra.mxu1 %v2808_v2  ;;  %2229 = vmatmul.bf16.gmra.mxu2 %v2812_v54  ;;  %v5137_v22 = vadd.f32 %v2079_v58, %v1981_v47  ;;  %v1692_v2 = vadd.f32 %v5099_v31, %v4350_v57  ;;  %v3616_v47 = vld [vmem:[%s5593_s0 + $0x25c] sm:$0xf] }
 0x1e3   :  { %2338 = vmatmul.bf16.gmra.mxu3 %v2888_v37 }
 0x1e4   :  { %2427 = vmatmul.bf16.gmra.mxu0 %v2820_v13  ;;  %v1884_v48 = vpop.f32.mrf.mxu2 }
 0x1e5   :  { %v1885_v6 = vadd.f32 %v1884_v48, %v1786_v9  ;;  %v2921_v9 = vld [vmem:[%s5593_s0 + $0x27c] sm:$0xf0] }
 0x1e6   :  { %v1787_v24 = vpop.f32.mrf.mxu1  ;;  %v5142_v3 = vpop.f32.mrf.mxu3  ;;  %v2924_v57 = vor.u32 %v3616_v47, %v2921_v9 }
 0x1e7   :  { %v1984_v49 = vadd.f32 %v5061_v18, %v1885_v6  ;;  %v1788_v56 = vadd.f32 %v1787_v24, %v1689_v23  ;;  %v3602_v18 = vld [vmem:[%s5593_s0 + $0x1e8] sm:$0xf0] }
 0x1e8   :  { %v2848_v13 = vor.u32 %v3602_v18, %v2847_v52 }
 0x1e9   :  { %v2084_v30 = vpop.f32.mrf.mxu0  ;;  %v5147_v58 = vadd.f32 %v2082_v32, %v1984_v49  ;;  %v1694_v49 = vadd.f32 %v5099_v31, %v4388_v10  ;;  %v2883_v10 = vld [vmem:[%s5593_s0 + $0x210] sm:$0xf] }
 0x1ec   :  { %v1886_v34 = vpop.f32.mrf.mxu2 }
 0x1ed   :  { %v1887_v54 = vadd.f32 %v1886_v34, %v1788_v56  ;;  %v2891_v34 = vld [vmem:[%s5593_s0 + $0x218] sm:$0xf] }
 0x1ee   :  { %v1790_v27 = vpop.f32.mrf.mxu1  ;;  %v5173_v23 = vpop.f32.mrf.mxu3 }
 0x1ef   :  { %v1986_v32 = vadd.f32 %v5092_v53, %v1887_v54  ;;  %v1791_v37 = vadd.f32 %v1790_v27, %v1692_v2  ;;  %v3612_v2 = vld [vmem:[%s5593_s0 + $0x238] sm:$0xf0]  ;;  %v2880_v27 = vor.u32 %v3606_v61, %v2877_v29 }
 0x1f0   :  { %v2892_v9 = vor.u32 %v3612_v2, %v2891_v34  ;;  %v3615_v34 = vld [vmem:[%s5593_s0 + $0x254] sm:$0xf]  ;;  %v2913_v2 = vld [vmem:[%s5593_s0 + $0x274] sm:$0xf0] }
 0x1f1   :  { %v2087_v48 = vpop.f32.mrf.mxu0  ;;  %2135 = vmatmul.bf16.gmra.mxu1 %v2844_v19  ;;  %2234 = vmatmul.bf16.gmra.mxu2 %v2848_v13  ;;  %v5175_v6 = vadd.f32 %v2084_v30, %v1986_v32  ;;  %v1697_v19 = vadd.f32 %v5099_v31, %v4402_v17  ;;  %v3625_v32 = vld [vmem:[%s5593_s0 + $0x2a4] sm:$0xf] }
 0x1f3   :  { %2343 = vmatmul.bf16.gmra.mxu3 %v2924_v57 }
 0x1f4   :  { %2432 = vmatmul.bf16.gmra.mxu0 %v2856_v40  ;;  %v1889_v24 = vpop.f32.mrf.mxu2 }
 0x1f5   :  { %v1890_v56 = vadd.f32 %v1889_v24, %v1791_v37  ;;  %v2957_v37 = vld [vmem:[%s5593_s0 + $0x2c4] sm:$0xf0] }
 0x1f6   :  { %v1792_v28 = vpop.f32.mrf.mxu1  ;;  %v5180_v18 = vpop.f32.mrf.mxu3  ;;  %v2960_v17 = vor.u32 %v3625_v32, %v2957_v37  ;;  %v3634_v32 = vld [vmem:[%s5593_s0 + $0x2ec] sm:$0xf]  ;;  %v2993_v37 = vld [vmem:[%s5593_s0 + $0x30c] sm:$0xf0] }
 0x1f7   :  { %v1989_v16 = vadd.f32 %v5104_v45, %v1890_v56  ;;  %v1793_v53 = vadd.f32 %v1792_v28, %v1694_v49  ;;  %v3611_v45 = vld [vmem:[%s5593_s0 + $0x230] sm:$0xf0] }
 0x1f8   :  { %v2884_v40 = vor.u32 %v3611_v45, %v2883_v10 }
 0x1f9   :  { %v2089_v52 = vpop.f32.mrf.mxu0  ;;  %v5185_v30 = vadd.f32 %v2087_v48, %v1989_v16  ;;  %v1699_v16 = vadd.f32 %v5099_v31, %v4434_v38  ;;  %v2919_v38 = vld [vmem:[%s5593_s0 + $0x258] sm:$0xf]  ;;  %v3620_v31 = vld [vmem:[%s5593_s0 + $0x278] sm:$0xf0] }
 0x1fc   :  { %v1891_v54 = vpop.f32.mrf.mxu2 }
 0x1fd   :  { %v1892_v13 = vadd.f32 %v1891_v54, %v1793_v53  ;;  %v3621_v54 = vld [vmem:[%s5593_s0 + $0x280] sm:$0xf0] }
 0x1fe   :  { %v1795_v47 = vpop.f32.mrf.mxu1  ;;  %v2306_v49 = vpop.f32.mrf.mxu3 }
 0x1ff   :  { %v1991_v48 = vadd.f32 %v5135_v5, %v1892_v13  ;;  %v1796_v57 = vadd.f32 %v1795_v47, %v1697_v19 }
 0x201   :  { %v2092_v24 = vpop.f32.mrf.mxu0  ;;  %2140 = vmatmul.bf16.gmra.mxu1 %v2880_v27  ;;  %2239 = vmatmul.bf16.gmra.mxu2 %v2884_v40  ;;  %v5211_v56 = vadd.f32 %v2089_v52, %v1991_v48  ;;  %v2916_v27 = vor.u32 %v3615_v34, %v2913_v2  ;;  %v2920_v40 = vor.u32 %v3620_v31, %v2919_v38  ;;  %v2949_v2 = vld [vmem:[%s5593_s0 + $0x2bc] sm:$0xf0] }
 0x203   :  { %2348 = vmatmul.bf16.gmra.mxu3 %v2960_v17  ;;  %v2996_v17 = vor.u32 %v3634_v32, %v2993_v37 }
 0x204   :  { %2437 = vmatmul.bf16.gmra.mxu0 %v2892_v9  ;;  %v1894_v28 = vpop.f32.mrf.mxu2 }
 0x205   :  { %v1895_v53 = vadd.f32 %v1894_v28, %v1796_v57 }
 0x206   :  { %v1797_v61 = vpop.f32.mrf.mxu1  ;;  %v5216_v45 = vpop.f32.mrf.mxu3 }
 0x207   :  { %v1994_v29 = vadd.f32 %v5142_v3, %v1895_v53  ;;  %v1798_v10 = vadd.f32 %v1797_v61, %v1699_v16  ;;  %v2927_v3 = vld [vmem:[%s5593_s0 + $0x260] sm:$0xf] }
 0x208   :  { %v2928_v9 = vor.u32 %v3621_v54, %v2927_v3  ;;  %v2963_v3 = vld [vmem:[%s5593_s0 + $0x2a8] sm:$0xf]  ;;  %v3630_v54 = vld [vmem:[%s5593_s0 + $0x2c8] sm:$0xf0] }
 0x209   :  { %v2094_v5 = vpop.f32.mrf.mxu0  ;;  %v5221_v52 = vadd.f32 %v2092_v24, %v1994_v29 }
 0x20c   :  { %v1896_v19 = vpop.f32.mrf.mxu2 }
 0x20d   :  { %v1897_v13 = vadd.f32 %v1896_v19, %v1798_v10 }
 0x20e   :  { %v2106_v47 = vpop.f32.mrf.mxu1  ;;  %v5245_v24 = vpop.f32.mrf.mxu3 }
 0x20f   :  { %v1996_v48 = vadd.f32 %v5173_v23, %v1897_v13  ;;  %v2107_v53 = vadd.f32 %v2106_v47, %v4536_v21  ;;  %v3624_v23 = vld [vmem:[%s5593_s0 + $0x29c] sm:$0xf]  ;;  %v3629_v21 = vld [vmem:[%s5593_s0 + $0x2c0] sm:$0xf0] }
 0x211   :  { %v2403_v57 = vpop.f32.mrf.mxu0  ;;  %2145 = vmatmul.bf16.gmra.mxu1 %v2916_v27  ;;  %2244 = vmatmul.bf16.gmra.mxu2 %v2920_v40  ;;  %v5247_v28 = vadd.f32 %v2094_v5, %v1996_v48  ;;  %v2955_v5 = vld [vmem:[%s5593_s0 + $0x2a0] sm:$0xf]  ;;  %v2952_v27 = vor.u32 %v3624_v23, %v2949_v2 }
 0x212   :  { %v2956_v40 = vor.u32 %v3629_v21, %v2955_v5 }
 0x213   :  { %2353 = vmatmul.bf16.gmra.mxu3 %v2996_v17 }
 0x214   :  { %2442 = vmatmul.bf16.gmra.mxu0 %v2928_v9  ;;  %v2205_v16 = vpop.f32.mrf.mxu2  ;;  %v2964_v9 = vor.u32 %v3630_v54, %v2963_v3  ;;  %v3638_v3 = vld [vmem:[%s5593_s0 + $0x308] sm:$0xf0] }
 0x215   :  { %v2206_v29 = vadd.f32 %v2205_v16, %v2107_v53 }
 0x216   :  { %v2108_v61 = vpop.f32.mrf.mxu1  ;;  %v5250_v34 = vpop.f32.mrf.mxu3 }
 0x217   :  { %v2305_v38 = vadd.f32 %v5180_v18, %v2206_v29  ;;  %v2109_v31 = vadd.f32 %v2108_v61, %v4564_v1  ;;  %v3643_v18 = vld [vmem:[%s5593_s0 + $0x334] sm:$0xf]  ;;  %v3029_v1 = vld [vmem:[%s5593_s0 + $0x354] sm:$0xf0] }
 0x218   :  { %v3032_v53 = vor.u32 %v3643_v18, %v3029_v1 }
 0x219   :  { %v2405_v10 = vpop.f32.mrf.mxu0  ;;  %v2404_v32 = vadd.f32 %v2403_v57, %v2305_v38 }
 0x21b   :  { %v2493_v61 = vmax.f32 %v2404_v32, 0.0 }
 0x21c   :  { %v2207_v19 = vpop.f32.mrf.mxu2 }
 0x21d   :  { %v2208_v13 = vadd.f32 %v2207_v19, %v2109_v31  ;;  %v2985_v31 = vld [vmem:[%s5593_s0 + $0x304] sm:$0xf0] }
 0x21e   :  { %v2111_v47 = vpop.f32.mrf.mxu1  ;;  %v5278_v17 = vpop.f32.mrf.mxu3 }
 0x21f   :  { %v2307_v37 = vadd.f32 %v2306_v49, %v2208_v13  ;;  %v2112_v5 = vadd.f32 %v2111_v47, %v4583_v26  ;;  %v2991_v26 = vld [vmem:[%s5593_s0 + $0x2e8] sm:$0xf]  ;;  %v2999_v13 = vld [vmem:[%s5593_s0 + $0x2f0] sm:$0xf] }
 0x220   :  { %v2992_v18 = vor.u32 %v3638_v3, %v2991_v26  ;;  %v3021_v3 = vld [vmem:[%s5593_s0 + $0x34c] sm:$0xf0] }
 0x221   :  { %v2408_v48 = vpop.f32.mrf.mxu0  ;;  %v2406_v16 = vadd.f32 %v2405_v10, %v2307_v37  ;;  %2150 = vmatmul.bf16.gmra.mxu1 %v2952_v27  ;;  %2249 = vmatmul.bf16.gmra.mxu2 %v2956_v40  ;;  %v3633_v10 = vld [vmem:[%s5593_s0 + $0x2e4] sm:$0xf]  ;;  %v3639_v27 = vld [vmem:[%s5593_s0 + $0x310] sm:$0xf0] }
 0x222   :  { %v3000_v32 = vor.u32 %v3639_v27, %v2999_v13  ;;  %v3035_v27 = vld [vmem:[%s5593_s0 + $0x338] sm:$0xf] }
 0x223   :  { %v2494_v29 = vmax.f32 %v2406_v16, 0.0  ;;  %2358 = vmatmul.bf16.gmra.mxu3 %v3032_v53 }
 0x224   :  { %2447 = vmatmul.bf16.gmra.mxu0 %v2964_v9  ;;  %v2210_v23 = vpop.f32.mrf.mxu2  ;;  %v2988_v9 = vor.u32 %v3633_v10, %v2985_v31 }
 0x225   :  { %v3778_v2 = vpack.c.bf16 %v2494_v29, %v2493_v61  ;;  %v2211_v49 = vadd.f32 %v2210_v23, %v2112_v5 }
 0x226   :  { %v2113_v21 = vpop.f32.mrf.mxu1  ;;  %v5284_v38 = vpop.f32.mrf.mxu3 }
 0x227   :  { %3779 = vst [vmem:[%s5594_s3] sm:$0xff] %v3778_v2   ;;  %v2310_v54 = vadd.f32 %v5216_v45, %v2211_v49  ;;  %v2114_v19 = vadd.f32 %v2113_v21, %v4614_v43  ;;  %v3652_v45 = vld [vmem:[%s5593_s0 + $0x37c] sm:$0xf]  ;;  %v3065_v43 = vld [vmem:[%s5593_s0 + $0x39c] sm:$0xf0] }
 0x228   :  { %v3068_v23 = vor.u32 %v3652_v45, %v3065_v43 }
 0x229   :  { %v2410_v57 = vpop.f32.mrf.mxu0  ;;  %v2409_v37 = vadd.f32 %v2408_v48, %v2310_v54  ;;  %v3647_v54 = vld [vmem:[%s5593_s0 + $0x350] sm:$0xf0] }
 0x22b   :  { %v2495_v2 = vmax.f32 %v2409_v37, 0.0 }
 0x22c   :  { %v2212_v40 = vpop.f32.mrf.mxu2 }
 0x22d   :  { %v2213_v47 = vadd.f32 %v2212_v40, %v2114_v19  ;;  %v3648_v40 = vld [vmem:[%s5593_s0 + $0x358] sm:$0xf0] }
 0x22e   :  { %v2116_v1 = vpop.f32.mrf.mxu1  ;;  %v5313_v61 = vpop.f32.mrf.mxu3  ;;  %v3036_v45 = vor.u32 %v3648_v40, %v3035_v27  ;;  %v3657_v27 = vld [vmem:[%s5593_s0 + $0x3a0] sm:$0xf0] }
 0x22f   :  { %v2312_v16 = vadd.f32 %v5245_v24, %v2213_v47  ;;  %v2117_v10 = vadd.f32 %v2116_v1, %v4624_v46  ;;  %v3027_v46 = vld [vmem:[%s5593_s0 + $0x330] sm:$0xf] }
 0x230   :  { %v3028_v1 = vor.u32 %v3647_v54, %v3027_v46  ;;  %v3656_v46 = vld [vmem:[%s5593_s0 + $0x398] sm:$0xf0] }
 0x231   :  { %v2413_v53 = vpop.f32.mrf.mxu0  ;;  %v2411_v29 = vadd.f32 %v2410_v57, %v2312_v16  ;;  %2155 = vmatmul.bf16.gmra.mxu1 %v2988_v9  ;;  %2254 = vmatmul.bf16.gmra.mxu2 %v2992_v18  ;;  %v3642_v57 = vld [vmem:[%s5593_s0 + $0x32c] sm:$0xf] }
 0x232   :  { %v3024_v18 = vor.u32 %v3642_v57, %v3021_v3  ;;  %v3057_v3 = vld [vmem:[%s5593_s0 + $0x394] sm:$0xf0] }
 0x233   :  { %v2496_v5 = vmax.f32 %v2411_v29, 0.0  ;;  %2363 = vmatmul.bf16.gmra.mxu3 %v3068_v23 }
 0x234   :  { %2452 = vmatmul.bf16.gmra.mxu0 %v3000_v32  ;;  %v2215_v21 = vpop.f32.mrf.mxu2 }
 0x235   :  { %v3783_v49 = vpack.c.bf16 %v2496_v5, %v2495_v2  ;;  %v2216_v24 = vadd.f32 %v2215_v21, %v2117_v10 }
 0x236   :  { %v2118_v31 = vpop.f32.mrf.mxu1  ;;  %v5319_v26 = vpop.f32.mrf.mxu3 }
 0x237   :  { %3865 = vst [vmem:[%s5594_s3 + $0x8] sm:$0xff] %v3783_v49   ;;  %v2315_v19 = vadd.f32 %v5250_v34, %v2216_v24  ;;  %v2119_v13 = vadd.f32 %v2118_v31, %v4652_v60  ;;  %v3661_v34 = vld [vmem:[%s5593_s0 + $0x3c4] sm:$0xf]  ;;  %v3101_v60 = vld [vmem:[%s5593_s0 + $0x3e4] sm:$0xf0] }
 0x238   :  { %v3104_v2 = vor.u32 %v3661_v34, %v3101_v60 }
 0x239   :  { %v2415_v48 = vpop.f32.mrf.mxu0  ;;  %v2414_v43 = vadd.f32 %v2413_v53, %v2315_v19 }
 0x23b   :  { %v2497_v5 = vmax.f32 %v2414_v43, 0.0 }
 0x23c   :  { %v2217_v47 = vpop.f32.mrf.mxu2 }
 0x23d   :  { %v2218_v9 = vadd.f32 %v2217_v47, %v2119_v13  ;;  %v3071_v13 = vld [vmem:[%s5593_s0 + $0x380] sm:$0xf] }
 0x23e   :  { %v2121_v32 = vpop.f32.mrf.mxu1  ;;  %v5348_v29 = vpop.f32.mrf.mxu3 }
 0x23f   :  { %v2317_v37 = vadd.f32 %v5278_v17, %v2218_v9  ;;  %v2122_v31 = vadd.f32 %v2121_v32, %v4668_v50  ;;  %v3063_v50 = vld [vmem:[%s5593_s0 + $0x378] sm:$0xf]  ;;  %v3072_v32 = vor.u32 %v3657_v27, %v3071_v13 }
 0x241   :  { %v2418_v16 = vpop.f32.mrf.mxu0  ;;  %v2416_v23 = vadd.f32 %v2415_v48, %v2317_v37  ;;  %2160 = vmatmul.bf16.gmra.mxu1 %v3024_v18  ;;  %2259 = vmatmul.bf16.gmra.mxu2 %v3028_v1  ;;  %v3651_v48 = vld [vmem:[%s5593_s0 + $0x374] sm:$0xf]  ;;  %v3064_v18 = vor.u32 %v3656_v46, %v3063_v50  ;;  %v3107_v46 = vld [vmem:[%s5593_s0 + $0x3c8] sm:$0xf] }
 0x242   :  { %v3060_v9 = vor.u32 %v3651_v48, %v3057_v3  ;;  %v3665_v48 = vld [vmem:[%s5593_s0 + $0x3e0] sm:$0xf0] }
 0x243   :  { %v2498_v21 = vmax.f32 %v2416_v23, 0.0  ;;  %2368 = vmatmul.bf16.gmra.mxu3 %v3104_v2 }
 0x244   :  { %2457 = vmatmul.bf16.gmra.mxu0 %v3036_v45  ;;  %v2220_v49 = vpop.f32.mrf.mxu2 }
 0x245   :  { %v3788_v10 = vpack.c.bf16 %v2498_v21, %v2497_v5  ;;  %v2221_v17 = vadd.f32 %v2220_v49, %v2122_v31 }
 0x246   :  { %v2123_v24 = vpop.f32.mrf.mxu1  ;;  %v5354_v57 = vpop.f32.mrf.mxu3 }
 0x247   :  { %3866 = vst [vmem:[%s5594_s3 + $0x10] sm:$0xff] %v3788_v10   ;;  %v2320_v54 = vadd.f32 %v5284_v38, %v2221_v17  ;;  %v2124_v19 = vadd.f32 %v2123_v24, %v4699_v63  ;;  %v3670_v38 = vld [vmem:[%s5593_s0 + $0x40c] sm:$0xf]  ;;  %v3137_v63 = vld [vmem:[%s5593_s0 + $0x42c] sm:$0xf0] }
 0x248   :  { %v3140_v23 = vor.u32 %v3670_v38, %v3137_v63  ;;  %v3660_v17 = vld [vmem:[%s5593_s0 + $0x3bc] sm:$0xf] }
 0x249   :  { %v2420_v53 = vpop.f32.mrf.mxu0  ;;  %v2419_v45 = vadd.f32 %v2418_v16, %v2320_v54  ;;  %v3666_v54 = vld [vmem:[%s5593_s0 + $0x3e8] sm:$0xf0] }
 0x24b   :  { %v2499_v2 = vmax.f32 %v2419_v45, 0.0 }
 0x24c   :  { %v2222_v40 = vpop.f32.mrf.mxu2 }
 0x24d   :  { %v2223_v47 = vadd.f32 %v2222_v40, %v2124_v19 }
 0x24e   :  { %v2126_v1 = vpop.f32.mrf.mxu1  ;;  %v5383_v43 = vpop.f32.mrf.mxu3 }
 0x24f   :  { %v2322_v34 = vadd.f32 %v5313_v61, %v2223_v47  ;;  %v2127_v10 = vadd.f32 %v2126_v1, %v4712_v51  ;;  %v3099_v51 = vld [vmem:[%s5593_s0 + $0x3c0] sm:$0xf] }
 0x250   :  { %v3100_v40 = vor.u32 %v3665_v48, %v3099_v51  ;;  %v3675_v51 = vld [vmem:[%s5593_s0 + $0x430] sm:$0xf0] }
 0x251   :  { %v2423_v60 = vpop.f32.mrf.mxu0  ;;  %v2421_v37 = vadd.f32 %v2420_v53, %v2322_v34  ;;  %2165 = vmatmul.bf16.gmra.mxu1 %v3060_v9  ;;  %2264 = vmatmul.bf16.gmra.mxu2 %v3064_v18  ;;  %v3093_v53 = vld [vmem:[%s5593_s0 + $0x3dc] sm:$0xf0]  ;;  %v3108_v9 = vor.u32 %v3666_v54, %v3107_v46 }
 0x252   :  { %v3096_v27 = vor.u32 %v3660_v17, %v3093_v53  ;;  %v3143_v53 = vld [vmem:[%s5593_s0 + $0x410] sm:$0xf] }
 0x253   :  { %v2500_v5 = vmax.f32 %v2421_v37, 0.0  ;;  %2373 = vmatmul.bf16.gmra.mxu3 %v3140_v23 }
 0x254   :  { %2462 = vmatmul.bf16.gmra.mxu0 %v3072_v32  ;;  %v2225_v21 = vpop.f32.mrf.mxu2 }
 0x255   :  { %v3793_v49 = vpack.c.bf16 %v2500_v5, %v2499_v2  ;;  %v2226_v61 = vadd.f32 %v2225_v21, %v2127_v10  ;;  %v3669_v10 = vld [vmem:[%s5593_s0 + $0x404] sm:$0xf] }
 0x256   :  { %v2128_v31 = vpop.f32.mrf.mxu1  ;;  %v5389_v24 = vpop.f32.mrf.mxu3 }
 0x257   :  { %3867 = vst [vmem:[%s5594_s3 + $0x18] sm:$0xff] %v3793_v49   ;;  %v2325_v3 = vadd.f32 %v5319_v26, %v2226_v61  ;;  %v2129_v50 = vadd.f32 %v2128_v31, %v4740_v42  ;;  %v3679_v26 = vld [vmem:[%s5593_s0 + $0x454] sm:$0xf]  ;;  %v3173_v42 = vld [vmem:[%s5593_s0 + $0x474] sm:$0xf0] }
 0x258   :  { %v3176_v45 = vor.u32 %v3679_v26, %v3173_v42  ;;  %v3129_v31 = vld [vmem:[%s5593_s0 + $0x424] sm:$0xf0]  ;;  %v3674_v61 = vld [vmem:[%s5593_s0 + $0x428] sm:$0xf0] }
 0x259   :  { %v2425_v16 = vpop.f32.mrf.mxu0  ;;  %v2424_v18 = vadd.f32 %v2423_v60, %v2325_v3 }
 0x25b   :  { %v2501_v34 = vmax.f32 %v2424_v18, 0.0 }
 0x25c   :  { %v2227_v19 = vpop.f32.mrf.mxu2 }
 0x25d   :  { %v2228_v13 = vadd.f32 %v2227_v19, %v2129_v50  ;;  %v3132_v50 = vor.u32 %v3669_v10, %v3129_v31  ;;  %v3144_v19 = vor.u32 %v3675_v51, %v3143_v53  ;;  %v3684_v10 = vld [vmem:[%s5593_s0 + $0x478] sm:$0xf0] }
 0x25e   :  { %v2131_v47 = vpop.f32.mrf.mxu1  ;;  %v5418_v38 = vpop.f32.mrf.mxu3 }
 0x25f   :  { %v2327_v1 = vadd.f32 %v5348_v29, %v2228_v13  ;;  %v2132_v5 = vadd.f32 %v2131_v47, %v4750_v62  ;;  %v3135_v62 = vld [vmem:[%s5593_s0 + $0x408] sm:$0xf] }
 0x260   :  { %v3136_v46 = vor.u32 %v3674_v61, %v3135_v62 }
 0x261   :  { %v2428_v32 = vpop.f32.mrf.mxu0  ;;  %v2426_v63 = vadd.f32 %v2425_v16, %v2327_v1  ;;  %2170 = vmatmul.bf16.gmra.mxu1 %v3096_v27  ;;  %2269 = vmatmul.bf16.gmra.mxu2 %v3100_v40 }
 0x263   :  { %v2502_v37 = vmax.f32 %v2426_v63, 0.0  ;;  %2378 = vmatmul.bf16.gmra.mxu3 %v3176_v45 }
 0x264   :  { %2467 = vmatmul.bf16.gmra.mxu0 %v3108_v9  ;;  %v2230_v23 = vpop.f32.mrf.mxu2 }
 0x265   :  { %v3798_v2 = vpack.c.bf16 %v2502_v37, %v2501_v34  ;;  %v2231_v29 = vadd.f32 %v2230_v23, %v2132_v5  ;;  %v3678_v23 = vld [vmem:[%s5593_s0 + $0x44c] sm:$0xf]  ;;  %v3683_v5 = vld [vmem:[%s5593_s0 + $0x470] sm:$0xf0] }
 0x266   :  { %v2133_v21 = vpop.f32.mrf.mxu1  ;;  %v5424_v49 = vpop.f32.mrf.mxu3 }
 0x267   :  { %3868 = vst [vmem:[%s5594_s3 + $0x20] sm:$0xff] %v3798_v2   ;;  %v2330_v16 = vadd.f32 %v5354_v57, %v2231_v29  ;;  %v2134_v17 = vadd.f32 %v2133_v21, %v4787_v36  ;;  %v3688_v57 = vld [vmem:[%s5593_s0 + $0x49c] sm:$0xf]  ;;  %v3209_v36 = vld [vmem:[%s5593_s0 + $0x4bc] sm:$0xf0] }
 0x268   :  { %v3212_v26 = vor.u32 %v3688_v57, %v3209_v36  ;;  %v3165_v2 = vld [vmem:[%s5593_s0 + $0x46c] sm:$0xf0] }
 0x269   :  { %v2430_v60 = vpop.f32.mrf.mxu0  ;;  %v2429_v13 = vadd.f32 %v2428_v32, %v2330_v16  ;;  %v3168_v61 = vor.u32 %v3678_v23, %v3165_v2 }
 0x26b   :  { %v2503_v42 = vmax.f32 %v2429_v13, 0.0 }
 0x26c   :  { %v2232_v48 = vpop.f32.mrf.mxu2 }
 0x26d   :  { %v2233_v3 = vadd.f32 %v2232_v48, %v2134_v17 }
 0x26e   :  { %v2136_v54 = vpop.f32.mrf.mxu1  ;;  %v5453_v47 = vpop.f32.mrf.mxu3 }
 0x26f   :  { %v2332_v27 = vadd.f32 %v5383_v43, %v2233_v3  ;;  %v2137_v45 = vadd.f32 %v2136_v54, %v4800_v33  ;;  %v3171_v33 = vld [vmem:[%s5593_s0 + $0x450] sm:$0xf] }
 0x270   :  { %v3172_v16 = vor.u32 %v3683_v5, %v3171_v33 }
 0x271   :  { %v2433_v40 = vpop.f32.mrf.mxu0  ;;  %v2431_v9 = vadd.f32 %v2430_v60, %v2332_v27  ;;  %2175 = vmatmul.bf16.gmra.mxu1 %v3132_v50  ;;  %2274 = vmatmul.bf16.gmra.mxu2 %v3136_v46  ;;  %v3179_v60 = vld [vmem:[%s5593_s0 + $0x458] sm:$0xf] }
 0x272   :  { %v3180_v53 = vor.u32 %v3684_v10, %v3179_v60 }
 0x273   :  { %v2504_v18 = vmax.f32 %v2431_v9, 0.0  ;;  %2383 = vmatmul.bf16.gmra.mxu3 %v3212_v26 }
 0x274   :  { %2472 = vmatmul.bf16.gmra.mxu0 %v3144_v19  ;;  %v2235_v1 = vpop.f32.mrf.mxu2 }
 0x275   :  { %v3803_v63 = vpack.c.bf16 %v2504_v18, %v2503_v42  ;;  %v2236_v43 = vadd.f32 %v2235_v1, %v2137_v45  ;;  %v3687_v42 = vld [vmem:[%s5593_s0 + $0x494] sm:$0xf]  ;;  %v3201_v18 = vld [vmem:[%s5593_s0 + $0x4b4] sm:$0xf0]  ;;  %v3692_v1 = vld [vmem:[%s5593_s0 + $0x4b8] sm:$0xf0] }
 0x276   :  { %v2138_v34 = vpop.f32.mrf.mxu1  ;;  %v5459_v37 = vpop.f32.mrf.mxu3  ;;  %v3204_v2 = vor.u32 %v3687_v42, %v3201_v18 }
 0x277   :  { %3869 = vst [vmem:[%s5594_s3 + $0x28] sm:$0xff] %v3803_v63   ;;  %v2335_v21 = vadd.f32 %v5389_v24, %v2236_v43  ;;  %v2139_v29 = vadd.f32 %v2138_v34, %v4828_v35  ;;  %v3697_v24 = vld [vmem:[%s5593_s0 + $0x4e4] sm:$0xf]  ;;  %v3245_v35 = vld [vmem:[%s5593_s0 + $0x504] sm:$0xf0] }
 0x278   :  { %v3248_v54 = vor.u32 %v3697_v24, %v3245_v35  ;;  %v3215_v34 = vld [vmem:[%s5593_s0 + $0x4a0] sm:$0xf]  ;;  %v3693_v43 = vld [vmem:[%s5593_s0 + $0x4c0] sm:$0xf0] }
 0x279   :  { %v2435_v32 = vpop.f32.mrf.mxu0  ;;  %v2434_v51 = vadd.f32 %v2433_v40, %v2335_v21  ;;  %v3216_v21 = vor.u32 %v3693_v43, %v3215_v34 }
 0x27b   :  { %v2505_v19 = vmax.f32 %v2434_v51, 0.0  ;;  %v3696_v51 = vld [vmem:[%s5593_s0 + $0x4dc] sm:$0xf] }
 0x27c   :  { %v2237_v31 = vpop.f32.mrf.mxu2 }
 0x27d   :  { %v2238_v62 = vadd.f32 %v2237_v31, %v2139_v29 }
 0x27e   :  { %v2141_v17 = vpop.f32.mrf.mxu1  ;;  %v5488_v50 = vpop.f32.mrf.mxu3 }
 0x27f   :  { %v2337_v48 = vadd.f32 %v5418_v38, %v2238_v62  ;;  %v2142_v27 = vadd.f32 %v2141_v17, %v4838_v8  ;;  %v3207_v8 = vld [vmem:[%s5593_s0 + $0x498] sm:$0xf] }
 0x280   :  { %v3208_v33 = vor.u32 %v3692_v1, %v3207_v8 }
 0x281   :  { %v2438_v3 = vpop.f32.mrf.mxu0  ;;  %v2436_v46 = vadd.f32 %v2435_v32, %v2337_v48  ;;  %2180 = vmatmul.bf16.gmra.mxu1 %v3168_v61  ;;  %2279 = vmatmul.bf16.gmra.mxu2 %v3172_v16  ;;  %v3237_v48 = vld [vmem:[%s5593_s0 + $0x4fc] sm:$0xf0] }
 0x283   :  { %v2506_v57 = vmax.f32 %v2436_v46, 0.0  ;;  %2388 = vmatmul.bf16.gmra.mxu3 %v3248_v54 }
 0x284   :  { %2477 = vmatmul.bf16.gmra.mxu0 %v3180_v53  ;;  %v2240_v36 = vpop.f32.mrf.mxu2 }
 0x285   :  { %v3808_v13 = vpack.c.bf16 %v2506_v57, %v2505_v19  ;;  %v2241_v38 = vadd.f32 %v2240_v36, %v2142_v27  ;;  %v3251_v19 = vld [vmem:[%s5593_s0 + $0x4e8] sm:$0xf]  ;;  %v3702_v57 = vld [vmem:[%s5593_s0 + $0x508] sm:$0xf0]  ;;  %v3240_v27 = vor.u32 %v3696_v51, %v3237_v48 }
 0x286   :  { %v2143_v9 = vpop.f32.mrf.mxu1  ;;  %v5494_v26 = vpop.f32.mrf.mxu3 }
 0x287   :  { %3870 = vst [vmem:[%s5594_s3 + $0x30] sm:$0xff] %v3808_v13   ;;  %v2340_v63 = vadd.f32 %v5424_v49, %v2241_v38  ;;  %v2144_v45 = vadd.f32 %v2143_v9, %v4866_v12 }
 0x289   :  { %v2440_v40 = vpop.f32.mrf.mxu0  ;;  %v2439_v29 = vadd.f32 %v2438_v3, %v2340_v63  ;;  %v3701_v3 = vld [vmem:[%s5593_s0 + $0x500] sm:$0xf0] }
 0x28b   :  { %v2507_v31 = vmax.f32 %v2439_v29, 0.0 }
 0x28c   :  { %v2242_v32 = vpop.f32.mrf.mxu2 }
 0x28d   :  { %v2243_v23 = vadd.f32 %v2242_v32, %v2144_v45 }
 0x28e   :  { %v2146_v5 = vpop.f32.mrf.mxu1  ;;  %v2351_v10 = vpop.f32.mrf.mxu3 }
 0x28f   :  { %v2342_v60 = vadd.f32 %v5453_v47, %v2243_v23  ;;  %v2147_v17 = vadd.f32 %v2146_v5, %v4876_v15  ;;  %v3243_v15 = vld [vmem:[%s5593_s0 + $0x4e0] sm:$0xf] }
 0x290   :  { %v3244_v9 = vor.u32 %v3701_v3, %v3243_v15 }
 0x291   :  { %v2443_v49 = vpop.f32.mrf.mxu0  ;;  %v2441_v12 = vadd.f32 %v2440_v40, %v2342_v60  ;;  %2185 = vmatmul.bf16.gmra.mxu1 %v3204_v2  ;;  %2284 = vmatmul.bf16.gmra.mxu2 %v3208_v33  ;;  %v3252_v40 = vor.u32 %v3702_v57, %v3251_v19 }
 0x293   :  { %v2508_v62 = vmax.f32 %v2441_v12, 0.0 }
 0x294   :  { %2482 = vmatmul.bf16.gmra.mxu0 %v3216_v21  ;;  %v2245_v61 = vpop.f32.mrf.mxu2 }
 0x295   :  { %v3813_v16 = vpack.c.bf16 %v2508_v62, %v2507_v31  ;;  %v2246_v24 = vadd.f32 %v2245_v61, %v2147_v17 }
 0x296   :  { %v2148_v53 = vpop.f32.mrf.mxu1  ;;  %v2354_v47 = vpop.f32.mrf.mxu3 }
 0x297   :  { %3871 = vst [vmem:[%s5594_s3 + $0x38] sm:$0xff] %v3813_v16   ;;  %v2345_v46 = vadd.f32 %v5459_v37, %v2246_v24  ;;  %v2149_v54 = vadd.f32 %v2148_v53, %v4904_v39 }
 0x299   :  { %v2445_v35 = vpop.f32.mrf.mxu0  ;;  %v2444_v42 = vadd.f32 %v2443_v49, %v2345_v46 }
 0x29b   :  { %v2509_v1 = vmax.f32 %v2444_v42, 0.0 }
 0x29c   :  { %v2247_v36 = vpop.f32.mrf.mxu2 }
 0x29d   :  { %v2248_v13 = vadd.f32 %v2247_v36, %v2149_v54 }
 0x29e   :  { %v2151_v38 = vpop.f32.mrf.mxu1  ;;  %v2356_v39 = vpop.f32.mrf.mxu3 }
 0x29f   :  { %v2347_v18 = vadd.f32 %v5488_v50, %v2248_v13  ;;  %v2152_v43 = vadd.f32 %v2151_v38, %v4914_v14 }
 0x2a1   :  { %v2448_v37 = vpop.f32.mrf.mxu0  ;;  %v2446_v8 = vadd.f32 %v2445_v35, %v2347_v18  ;;  %2190 = vmatmul.bf16.gmra.mxu1 %v3240_v27  ;;  %2289 = vmatmul.bf16.gmra.mxu2 %v3244_v9 }
 0x2a3   :  { %v2510_v63 = vmax.f32 %v2446_v8, 0.0 }
 0x2a4   :  { %2487 = vmatmul.bf16.gmra.mxu0 %v3252_v40  ;;  %v2250_v45 = vpop.f32.mrf.mxu2 }
 0x2a5   :  { %v3818_v34 = vpack.c.bf16 %v2510_v63, %v2509_v1  ;;  %v2251_v23 = vadd.f32 %v2250_v45, %v2152_v43 }
 0x2a6   :  { %v2153_v32 = vpop.f32.mrf.mxu1  ;;  %v2359_v21 = vpop.f32.mrf.mxu3 }
 0x2a7   :  { %3872 = vst [vmem:[%s5594_s3 + $0x40] sm:$0xff] %v3818_v34   ;;  %v2350_v50 = vadd.f32 %v5494_v26, %v2251_v23  ;;  %v2154_v33 = vadd.f32 %v2153_v32, %v4942_v59 }
 0x2a9   :  { %v2450_v2 = vpop.f32.mrf.mxu0  ;;  %v2449_v49 = vadd.f32 %v2448_v37, %v2350_v50 }
 0x2ab   :  { %v2511_v14 = vmax.f32 %v2449_v49, 0.0 }
 0x2ac   :  { %v2252_v5 = vpop.f32.mrf.mxu2 }
 0x2ad   :  { %v2253_v29 = vadd.f32 %v2252_v5, %v2154_v33 }
 0x2ae   :  { %v2156_v60 = vpop.f32.mrf.mxu1  ;;  %v2361_v35 = vpop.f32.mrf.mxu3 }
 0x2af   :  { %v2352_v12 = vadd.f32 %v2351_v10, %v2253_v29  ;;  %v2157_v53 = vadd.f32 %v2156_v60, %v4952_v41 }
 0x2b1   :  { %v2453_v31 = vpop.f32.mrf.mxu0  ;;  %v2451_v62 = vadd.f32 %v2450_v2, %v2352_v12 }
 0x2b3   :  { %v2512_v61 = vmax.f32 %v2451_v62, 0.0 }
 0x2b4   :  { %v2255_v16 = vpop.f32.mrf.mxu2 }
 0x2b5   :  { %v3823_v17 = vpack.c.bf16 %v2512_v61, %v2511_v14  ;;  %v2256_v59 = vadd.f32 %v2255_v16, %v2157_v53 }
 0x2b6   :  { %v2158_v24 = vpop.f32.mrf.mxu1  ;;  %v2364_v57 = vpop.f32.mrf.mxu3 }
 0x2b7   :  { %3873 = vst [vmem:[%s5594_s3 + $0x48] sm:$0xff] %v3823_v17   ;;  %v2355_v51 = vadd.f32 %v2354_v47, %v2256_v59  ;;  %v2159_v48 = vadd.f32 %v2158_v24, %v4980_v7 }
 0x2b9   :  { %v2455_v26 = vpop.f32.mrf.mxu0  ;;  %v2454_v46 = vadd.f32 %v2453_v31, %v2355_v51 }
 0x2bb   :  { %v2513_v41 = vmax.f32 %v2454_v46, 0.0 }
 0x2bc   :  { %v2257_v10 = vpop.f32.mrf.mxu2 }
 0x2bd   :  { %v2258_v15 = vadd.f32 %v2257_v10, %v2159_v48 }
 0x2be   :  { %v2161_v3 = vpop.f32.mrf.mxu1  ;;  %v2366_v42 = vpop.f32.mrf.mxu3 }
 0x2bf   :  { %v2357_v54 = vadd.f32 %v2356_v39, %v2258_v15  ;;  %v2162_v38 = vadd.f32 %v2161_v3, %v4990_v11 }
 0x2c1   :  { %v2458_v19 = vpop.f32.mrf.mxu0  ;;  %v2456_v36 = vadd.f32 %v2455_v26, %v2357_v54 }
 0x2c3   :  { %v2514_v13 = vmax.f32 %v2456_v36, 0.0 }
 0x2c4   :  { %v2260_v27 = vpop.f32.mrf.mxu2 }
 0x2c5   :  { %v3828_v9 = vpack.c.bf16 %v2514_v13, %v2513_v41  ;;  %v2261_v7 = vadd.f32 %v2260_v27, %v2162_v38 }
 0x2c6   :  { %v2163_v40 = vpop.f32.mrf.mxu1  ;;  %v2369_v2 = vpop.f32.mrf.mxu3 }
 0x2c7   :  { %3874 = vst [vmem:[%s5594_s3 + $0x50] sm:$0xff] %v3828_v9   ;;  %v2360_v18 = vadd.f32 %v2359_v21, %v2261_v7  ;;  %v2164_v37 = vadd.f32 %v2163_v40, %v5018_v20 }
 0x2c9   :  { %v2460_v47 = vpop.f32.mrf.mxu0  ;;  %v2459_v63 = vadd.f32 %v2458_v19, %v2360_v18 }
 0x2cb   :  { %v2515_v32 = vmax.f32 %v2459_v63, 0.0 }
 0x2cc   :  { %v2262_v8 = vpop.f32.mrf.mxu2 }
 0x2cd   :  { %v2263_v39 = vadd.f32 %v2262_v8, %v2164_v37 }
 0x2ce   :  { %v2166_v1 = vpop.f32.mrf.mxu1  ;;  %v2371_v62 = vpop.f32.mrf.mxu3 }
 0x2cf   :  { %v2362_v45 = vadd.f32 %v2361_v35, %v2263_v39  ;;  %v2167_v33 = vadd.f32 %v2166_v1, %v5028_v44 }
 0x2d1   :  { %v2463_v34 = vpop.f32.mrf.mxu0  ;;  %v2461_v43 = vadd.f32 %v2460_v47, %v2362_v45 }
 0x2d3   :  { %v2516_v11 = vmax.f32 %v2461_v43, 0.0 }
 0x2d4   :  { %v2265_v23 = vpop.f32.mrf.mxu2 }
 0x2d5   :  { %v3833_v50 = vpack.c.bf16 %v2516_v11, %v2515_v32  ;;  %v2266_v20 = vadd.f32 %v2265_v23, %v2167_v33 }
 0x2d6   :  { %v2168_v5 = vpop.f32.mrf.mxu1  ;;  %v2374_v48 = vpop.f32.mrf.mxu3 }
 0x2d7   :  { %3875 = vst [vmem:[%s5594_s3 + $0x58] sm:$0xff] %v3833_v50   ;;  %v2365_v29 = vadd.f32 %v2364_v57, %v2266_v20  ;;  %v2169_v60 = vadd.f32 %v2168_v5, %v5056_v55 }
 0x2d9   :  { %v2465_v21 = vpop.f32.mrf.mxu0  ;;  %v2464_v14 = vadd.f32 %v2463_v34, %v2365_v29 }
 0x2db   :  { %v2517_v53 = vmax.f32 %v2464_v14, 0.0 }
 0x2dc   :  { %v2267_v49 = vpop.f32.mrf.mxu2 }
 0x2dd   :  { %v2268_v12 = vadd.f32 %v2267_v49, %v2169_v60 }
 0x2de   :  { %v2171_v31 = vpop.f32.mrf.mxu1  ;;  %v2376_v13 = vpop.f32.mrf.mxu3 }
 0x2df   :  { %v2367_v61 = vadd.f32 %v2366_v42, %v2268_v12  ;;  %v2172_v59 = vadd.f32 %v2171_v31, %v5066_v0 }
 0x2e1   :  { %v2468_v16 = vpop.f32.mrf.mxu0  ;;  %v2466_v17 = vadd.f32 %v2465_v21, %v2367_v61 }
 0x2e3   :  { %v2518_v44 = vmax.f32 %v2466_v17, 0.0 }
 0x2e4   :  { %v2270_v24 = vpop.f32.mrf.mxu2 }
 0x2e5   :  { %v3838_v35 = vpack.c.bf16 %v2518_v44, %v2517_v53  ;;  %v2271_v55 = vadd.f32 %v2270_v24, %v2172_v59 }
 0x2e6   :  { %v2173_v26 = vpop.f32.mrf.mxu1  ;;  %v2379_v8 = vpop.f32.mrf.mxu3 }
 0x2e7   :  { %3876 = vst [vmem:[%s5594_s3 + $0x60] sm:$0xff] %v3838_v35   ;;  %v2370_v10 = vadd.f32 %v2369_v2, %v2271_v55  ;;  %v2174_v15 = vadd.f32 %v2173_v26, %v5094_v25 }
 0x2e9   :  { %v2470_v51 = vpop.f32.mrf.mxu0  ;;  %v2469_v19 = vadd.f32 %v2468_v16, %v2370_v10 }
 0x2eb   :  { %v2519_v0 = vmax.f32 %v2469_v19, 0.0 }
 0x2ec   :  { %v2272_v3 = vpop.f32.mrf.mxu2 }
 0x2ed   :  { %v2273_v46 = vadd.f32 %v2272_v3, %v2174_v15 }
 0x2ee   :  { %v2176_v54 = vpop.f32.mrf.mxu1  ;;  %v2381_v33 = vpop.f32.mrf.mxu3 }
 0x2ef   :  { %v2372_v57 = vadd.f32 %v2371_v62, %v2273_v46  ;;  %v2177_v40 = vadd.f32 %v2176_v54, %v5109_v4 }
 0x2f1   :  { %v2473_v36 = vpop.f32.mrf.mxu0  ;;  %v2471_v41 = vadd.f32 %v2470_v51, %v2372_v57 }
 0x2f3   :  { %v2520_v27 = vmax.f32 %v2471_v41, 0.0 }
 0x2f4   :  { %v2275_v9 = vpop.f32.mrf.mxu2 }
 0x2f5   :  { %v3843_v38 = vpack.c.bf16 %v2520_v27, %v2519_v0  ;;  %v2276_v25 = vadd.f32 %v2275_v9, %v2177_v40 }
 0x2f6   :  { %v2178_v7 = vpop.f32.mrf.mxu1  ;;  %v2384_v62 = vpop.f32.mrf.mxu3 }
 0x2f7   :  { %3877 = vst [vmem:[%s5594_s3 + $0x68] sm:$0xff] %v3843_v38   ;;  %v2375_v42 = vadd.f32 %v2374_v48, %v2276_v25  ;;  %v2179_v18 = vadd.f32 %v2178_v7, %v5137_v22 }
 0x2f9   :  { %v2475_v47 = vpop.f32.mrf.mxu0  ;;  %v2474_v63 = vadd.f32 %v2473_v36, %v2375_v42 }
 0x2fb   :  { %v2521_v32 = vmax.f32 %v2474_v63, 0.0 }
 0x2fc   :  { %v2277_v37 = vpop.f32.mrf.mxu2 }
 0x2fd   :  { %v2278_v39 = vadd.f32 %v2277_v37, %v2179_v18 }
 0x2fe   :  { %v2181_v1 = vpop.f32.mrf.mxu1  ;;  %v2386_v35 = vpop.f32.mrf.mxu3 }
 0x2ff   :  { %v2377_v45 = vadd.f32 %v2376_v13, %v2278_v39  ;;  %v2182_v2 = vadd.f32 %v2181_v1, %v5147_v58 }
 0x301   :  { %v2478_v34 = vpop.f32.mrf.mxu0  ;;  %v2476_v43 = vadd.f32 %v2475_v47, %v2377_v45 }
 0x303   :  { %v2522_v4 = vmax.f32 %v2476_v43, 0.0 }
 0x304   :  { %v2280_v11 = vpop.f32.mrf.mxu2 }
 0x305   :  { %v3848_v23 = vpack.c.bf16 %v2522_v4, %v2521_v32  ;;  %v2281_v22 = vadd.f32 %v2280_v11, %v2182_v2 }
 0x306   :  { %v2183_v50 = vpop.f32.mrf.mxu1 }
 0x307   :  { %3878 = vst [vmem:[%s5594_s3 + $0x70] sm:$0xff] %v3848_v23   ;;  %v2380_v20 = vadd.f32 %v2379_v8, %v2281_v22  ;;  %v2184_v21 = vadd.f32 %v2183_v50, %v5175_v6 }
 0x309   :  { %v2480_v5 = vpop.f32.mrf.mxu0  ;;  %v2479_v12 = vadd.f32 %v2478_v34, %v2380_v20 }
 0x30b   :  { %v2523_v58 = vmax.f32 %v2479_v12, 0.0 }
 0x30c   :  { %v2282_v29 = vpop.f32.mrf.mxu2 }
 0x30d   :  { %v2283_v60 = vadd.f32 %v2282_v29, %v2184_v21 }
 0x30e   :  { %v2186_v49 = vpop.f32.mrf.mxu1 }
 0x30f   :  { %v2382_v31 = vadd.f32 %v2381_v33, %v2283_v60  ;;  %v2187_v44 = vadd.f32 %v2186_v49, %v5185_v30  ;;  %v2389_v30 = vpop.f32.mrf.mxu3 }
 0x311   :  { %v2481_v14 = vadd.f32 %v2480_v5, %v2382_v31  ;;  %v2483_v61 = vpop.f32.mrf.mxu0 }
 0x313   :  { %v2524_v16 = vmax.f32 %v2481_v14, 0.0 }
 0x314   :  { %v2285_v17 = vpop.f32.mrf.mxu2 }
 0x315   :  { %v3853_v53 = vpack.c.bf16 %v2524_v16, %v2523_v58  ;;  %v2286_v6 = vadd.f32 %v2285_v17, %v2187_v44 }
 0x316   :  { %v2188_v24 = vpop.f32.mrf.mxu1 }
 0x317   :  { %3879 = vst [vmem:[%s5594_s3 + $0x78] sm:$0xff] %v3853_v53   ;;  %v2385_v59 = vadd.f32 %v2384_v62, %v2286_v6  ;;  %v2189_v26 = vadd.f32 %v2188_v24, %v5211_v56  ;;  %v2391_v7 = vpop.f32.mrf.mxu3 }
 0x319   :  { %v2485_v55 = vpop.f32.mrf.mxu0  ;;  %v2484_v15 = vadd.f32 %v2483_v61, %v2385_v59 }
 0x31b   :  { %v2525_v54 = vmax.f32 %v2484_v15, 0.0 }
 0x31c   :  { %v2287_v51 = vpop.f32.mrf.mxu2 }
 0x31d   :  { %v2288_v48 = vadd.f32 %v2287_v51, %v2189_v26 }
 0x31e   :  { %v2191_v10 = vpop.f32.mrf.mxu1 }
 0x31f   :  { %v2387_v3 = vadd.f32 %v2386_v35, %v2288_v48  ;;  %v2192_v41 = vadd.f32 %v2191_v10, %v5221_v52 }
 0x321   :  { %v2486_v46 = vadd.f32 %v2485_v55, %v2387_v3  ;;  %v2488_v13 = vpop.f32.mrf.mxu0 }
 0x323   :  { %v2526_v19 = vmax.f32 %v2486_v46, 0.0 }
 0x324   :  { %v2290_v57 = vpop.f32.mrf.mxu2 }
 0x325   :  { %v3858_v36 = vpack.c.bf16 %v2526_v19, %v2525_v54  ;;  %v2291_v56 = vadd.f32 %v2290_v57, %v2192_v41 }
 0x326   :  { %v2193_v0 = vpop.f32.mrf.mxu1 }
 0x327   :  { %3880 = vst [vmem:[%s5594_s3 + $0x80] sm:$0xff] %v3858_v36   ;;  %v2390_v27 = vadd.f32 %v2389_v30, %v2291_v56  ;;  %v2194_v9 = vadd.f32 %v2193_v0, %v5247_v28 }
 0x329   :  { %v2489_v25 = vadd.f32 %v2488_v13, %v2390_v27  ;;  %v2490_v42 = vpop.f32.mrf.mxu0 }
 0x32b   :  { %v2527_v37 = vmax.f32 %v2489_v25, 0.0 }
 0x32c   :  { %v2292_v38 = vpop.f32.mrf.mxu2 }
 0x32d   :  { %v2293_v40 = vadd.f32 %v2292_v38, %v2194_v9 }
 0x32f   :  { %v2392_v47 = vadd.f32 %v2391_v7, %v2293_v40 }
 0x331   :  { %v2491_v18 = vadd.f32 %v2490_v42, %v2392_v47 }
 0x333   :  { %v2528_v8 = vmax.f32 %v2491_v18, 0.0 }
 0x335   :  { %v3863_v52 = vpack.c.bf16 %v2528_v8, %v2527_v37 }
 0x337   :  { %3881 = vst [vmem:[%s5594_s3 + $0x88] sm:$0xff] %v3863_v52  }

// kernel: custom_resnet4_forward.8
= control target key start
LH: loop header
LB: loop body
LE: loop exit
PB: predicated region body
PF: predicated region fallthrough
CT: control target
= control target key end

     0   :  { %s5856_s1 = inlined_call_operand.vmem [shape: bf16[1152,128], index: 1, kind: input, shape index: {}]   ;;  %s5857_s2 = inlined_call_operand.vmem [shape: f32[1,128], index: 2, kind: input, shape index: {}]   ;;  %s5858_s0 = inlined_call_operand.vmem [shape: bf16[288,1152], index: 0, kind: input, shape index: {}]   ;;  %s5859_s3 = inlined_call_operand.vmem [shape: bf16[288,128], index: 3, kind: input, shape index: {}]   ;;  %s5860_s4 = inlined_call_operand.vmem [shape: bf16[288,128], index: 4, kind: output, shape index: {}]  }
   0x1   :  { %v3821_v0 = vld [vmem:[%s5856_s1 + $0x38] sm:$0xff]  ;;  %v3820_v1 = vld [vmem:[%s5856_s1 + $0x30] sm:$0xff]  ;;  %v3819_v2 = vld [vmem:[%s5856_s1 + $0x28] sm:$0xff] }
   0x2   :  { %4082 = vmatpush.bf16.msra.mxu1 %v3821_v0  ;;  %4083 = vmatpush.bf16.msra.mxu2 %v3821_v0  ;;  %v3818_v3 = vld [vmem:[%s5856_s1 + $0x20] sm:$0xff]  ;;  %v3817_v4 = vld [vmem:[%s5856_s1 + $0x18] sm:$0xff]  ;;  %v3816_v5 = vld [vmem:[%s5856_s1 + $0x10] sm:$0xff] }
   0x3   :  { %1605 = vmatpush.bf16.msra.mxu0 %v3821_v0  ;;  %4084 = vmatpush.bf16.msra.mxu3 %v3821_v0  ;;  %v3815_v6 = vld [vmem:[%s5856_s1 + $0x8] sm:$0xff]  ;;  %v3814_v7 = vld [vmem:[%s5856_s1] sm:$0xff]  ;;  %v3078_v10 = vld [vmem:[%s5858_s0 + $0x2d0] sm:$0xf] }
   0x4   :  { %v2898_v8 = vld [vmem:[%s5858_s0 + $0x168] sm:$0xf]  ;;  %v3701_v9 = vld [vmem:[%s5858_s0 + $0x188] sm:$0xf0]  ;;  %v3746_v11 = vld [vmem:[%s5858_s0 + $0x2f0] sm:$0xf0] }
   0x5   :  { %v3837_v12 = vld [vmem:[%s5856_s1 + $0xb8] sm:$0xff]  ;;  %v2718_v13 = vld [vmem:[%s5858_s0] sm:$0xf]  ;;  %v3656_v14 = vld [vmem:[%s5858_s0 + $0x20] sm:$0xf0]  ;;  %v2899_v17 = vor.u32 %v3701_v9, %v2898_v8  ;;  %v3079_v18 = vor.u32 %v3746_v11, %v3078_v10 }
   0x6   :  { %4085 = vmatpush.bf16.msra.mxu1 %v3820_v1  ;;  %4086 = vmatpush.bf16.msra.mxu2 %v3820_v1  ;;  %v3829_v15 = vld [vmem:[%s5856_s1 + $0x78] sm:$0xff]  ;;  %v2719_v19 = vor.u32 %v3656_v14, %v2718_v13  ;;  %v3836_v22 = vld [vmem:[%s5856_s1 + $0xb0] sm:$0xff]  ;;  %v3835_v27 = vld [vmem:[%s5856_s1 + $0xa8] sm:$0xff] }
   0x7   :  { %1606 = vmatpush.bf16.msra.mxu0 %v3820_v1  ;;  %4087 = vmatpush.bf16.msra.mxu3 %v3820_v1  ;;  %v3853_v16 = vld [vmem:[%s5856_s1 + $0x138] sm:$0xff]  ;;  %v3828_v23 = vld [vmem:[%s5856_s1 + $0x70] sm:$0xff]  ;;  %v3827_v28 = vld [vmem:[%s5856_s1 + $0x68] sm:$0xff] }
   0x8   :  { %v3258_v20 = vld [vmem:[%s5858_s0 + $0x438] sm:$0xf]  ;;  %v3791_v21 = vld [vmem:[%s5858_s0 + $0x458] sm:$0xf0]  ;;  %v3852_v24 = vld [vmem:[%s5856_s1 + $0x130] sm:$0xff] }
   0x9   :  { %v3259_v25 = vor.u32 %v3791_v21, %v3258_v20  ;;  %v3845_v26 = vld [vmem:[%s5856_s1 + $0xf8] sm:$0xff]  ;;  %v3851_v29 = vld [vmem:[%s5856_s1 + $0x128] sm:$0xff]  ;;  %v3844_v30 = vld [vmem:[%s5856_s1 + $0xf0] sm:$0xff] }
   0xa   :  { %4088 = vmatpush.bf16.msra.mxu1 %v3819_v2  ;;  %4089 = vmatpush.bf16.msra.mxu2 %v3819_v2  ;;  %v3834_v31 = vld [vmem:[%s5856_s1 + $0xa0] sm:$0xff]  ;;  %v2934_v34 = vld [vmem:[%s5858_s0 + $0x1b0] sm:$0xf]  ;;  %v3710_v35 = vld [vmem:[%s5858_s0 + $0x1d0] sm:$0xf0] }
   0xb   :  { %1607 = vmatpush.bf16.msra.mxu0 %v3819_v2  ;;  %4090 = vmatpush.bf16.msra.mxu3 %v3819_v2  ;;  %v3826_v32 = vld [vmem:[%s5856_s1 + $0x60] sm:$0xff]  ;;  %v3114_v36 = vld [vmem:[%s5858_s0 + $0x318] sm:$0xf]  ;;  %v3755_v37 = vld [vmem:[%s5858_s0 + $0x338] sm:$0xf0]  ;;  %v2935_v43 = vor.u32 %v3710_v35, %v2934_v34 }
   0xc   :  { %v3850_v33 = vld [vmem:[%s5856_s1 + $0x120] sm:$0xff]  ;;  %v3843_v38 = vld [vmem:[%s5856_s1 + $0xe8] sm:$0xff]  ;;  %v3833_v41 = vld [vmem:[%s5856_s1 + $0x98] sm:$0xff]  ;;  %v3115_v44 = vor.u32 %v3755_v37, %v3114_v36 }
   0xd   :  { %v2754_v39 = vld [vmem:[%s5858_s0 + $0x48] sm:$0xf]  ;;  %v3665_v40 = vld [vmem:[%s5858_s0 + $0x68] sm:$0xf0]  ;;  %v3825_v42 = vld [vmem:[%s5856_s1 + $0x58] sm:$0xff] }
   0xe   :  { %4091 = vmatpush.bf16.msra.mxu1 %v3818_v3  ;;  %4092 = vmatpush.bf16.msra.mxu2 %v3818_v3  ;;  %v2755_v45 = vor.u32 %v3665_v40, %v2754_v39  ;;  %v3294_v46 = vld [vmem:[%s5858_s0 + $0x480] sm:$0xf]  ;;  %v3800_v47 = vld [vmem:[%s5858_s0 + $0x4a0] sm:$0xf0]  ;;  %v3832_v49 = vld [vmem:[%s5856_s1 + $0x90] sm:$0xff] }
   0xf   :  { %1608 = vmatpush.bf16.msra.mxu0 %v3818_v3  ;;  %4093 = vmatpush.bf16.msra.mxu3 %v3818_v3  ;;  %v3295_v48 = vor.u32 %v3800_v47, %v3294_v46  ;;  %v3849_v50 = vld [vmem:[%s5856_s1 + $0x118] sm:$0xff]  ;;  %v3842_v51 = vld [vmem:[%s5856_s1 + $0xe0] sm:$0xff]  ;;  %v3824_v52 = vld [vmem:[%s5856_s1 + $0x50] sm:$0xff] }
  0x10   :  { %v3831_v53 = vld [vmem:[%s5856_s1 + $0x88] sm:$0xff]  ;;  %v3848_v54 = vld [vmem:[%s5856_s1 + $0x110] sm:$0xff]  ;;  %v3841_v55 = vld [vmem:[%s5856_s1 + $0xd8] sm:$0xff] }
  0x11   :  { %v2970_v56 = vld [vmem:[%s5858_s0 + $0x1f8] sm:$0xf]  ;;  %v3719_v57 = vld [vmem:[%s5858_s0 + $0x218] sm:$0xf0]  ;;  %v3150_v58 = vld [vmem:[%s5858_s0 + $0x360] sm:$0xf] }
  0x12   :  { %4094 = vmatpush.bf16.msra.mxu1 %v3817_v4  ;;  %4095 = vmatpush.bf16.msra.mxu2 %v3817_v4  ;;  %v3764_v59 = vld [vmem:[%s5858_s0 + $0x380] sm:$0xf0]  ;;  %v3840_v60 = vld [vmem:[%s5856_s1 + $0xd0] sm:$0xff]  ;;  %v2971_v63 = vor.u32 %v3719_v57, %v2970_v56  ;;  %v3330_v2 = vld [vmem:[%s5858_s0 + $0x4c8] sm:$0xf] }
  0x13   :  { %1609 = vmatpush.bf16.msra.mxu0 %v3817_v4  ;;  %4096 = vmatpush.bf16.msra.mxu3 %v3817_v4  ;;  %v2790_v61 = vld [vmem:[%s5858_s0 + $0x90] sm:$0xf]  ;;  %v3674_v62 = vld [vmem:[%s5858_s0 + $0xb0] sm:$0xf0]  ;;  %v3151_v0 = vor.u32 %v3764_v59, %v3150_v58  ;;  %v3809_v3 = vld [vmem:[%s5858_s0 + $0x4e8] sm:$0xf0] }
  0x14   :  { %v2791_v1 = vor.u32 %v3674_v62, %v2790_v61  ;;  %v3331_v4 = vor.u32 %v3809_v3, %v3330_v2  ;;  %v3847_v8 = vld [vmem:[%s5856_s1 + $0x108] sm:$0xff]  ;;  %v3822_v9 = vld [vmem:[%s5856_s1 + $0x40] sm:$0xff]  ;;  %v3662_v37 = vld [vmem:[%s5858_s0 + $0x54] sm:$0xf] }
  0x15   :  { %v3838_v10 = vld [vmem:[%s5856_s1 + $0xc0] sm:$0xff]  ;;  %v3186_v14 = vld [vmem:[%s5858_s0 + $0x3a8] sm:$0xf]  ;;  %v3653_v21 = vld [vmem:[%s5858_s0 + $0xc] sm:$0xf] }
  0x16   :  { %4097 = vmatpush.bf16.msra.mxu1 %v3816_v5  ;;  %4098 = vmatpush.bf16.msra.mxu2 %v3816_v5  ;;  %v3846_v11 = vld [vmem:[%s5856_s1 + $0x100] sm:$0xff]  ;;  %v2756_v56 = vld [vmem:[%s5858_s0 + $0x6c] sm:$0xf0]  ;;  %v3666_v58 = vld [vmem:[%s5858_s0 + $0x70] sm:$0xf0] }
  0x17   :  { %1610 = vmatpush.bf16.msra.mxu0 %v3816_v5  ;;  %4099 = vmatpush.bf16.msra.mxu3 %v3816_v5  ;;  %v3823_v5 = vld [vmem:[%s5856_s1 + $0x48] sm:$0xff]  ;;  %v3728_v13 = vld [vmem:[%s5858_s0 + $0x260] sm:$0xf0]  ;;  %v2762_v57 = vld [vmem:[%s5858_s0 + $0x50] sm:$0xf] }
  0x18   :  { %v3652_v40 = vld [vmem:[%s5858_s0 + $0x4] sm:$0xf]  ;;  %v2770_v59 = vld [vmem:[%s5858_s0 + $0x58] sm:$0xf]  ;;  %v2763_v62 = vor.u32 %v3666_v58, %v2762_v57  ;;  %v3884_v2 = vld [vmem:[%s5856_s1 + $0x230] sm:$0xff] }
  0x19   :  { %v3697_v58 = vld [vmem:[%s5858_s0 + $0x16c] sm:$0xf] }
  0x1a   :  { %4100 = vmatpush.bf16.msra.mxu1 %v3815_v6  ;;  %4101 = vmatpush.bf16.msra.mxu2 %v3815_v6 }
  0x1b   :  { %1611 = vmatpush.bf16.msra.mxu0 %v3815_v6  ;;  %4102 = vmatpush.bf16.msra.mxu3 %v3815_v6  ;;  %v3839_v6 = vld [vmem:[%s5856_s1 + $0xc8] sm:$0xff] }
  0x1e   :  { %4103 = vmatpush.bf16.msra.mxu1 %v3814_v7  ;;  %4104 = vmatpush.bf16.msra.mxu2 %v3814_v7 }
  0x1f   :  { %1612 = vmatpush.bf16.msra.mxu0 %v3814_v7  ;;  %4105 = vmatpush.bf16.msra.mxu3 %v3814_v7  ;;  %v3830_v7 = vld [vmem:[%s5856_s1 + $0x80] sm:$0xff] }
  0x21   :  { %1638 = vmatmul.bf16.vlgmr.msra.gmra.mxu1 %v2899_v17  ;;  %1663 = vmatmul.bf16.vlgmr.msra.gmra.mxu2 %v3079_v18  ;;  %v3683_v17 = vld [vmem:[%s5858_s0 + $0xf8] sm:$0xf0] }
  0x22   :  { %1803 = vmatpush.bf16.msrb.mxu2 %v3837_v12  ;;  %1704 = vmatpush.bf16.msrb.mxu1 %v3829_v15  ;;  %v3006_v12 = vld [vmem:[%s5858_s0 + $0x240] sm:$0xf]  ;;  %v3773_v15 = vld [vmem:[%s5858_s0 + $0x3c8] sm:$0xf0] }
  0x23   :  { %2001 = vmatpush.bf16.msrb.mxu0 %v3853_v16  ;;  %1688 = vmatmul.bf16.vlgmr.msra.gmra.mxu3 %v3259_v25  ;;  %v2826_v16 = vld [vmem:[%s5858_s0 + $0xd8] sm:$0xf]  ;;  %v3007_v18 = vor.u32 %v3728_v13, %v3006_v12  ;;  %v3689_v13 = vld [vmem:[%s5858_s0 + $0x12c] sm:$0xf] }
  0x24   :  { %1613 = vmatmul.bf16.vlgmr.msra.gmra.mxu0 %v2719_v19  ;;  %1902 = vmatpush.bf16.msrb.mxu3 %v3845_v26  ;;  %v3187_v19 = vor.u32 %v3773_v15, %v3186_v14  ;;  %v2827_v20 = vor.u32 %v3683_v17, %v2826_v16  ;;  %v3877_v25 = vld [vmem:[%s5856_s1 + $0x1f8] sm:$0xff]  ;;  %v2872_v14 = vld [vmem:[%s5858_s0 + $0x14c] sm:$0xf0]  ;;  %v3867_v16 = vld [vmem:[%s5856_s1 + $0x1a8] sm:$0xff] }
  0x25   :  { %v3861_v26 = vld [vmem:[%s5856_s1 + $0x178] sm:$0xff]  ;;  %v2875_v15 = vor.u32 %v3689_v13, %v2872_v14 }
  0x26   :  { %1804 = vmatpush.bf16.msrb.mxu2 %v3836_v22  ;;  %1705 = vmatpush.bf16.msrb.mxu1 %v3828_v23  ;;  %v2728_v22 = vld [vmem:[%s5858_s0 + $0x2c] sm:$0xf0]  ;;  %v3679_v17 = vld [vmem:[%s5858_s0 + $0xdc] sm:$0xf] }
  0x27   :  { %2002 = vmatpush.bf16.msrb.mxu0 %v3852_v24  ;;  %v2731_v23 = vor.u32 %v3653_v21, %v2728_v22  ;;  %v3869_v24 = vld [vmem:[%s5856_s1 + $0x1b8] sm:$0xff]  ;;  %v3684_v21 = vld [vmem:[%s5858_s0 + $0x100] sm:$0xf0]  ;;  %v2842_v22 = vld [vmem:[%s5858_s0 + $0xe8] sm:$0xf] }
  0x28   :  { %1903 = vmatpush.bf16.msrb.mxu3 %v3844_v30  ;;  %v3222_v30 = vld [vmem:[%s5858_s0 + $0x3f0] sm:$0xf] }
  0x2a   :  { %1805 = vmatpush.bf16.msrb.mxu2 %v3835_v27  ;;  %1706 = vmatpush.bf16.msrb.mxu1 %v3827_v28  ;;  %v3885_v27 = vld [vmem:[%s5856_s1 + $0x238] sm:$0xff]  ;;  %v3042_v28 = vld [vmem:[%s5858_s0 + $0x288] sm:$0xf] }
  0x2b   :  { %2003 = vmatpush.bf16.msrb.mxu0 %v3851_v29  ;;  %v3737_v29 = vld [vmem:[%s5858_s0 + $0x2a8] sm:$0xf0] }
  0x2c   :  { %1904 = vmatpush.bf16.msrb.mxu3 %v3843_v38  ;;  %v3043_v34 = vor.u32 %v3737_v29, %v3042_v28  ;;  %v2764_v38 = vld [vmem:[%s5858_s0 + $0x74] sm:$0xf0]  ;;  %v3698_v29 = vld [vmem:[%s5858_s0 + $0x174] sm:$0xf] }
  0x2d   :  { %v2767_v39 = vor.u32 %v3662_v37, %v2764_v38  ;;  %v3688_v38 = vld [vmem:[%s5858_s0 + $0x124] sm:$0xf] }
  0x2e   :  { %1806 = vmatpush.bf16.msrb.mxu2 %v3834_v31  ;;  %1707 = vmatpush.bf16.msrb.mxu1 %v3826_v32  ;;  %v3782_v31 = vld [vmem:[%s5858_s0 + $0x410] sm:$0xf0]  ;;  %v2862_v32 = vld [vmem:[%s5858_s0 + $0x120] sm:$0xf] }
  0x2f   :  { %2004 = vmatpush.bf16.msrb.mxu0 %v3850_v33  ;;  %v3692_v33 = vld [vmem:[%s5858_s0 + $0x140] sm:$0xf0]  ;;  %v3223_v35 = vor.u32 %v3782_v31, %v3222_v30  ;;  %v2908_v30 = vld [vmem:[%s5858_s0 + $0x194] sm:$0xf0] }
  0x30   :  { %1905 = vmatpush.bf16.msrb.mxu3 %v3842_v51  ;;  %v2863_v36 = vor.u32 %v3692_v33, %v2862_v32  ;;  %v2911_v32 = vor.u32 %v3698_v29, %v2908_v30  ;;  %v3883_v33 = vld [vmem:[%s5856_s1 + $0x228] sm:$0xff] }
  0x31   :  { %1643 = vmatmul.bf16.gmra.mxu1 %v2935_v43  ;;  %1668 = vmatmul.bf16.gmra.mxu2 %v3115_v44  ;;  %v3657_v43 = vld [vmem:[%s5858_s0 + $0x28] sm:$0xf0]  ;;  %v2734_v44 = vld [vmem:[%s5858_s0 + $0x10] sm:$0xf] }
  0x32   :  { %1807 = vmatpush.bf16.msrb.mxu2 %v3833_v41  ;;  %1708 = vmatpush.bf16.msrb.mxu1 %v3825_v42  ;;  %v2720_v41 = vld [vmem:[%s5858_s0 + $0x24] sm:$0xf0]  ;;  %v3725_v30 = vld [vmem:[%s5858_s0 + $0x24c] sm:$0xf] }
  0x33   :  { %2005 = vmatpush.bf16.msrb.mxu0 %v3849_v50  ;;  %1693 = vmatmul.bf16.gmra.mxu3 %v3295_v48  ;;  %v2726_v42 = vld [vmem:[%s5858_s0 + $0x8] sm:$0xf]  ;;  %v2723_v46 = vor.u32 %v3652_v40, %v2720_v41  ;;  %v2800_v50 = vld [vmem:[%s5858_s0 + $0xbc] sm:$0xf0]  ;;  %v3693_v41 = vld [vmem:[%s5858_s0 + $0x148] sm:$0xf0] }
  0x34   :  { %1618 = vmatmul.bf16.gmra.mxu0 %v2755_v45  ;;  %1906 = vmatpush.bf16.msrb.mxu3 %v3841_v55  ;;  %v3658_v45 = vld [vmem:[%s5858_s0 + $0x30] sm:$0xf0]  ;;  %v2727_v47 = vor.u32 %v3657_v43, %v2726_v42  ;;  %v3661_v55 = vld [vmem:[%s5858_s0 + $0x4c] sm:$0xf]  ;;  %v2870_v40 = vld [vmem:[%s5858_s0 + $0x128] sm:$0xf] }
  0x35   :  { %v2735_v48 = vor.u32 %v3658_v45, %v2734_v44  ;;  %v2759_v61 = vor.u32 %v3661_v55, %v2756_v56  ;;  %v2878_v42 = vld [vmem:[%s5858_s0 + $0x130] sm:$0xf]  ;;  %v3694_v43 = vld [vmem:[%s5858_s0 + $0x150] sm:$0xf0] }
  0x36   :  { %1808 = vmatpush.bf16.msrb.mxu2 %v3832_v49  ;;  %1709 = vmatpush.bf16.msrb.mxu1 %v3824_v52  ;;  %v3671_v49 = vld [vmem:[%s5858_s0 + $0x9c] sm:$0xf]  ;;  %v3868_v52 = vld [vmem:[%s5856_s1 + $0x1b0] sm:$0xff] }
  0x37   :  { %2006 = vmatpush.bf16.msrb.mxu0 %v3848_v54  ;;  %v2803_v51 = vor.u32 %v3671_v49, %v2800_v50  ;;  %v3860_v54 = vld [vmem:[%s5856_s1 + $0x170] sm:$0xff]  ;;  %v3707_v49 = vld [vmem:[%s5858_s0 + $0x1bc] sm:$0xf]  ;;  %v2944_v50 = vld [vmem:[%s5858_s0 + $0x1dc] sm:$0xf0] }
  0x38   :  { %1907 = vmatpush.bf16.msrb.mxu3 %v3840_v60  ;;  %v3667_v60 = vld [vmem:[%s5858_s0 + $0x78] sm:$0xf0] }
  0x3a   :  { %1809 = vmatpush.bf16.msrb.mxu2 %v3831_v53  ;;  %1710 = vmatpush.bf16.msrb.mxu1 %v3823_v5  ;;  %v3876_v53 = vld [vmem:[%s5856_s1 + $0x1f0] sm:$0xff]  ;;  %v2792_v5 = vld [vmem:[%s5858_s0 + $0xb4] sm:$0xf0] }
  0x3b   :  { %2007 = vmatpush.bf16.msrb.mxu0 %v3847_v8  ;;  %v2806_v8 = vld [vmem:[%s5858_s0 + $0xa0] sm:$0xf] }
  0x3c   :  { %1908 = vmatpush.bf16.msrb.mxu3 %v3839_v6  ;;  %v2798_v6 = vld [vmem:[%s5858_s0 + $0x98] sm:$0xf] }
  0x3e   :  { %1810 = vmatpush.bf16.msrb.mxu2 %v3830_v7  ;;  %1711 = vmatpush.bf16.msrb.mxu1 %v3822_v9  ;;  %v3675_v7 = vld [vmem:[%s5858_s0 + $0xb8] sm:$0xf0]  ;;  %v3676_v9 = vld [vmem:[%s5858_s0 + $0xc0] sm:$0xf0] }
  0x3f   :  { %2008 = vmatpush.bf16.msrb.mxu0 %v3846_v11  ;;  %v2799_v11 = vor.u32 %v3675_v7, %v2798_v6  ;;  %v2807_v12 = vor.u32 %v3676_v9, %v2806_v8  ;;  %v3716_v6 = vld [vmem:[%s5858_s0 + $0x204] sm:$0xf]  ;;  %v2980_v7 = vld [vmem:[%s5858_s0 + $0x224] sm:$0xf0] }
  0x40   :  { %1909 = vmatpush.bf16.msrb.mxu3 %v3838_v10  ;;  %v3874_v9 = vld [vmem:[%s5856_s1 + $0x1e0] sm:$0xff] }
  0x41   :  { %1648 = vmatmul.bf16.gmra.mxu1 %v2971_v63  ;;  %1673 = vmatmul.bf16.gmra.mxu2 %v3151_v0  ;;  %v2771_v63 = vor.u32 %v3667_v60, %v2770_v59  ;;  %v3680_v0 = vld [vmem:[%s5858_s0 + $0xe4] sm:$0xf]  ;;  %v2900_v59 = vld [vmem:[%s5858_s0 + $0x18c] sm:$0xf0] }
  0x42   :  { %2199 = vmatpush.bf16.msra.mxu2 %v3869_v24  ;;  %2100 = vmatpush.bf16.msra.mxu1 %v3861_v26  ;;  %v3859_v26 = vld [vmem:[%s5856_s1 + $0x168] sm:$0xff]  ;;  %v2906_v60 = vld [vmem:[%s5858_s0 + $0x170] sm:$0xf] }
  0x43   :  { %1698 = vmatmul.bf16.gmra.mxu3 %v3331_v4  ;;  %2397 = vmatpush.bf16.msra.mxu0 %v3885_v27  ;;  %v3670_v4 = vld [vmem:[%s5858_s0 + $0x94] sm:$0xf] }
  0x44   :  { %1623 = vmatmul.bf16.gmra.mxu0 %v2791_v1  ;;  %2298 = vmatpush.bf16.msra.mxu3 %v3877_v25  ;;  %v2836_v1 = vld [vmem:[%s5858_s0 + $0x104] sm:$0xf0]  ;;  %v2795_v10 = vor.u32 %v3670_v4, %v2792_v5 }
  0x45   :  { %v2839_v3 = vor.u32 %v3680_v0, %v2836_v1  ;;  %v2903_v1 = vor.u32 %v3697_v58, %v2900_v59 }
  0x46   :  { %2200 = vmatpush.bf16.msra.mxu2 %v3868_v52  ;;  %2101 = vmatpush.bf16.msra.mxu1 %v3860_v54 }
  0x47   :  { %2398 = vmatpush.bf16.msra.mxu0 %v3884_v2 }
  0x48   :  { %2299 = vmatpush.bf16.msra.mxu3 %v3876_v53  ;;  %v2947_v53 = vor.u32 %v3707_v49, %v2944_v50  ;;  %v3720_v49 = vld [vmem:[%s5858_s0 + $0x220] sm:$0xf0]  ;;  %v2986_v50 = vld [vmem:[%s5858_s0 + $0x208] sm:$0xf] }
  0x4a   :  { %2201 = vmatpush.bf16.msra.mxu2 %v3867_v16  ;;  %2102 = vmatpush.bf16.msra.mxu1 %v3859_v26  ;;  %v3882_v16 = vld [vmem:[%s5856_s1 + $0x220] sm:$0xff] }
  0x4b   :  { %2399 = vmatpush.bf16.msra.mxu0 %v3883_v33 }
  0x4f   :  { %2400 = vmatpush.bf16.msra.mxu0 %v3882_v16  ;;  %v3857_v16 = vld [vmem:[%s5856_s1 + $0x158] sm:$0xff] }
  0x51   :  { %1653 = vmatmul.bf16.gmra.mxu1 %v3007_v18  ;;  %1678 = vmatmul.bf16.gmra.mxu2 %v3187_v19  ;;  %v3875_v18 = vld [vmem:[%s5856_s1 + $0x1e8] sm:$0xff]  ;;  %v2828_v19 = vld [vmem:[%s5858_s0 + $0xfc] sm:$0xf0] }
  0x52   :  { %2300 = vmatpush.bf16.msra.mxu3 %v3875_v18  ;;  %v2831_v24 = vor.u32 %v3679_v17, %v2828_v19  ;;  %v3706_v18 = vld [vmem:[%s5858_s0 + $0x1b4] sm:$0xf]  ;;  %v2936_v19 = vld [vmem:[%s5858_s0 + $0x1d4] sm:$0xf0] }
  0x53   :  { %1910 = vmatmul.bf16.vlgmr.msrb.gmra.mxu3 %v2731_v23  ;;  %v3685_v23 = vld [vmem:[%s5858_s0 + $0x108] sm:$0xf0] }
  0x54   :  { %1628 = vmatmul.bf16.gmra.mxu0 %v2827_v20  ;;  %v2834_v20 = vld [vmem:[%s5858_s0 + $0xe0] sm:$0xf]  ;;  %v2843_v28 = vor.u32 %v3685_v23, %v2842_v22  ;;  %v3712_v23 = vld [vmem:[%s5858_s0 + $0x1e0] sm:$0xf0] }
  0x55   :  { %v2835_v25 = vor.u32 %v3684_v21, %v2834_v20  ;;  %v2942_v20 = vld [vmem:[%s5858_s0 + $0x1b8] sm:$0xf]  ;;  %v3711_v21 = vld [vmem:[%s5858_s0 + $0x1d8] sm:$0xf0]  ;;  %v2950_v22 = vld [vmem:[%s5858_s0 + $0x1c0] sm:$0xf] }
  0x56   :  { %2301 = vmatpush.bf16.msra.mxu3 %v3874_v9  ;;  %v2943_v26 = vor.u32 %v3711_v21, %v2942_v20  ;;  %v2951_v29 = vor.u32 %v3712_v23, %v2950_v22  ;;  %v3724_v20 = vld [vmem:[%s5858_s0 + $0x244] sm:$0xf]  ;;  %v3008_v21 = vld [vmem:[%s5858_s0 + $0x264] sm:$0xf0]  ;;  %v3729_v23 = vld [vmem:[%s5858_s0 + $0x268] sm:$0xf0] }
  0x57   :  { %v3014_v22 = vld [vmem:[%s5858_s0 + $0x248] sm:$0xf] }
  0x61   :  { %1658 = vmatmul.bf16.gmra.mxu1 %v3043_v34  ;;  %1683 = vmatmul.bf16.gmra.mxu2 %v3223_v35 }
  0x63   :  { %1915 = vmatmul.bf16.gmra.mxu3 %v2767_v39  ;;  %v2864_v39 = vld [vmem:[%s5858_s0 + $0x144] sm:$0xf0] }
  0x64   :  { %1633 = vmatmul.bf16.gmra.mxu0 %v2863_v36  ;;  %v2867_v45 = vor.u32 %v3688_v38, %v2864_v39 }
  0x71   :  { %1712 = vmatmul.bf16.vlgmr.msrb.gmra.mxu1 %v2723_v46  ;;  %1811 = vmatmul.bf16.vlgmr.msrb.gmra.mxu2 %v2727_v47  ;;  %v2871_v46 = vor.u32 %v3693_v41, %v2870_v40 }
  0x73   :  { %1920 = vmatmul.bf16.gmra.mxu3 %v2803_v51 }
  0x74   :  { %2009 = vmatmul.bf16.vlgmr.msrb.gmra.mxu0 %v2735_v48  ;;  %v2879_v48 = vor.u32 %v3694_v43, %v2878_v42 }
  0x81   :  { %1717 = vmatmul.bf16.gmra.mxu1 %v2759_v61  ;;  %1816 = vmatmul.bf16.gmra.mxu2 %v2763_v62  ;;  %v3702_v61 = vld [vmem:[%s5858_s0 + $0x190] sm:$0xf0]  ;;  %v2914_v62 = vld [vmem:[%s5858_s0 + $0x178] sm:$0xf] }
  0x82   :  { %v2907_v2 = vor.u32 %v3702_v61, %v2906_v60 }
  0x83   :  { %1925 = vmatmul.bf16.gmra.mxu3 %v2839_v3  ;;  %v3866_v3 = vld [vmem:[%s5856_s1 + $0x1a0] sm:$0xff] }
  0x84   :  { %2014 = vmatmul.bf16.gmra.mxu0 %v2771_v63  ;;  %v3703_v63 = vld [vmem:[%s5858_s0 + $0x198] sm:$0xf0]  ;;  %2202 = vmatpush.bf16.msra.mxu2 %v3866_v3 }
  0x85   :  { %v2915_v5 = vor.u32 %v3703_v63, %v2914_v62  ;;  %v3734_v63 = vld [vmem:[%s5858_s0 + $0x294] sm:$0xf] }
  0x91   :  { %1722 = vmatmul.bf16.gmra.mxu1 %v2795_v10  ;;  %1821 = vmatmul.bf16.gmra.mxu2 %v2799_v11  ;;  %v2983_v11 = vor.u32 %v3716_v6, %v2980_v7  ;;  %v3865_v6 = vld [vmem:[%s5856_s1 + $0x198] sm:$0xff] }
  0x92   :  { %v3873_v7 = vld [vmem:[%s5856_s1 + $0x1d8] sm:$0xff]  ;;  %2203 = vmatpush.bf16.msra.mxu2 %v3865_v6 }
  0x93   :  { %1930 = vmatmul.bf16.gmra.mxu3 %v2875_v15 }
  0x94   :  { %2019 = vmatmul.bf16.gmra.mxu0 %v2807_v12  ;;  %v3858_v12 = vld [vmem:[%s5856_s1 + $0x160] sm:$0xff]  ;;  %2302 = vmatpush.bf16.msra.mxu3 %v3873_v7 }
  0x95   :  { %2103 = vmatpush.bf16.msra.mxu1 %v3858_v12 }
  0x99   :  { %2104 = vmatpush.bf16.msra.mxu1 %v3857_v16 }
  0x9e   :  { %v4496_v27 = vpop.f32.mrf.mxu1 }
  0xa1   :  { %v4504_v31 = vpop.f32.mrf.mxu0  ;;  %1727 = vmatmul.bf16.gmra.mxu1 %v2831_v24  ;;  %1826 = vmatmul.bf16.gmra.mxu2 %v2835_v25  ;;  %v2939_v25 = vor.u32 %v3706_v18, %v2936_v19  ;;  %v3881_v19 = vld [vmem:[%s5856_s1 + $0x218] sm:$0xff] }
  0xa2   :  { %2401 = vmatpush.bf16.msra.mxu0 %v3881_v19 }
  0xa3   :  { %1935 = vmatmul.bf16.gmra.mxu3 %v2911_v32  ;;  %v3016_v32 = vld [vmem:[%s5858_s0 + $0x26c] sm:$0xf0] }
  0xa4   :  { %2024 = vmatmul.bf16.gmra.mxu0 %v2843_v28  ;;  %v4509_v34 = vpop.f32.mrf.mxu2  ;;  %v3019_v39 = vor.u32 %v3725_v30, %v3016_v32 }
  0xa6   :  { %v4511_v35 = vpop.f32.mrf.mxu1  ;;  %v4515_v37 = vpop.f32.mrf.mxu3 }
  0xa9   :  { %v4513_v36 = vpop.f32.mrf.mxu0 }
  0xac   :  { %v4535_v44 = vpop.f32.mrf.mxu2 }
  0xae   :  { %v4537_v47 = vpop.f32.mrf.mxu1  ;;  %v4547_v52 = vpop.f32.mrf.mxu3 }
  0xb1   :  { %v4545_v51 = vpop.f32.mrf.mxu0  ;;  %1732 = vmatmul.bf16.gmra.mxu1 %v2867_v45  ;;  %1831 = vmatmul.bf16.gmra.mxu2 %v2871_v46  ;;  %v3715_v45 = vld [vmem:[%s5858_s0 + $0x1fc] sm:$0xf]  ;;  %v2972_v46 = vld [vmem:[%s5858_s0 + $0x21c] sm:$0xf0] }
  0xb2   :  { %v2975_v59 = vor.u32 %v3715_v45, %v2972_v46  ;;  %v3015_v45 = vor.u32 %v3729_v23, %v3014_v22  ;;  %v3044_v22 = vld [vmem:[%s5858_s0 + $0x2ac] sm:$0xf0]  ;;  %v3058_v23 = vld [vmem:[%s5858_s0 + $0x298] sm:$0xf] }
  0xb3   :  { %1940 = vmatmul.bf16.gmra.mxu3 %v2947_v53  ;;  %v3721_v53 = vld [vmem:[%s5858_s0 + $0x228] sm:$0xf0] }
  0xb4   :  { %2029 = vmatmul.bf16.gmra.mxu0 %v2879_v48  ;;  %v4549_v54 = vpop.f32.mrf.mxu2  ;;  %v2978_v48 = vld [vmem:[%s5858_s0 + $0x200] sm:$0xf]  ;;  %v2987_v62 = vor.u32 %v3721_v53, %v2986_v50 }
  0xb5   :  { %v2979_v60 = vor.u32 %v3720_v49, %v2978_v48  ;;  %v3743_v49 = vld [vmem:[%s5858_s0 + $0x2dc] sm:$0xf]  ;;  %v3088_v50 = vld [vmem:[%s5858_s0 + $0x2fc] sm:$0xf0] }
  0xb6   :  { %v4551_v55 = vpop.f32.mrf.mxu1  ;;  %v4555_v57 = vpop.f32.mrf.mxu3 }
  0xb9   :  { %v4553_v56 = vpop.f32.mrf.mxu0 }
  0xbc   :  { %v4575_v0 = vpop.f32.mrf.mxu2 }
  0xbe   :  { %v4580_v4 = vpop.f32.mrf.mxu1  ;;  %v4593_v10 = vpop.f32.mrf.mxu3 }
  0xc1   :  { %v4588_v8 = vpop.f32.mrf.mxu0  ;;  %1737 = vmatmul.bf16.gmra.mxu1 %v2903_v1  ;;  %1836 = vmatmul.bf16.gmra.mxu2 %v2907_v2  ;;  %v3052_v1 = vld [vmem:[%s5858_s0 + $0x2b4] sm:$0xf0] }
  0xc3   :  { %1945 = vmatmul.bf16.gmra.mxu3 %v2983_v11 }
  0xc4   :  { %2034 = vmatmul.bf16.gmra.mxu0 %v2915_v5  ;;  %v4598_v13 = vpop.f32.mrf.mxu2  ;;  %v3055_v5 = vor.u32 %v3734_v63, %v3052_v1 }
  0xc6   :  { %v4600_v14 = vpop.f32.mrf.mxu1  ;;  %v4607_v17 = vpop.f32.mrf.mxu3 }
  0xc9   :  { %v4602_v15 = vpop.f32.mrf.mxu0 }
  0xcc   :  { %v4627_v24 = vpop.f32.mrf.mxu2 }
  0xce   :  { %v4629_v28 = vpop.f32.mrf.mxu1  ;;  %v4639_v38 = vpop.f32.mrf.mxu3 }
  0xd1   :  { %v4637_v33 = vpop.f32.mrf.mxu0  ;;  %1742 = vmatmul.bf16.gmra.mxu1 %v2939_v25  ;;  %1841 = vmatmul.bf16.gmra.mxu2 %v2943_v26  ;;  %v4714_v25 = vld [vmem:[%s5857_s2] ss:$0 sm:$0xff]  ;;  %v3022_v26 = vld [vmem:[%s5858_s0 + $0x250] sm:$0xf] }
  0xd2   :  { %v1615_v32 = vadd.f32 %v4714_v25, %v4504_v31  ;;  %v1617_v63 = vadd.f32 %v4714_v25, %v4513_v36  ;;  %v3050_v36 = vld [vmem:[%s5858_s0 + $0x290] sm:$0xf] }
  0xd3   :  { %1950 = vmatmul.bf16.gmra.mxu3 %v3019_v39  ;;  %v3011_v39 = vor.u32 %v3724_v20, %v3008_v21  ;;  %v3733_v20 = vld [vmem:[%s5858_s0 + $0x28c] sm:$0xf] }
  0xd4   :  { %2039 = vmatmul.bf16.gmra.mxu0 %v2951_v29  ;;  %v4641_v40 = vpop.f32.mrf.mxu2  ;;  %v3730_v29 = vld [vmem:[%s5858_s0 + $0x270] sm:$0xf0] }
  0xd5   :  { %v3023_v48 = vor.u32 %v3730_v29, %v3022_v26  ;;  %v3739_v26 = vld [vmem:[%s5858_s0 + $0x2b8] sm:$0xf0] }
  0xd6   :  { %v4643_v41 = vpop.f32.mrf.mxu1  ;;  %v1911_v43 = vpop.f32.mrf.mxu3 }
  0xd9   :  { %v4645_v42 = vpop.f32.mrf.mxu0 }
  0xdc   :  { %v4665_v58 = vpop.f32.mrf.mxu2 }
  0xde   :  { %v4667_v61 = vpop.f32.mrf.mxu1  ;;  %v4677_v3 = vpop.f32.mrf.mxu3 }
  0xe1   :  { %v4675_v2 = vpop.f32.mrf.mxu0  ;;  %1747 = vmatmul.bf16.gmra.mxu1 %v2975_v59  ;;  %1846 = vmatmul.bf16.gmra.mxu2 %v2979_v60 }
  0xe3   :  { %1955 = vmatmul.bf16.gmra.mxu3 %v3055_v5 }
  0xe4   :  { %2044 = vmatmul.bf16.gmra.mxu0 %v2987_v62  ;;  %v4685_v9 = vpop.f32.mrf.mxu2  ;;  %v3091_v62 = vor.u32 %v3743_v49, %v3088_v50  ;;  %v3059_v49 = vor.u32 %v3739_v26, %v3058_v23  ;;  %v3752_v50 = vld [vmem:[%s5858_s0 + $0x324] sm:$0xf]  ;;  %v3856_v23 = vld [vmem:[%s5856_s1 + $0x150] sm:$0xff] }
  0xe5   :  { %2105 = vmatpush.bf16.msra.mxu1 %v3856_v23  ;;  %v1627_v23 = vadd.f32 %v4714_v25, %v4602_v15  ;;  %v3122_v15 = vld [vmem:[%s5858_s0 + $0x320] sm:$0xf] }
  0xe6   :  { %v4687_v11 = vpop.f32.mrf.mxu1  ;;  %v4694_v18 = vpop.f32.mrf.mxu3 }
  0xe9   :  { %v4689_v12 = vpop.f32.mrf.mxu0 }
  0xec   :  { %v4722_v30 = vpop.f32.mrf.mxu2 }
  0xee   :  { %v1713_v46 = vpop.f32.mrf.mxu1  ;;  %v4732_v60 = vpop.f32.mrf.mxu3 }
  0xef   :  { %v1714_v53 = vadd.f32 %v1713_v46, %v1615_v32  ;;  %v1620_v32 = vadd.f32 %v4714_v25, %v4545_v51 }
  0xf1   :  { %v2010_v59 = vpop.f32.mrf.mxu0  ;;  %1752 = vmatmul.bf16.gmra.mxu1 %v3011_v39  ;;  %1851 = vmatmul.bf16.gmra.mxu2 %v3015_v45  ;;  %v3047_v45 = vor.u32 %v3733_v20, %v3044_v22 }
  0xf3   :  { %1960 = vmatmul.bf16.gmra.mxu3 %v3091_v62 }
  0xf4   :  { %2049 = vmatmul.bf16.gmra.mxu0 %v3023_v48  ;;  %v1812_v31 = vpop.f32.mrf.mxu2 }
  0xf5   :  { %v1813_v1 = vadd.f32 %v1812_v31, %v1714_v53  ;;  %v3124_v53 = vld [vmem:[%s5858_s0 + $0x344] sm:$0xf0] }
  0xf6   :  { %v1715_v5 = vpop.f32.mrf.mxu1  ;;  %v4736_v19 = vpop.f32.mrf.mxu3  ;;  %v3127_v51 = vor.u32 %v3752_v50, %v3124_v53 }
  0xf7   :  { %v1912_v6 = vadd.f32 %v1911_v43, %v1813_v1  ;;  %v1716_v7 = vadd.f32 %v1715_v5, %v1617_v63  ;;  %v3738_v43 = vld [vmem:[%s5858_s0 + $0x2b0] sm:$0xf0] }
  0xf8   :  { %v3051_v46 = vor.u32 %v3738_v43, %v3050_v36  ;;  %v3864_v43 = vld [vmem:[%s5856_s1 + $0x190] sm:$0xff] }
  0xf9   :  { %v2012_v16 = vpop.f32.mrf.mxu0  ;;  %v4741_v21 = vadd.f32 %v2010_v59, %v1912_v6  ;;  %v1622_v6 = vadd.f32 %v4714_v25, %v4553_v56  ;;  %2204 = vmatpush.bf16.msra.mxu2 %v3864_v43 }
  0xfc   :  { %v1814_v29 = vpop.f32.mrf.mxu2 }
  0xfd   :  { %v1815_v39 = vadd.f32 %v1814_v29, %v1716_v7  ;;  %v3080_v29 = vld [vmem:[%s5858_s0 + $0x2f4] sm:$0xf0] }
  0xfe   :  { %v1718_v48 = vpop.f32.mrf.mxu1  ;;  %v4767_v63 = vpop.f32.mrf.mxu3 }
  0xff   :  { %v1914_v59 = vadd.f32 %v4677_v3, %v1815_v39  ;;  %v1719_v62 = vadd.f32 %v1718_v48, %v1620_v32  ;;  %v3086_v32 = vld [vmem:[%s5858_s0 + $0x2d8] sm:$0xf]  ;;  %v3747_v39 = vld [vmem:[%s5858_s0 + $0x2f8] sm:$0xf0] }
 0x101   :  { %v2015_v31 = vpop.f32.mrf.mxu0  ;;  %1757 = vmatmul.bf16.gmra.mxu1 %v3047_v45  ;;  %1856 = vmatmul.bf16.gmra.mxu2 %v3051_v46  ;;  %v4769_v1 = vadd.f32 %v2012_v16, %v1914_v59  ;;  %v3872_v16 = vld [vmem:[%s5856_s1 + $0x1d0] sm:$0xff]  ;;  %v3094_v45 = vld [vmem:[%s5858_s0 + $0x2e0] sm:$0xf]  ;;  %v3748_v46 = vld [vmem:[%s5858_s0 + $0x300] sm:$0xf0]  ;;  %v3087_v59 = vor.u32 %v3747_v39, %v3086_v32 }
 0x102   :  { %2303 = vmatpush.bf16.msra.mxu3 %v3872_v16 }
 0x103   :  { %1965 = vmatmul.bf16.gmra.mxu3 %v3127_v51  ;;  %v3761_v51 = vld [vmem:[%s5858_s0 + $0x36c] sm:$0xf] }
 0x104   :  { %2054 = vmatmul.bf16.gmra.mxu0 %v3059_v49  ;;  %v1817_v5 = vpop.f32.mrf.mxu2  ;;  %v1625_v49 = vadd.f32 %v4714_v25, %v4588_v8  ;;  %v3880_v8 = vld [vmem:[%s5856_s1 + $0x210] sm:$0xff] }
 0x105   :  { %v1818_v7 = vadd.f32 %v1817_v5, %v1719_v62  ;;  %v3160_v5 = vld [vmem:[%s5858_s0 + $0x38c] sm:$0xf0]  ;;  %2402 = vmatpush.bf16.msra.mxu0 %v3880_v8 }
 0x106   :  { %v1720_v20 = vpop.f32.mrf.mxu1  ;;  %v4783_v56 = vpop.f32.mrf.mxu3 }
 0x107   :  { %v1917_v22 = vadd.f32 %v4694_v18, %v1818_v7  ;;  %v1721_v3 = vadd.f32 %v1720_v20, %v1622_v6  ;;  %v3742_v18 = vld [vmem:[%s5858_s0 + $0x2d4] sm:$0xf] }
 0x108   :  { %v3083_v53 = vor.u32 %v3742_v18, %v3080_v29 }
 0x109   :  { %v2017_v36 = vpop.f32.mrf.mxu0  ;;  %v4788_v26 = vadd.f32 %v2015_v31, %v1917_v22  ;;  %v3095_v31 = vor.u32 %v3748_v46, %v3094_v45 }
 0x10c   :  { %v1819_v48 = vpop.f32.mrf.mxu2 }
 0x10d   :  { %v1820_v50 = vadd.f32 %v1819_v48, %v1721_v3  ;;  %v3163_v3 = vor.u32 %v3761_v51, %v3160_v5  ;;  %v3116_v48 = vld [vmem:[%s5858_s0 + $0x33c] sm:$0xf0] }
 0x10e   :  { %v1723_v62 = vpop.f32.mrf.mxu1  ;;  %v4817_v22 = vpop.f32.mrf.mxu3 }
 0x10f   :  { %v1919_v6 = vadd.f32 %v4732_v60, %v1820_v50  ;;  %v1724_v7 = vadd.f32 %v1723_v62, %v1625_v49  ;;  %v3130_v49 = vld [vmem:[%s5858_s0 + $0x328] sm:$0xf]  ;;  %v3757_v50 = vld [vmem:[%s5858_s0 + $0x348] sm:$0xf0] }
 0x111   :  { %v2020_v20 = vpop.f32.mrf.mxu0  ;;  %1762 = vmatmul.bf16.gmra.mxu1 %v3083_v53  ;;  %1861 = vmatmul.bf16.gmra.mxu2 %v3087_v59  ;;  %v4819_v43 = vadd.f32 %v2017_v36, %v1919_v6  ;;  %v3751_v36 = vld [vmem:[%s5858_s0 + $0x31c] sm:$0xf]  ;;  %v1630_v59 = vadd.f32 %v4714_v25, %v4637_v33  ;;  %v3131_v6 = vor.u32 %v3757_v50, %v3130_v49 }
 0x113   :  { %1970 = vmatmul.bf16.gmra.mxu3 %v3163_v3 }
 0x114   :  { %2059 = vmatmul.bf16.gmra.mxu0 %v3095_v31  ;;  %v1822_v16 = vpop.f32.mrf.mxu2  ;;  %v3119_v31 = vor.u32 %v3751_v36, %v3116_v48 }
 0x115   :  { %v1823_v60 = vadd.f32 %v1822_v16, %v1724_v7  ;;  %v3770_v7 = vld [vmem:[%s5858_s0 + $0x3b4] sm:$0xf] }
 0x116   :  { %v1725_v18 = vpop.f32.mrf.mxu1  ;;  %v4824_v45 = vpop.f32.mrf.mxu3 }
 0x117   :  { %v1922_v29 = vadd.f32 %v4736_v19, %v1823_v60  ;;  %v1726_v32 = vadd.f32 %v1725_v18, %v1627_v23  ;;  %v3756_v19 = vld [vmem:[%s5858_s0 + $0x340] sm:$0xf0] }
 0x118   :  { %v3123_v51 = vor.u32 %v3756_v19, %v3122_v15  ;;  %v3863_v19 = vld [vmem:[%s5856_s1 + $0x188] sm:$0xff] }
 0x119   :  { %v2022_v39 = vpop.f32.mrf.mxu0  ;;  %v4829_v46 = vadd.f32 %v2020_v20, %v1922_v29  ;;  %v3196_v20 = vld [vmem:[%s5858_s0 + $0x3d4] sm:$0xf0]  ;;  %v1632_v29 = vadd.f32 %v4714_v25, %v4645_v42  ;;  %v3760_v42 = vld [vmem:[%s5858_s0 + $0x364] sm:$0xf]  ;;  %2205 = vmatpush.bf16.msra.mxu2 %v3863_v19  ;;  %v3879_v19 = vld [vmem:[%s5856_s1 + $0x208] sm:$0xff] }
 0x11a   :  { %v3199_v33 = vor.u32 %v3770_v7, %v3196_v20  ;;  %2403 = vmatpush.bf16.msra.mxu0 %v3879_v19 }
 0x11c   :  { %v1824_v53 = vpop.f32.mrf.mxu2 }
 0x11d   :  { %v1825_v62 = vadd.f32 %v1824_v53, %v1726_v32  ;;  %v3158_v53 = vld [vmem:[%s5858_s0 + $0x368] sm:$0xf] }
 0x11e   :  { %v1728_v5 = vpop.f32.mrf.mxu1  ;;  %v4855_v23 = vpop.f32.mrf.mxu3 }
 0x11f   :  { %v1924_v8 = vadd.f32 %v4767_v63, %v1825_v62  ;;  %v1729_v3 = vadd.f32 %v1728_v5, %v1630_v59  ;;  %v3765_v59 = vld [vmem:[%s5858_s0 + $0x388] sm:$0xf0]  ;;  %v3166_v62 = vld [vmem:[%s5858_s0 + $0x370] sm:$0xf]  ;;  %v1635_v5 = vadd.f32 %v4714_v25, %v4675_v2 }
 0x120   :  { %v3159_v20 = vor.u32 %v3765_v59, %v3158_v53  ;;  %v3855_v2 = vld [vmem:[%s5856_s1 + $0x148] sm:$0xff] }
 0x121   :  { %v2025_v16 = vpop.f32.mrf.mxu0  ;;  %1767 = vmatmul.bf16.gmra.mxu1 %v3119_v31  ;;  %1866 = vmatmul.bf16.gmra.mxu2 %v3123_v51  ;;  %v4857_v60 = vadd.f32 %v2022_v39, %v1924_v8  ;;  %v3871_v39 = vld [vmem:[%s5856_s1 + $0x1c8] sm:$0xff]  ;;  %v3766_v31 = vld [vmem:[%s5858_s0 + $0x390] sm:$0xf0] }
 0x122   :  { %2304 = vmatpush.bf16.msra.mxu3 %v3871_v39  ;;  %2106 = vmatpush.bf16.msra.mxu1 %v3855_v2  ;;  %v1637_v39 = vadd.f32 %v4714_v25, %v4689_v12  ;;  %v3194_v12 = vld [vmem:[%s5858_s0 + $0x3b0] sm:$0xf]  ;;  %v3268_v2 = vld [vmem:[%s5858_s0 + $0x464] sm:$0xf0] }
 0x123   :  { %1975 = vmatmul.bf16.gmra.mxu3 %v3199_v33  ;;  %v3232_v33 = vld [vmem:[%s5858_s0 + $0x41c] sm:$0xf0] }
 0x124   :  { %2064 = vmatmul.bf16.gmra.mxu0 %v3131_v6  ;;  %v1827_v18 = vpop.f32.mrf.mxu2 }
 0x125   :  { %v1828_v32 = vadd.f32 %v1827_v18, %v1729_v3  ;;  %v3167_v3 = vor.u32 %v3766_v31, %v3166_v62  ;;  %v3769_v31 = vld [vmem:[%s5858_s0 + $0x3ac] sm:$0xf] }
 0x126   :  { %v1730_v36 = vpop.f32.mrf.mxu1  ;;  %v4865_v49 = vpop.f32.mrf.mxu3 }
 0x127   :  { %v1927_v48 = vadd.f32 %v4783_v56, %v1828_v32  ;;  %v1731_v63 = vadd.f32 %v1730_v36, %v1632_v29  ;;  %v3152_v56 = vld [vmem:[%s5858_s0 + $0x384] sm:$0xf0] }
 0x128   :  { %v3155_v7 = vor.u32 %v3760_v42, %v3152_v56 }
 0x129   :  { %v2027_v15 = vpop.f32.mrf.mxu0  ;;  %v4873_v50 = vadd.f32 %v2025_v16, %v1927_v48  ;;  %v3779_v16 = vld [vmem:[%s5858_s0 + $0x3fc] sm:$0xf] }
 0x12a   :  { %v3235_v48 = vor.u32 %v3779_v16, %v3232_v33 }
 0x12c   :  { %v1829_v51 = vpop.f32.mrf.mxu2 }
 0x12d   :  { %v1830_v6 = vadd.f32 %v1829_v51, %v1731_v63 }
 0x12e   :  { %v1733_v8 = vpop.f32.mrf.mxu1  ;;  %v4902_v36 = vpop.f32.mrf.mxu3 }
 0x12f   :  { %v1929_v18 = vadd.f32 %v4817_v22, %v1830_v6  ;;  %v1734_v29 = vadd.f32 %v1733_v8, %v1635_v5  ;;  %v3188_v5 = vld [vmem:[%s5858_s0 + $0x3cc] sm:$0xf0]  ;;  %v3202_v6 = vld [vmem:[%s5858_s0 + $0x3b8] sm:$0xf]  ;;  %v1640_v8 = vadd.f32 %v4714_v25, %v4496_v27 }
 0x130   :  { %v3191_v16 = vor.u32 %v3769_v31, %v3188_v5 }
 0x131   :  { %v2030_v32 = vpop.f32.mrf.mxu0  ;;  %1772 = vmatmul.bf16.gmra.mxu1 %v3155_v7  ;;  %1871 = vmatmul.bf16.gmra.mxu2 %v3159_v20  ;;  %v4904_v63 = vadd.f32 %v2027_v15, %v1929_v18  ;;  %v3775_v7 = vld [vmem:[%s5858_s0 + $0x3d8] sm:$0xf0] }
 0x133   :  { %1980 = vmatmul.bf16.gmra.mxu3 %v3235_v48 }
 0x134   :  { %2069 = vmatmul.bf16.gmra.mxu0 %v3167_v3  ;;  %v1832_v22 = vpop.f32.mrf.mxu2 }
 0x135   :  { %v1833_v42 = vadd.f32 %v1832_v22, %v1734_v29  ;;  %v3203_v29 = vor.u32 %v3775_v7, %v3202_v6  ;;  %v3778_v6 = vld [vmem:[%s5858_s0 + $0x3f4] sm:$0xf]  ;;  %v3224_v7 = vld [vmem:[%s5858_s0 + $0x414] sm:$0xf0] }
 0x136   :  { %v1735_v56 = vpop.f32.mrf.mxu1  ;;  %v4912_v15 = vpop.f32.mrf.mxu3 }
 0x137   :  { %v1932_v53 = vadd.f32 %v4824_v45, %v1833_v42  ;;  %v1736_v59 = vadd.f32 %v1735_v56, %v1637_v39  ;;  %v3774_v45 = vld [vmem:[%s5858_s0 + $0x3d0] sm:$0xf0] }
 0x138   :  { %v3195_v33 = vor.u32 %v3774_v45, %v3194_v12 }
 0x139   :  { %v2032_v62 = vpop.f32.mrf.mxu0  ;;  %v4917_v51 = vadd.f32 %v2030_v32, %v1932_v53  ;;  %v3788_v32 = vld [vmem:[%s5858_s0 + $0x444] sm:$0xf]  ;;  %v1642_v53 = vadd.f32 %v4714_v25, %v4511_v35  ;;  %v3230_v35 = vld [vmem:[%s5858_s0 + $0x3f8] sm:$0xf] }
 0x13a   :  { %v3271_v27 = vor.u32 %v3788_v32, %v3268_v2 }
 0x13c   :  { %v1834_v20 = vpop.f32.mrf.mxu2 }
 0x13d   :  { %v1835_v3 = vadd.f32 %v1834_v20, %v1736_v59  ;;  %v3238_v20 = vld [vmem:[%s5858_s0 + $0x400] sm:$0xf] }
 0x13e   :  { %v1738_v18 = vpop.f32.mrf.mxu1  ;;  %v4943_v39 = vpop.f32.mrf.mxu3 }
 0x13f   :  { %v1934_v48 = vadd.f32 %v4855_v23, %v1835_v3  ;;  %v1739_v19 = vadd.f32 %v1738_v18, %v1640_v8  ;;  %v3784_v8 = vld [vmem:[%s5858_s0 + $0x420] sm:$0xf0]  ;;  %v3227_v18 = vor.u32 %v3778_v6, %v3224_v7  ;;  %v1647_v6 = vadd.f32 %v4714_v25, %v4551_v55  ;;  %v3260_v55 = vld [vmem:[%s5858_s0 + $0x45c] sm:$0xf0] }
 0x140   :  { %v3239_v2 = vor.u32 %v3784_v8, %v3238_v20 }
 0x141   :  { %v2035_v22 = vpop.f32.mrf.mxu0  ;;  %1777 = vmatmul.bf16.gmra.mxu1 %v3191_v16  ;;  %1876 = vmatmul.bf16.gmra.mxu2 %v3195_v33  ;;  %v4945_v42 = vadd.f32 %v2032_v62, %v1934_v48  ;;  %v1645_v16 = vadd.f32 %v4714_v25, %v4537_v47  ;;  %v3797_v48 = vld [vmem:[%s5858_s0 + $0x48c] sm:$0xf]  ;;  %v3862_v47 = vld [vmem:[%s5856_s1 + $0x180] sm:$0xff] }
 0x142   :  { %2206 = vmatpush.bf16.msra.mxu2 %v3862_v47 }
 0x143   :  { %1985 = vmatmul.bf16.gmra.mxu3 %v3271_v27 }
 0x144   :  { %2074 = vmatmul.bf16.gmra.mxu0 %v3203_v29  ;;  %v1837_v56 = vpop.f32.mrf.mxu2 }
 0x145   :  { %v1838_v59 = vadd.f32 %v1837_v56, %v1739_v19  ;;  %v3304_v19 = vld [vmem:[%s5858_s0 + $0x4ac] sm:$0xf0] }
 0x146   :  { %v1740_v31 = vpop.f32.mrf.mxu1  ;;  %v4950_v45 = vpop.f32.mrf.mxu3 }
 0x147   :  { %v1937_v5 = vadd.f32 %v4865_v49, %v1838_v59  ;;  %v1741_v23 = vadd.f32 %v1740_v31, %v1642_v53  ;;  %v3783_v49 = vld [vmem:[%s5858_s0 + $0x418] sm:$0xf0]  ;;  %v3870_v53 = vld [vmem:[%s5856_s1 + $0x1c0] sm:$0xff]  ;;  %v3307_v31 = vor.u32 %v3797_v48, %v3304_v19  ;;  %v1650_v48 = vadd.f32 %v4714_v25, %v4580_v4 }
 0x148   :  { %v3231_v29 = vor.u32 %v3783_v49, %v3230_v35  ;;  %2305 = vmatpush.bf16.msra.mxu3 %v3870_v53  ;;  %v3806_v53 = vld [vmem:[%s5858_s0 + $0x4d4] sm:$0xf] }
 0x149   :  { %v2037_v12 = vpop.f32.mrf.mxu0  ;;  %v4955_v62 = vadd.f32 %v2035_v22, %v1937_v5  ;;  %v3854_v5 = vld [vmem:[%s5856_s1 + $0x140] sm:$0xff] }
 0x14a   :  { %2107 = vmatpush.bf16.msra.mxu1 %v3854_v5 }
 0x14c   :  { %v1839_v3 = vpop.f32.mrf.mxu2 }
 0x14d   :  { %v1840_v33 = vadd.f32 %v1839_v3, %v1741_v23 }
 0x14e   :  { %v1743_v32 = vpop.f32.mrf.mxu1  ;;  %v4987_v59 = vpop.f32.mrf.mxu3 }
 0x14f   :  { %v1939_v22 = vadd.f32 %v4902_v36, %v1840_v33  ;;  %v1744_v27 = vadd.f32 %v1743_v32, %v1645_v16  ;;  %v3787_v16 = vld [vmem:[%s5858_s0 + $0x43c] sm:$0xf]  ;;  %v3793_v32 = vld [vmem:[%s5858_s0 + $0x468] sm:$0xf0] }
 0x151   :  { %v2040_v56 = vpop.f32.mrf.mxu0  ;;  %1782 = vmatmul.bf16.gmra.mxu1 %v3227_v18  ;;  %1881 = vmatmul.bf16.gmra.mxu2 %v3231_v29  ;;  %v4992_v36 = vadd.f32 %v2037_v12, %v1939_v22  ;;  %v3878_v12 = vld [vmem:[%s5856_s1 + $0x200] sm:$0xff]  ;;  %v3274_v29 = vld [vmem:[%s5858_s0 + $0x448] sm:$0xf]  ;;  %v3263_v22 = vor.u32 %v3787_v16, %v3260_v55 }
 0x152   :  { %2404 = vmatpush.bf16.msra.mxu0 %v3878_v12  ;;  %v3792_v18 = vld [vmem:[%s5858_s0 + $0x460] sm:$0xf0]  ;;  %v3275_v47 = vor.u32 %v3793_v32, %v3274_v29  ;;  %v3296_v32 = vld [vmem:[%s5858_s0 + $0x4a4] sm:$0xf0] }
 0x153   :  { %1990 = vmatmul.bf16.gmra.mxu3 %v3307_v31  ;;  %v3340_v31 = vld [vmem:[%s5858_s0 + $0x4f4] sm:$0xf0]  ;;  %v3796_v29 = vld [vmem:[%s5858_s0 + $0x484] sm:$0xf] }
 0x154   :  { %2079 = vmatmul.bf16.gmra.mxu0 %v3239_v2  ;;  %v1842_v23 = vpop.f32.mrf.mxu2  ;;  %v3343_v4 = vor.u32 %v3806_v53, %v3340_v31 }
 0x155   :  { %v1843_v7 = vadd.f32 %v1842_v23, %v1744_v27 }
 0x156   :  { %v1745_v35 = vpop.f32.mrf.mxu1  ;;  %v5000_v3 = vpop.f32.mrf.mxu3 }
 0x157   :  { %v1942_v49 = vadd.f32 %v4912_v15, %v1843_v7  ;;  %v1746_v20 = vadd.f32 %v1745_v35, %v1647_v6  ;;  %v3266_v15 = vld [vmem:[%s5858_s0 + $0x440] sm:$0xf] }
 0x158   :  { %v3267_v27 = vor.u32 %v3792_v18, %v3266_v15 }
 0x159   :  { %v2042_v8 = vpop.f32.mrf.mxu0  ;;  %v5005_v33 = vadd.f32 %v2040_v56, %v1942_v49 }
 0x15c   :  { %v1844_v2 = vpop.f32.mrf.mxu2 }
 0x15d   :  { %v1845_v19 = vadd.f32 %v1844_v2, %v1746_v20  ;;  %v1652_v20 = vadd.f32 %v4714_v25, %v4600_v14  ;;  %v3302_v14 = vld [vmem:[%s5858_s0 + $0x488] sm:$0xf]  ;;  %v3310_v2 = vld [vmem:[%s5858_s0 + $0x490] sm:$0xf] }
 0x15e   :  { %v1748_v56 = vpop.f32.mrf.mxu1  ;;  %v5031_v7 = vpop.f32.mrf.mxu3 }
 0x15f   :  { %v1944_v5 = vadd.f32 %v4943_v39, %v1845_v19  ;;  %v1749_v23 = vadd.f32 %v1748_v56, %v1650_v48  ;;  %v3802_v48 = vld [vmem:[%s5858_s0 + $0x4b0] sm:$0xf0]  ;;  %v3299_v56 = vor.u32 %v3796_v29, %v3296_v32 }
 0x160   :  { %v3311_v31 = vor.u32 %v3802_v48, %v3310_v2  ;;  %v3805_v2 = vld [vmem:[%s5858_s0 + $0x4cc] sm:$0xf]  ;;  %v3332_v48 = vld [vmem:[%s5858_s0 + $0x4ec] sm:$0xf0] }
 0x161   :  { %v2045_v6 = vpop.f32.mrf.mxu0  ;;  %1787 = vmatmul.bf16.gmra.mxu1 %v3263_v22  ;;  %1886 = vmatmul.bf16.gmra.mxu2 %v3267_v27  ;;  %v5033_v35 = vadd.f32 %v2042_v8, %v1944_v5  ;;  %v1655_v22 = vadd.f32 %v4714_v25, %v4629_v28  ;;  %v3655_v5 = vld [vmem:[%s5858_s0 + $0x1c] sm:$0xf] }
 0x163   :  { %1995 = vmatmul.bf16.gmra.mxu3 %v3343_v4 }
 0x164   :  { %2084 = vmatmul.bf16.gmra.mxu0 %v3275_v47  ;;  %v1847_v49 = vpop.f32.mrf.mxu2 }
 0x165   :  { %v1848_v12 = vadd.f32 %v1847_v49, %v1749_v23  ;;  %v2744_v23 = vld [vmem:[%s5858_s0 + $0x3c] sm:$0xf0] }
 0x166   :  { %v1750_v16 = vpop.f32.mrf.mxu1  ;;  %v5038_v18 = vpop.f32.mrf.mxu3  ;;  %v2747_v28 = vor.u32 %v3655_v5, %v2744_v23 }
 0x167   :  { %v1947_v55 = vadd.f32 %v4950_v45, %v1848_v12  ;;  %v1751_v39 = vadd.f32 %v1750_v16, %v1652_v20  ;;  %v3801_v45 = vld [vmem:[%s5858_s0 + $0x4a8] sm:$0xf0] }
 0x168   :  { %v3303_v47 = vor.u32 %v3801_v45, %v3302_v14 }
 0x169   :  { %v2047_v15 = vpop.f32.mrf.mxu0  ;;  %v5043_v8 = vadd.f32 %v2045_v6, %v1947_v55  ;;  %v1657_v55 = vadd.f32 %v4714_v25, %v4643_v41  ;;  %v3338_v41 = vld [vmem:[%s5858_s0 + $0x4d0] sm:$0xf] }
 0x16c   :  { %v1849_v19 = vpop.f32.mrf.mxu2 }
 0x16d   :  { %v1850_v27 = vadd.f32 %v1849_v19, %v1751_v39  ;;  %v3346_v19 = vld [vmem:[%s5858_s0 + $0x4d8] sm:$0xf] }
 0x16e   :  { %v1753_v53 = vpop.f32.mrf.mxu1  ;;  %v5069_v20 = vpop.f32.mrf.mxu3 }
 0x16f   :  { %v1949_v6 = vadd.f32 %v4987_v59, %v1850_v27  ;;  %v1754_v4 = vadd.f32 %v1753_v53, %v1655_v22  ;;  %v3811_v22 = vld [vmem:[%s5858_s0 + $0x4f8] sm:$0xf0]  ;;  %v3335_v53 = vor.u32 %v3805_v2, %v3332_v48 }
 0x170   :  { %v3347_v23 = vor.u32 %v3811_v22, %v3346_v19  ;;  %v3654_v19 = vld [vmem:[%s5858_s0 + $0x14] sm:$0xf]  ;;  %v2736_v22 = vld [vmem:[%s5858_s0 + $0x34] sm:$0xf0] }
 0x171   :  { %v2050_v49 = vpop.f32.mrf.mxu0  ;;  %1792 = vmatmul.bf16.gmra.mxu1 %v3299_v56  ;;  %1891 = vmatmul.bf16.gmra.mxu2 %v3303_v47  ;;  %v5071_v12 = vadd.f32 %v2047_v15, %v1949_v6  ;;  %v1660_v56 = vadd.f32 %v4714_v25, %v4667_v61  ;;  %v3664_v6 = vld [vmem:[%s5858_s0 + $0x64] sm:$0xf] }
 0x173   :  { %2306 = vmatmul.bf16.vlgmr.msra.gmra.mxu3 %v2747_v28 }
 0x174   :  { %2089 = vmatmul.bf16.gmra.mxu0 %v3311_v31  ;;  %v1852_v16 = vpop.f32.mrf.mxu2 }
 0x175   :  { %v1853_v39 = vadd.f32 %v1852_v16, %v1754_v4  ;;  %v2780_v4 = vld [vmem:[%s5858_s0 + $0x84] sm:$0xf0] }
 0x176   :  { %v1755_v29 = vpop.f32.mrf.mxu1  ;;  %v5076_v45 = vpop.f32.mrf.mxu3  ;;  %v2783_v61 = vor.u32 %v3664_v6, %v2780_v4 }
 0x177   :  { %v1952_v32 = vadd.f32 %v5000_v3, %v1853_v39  ;;  %v1756_v59 = vadd.f32 %v1755_v29, %v1657_v55  ;;  %v3810_v3 = vld [vmem:[%s5858_s0 + $0x4f0] sm:$0xf0] }
 0x178   :  { %v3339_v31 = vor.u32 %v3810_v3, %v3338_v41 }
 0x179   :  { %v2052_v14 = vpop.f32.mrf.mxu0  ;;  %v5081_v15 = vadd.f32 %v2050_v49, %v1952_v32  ;;  %v1662_v32 = vadd.f32 %v4714_v25, %v4687_v11  ;;  %v2742_v11 = vld [vmem:[%s5858_s0 + $0x18] sm:$0xf] }
 0x17c   :  { %v1854_v27 = vpop.f32.mrf.mxu2 }
 0x17d   :  { %v1855_v47 = vadd.f32 %v1854_v27, %v1756_v59  ;;  %v2750_v27 = vld [vmem:[%s5858_s0 + $0x20] sm:$0xf] }
 0x17e   :  { %v1758_v5 = vpop.f32.mrf.mxu1  ;;  %v5107_v55 = vpop.f32.mrf.mxu3 }
 0x17f   :  { %v1954_v49 = vadd.f32 %v5031_v7, %v1855_v47  ;;  %v1759_v28 = vadd.f32 %v1758_v5, %v1660_v56  ;;  %v3660_v56 = vld [vmem:[%s5858_s0 + $0x40] sm:$0xf0]  ;;  %v2739_v5 = vor.u32 %v3654_v19, %v2736_v22 }
 0x180   :  { %v2751_v4 = vor.u32 %v3660_v56, %v2750_v27  ;;  %v3663_v27 = vld [vmem:[%s5858_s0 + $0x5c] sm:$0xf]  ;;  %v2772_v56 = vld [vmem:[%s5858_s0 + $0x7c] sm:$0xf0] }
 0x181   :  { %v2055_v16 = vpop.f32.mrf.mxu0  ;;  %1797 = vmatmul.bf16.gmra.mxu1 %v3335_v53  ;;  %1896 = vmatmul.bf16.gmra.mxu2 %v3339_v31  ;;  %v5109_v39 = vadd.f32 %v2052_v14, %v1954_v49  ;;  %v1665_v53 = vadd.f32 %v4714_v25, %v4509_v34  ;;  %v3673_v49 = vld [vmem:[%s5858_s0 + $0xac] sm:$0xf] }
 0x183   :  { %2311 = vmatmul.bf16.gmra.mxu3 %v2783_v61 }
 0x184   :  { %2094 = vmatmul.bf16.gmra.mxu0 %v3347_v23  ;;  %v1857_v29 = vpop.f32.mrf.mxu2 }
 0x185   :  { %v1858_v59 = vadd.f32 %v1857_v29, %v1759_v28  ;;  %v2816_v28 = vld [vmem:[%s5858_s0 + $0xcc] sm:$0xf0] }
 0x186   :  { %v1760_v2 = vpop.f32.mrf.mxu1  ;;  %v5114_v3 = vpop.f32.mrf.mxu3  ;;  %v2819_v34 = vor.u32 %v3673_v49, %v2816_v28 }
 0x187   :  { %v1957_v48 = vadd.f32 %v5038_v18, %v1858_v59  ;;  %v1761_v7 = vadd.f32 %v1760_v2, %v1662_v32  ;;  %v3659_v18 = vld [vmem:[%s5858_s0 + $0x38] sm:$0xf0] }
 0x188   :  { %v2743_v23 = vor.u32 %v3659_v18, %v2742_v11 }
 0x189   :  { %v2057_v41 = vpop.f32.mrf.mxu0  ;;  %v5119_v14 = vadd.f32 %v2055_v16, %v1957_v48  ;;  %v1667_v48 = vadd.f32 %v4714_v25, %v4535_v44  ;;  %v2778_v44 = vld [vmem:[%s5858_s0 + $0x60] sm:$0xf] }
 0x18c   :  { %v1859_v47 = vpop.f32.mrf.mxu2 }
 0x18d   :  { %v1860_v31 = vadd.f32 %v1859_v47, %v1761_v7  ;;  %v2786_v47 = vld [vmem:[%s5858_s0 + $0x68] sm:$0xf] }
 0x18e   :  { %v1763_v6 = vpop.f32.mrf.mxu1  ;;  %v5145_v32 = vpop.f32.mrf.mxu3 }
 0x18f   :  { %v1959_v16 = vadd.f32 %v5069_v20, %v1860_v31  ;;  %v1764_v61 = vadd.f32 %v1763_v6, %v1665_v53  ;;  %v3669_v53 = vld [vmem:[%s5858_s0 + $0x88] sm:$0xf0]  ;;  %v2775_v6 = vor.u32 %v3663_v27, %v2772_v56 }
 0x190   :  { %v2787_v28 = vor.u32 %v3669_v53, %v2786_v47  ;;  %v3672_v47 = vld [vmem:[%s5858_s0 + $0xa4] sm:$0xf]  ;;  %v2808_v53 = vld [vmem:[%s5858_s0 + $0xc4] sm:$0xf0] }
 0x191   :  { %v2060_v29 = vpop.f32.mrf.mxu0  ;;  %2108 = vmatmul.bf16.vlgmr.msra.gmra.mxu1 %v2739_v5  ;;  %2207 = vmatmul.bf16.vlgmr.msra.gmra.mxu2 %v2743_v23  ;;  %v5147_v59 = vadd.f32 %v2057_v41, %v1959_v16  ;;  %v1670_v5 = vadd.f32 %v4714_v25, %v4549_v54  ;;  %v3682_v16 = vld [vmem:[%s5858_s0 + $0xf4] sm:$0xf] }
 0x193   :  { %2316 = vmatmul.bf16.gmra.mxu3 %v2819_v34 }
 0x194   :  { %2405 = vmatmul.bf16.vlgmr.msra.gmra.mxu0 %v2751_v4  ;;  %v1862_v2 = vpop.f32.mrf.mxu2 }
 0x195   :  { %v1863_v7 = vadd.f32 %v1862_v2, %v1764_v61  ;;  %v2852_v61 = vld [vmem:[%s5858_s0 + $0x114] sm:$0xf0] }
 0x196   :  { %v1765_v19 = vpop.f32.mrf.mxu1  ;;  %v5152_v18 = vpop.f32.mrf.mxu3  ;;  %v2855_v54 = vor.u32 %v3682_v16, %v2852_v61 }
 0x197   :  { %v1962_v22 = vadd.f32 %v5076_v45, %v1863_v7  ;;  %v1766_v20 = vadd.f32 %v1765_v19, %v1667_v48  ;;  %v3668_v45 = vld [vmem:[%s5858_s0 + $0x80] sm:$0xf0] }
 0x198   :  { %v2779_v4 = vor.u32 %v3668_v45, %v2778_v44 }
 0x199   :  { %v2062_v11 = vpop.f32.mrf.mxu0  ;;  %v5157_v41 = vadd.f32 %v2060_v29, %v1962_v22  ;;  %v1672_v22 = vadd.f32 %v4714_v25, %v4575_v0  ;;  %v2814_v0 = vld [vmem:[%s5858_s0 + $0xa8] sm:$0xf] }
 0x19c   :  { %v1864_v31 = vpop.f32.mrf.mxu2 }
 0x19d   :  { %v1865_v23 = vadd.f32 %v1864_v31, %v1766_v20  ;;  %v2822_v31 = vld [vmem:[%s5858_s0 + $0xb0] sm:$0xf] }
 0x19e   :  { %v1768_v49 = vpop.f32.mrf.mxu1  ;;  %v5183_v48 = vpop.f32.mrf.mxu3 }
 0x19f   :  { %v1964_v29 = vadd.f32 %v5107_v55, %v1865_v23  ;;  %v1769_v34 = vadd.f32 %v1768_v49, %v1670_v5  ;;  %v3678_v5 = vld [vmem:[%s5858_s0 + $0xd0] sm:$0xf0]  ;;  %v2811_v49 = vor.u32 %v3672_v47, %v2808_v53 }
 0x1a0   :  { %v2823_v61 = vor.u32 %v3678_v5, %v2822_v31  ;;  %v3681_v31 = vld [vmem:[%s5858_s0 + $0xec] sm:$0xf]  ;;  %v2844_v5 = vld [vmem:[%s5858_s0 + $0x10c] sm:$0xf0] }
 0x1a1   :  { %v2065_v2 = vpop.f32.mrf.mxu0  ;;  %2113 = vmatmul.bf16.gmra.mxu1 %v2775_v6  ;;  %2212 = vmatmul.bf16.gmra.mxu2 %v2779_v4  ;;  %v5185_v7 = vadd.f32 %v2062_v11, %v1964_v29  ;;  %v1675_v6 = vadd.f32 %v4714_v25, %v4598_v13  ;;  %v3691_v29 = vld [vmem:[%s5858_s0 + $0x13c] sm:$0xf] }
 0x1a3   :  { %2321 = vmatmul.bf16.gmra.mxu3 %v2855_v54 }
 0x1a4   :  { %2410 = vmatmul.bf16.gmra.mxu0 %v2787_v28  ;;  %v1867_v19 = vpop.f32.mrf.mxu2 }
 0x1a5   :  { %v1868_v20 = vadd.f32 %v1867_v19, %v1769_v34  ;;  %v2888_v34 = vld [vmem:[%s5858_s0 + $0x15c] sm:$0xf0] }
 0x1a6   :  { %v1770_v27 = vpop.f32.mrf.mxu1  ;;  %v5190_v45 = vpop.f32.mrf.mxu3  ;;  %v2891_v13 = vor.u32 %v3691_v29, %v2888_v34 }
 0x1a7   :  { %v1967_v56 = vadd.f32 %v5114_v3, %v1868_v20  ;;  %v1771_v55 = vadd.f32 %v1770_v27, %v1672_v22  ;;  %v3677_v3 = vld [vmem:[%s5858_s0 + $0xc8] sm:$0xf0] }
 0x1a8   :  { %v2815_v28 = vor.u32 %v3677_v3, %v2814_v0 }
 0x1a9   :  { %v2067_v44 = vpop.f32.mrf.mxu0  ;;  %v5195_v11 = vadd.f32 %v2065_v2, %v1967_v56  ;;  %v1677_v56 = vadd.f32 %v4714_v25, %v4627_v24  ;;  %v2850_v24 = vld [vmem:[%s5858_s0 + $0xf0] sm:$0xf] }
 0x1ac   :  { %v1869_v23 = vpop.f32.mrf.mxu2 }
 0x1ad   :  { %v1870_v4 = vadd.f32 %v1869_v23, %v1771_v55  ;;  %v2858_v23 = vld [vmem:[%s5858_s0 + $0xf8] sm:$0xf] }
 0x1ae   :  { %v1773_v16 = vpop.f32.mrf.mxu1  ;;  %v5221_v22 = vpop.f32.mrf.mxu3 }
 0x1af   :  { %v1969_v2 = vadd.f32 %v5145_v32, %v1870_v4  ;;  %v1774_v54 = vadd.f32 %v1773_v16, %v1675_v6  ;;  %v3687_v6 = vld [vmem:[%s5858_s0 + $0x118] sm:$0xf0]  ;;  %v2847_v16 = vor.u32 %v3681_v31, %v2844_v5 }
 0x1b0   :  { %v2859_v34 = vor.u32 %v3687_v6, %v2858_v23  ;;  %v3690_v23 = vld [vmem:[%s5858_s0 + $0x134] sm:$0xf]  ;;  %v2880_v6 = vld [vmem:[%s5858_s0 + $0x154] sm:$0xf0] }
 0x1b1   :  { %v2070_v19 = vpop.f32.mrf.mxu0  ;;  %2118 = vmatmul.bf16.gmra.mxu1 %v2811_v49  ;;  %2217 = vmatmul.bf16.gmra.mxu2 %v2815_v28  ;;  %v5223_v20 = vadd.f32 %v2067_v44, %v1969_v2  ;;  %v1680_v49 = vadd.f32 %v4714_v25, %v4641_v40  ;;  %v3700_v2 = vld [vmem:[%s5858_s0 + $0x184] sm:$0xf] }
 0x1b3   :  { %2326 = vmatmul.bf16.gmra.mxu3 %v2891_v13 }
 0x1b4   :  { %2415 = vmatmul.bf16.gmra.mxu0 %v2823_v61  ;;  %v1872_v27 = vpop.f32.mrf.mxu2 }
 0x1b5   :  { %v1873_v55 = vadd.f32 %v1872_v27, %v1774_v54  ;;  %v2924_v54 = vld [vmem:[%s5858_s0 + $0x1a4] sm:$0xf0] }
 0x1b6   :  { %v1775_v47 = vpop.f32.mrf.mxu1  ;;  %v5228_v3 = vpop.f32.mrf.mxu3  ;;  %v2927_v40 = vor.u32 %v3700_v2, %v2924_v54 }
 0x1b7   :  { %v1972_v53 = vadd.f32 %v5152_v18, %v1873_v55  ;;  %v1776_v32 = vadd.f32 %v1775_v47, %v1677_v56  ;;  %v3686_v18 = vld [vmem:[%s5858_s0 + $0x110] sm:$0xf0] }
 0x1b8   :  { %v2851_v61 = vor.u32 %v3686_v18, %v2850_v24 }
 0x1b9   :  { %v2072_v0 = vpop.f32.mrf.mxu0  ;;  %v5233_v44 = vadd.f32 %v2070_v19, %v1972_v53  ;;  %v1682_v53 = vadd.f32 %v4714_v25, %v4665_v58  ;;  %v2886_v58 = vld [vmem:[%s5858_s0 + $0x138] sm:$0xf] }
 0x1bc   :  { %v1874_v4 = vpop.f32.mrf.mxu2 }
 0x1bd   :  { %v1875_v28 = vadd.f32 %v1874_v4, %v1776_v32  ;;  %v2894_v4 = vld [vmem:[%s5858_s0 + $0x140] sm:$0xf] }
 0x1be   :  { %v1778_v29 = vpop.f32.mrf.mxu1  ;;  %v5259_v56 = vpop.f32.mrf.mxu3 }
 0x1bf   :  { %v1974_v19 = vadd.f32 %v5183_v48, %v1875_v28  ;;  %v1779_v13 = vadd.f32 %v1778_v29, %v1680_v49  ;;  %v3696_v49 = vld [vmem:[%s5858_s0 + $0x160] sm:$0xf0]  ;;  %v2883_v29 = vor.u32 %v3690_v23, %v2880_v6 }
 0x1c0   :  { %v2895_v54 = vor.u32 %v3696_v49, %v2894_v4  ;;  %v2916_v49 = vld [vmem:[%s5858_s0 + $0x19c] sm:$0xf0] }
 0x1c1   :  { %v2075_v27 = vpop.f32.mrf.mxu0  ;;  %2123 = vmatmul.bf16.gmra.mxu1 %v2847_v16  ;;  %2222 = vmatmul.bf16.gmra.mxu2 %v2851_v61  ;;  %v5261_v55 = vadd.f32 %v2072_v0, %v1974_v19  ;;  %v1685_v16 = vadd.f32 %v4714_v25, %v4685_v9  ;;  %v3709_v19 = vld [vmem:[%s5858_s0 + $0x1cc] sm:$0xf] }
 0x1c3   :  { %2331 = vmatmul.bf16.gmra.mxu3 %v2927_v40 }
 0x1c4   :  { %2420 = vmatmul.bf16.gmra.mxu0 %v2859_v34  ;;  %v1877_v47 = vpop.f32.mrf.mxu2 }
 0x1c5   :  { %v1878_v32 = vadd.f32 %v1877_v47, %v1779_v13  ;;  %v2960_v13 = vld [vmem:[%s5858_s0 + $0x1ec] sm:$0xf0] }
 0x1c6   :  { %v1780_v31 = vpop.f32.mrf.mxu1  ;;  %v5266_v18 = vpop.f32.mrf.mxu3  ;;  %v2963_v9 = vor.u32 %v3709_v19, %v2960_v13 }
 0x1c7   :  { %v1977_v5 = vadd.f32 %v5190_v45, %v1878_v32  ;;  %v1781_v48 = vadd.f32 %v1780_v31, %v1682_v53  ;;  %v3695_v45 = vld [vmem:[%s5858_s0 + $0x158] sm:$0xf0]  ;;  %v5304_v31 = vld [vmem:[%s5857_s2] ss:$0 sm:$0xff] }
 0x1c8   :  { %v2887_v34 = vor.u32 %v3695_v45, %v2886_v58 }
 0x1c9   :  { %v2077_v24 = vpop.f32.mrf.mxu0  ;;  %v5271_v0 = vadd.f32 %v2075_v27, %v1977_v5  ;;  %v1687_v5 = vadd.f32 %v5304_v31, %v4722_v30  ;;  %v2922_v30 = vld [vmem:[%s5858_s0 + $0x180] sm:$0xf] }
 0x1cc   :  { %v1879_v28 = vpop.f32.mrf.mxu2 }
 0x1cd   :  { %v1880_v61 = vadd.f32 %v1879_v28, %v1781_v48  ;;  %v2930_v28 = vld [vmem:[%s5858_s0 + $0x188] sm:$0xf] }
 0x1ce   :  { %v1783_v2 = vpop.f32.mrf.mxu1  ;;  %v5297_v53 = vpop.f32.mrf.mxu3 }
 0x1cf   :  { %v1979_v27 = vadd.f32 %v5221_v22, %v1880_v61  ;;  %v1784_v40 = vadd.f32 %v1783_v2, %v1685_v16  ;;  %v3705_v16 = vld [vmem:[%s5858_s0 + $0x1a8] sm:$0xf0] }
 0x1d0   :  { %v2931_v13 = vor.u32 %v3705_v16, %v2930_v28  ;;  %v3708_v28 = vld [vmem:[%s5858_s0 + $0x1c4] sm:$0xf]  ;;  %v2952_v16 = vld [vmem:[%s5858_s0 + $0x1e4] sm:$0xf0] }
 0x1d1   :  { %v2080_v47 = vpop.f32.mrf.mxu0  ;;  %2128 = vmatmul.bf16.gmra.mxu1 %v2883_v29  ;;  %2227 = vmatmul.bf16.gmra.mxu2 %v2887_v34  ;;  %v5299_v25 = vadd.f32 %v2077_v24, %v1979_v27  ;;  %v3699_v24 = vld [vmem:[%s5858_s0 + $0x17c] sm:$0xf]  ;;  %v1690_v29 = vadd.f32 %v5304_v31, %v4515_v37  ;;  %v3718_v27 = vld [vmem:[%s5858_s0 + $0x214] sm:$0xf] }
 0x1d2   :  { %v2919_v2 = vor.u32 %v3699_v24, %v2916_v49 }
 0x1d3   :  { %2336 = vmatmul.bf16.gmra.mxu3 %v2963_v9 }
 0x1d4   :  { %2425 = vmatmul.bf16.gmra.mxu0 %v2895_v54  ;;  %v1882_v32 = vpop.f32.mrf.mxu2 }
 0x1d5   :  { %v1883_v22 = vadd.f32 %v1882_v32, %v1784_v40  ;;  %v2996_v40 = vld [vmem:[%s5858_s0 + $0x234] sm:$0xf0] }
 0x1d6   :  { %v1785_v48 = vpop.f32.mrf.mxu1  ;;  %v5309_v45 = vpop.f32.mrf.mxu3  ;;  %v2999_v37 = vor.u32 %v3718_v27, %v2996_v40 }
 0x1d7   :  { %v1982_v23 = vadd.f32 %v5228_v3, %v1883_v22  ;;  %v1786_v6 = vadd.f32 %v1785_v48, %v1687_v5  ;;  %v3704_v3 = vld [vmem:[%s5858_s0 + $0x1a0] sm:$0xf0] }
 0x1d8   :  { %v2923_v54 = vor.u32 %v3704_v3, %v2922_v30 }
 0x1d9   :  { %v2082_v58 = vpop.f32.mrf.mxu0  ;;  %v5314_v4 = vadd.f32 %v2080_v47, %v1982_v23  ;;  %v1692_v23 = vadd.f32 %v5304_v31, %v4547_v52  ;;  %v2958_v52 = vld [vmem:[%s5858_s0 + $0x1c8] sm:$0xf] }
 0x1dc   :  { %v1884_v61 = vpop.f32.mrf.mxu2 }
 0x1dd   :  { %v1885_v34 = vadd.f32 %v1884_v61, %v1786_v6  ;;  %v2966_v61 = vld [vmem:[%s5858_s0 + $0x1d0] sm:$0xf] }
 0x1de   :  { %v1788_v19 = vpop.f32.mrf.mxu1  ;;  %v5340_v5 = vpop.f32.mrf.mxu3 }
 0x1df   :  { %v1984_v47 = vadd.f32 %v5259_v56, %v1885_v34  ;;  %v1789_v9 = vadd.f32 %v1788_v19, %v1690_v29  ;;  %v3714_v29 = vld [vmem:[%s5858_s0 + $0x1f0] sm:$0xf0]  ;;  %v2955_v19 = vor.u32 %v3708_v28, %v2952_v16 }
 0x1e0   :  { %v2967_v40 = vor.u32 %v3714_v29, %v2966_v61  ;;  %v3717_v61 = vld [vmem:[%s5858_s0 + $0x20c] sm:$0xf]  ;;  %v2988_v29 = vld [vmem:[%s5858_s0 + $0x22c] sm:$0xf0] }
 0x1e1   :  { %v2085_v32 = vpop.f32.mrf.mxu0  ;;  %2133 = vmatmul.bf16.gmra.mxu1 %v2919_v2  ;;  %2232 = vmatmul.bf16.gmra.mxu2 %v2923_v54  ;;  %v5342_v22 = vadd.f32 %v2082_v58, %v1984_v47  ;;  %v1695_v2 = vadd.f32 %v5304_v31, %v4555_v57  ;;  %v3727_v47 = vld [vmem:[%s5858_s0 + $0x25c] sm:$0xf] }
 0x1e3   :  { %2341 = vmatmul.bf16.gmra.mxu3 %v2999_v37 }
 0x1e4   :  { %2430 = vmatmul.bf16.gmra.mxu0 %v2931_v13  ;;  %v1887_v48 = vpop.f32.mrf.mxu2 }
 0x1e5   :  { %v1888_v6 = vadd.f32 %v1887_v48, %v1789_v9  ;;  %v3032_v9 = vld [vmem:[%s5858_s0 + $0x27c] sm:$0xf0] }
 0x1e6   :  { %v1790_v24 = vpop.f32.mrf.mxu1  ;;  %v5347_v3 = vpop.f32.mrf.mxu3  ;;  %v3035_v57 = vor.u32 %v3727_v47, %v3032_v9 }
 0x1e7   :  { %v1987_v49 = vadd.f32 %v5266_v18, %v1888_v6  ;;  %v1791_v56 = vadd.f32 %v1790_v24, %v1692_v23  ;;  %v3713_v18 = vld [vmem:[%s5858_s0 + $0x1e8] sm:$0xf0] }
 0x1e8   :  { %v2959_v13 = vor.u32 %v3713_v18, %v2958_v52 }
 0x1e9   :  { %v2087_v30 = vpop.f32.mrf.mxu0  ;;  %v5352_v58 = vadd.f32 %v2085_v32, %v1987_v49  ;;  %v1697_v49 = vadd.f32 %v5304_v31, %v4593_v10  ;;  %v2994_v10 = vld [vmem:[%s5858_s0 + $0x210] sm:$0xf] }
 0x1ec   :  { %v1889_v34 = vpop.f32.mrf.mxu2 }
 0x1ed   :  { %v1890_v54 = vadd.f32 %v1889_v34, %v1791_v56  ;;  %v3002_v34 = vld [vmem:[%s5858_s0 + $0x218] sm:$0xf] }
 0x1ee   :  { %v1793_v27 = vpop.f32.mrf.mxu1  ;;  %v5378_v23 = vpop.f32.mrf.mxu3 }
 0x1ef   :  { %v1989_v32 = vadd.f32 %v5297_v53, %v1890_v54  ;;  %v1794_v37 = vadd.f32 %v1793_v27, %v1695_v2  ;;  %v3723_v2 = vld [vmem:[%s5858_s0 + $0x238] sm:$0xf0]  ;;  %v2991_v27 = vor.u32 %v3717_v61, %v2988_v29 }
 0x1f0   :  { %v3003_v9 = vor.u32 %v3723_v2, %v3002_v34  ;;  %v3726_v34 = vld [vmem:[%s5858_s0 + $0x254] sm:$0xf]  ;;  %v3024_v2 = vld [vmem:[%s5858_s0 + $0x274] sm:$0xf0] }
 0x1f1   :  { %v2090_v48 = vpop.f32.mrf.mxu0  ;;  %2138 = vmatmul.bf16.gmra.mxu1 %v2955_v19  ;;  %2237 = vmatmul.bf16.gmra.mxu2 %v2959_v13  ;;  %v5380_v6 = vadd.f32 %v2087_v30, %v1989_v32  ;;  %v1700_v19 = vadd.f32 %v5304_v31, %v4607_v17  ;;  %v3736_v32 = vld [vmem:[%s5858_s0 + $0x2a4] sm:$0xf] }
 0x1f3   :  { %2346 = vmatmul.bf16.gmra.mxu3 %v3035_v57 }
 0x1f4   :  { %2435 = vmatmul.bf16.gmra.mxu0 %v2967_v40  ;;  %v1892_v24 = vpop.f32.mrf.mxu2 }
 0x1f5   :  { %v1893_v56 = vadd.f32 %v1892_v24, %v1794_v37  ;;  %v3068_v37 = vld [vmem:[%s5858_s0 + $0x2c4] sm:$0xf0] }
 0x1f6   :  { %v1795_v28 = vpop.f32.mrf.mxu1  ;;  %v5385_v18 = vpop.f32.mrf.mxu3  ;;  %v3071_v17 = vor.u32 %v3736_v32, %v3068_v37  ;;  %v3745_v32 = vld [vmem:[%s5858_s0 + $0x2ec] sm:$0xf]  ;;  %v3104_v37 = vld [vmem:[%s5858_s0 + $0x30c] sm:$0xf0] }
 0x1f7   :  { %v1992_v16 = vadd.f32 %v5309_v45, %v1893_v56  ;;  %v1796_v53 = vadd.f32 %v1795_v28, %v1697_v49  ;;  %v3722_v45 = vld [vmem:[%s5858_s0 + $0x230] sm:$0xf0] }
 0x1f8   :  { %v2995_v40 = vor.u32 %v3722_v45, %v2994_v10 }
 0x1f9   :  { %v2092_v52 = vpop.f32.mrf.mxu0  ;;  %v5390_v30 = vadd.f32 %v2090_v48, %v1992_v16  ;;  %v1702_v16 = vadd.f32 %v5304_v31, %v4639_v38  ;;  %v3030_v38 = vld [vmem:[%s5858_s0 + $0x258] sm:$0xf]  ;;  %v3731_v31 = vld [vmem:[%s5858_s0 + $0x278] sm:$0xf0] }
 0x1fc   :  { %v1894_v54 = vpop.f32.mrf.mxu2 }
 0x1fd   :  { %v1895_v13 = vadd.f32 %v1894_v54, %v1796_v53  ;;  %v3732_v54 = vld [vmem:[%s5858_s0 + $0x280] sm:$0xf0] }
 0x1fe   :  { %v1798_v47 = vpop.f32.mrf.mxu1  ;;  %v5416_v49 = vpop.f32.mrf.mxu3 }
 0x1ff   :  { %v1994_v48 = vadd.f32 %v5340_v5, %v1895_v13  ;;  %v1799_v57 = vadd.f32 %v1798_v47, %v1700_v19 }
 0x201   :  { %v2095_v24 = vpop.f32.mrf.mxu0  ;;  %2143 = vmatmul.bf16.gmra.mxu1 %v2991_v27  ;;  %2242 = vmatmul.bf16.gmra.mxu2 %v2995_v40  ;;  %v5418_v56 = vadd.f32 %v2092_v52, %v1994_v48  ;;  %v3027_v27 = vor.u32 %v3726_v34, %v3024_v2  ;;  %v3031_v40 = vor.u32 %v3731_v31, %v3030_v38  ;;  %v3887_v2 = vld [vmem:[%s5859_s3] sm:$0xff]  }
 0x202   :  { %v3066_v38 = vld [vmem:[%s5858_s0 + $0x2a0] sm:$0xf] }
 0x203   :  { %2351 = vmatmul.bf16.gmra.mxu3 %v3071_v17  ;;  %v3107_v17 = vor.u32 %v3745_v32, %v3104_v37 }
 0x204   :  { %2440 = vmatmul.bf16.gmra.mxu0 %v3003_v9  ;;  %v1897_v28 = vpop.f32.mrf.mxu2 }
 0x205   :  { %v1898_v53 = vadd.f32 %v1897_v28, %v1799_v57 }
 0x206   :  { %v1800_v61 = vpop.f32.mrf.mxu1  ;;  %v5423_v45 = vpop.f32.mrf.mxu3 }
 0x207   :  { %v1997_v29 = vadd.f32 %v5347_v3, %v1898_v53  ;;  %v1801_v5 = vadd.f32 %v1800_v61, %v1702_v16  ;;  %v3038_v3 = vld [vmem:[%s5858_s0 + $0x260] sm:$0xf] }
 0x208   :  { %v3039_v9 = vor.u32 %v3732_v54, %v3038_v3  ;;  %v3074_v3 = vld [vmem:[%s5858_s0 + $0x2a8] sm:$0xf]  ;;  %v3741_v54 = vld [vmem:[%s5858_s0 + $0x2c8] sm:$0xf0] }
 0x209   :  { %v2097_v10 = vpop.f32.mrf.mxu0  ;;  %v5428_v52 = vadd.f32 %v2095_v24, %v1997_v29  ;;  %v3075_v37 = vor.u32 %v3741_v54, %v3074_v3 }
 0x20c   :  { %v1899_v19 = vpop.f32.mrf.mxu2 }
 0x20d   :  { %v1900_v13 = vadd.f32 %v1899_v19, %v1801_v5  ;;  %v3888_v19 = vunpack.c.l.bf16 %v3887_v2 }
 0x20e   :  { %v2109_v47 = vpop.f32.mrf.mxu1  ;;  %v5452_v24 = vpop.f32.mrf.mxu3 }
 0x20f   :  { %v1999_v48 = vadd.f32 %v5378_v23, %v1900_v13  ;;  %v2110_v16 = vadd.f32 %v2109_v47, %v4741_v21  ;;  %v3060_v21 = vld [vmem:[%s5858_s0 + $0x2bc] sm:$0xf0] }
 0x211   :  { %v2406_v57 = vpop.f32.mrf.mxu0  ;;  %2148 = vmatmul.bf16.gmra.mxu1 %v3027_v27  ;;  %2247 = vmatmul.bf16.gmra.mxu2 %v3031_v40  ;;  %v5454_v28 = vadd.f32 %v2097_v10, %v1999_v48  ;;  %v3735_v10 = vld [vmem:[%s5858_s0 + $0x29c] sm:$0xf]  ;;  %v3140_v48 = vld [vmem:[%s5858_s0 + $0x354] sm:$0xf0] }
 0x212   :  { %v3063_v47 = vor.u32 %v3735_v10, %v3060_v21 }
 0x213   :  { %2356 = vmatmul.bf16.gmra.mxu3 %v3107_v17 }
 0x214   :  { %2445 = vmatmul.bf16.gmra.mxu0 %v3039_v9  ;;  %v2208_v53 = vpop.f32.mrf.mxu2 }
 0x215   :  { %v2209_v61 = vadd.f32 %v2208_v53, %v2110_v16  ;;  %v3889_v16 = vunpack.c.h.bf16 %v3887_v2 }
 0x216   :  { %v2111_v29 = vpop.f32.mrf.mxu1  ;;  %v5457_v34 = vpop.f32.mrf.mxu3 }
 0x217   :  { %v2308_v23 = vadd.f32 %v5385_v18, %v2209_v61  ;;  %v3740_v18 = vld [vmem:[%s5858_s0 + $0x2c0] sm:$0xf0]  ;;  %v2112_v31 = vadd.f32 %v2111_v29, %v4769_v1  ;;  %v3754_v1 = vld [vmem:[%s5858_s0 + $0x334] sm:$0xf] }
 0x218   :  { %v3067_v9 = vor.u32 %v3740_v18, %v3066_v38 }
 0x219   :  { %v2408_v5 = vpop.f32.mrf.mxu0  ;;  %v2407_v27 = vadd.f32 %v2406_v57, %v2308_v23  ;;  %v3143_v23 = vor.u32 %v3754_v1, %v3140_v48 }
 0x21b   :  { %v2568_v57 = vadd.f32 %v3888_v19, %v2407_v27  ;;  %v3744_v19 = vld [vmem:[%s5858_s0 + $0x2e4] sm:$0xf]  ;;  %v3096_v27 = vld [vmem:[%s5858_s0 + $0x304] sm:$0xf0] }
 0x21c   :  { %v2210_v13 = vpop.f32.mrf.mxu2 }
 0x21d   :  { %v2211_v40 = vadd.f32 %v2210_v13, %v2112_v31  ;;  %v2604_v18 = vmax.f32 %v2568_v57, 0.0 }
 0x21e   :  { %v2114_v32 = vpop.f32.mrf.mxu1  ;;  %v5489_v61 = vpop.f32.mrf.mxu3 }
 0x21f   :  { %v2310_v17 = vadd.f32 %v5416_v49, %v2211_v40  ;;  %v2115_v21 = vadd.f32 %v2114_v32, %v4788_v26  ;;  %v4048_v26 = vld [vmem:[%s5859_s3 + $0x8] sm:$0xff]   ;;  %v3750_v32 = vld [vmem:[%s5858_s0 + $0x310] sm:$0xf0] }
 0x220   :  { %v3102_v40 = vld [vmem:[%s5858_s0 + $0x2e8] sm:$0xf] }
 0x221   :  { %v2411_v53 = vpop.f32.mrf.mxu0  ;;  %v2409_v29 = vadd.f32 %v2408_v5, %v2310_v17  ;;  %2153 = vmatmul.bf16.gmra.mxu1 %v3063_v47  ;;  %2252 = vmatmul.bf16.gmra.mxu2 %v3067_v9  ;;  %v3110_v9 = vld [vmem:[%s5858_s0 + $0x2f0] sm:$0xf] }
 0x223   :  { %v2569_v10 = vadd.f32 %v3889_v16, %v2409_v29  ;;  %2361 = vmatmul.bf16.gmra.mxu3 %v3143_v23  ;;  %v3099_v16 = vor.u32 %v3744_v19, %v3096_v27  ;;  %v3111_v23 = vor.u32 %v3750_v32, %v3110_v9  ;;  %v3753_v32 = vld [vmem:[%s5858_s0 + $0x32c] sm:$0xf] }
 0x224   :  { %2450 = vmatmul.bf16.gmra.mxu0 %v3075_v37  ;;  %v2213_v38 = vpop.f32.mrf.mxu2  ;;  %v3892_v37 = vunpack.c.l.bf16 %v4048_v26 }
 0x225   :  { %v2605_v31 = vmax.f32 %v2569_v10, 0.0  ;;  %v2214_v3 = vadd.f32 %v2213_v38, %v2115_v21  ;;  %v3176_v10 = vld [vmem:[%s5858_s0 + $0x39c] sm:$0xf0]  ;;  %v3893_v38 = vunpack.c.h.bf16 %v4048_v26 }
 0x226   :  { %v2116_v54 = vpop.f32.mrf.mxu1  ;;  %v5492_v13 = vpop.f32.mrf.mxu3 }
 0x227   :  { %v3961_v49 = vpack.c.bf16 %v2605_v31, %v2604_v18  ;;  %v2313_v5 = vadd.f32 %v5423_v45, %v2214_v3  ;;  %v3749_v45 = vld [vmem:[%s5858_s0 + $0x308] sm:$0xf0]  ;;  %v2117_v47 = vadd.f32 %v2116_v54, %v4819_v43  ;;  %v3763_v43 = vld [vmem:[%s5858_s0 + $0x37c] sm:$0xf] }
 0x228   :  { %v3103_v57 = vor.u32 %v3749_v45, %v3102_v40  ;;  %v3179_v54 = vor.u32 %v3763_v43, %v3176_v10 }
 0x229   :  { %v2413_v2 = vpop.f32.mrf.mxu0  ;;  %3962 = vst [vmem:[%s5860_s4] sm:$0xff] %v3961_v49   ;;  %v2412_v48 = vadd.f32 %v2411_v53, %v2313_v5 }
 0x22b   :  { %v2570_v53 = vadd.f32 %v3892_v37, %v2412_v48  ;;  %v3132_v37 = vld [vmem:[%s5858_s0 + $0x34c] sm:$0xf0] }
 0x22c   :  { %v2215_v1 = vpop.f32.mrf.mxu2  ;;  %v3135_v10 = vor.u32 %v3753_v32, %v3132_v37 }
 0x22d   :  { %v2216_v17 = vadd.f32 %v2215_v1, %v2117_v47  ;;  %v2606_v27 = vmax.f32 %v2570_v53, 0.0  ;;  %v3138_v1 = vld [vmem:[%s5858_s0 + $0x330] sm:$0xf] }
 0x22e   :  { %v2119_v29 = vpop.f32.mrf.mxu1  ;;  %v5527_v31 = vpop.f32.mrf.mxu3 }
 0x22f   :  { %v2315_v21 = vadd.f32 %v5452_v24, %v2216_v17  ;;  %v2120_v5 = vadd.f32 %v2119_v29, %v4829_v46  ;;  %v4049_v46 = vld [vmem:[%s5859_s3 + $0x10] sm:$0xff]   ;;  %v3146_v17 = vld [vmem:[%s5858_s0 + $0x338] sm:$0xf] }
 0x231   :  { %v2416_v18 = vpop.f32.mrf.mxu0  ;;  %v2414_v3 = vadd.f32 %v2413_v2, %v2315_v21  ;;  %2158 = vmatmul.bf16.gmra.mxu1 %v3099_v16  ;;  %2257 = vmatmul.bf16.gmra.mxu2 %v3103_v57  ;;  %v3759_v16 = vld [vmem:[%s5858_s0 + $0x358] sm:$0xf0]  ;;  %v3896_v57 = vunpack.c.l.bf16 %v4049_v46 }
 0x232   :  { %v3147_v53 = vor.u32 %v3759_v16, %v3146_v17  ;;  %v3168_v17 = vld [vmem:[%s5858_s0 + $0x394] sm:$0xf0] }
 0x233   :  { %v2571_v49 = vadd.f32 %v3893_v38, %v2414_v3  ;;  %2366 = vmatmul.bf16.gmra.mxu3 %v3179_v54  ;;  %v3212_v3 = vld [vmem:[%s5858_s0 + $0x3e4] sm:$0xf0]  ;;  %v3174_v16 = vld [vmem:[%s5858_s0 + $0x378] sm:$0xf] }
 0x234   :  { %2455 = vmatmul.bf16.gmra.mxu0 %v3111_v23  ;;  %v2218_v19 = vpop.f32.mrf.mxu2 }
 0x235   :  { %v2607_v40 = vmax.f32 %v2571_v49, 0.0  ;;  %v2219_v45 = vadd.f32 %v2218_v19, %v2120_v5  ;;  %v3897_v49 = vunpack.c.h.bf16 %v4049_v46 }
 0x236   :  { %v2121_v47 = vpop.f32.mrf.mxu1  ;;  %v5530_v9 = vpop.f32.mrf.mxu3 }
 0x237   :  { %v3966_v24 = vpack.c.bf16 %v2607_v40, %v2606_v27  ;;  %v2318_v2 = vadd.f32 %v5457_v34, %v2219_v45  ;;  %v3758_v34 = vld [vmem:[%s5858_s0 + $0x350] sm:$0xf0]  ;;  %v2122_v48 = vadd.f32 %v2121_v47, %v4857_v60  ;;  %v3772_v60 = vld [vmem:[%s5858_s0 + $0x3c4] sm:$0xf] }
 0x238   :  { %v3139_v21 = vor.u32 %v3758_v34, %v3138_v1  ;;  %v3215_v40 = vor.u32 %v3772_v60, %v3212_v3 }
 0x239   :  { %v2418_v26 = vpop.f32.mrf.mxu0  ;;  %4065 = vst [vmem:[%s5860_s4 + $0x8] sm:$0xff] %v3966_v24   ;;  %v2417_v23 = vadd.f32 %v2416_v18, %v2318_v2 }
 0x23b   :  { %v2572_v18 = vadd.f32 %v3896_v57, %v2417_v23  ;;  %v3768_v23 = vld [vmem:[%s5858_s0 + $0x3a0] sm:$0xf0] }
 0x23c   :  { %v2220_v29 = vpop.f32.mrf.mxu2 }
 0x23d   :  { %v2221_v43 = vadd.f32 %v2220_v29, %v2122_v48  ;;  %v2608_v2 = vmax.f32 %v2572_v18, 0.0  ;;  %v3762_v48 = vld [vmem:[%s5858_s0 + $0x374] sm:$0xf]  ;;  %v3182_v29 = vld [vmem:[%s5858_s0 + $0x380] sm:$0xf] }
 0x23e   :  { %v2124_v38 = vpop.f32.mrf.mxu1  ;;  %v5565_v19 = vpop.f32.mrf.mxu3 }
 0x23f   :  { %v2320_v54 = vadd.f32 %v5489_v61, %v2221_v43  ;;  %v2125_v47 = vadd.f32 %v2124_v38, %v4873_v50  ;;  %v4050_v50 = vld [vmem:[%s5859_s3 + $0x18] sm:$0xff]  }
 0x240   :  { %v3900_v43 = vunpack.c.l.bf16 %v4050_v50 }
 0x241   :  { %v2421_v5 = vpop.f32.mrf.mxu0  ;;  %v2419_v27 = vadd.f32 %v2418_v26, %v2320_v54  ;;  %2163 = vmatmul.bf16.gmra.mxu1 %v3135_v10  ;;  %2262 = vmatmul.bf16.gmra.mxu2 %v3139_v21  ;;  %v3183_v54 = vor.u32 %v3768_v23, %v3182_v29  ;;  %v3218_v23 = vld [vmem:[%s5858_s0 + $0x3c8] sm:$0xf] }
 0x243   :  { %v2573_v45 = vadd.f32 %v3897_v49, %v2419_v27  ;;  %2371 = vmatmul.bf16.gmra.mxu3 %v3215_v40  ;;  %v3248_v49 = vld [vmem:[%s5858_s0 + $0x42c] sm:$0xf0]  ;;  %v3901_v27 = vunpack.c.h.bf16 %v4050_v50 }
 0x244   :  { %2460 = vmatmul.bf16.gmra.mxu0 %v3147_v53  ;;  %v2223_v24 = vpop.f32.mrf.mxu2  ;;  %v3171_v53 = vor.u32 %v3762_v48, %v3168_v17 }
 0x245   :  { %v2609_v32 = vmax.f32 %v2573_v45, 0.0  ;;  %v2224_v37 = vadd.f32 %v2223_v24, %v2125_v47 }
 0x246   :  { %v2126_v1 = vpop.f32.mrf.mxu1  ;;  %v5568_v34 = vpop.f32.mrf.mxu3 }
 0x247   :  { %v3971_v61 = vpack.c.bf16 %v2609_v32, %v2608_v2  ;;  %v2323_v26 = vadd.f32 %v5492_v13, %v2224_v37  ;;  %v3767_v13 = vld [vmem:[%s5858_s0 + $0x398] sm:$0xf0]  ;;  %v2127_v57 = vadd.f32 %v2126_v1, %v4904_v63  ;;  %v3781_v63 = vld [vmem:[%s5858_s0 + $0x40c] sm:$0xf] }
 0x248   :  { %v3175_v60 = vor.u32 %v3767_v13, %v3174_v16  ;;  %v3251_v24 = vor.u32 %v3781_v63, %v3248_v49  ;;  %v3771_v16 = vld [vmem:[%s5858_s0 + $0x3bc] sm:$0xf]  ;;  %v3204_v13 = vld [vmem:[%s5858_s0 + $0x3dc] sm:$0xf0]  ;;  %v3284_v49 = vld [vmem:[%s5858_s0 + $0x474] sm:$0xf0] }
 0x249   :  { %v2423_v46 = vpop.f32.mrf.mxu0  ;;  %4066 = vst [vmem:[%s5860_s4 + $0x10] sm:$0xff] %v3971_v61   ;;  %v2422_v21 = vadd.f32 %v2421_v5, %v2323_v26 }
 0x24b   :  { %v2574_v5 = vadd.f32 %v3900_v43, %v2422_v21  ;;  %v3777_v43 = vld [vmem:[%s5858_s0 + $0x3e8] sm:$0xf0] }
 0x24c   :  { %v2225_v10 = vpop.f32.mrf.mxu2  ;;  %v3219_v63 = vor.u32 %v3777_v43, %v3218_v23  ;;  %v3786_v23 = vld [vmem:[%s5858_s0 + $0x430] sm:$0xf0] }
 0x24d   :  { %v2226_v38 = vadd.f32 %v2225_v10, %v2127_v57  ;;  %v2610_v1 = vmax.f32 %v2574_v5, 0.0  ;;  %v3210_v57 = vld [vmem:[%s5858_s0 + $0x3c0] sm:$0xf] }
 0x24e   :  { %v2129_v3 = vpop.f32.mrf.mxu1  ;;  %v5603_v45 = vpop.f32.mrf.mxu3 }
 0x24f   :  { %v2325_v18 = vadd.f32 %v5527_v31, %v2226_v38  ;;  %v2130_v32 = vadd.f32 %v2129_v3, %v4917_v51  ;;  %v4051_v51 = vld [vmem:[%s5859_s3 + $0x20] sm:$0xff]  }
 0x250   :  { %v3904_v10 = vunpack.c.l.bf16 %v4051_v51 }
 0x251   :  { %v2426_v40 = vpop.f32.mrf.mxu0  ;;  %v2424_v47 = vadd.f32 %v2423_v46, %v2325_v18  ;;  %2168 = vmatmul.bf16.gmra.mxu1 %v3171_v53  ;;  %2267 = vmatmul.bf16.gmra.mxu2 %v3175_v60  ;;  %v3207_v60 = vor.u32 %v3771_v16, %v3204_v13  ;;  %v3780_v16 = vld [vmem:[%s5858_s0 + $0x404] sm:$0xf]  ;;  %v3240_v13 = vld [vmem:[%s5858_s0 + $0x424] sm:$0xf0] }
 0x253   :  { %v2575_v2 = vadd.f32 %v3901_v27, %v2424_v47  ;;  %2376 = vmatmul.bf16.gmra.mxu3 %v3251_v24  ;;  %v3905_v27 = vunpack.c.h.bf16 %v4051_v51 }
 0x254   :  { %2465 = vmatmul.bf16.gmra.mxu0 %v3183_v54  ;;  %v2228_v37 = vpop.f32.mrf.mxu2 }
 0x255   :  { %v2611_v61 = vmax.f32 %v2575_v2, 0.0  ;;  %v2229_v26 = vadd.f32 %v2228_v37, %v2130_v32 }
 0x256   :  { %v2131_v48 = vpop.f32.mrf.mxu1  ;;  %v5606_v17 = vpop.f32.mrf.mxu3 }
 0x257   :  { %v3976_v31 = vpack.c.bf16 %v2611_v61, %v2610_v1  ;;  %v2328_v46 = vadd.f32 %v5530_v9, %v2229_v26  ;;  %v3776_v9 = vld [vmem:[%s5858_s0 + $0x3e0] sm:$0xf0]  ;;  %v2132_v29 = vadd.f32 %v2131_v48, %v4945_v42  ;;  %v3790_v42 = vld [vmem:[%s5858_s0 + $0x454] sm:$0xf] }
 0x258   :  { %v3211_v3 = vor.u32 %v3776_v9, %v3210_v57  ;;  %v3287_v2 = vor.u32 %v3790_v42, %v3284_v49  ;;  %v3246_v57 = vld [vmem:[%s5858_s0 + $0x408] sm:$0xf] }
 0x259   :  { %v2428_v50 = vpop.f32.mrf.mxu0  ;;  %4067 = vst [vmem:[%s5860_s4 + $0x18] sm:$0xff] %v3976_v31   ;;  %v2427_v38 = vadd.f32 %v2426_v40, %v2328_v46 }
 0x25b   :  { %v2576_v40 = vadd.f32 %v3904_v10, %v2427_v38 }
 0x25c   :  { %v2230_v21 = vpop.f32.mrf.mxu2 }
 0x25d   :  { %v2231_v53 = vadd.f32 %v2230_v21, %v2132_v29  ;;  %v2612_v61 = vmax.f32 %v2576_v40, 0.0  ;;  %v3254_v29 = vld [vmem:[%s5858_s0 + $0x410] sm:$0xf] }
 0x25e   :  { %v2134_v54 = vpop.f32.mrf.mxu1  ;;  %v5641_v47 = vpop.f32.mrf.mxu3 }
 0x25f   :  { %v2330_v18 = vadd.f32 %v5565_v19, %v2231_v53  ;;  %v2135_v37 = vadd.f32 %v2134_v54, %v4955_v62  ;;  %v4052_v62 = vld [vmem:[%s5859_s3 + $0x28] sm:$0xff]   ;;  %v3243_v53 = vor.u32 %v3780_v16, %v3240_v13  ;;  %v3255_v54 = vor.u32 %v3786_v23, %v3254_v29  ;;  %v3282_v16 = vld [vmem:[%s5858_s0 + $0x450] sm:$0xf] }
 0x260   :  { %v3908_v43 = vunpack.c.l.bf16 %v4052_v62  ;;  %v3909_v49 = vunpack.c.h.bf16 %v4052_v62  ;;  %v3276_v62 = vld [vmem:[%s5858_s0 + $0x46c] sm:$0xf0] }
 0x261   :  { %v2431_v5 = vpop.f32.mrf.mxu0  ;;  %v2429_v24 = vadd.f32 %v2428_v50, %v2330_v18  ;;  %2173 = vmatmul.bf16.gmra.mxu1 %v3207_v60  ;;  %2272 = vmatmul.bf16.gmra.mxu2 %v3211_v3 }
 0x263   :  { %v2577_v32 = vadd.f32 %v3905_v27, %v2429_v24  ;;  %2381 = vmatmul.bf16.gmra.mxu3 %v3287_v2 }
 0x264   :  { %2470 = vmatmul.bf16.gmra.mxu0 %v3219_v63  ;;  %v2233_v1 = vpop.f32.mrf.mxu2  ;;  %v3320_v63 = vld [vmem:[%s5858_s0 + $0x4bc] sm:$0xf0] }
 0x265   :  { %v2613_v26 = vmax.f32 %v2577_v32, 0.0  ;;  %v2234_v48 = vadd.f32 %v2233_v1, %v2135_v37 }
 0x266   :  { %v2136_v31 = vpop.f32.mrf.mxu1  ;;  %v5644_v51 = vpop.f32.mrf.mxu3 }
 0x267   :  { %v3981_v19 = vpack.c.bf16 %v2613_v26, %v2612_v61  ;;  %v2333_v50 = vadd.f32 %v5568_v34, %v2234_v48  ;;  %v3785_v34 = vld [vmem:[%s5858_s0 + $0x428] sm:$0xf0]  ;;  %v2137_v9 = vadd.f32 %v2136_v31, %v4992_v36  ;;  %v3799_v36 = vld [vmem:[%s5858_s0 + $0x49c] sm:$0xf] }
 0x268   :  { %v3247_v60 = vor.u32 %v3785_v34, %v3246_v57  ;;  %v3323_v24 = vor.u32 %v3799_v36, %v3320_v63  ;;  %v3290_v57 = vld [vmem:[%s5858_s0 + $0x458] sm:$0xf]  ;;  %v3795_v34 = vld [vmem:[%s5858_s0 + $0x478] sm:$0xf0] }
 0x269   :  { %v2433_v46 = vpop.f32.mrf.mxu0  ;;  %4068 = vst [vmem:[%s5860_s4 + $0x20] sm:$0xff] %v3981_v19   ;;  %v2432_v21 = vadd.f32 %v2431_v5, %v2333_v50  ;;  %v3789_v50 = vld [vmem:[%s5858_s0 + $0x44c] sm:$0xf] }
 0x26b   :  { %v2578_v5 = vadd.f32 %v3908_v43, %v2432_v21 }
 0x26c   :  { %v2235_v10 = vpop.f32.mrf.mxu2 }
 0x26d   :  { %v2236_v38 = vadd.f32 %v2235_v10, %v2137_v9  ;;  %v2614_v1 = vmax.f32 %v2578_v5, 0.0  ;;  %v3279_v10 = vor.u32 %v3789_v50, %v3276_v62  ;;  %v3326_v50 = vld [vmem:[%s5858_s0 + $0x4a0] sm:$0xf]  ;;  %v3804_v62 = vld [vmem:[%s5858_s0 + $0x4c0] sm:$0xf0] }
 0x26e   :  { %v2139_v3 = vpop.f32.mrf.mxu1  ;;  %v5679_v27 = vpop.f32.mrf.mxu3 }
 0x26f   :  { %v2335_v42 = vadd.f32 %v5603_v45, %v2236_v38  ;;  %v2140_v32 = vadd.f32 %v2139_v3, %v5005_v33  ;;  %v4053_v33 = vld [vmem:[%s5859_s3 + $0x30] sm:$0xff]  }
 0x270   :  { %v3912_v9 = vunpack.c.l.bf16 %v4053_v33 }
 0x271   :  { %v2436_v18 = vpop.f32.mrf.mxu0  ;;  %v2434_v40 = vadd.f32 %v2433_v46, %v2335_v42  ;;  %2178 = vmatmul.bf16.gmra.mxu1 %v3243_v53  ;;  %2277 = vmatmul.bf16.gmra.mxu2 %v3247_v60  ;;  %v3291_v53 = vor.u32 %v3795_v34, %v3290_v57  ;;  %v3356_v60 = vld [vmem:[%s5858_s0 + $0x504] sm:$0xf0] }
 0x273   :  { %v2579_v2 = vadd.f32 %v3909_v49, %v2434_v40  ;;  %2386 = vmatmul.bf16.gmra.mxu3 %v3323_v24 }
 0x274   :  { %2475 = vmatmul.bf16.gmra.mxu0 %v3255_v54  ;;  %v2238_v37 = vpop.f32.mrf.mxu2  ;;  %v3913_v54 = vunpack.c.h.bf16 %v4053_v33 }
 0x275   :  { %v2615_v61 = vmax.f32 %v2579_v2, 0.0  ;;  %v2239_v26 = vadd.f32 %v2238_v37, %v2140_v32 }
 0x276   :  { %v2141_v48 = vpop.f32.mrf.mxu1  ;;  %v5682_v19 = vpop.f32.mrf.mxu3 }
 0x277   :  { %v3986_v45 = vpack.c.bf16 %v2615_v61, %v2614_v1  ;;  %v2338_v46 = vadd.f32 %v5606_v17, %v2239_v26  ;;  %v3794_v17 = vld [vmem:[%s5858_s0 + $0x470] sm:$0xf0]  ;;  %v2142_v13 = vadd.f32 %v2141_v48, %v5033_v35  ;;  %v3808_v35 = vld [vmem:[%s5858_s0 + $0x4e4] sm:$0xf] }
 0x278   :  { %v3283_v21 = vor.u32 %v3794_v17, %v3282_v16 }
 0x279   :  { %v2438_v31 = vpop.f32.mrf.mxu0  ;;  %4069 = vst [vmem:[%s5860_s4 + $0x28] sm:$0xff] %v3986_v45   ;;  %v2437_v23 = vadd.f32 %v2436_v18, %v2338_v46  ;;  %v3359_v18 = vor.u32 %v3808_v35, %v3356_v60  ;;  %v3798_v45 = vld [vmem:[%s5858_s0 + $0x494] sm:$0xf]  ;;  %v3318_v46 = vld [vmem:[%s5858_s0 + $0x498] sm:$0xf] }
 0x27b   :  { %v2580_v42 = vadd.f32 %v3912_v9, %v2437_v23  ;;  %v3327_v23 = vor.u32 %v3804_v62, %v3326_v50 }
 0x27c   :  { %v2240_v29 = vpop.f32.mrf.mxu2 }
 0x27d   :  { %v2241_v43 = vadd.f32 %v2240_v29, %v2142_v13  ;;  %v2616_v2 = vmax.f32 %v2580_v42, 0.0 }
 0x27e   :  { %v2144_v38 = vpop.f32.mrf.mxu1  ;;  %v5717_v63 = vpop.f32.mrf.mxu3 }
 0x27f   :  { %v2340_v3 = vadd.f32 %v5641_v47, %v2241_v43  ;;  %v2145_v40 = vadd.f32 %v2144_v38, %v5043_v8  ;;  %v4054_v8 = vld [vmem:[%s5859_s3 + $0x38] sm:$0xff]  }
 0x280   :  { %v3916_v16 = vunpack.c.l.bf16 %v4054_v8 }
 0x281   :  { %v2441_v36 = vpop.f32.mrf.mxu0  ;;  %v2439_v49 = vadd.f32 %v2438_v31, %v2340_v3  ;;  %2183 = vmatmul.bf16.gmra.mxu1 %v3279_v10  ;;  %2282 = vmatmul.bf16.gmra.mxu2 %v3283_v21  ;;  %v3312_v31 = vld [vmem:[%s5858_s0 + $0x4b4] sm:$0xf0]  ;;  %v3917_v10 = vunpack.c.h.bf16 %v4054_v8 }
 0x282   :  { %v3315_v34 = vor.u32 %v3798_v45, %v3312_v31 }
 0x283   :  { %v2581_v5 = vadd.f32 %v3913_v54, %v2439_v49  ;;  %2391 = vmatmul.bf16.gmra.mxu3 %v3359_v18 }
 0x284   :  { %2480 = vmatmul.bf16.gmra.mxu0 %v3291_v53  ;;  %v2243_v24 = vpop.f32.mrf.mxu2 }
 0x285   :  { %v2617_v32 = vmax.f32 %v2581_v5, 0.0  ;;  %v2244_v37 = vadd.f32 %v2243_v24, %v2145_v40  ;;  %v4055_v24 = vld [vmem:[%s5859_s3 + $0x40] sm:$0xff]  }
 0x286   :  { %v2146_v1 = vpop.f32.mrf.mxu1  ;;  %v5720_v26 = vpop.f32.mrf.mxu3  ;;  %v3921_v62 = vunpack.c.h.bf16 %v4055_v24 }
 0x287   :  { %v3991_v47 = vpack.c.bf16 %v2617_v32, %v2616_v2  ;;  %v2343_v48 = vadd.f32 %v5644_v51, %v2244_v37  ;;  %v3803_v51 = vld [vmem:[%s5858_s0 + $0x4b8] sm:$0xf0]  ;;  %v2147_v33 = vadd.f32 %v2146_v1, %v5071_v12  ;;  %v3348_v2 = vld [vmem:[%s5858_s0 + $0x4fc] sm:$0xf0]  ;;  %v3362_v1 = vld [vmem:[%s5858_s0 + $0x4e8] sm:$0xf] }
 0x288   :  { %v3319_v9 = vor.u32 %v3803_v51, %v3318_v46  ;;  %v3354_v32 = vld [vmem:[%s5858_s0 + $0x4e0] sm:$0xf] }
 0x289   :  { %v2443_v61 = vpop.f32.mrf.mxu0  ;;  %4070 = vst [vmem:[%s5860_s4 + $0x30] sm:$0xff] %v3991_v47   ;;  %v2442_v13 = vadd.f32 %v2441_v36, %v2343_v48  ;;  %v3813_v47 = vld [vmem:[%s5858_s0 + $0x508] sm:$0xf0] }
 0x28b   :  { %v2582_v38 = vadd.f32 %v3916_v16, %v2442_v13 }
 0x28c   :  { %v2245_v17 = vpop.f32.mrf.mxu2 }
 0x28d   :  { %v2246_v57 = vadd.f32 %v2245_v17, %v2147_v33  ;;  %v2618_v54 = vmax.f32 %v2582_v38, 0.0  ;;  %v3363_v33 = vor.u32 %v3813_v47, %v3362_v1 }
 0x28e   :  { %v2149_v29 = vpop.f32.mrf.mxu1  ;;  %v2354_v21 = vpop.f32.mrf.mxu3 }
 0x28f   :  { %v2345_v43 = vadd.f32 %v5679_v27, %v2246_v57  ;;  %v2150_v60 = vadd.f32 %v2149_v29, %v5081_v15  ;;  %v3807_v15 = vld [vmem:[%s5858_s0 + $0x4dc] sm:$0xf] }
 0x290   :  { %v3351_v31 = vor.u32 %v3807_v15, %v3348_v2 }
 0x291   :  { %v2446_v12 = vpop.f32.mrf.mxu0  ;;  %v2444_v53 = vadd.f32 %v2443_v61, %v2345_v43  ;;  %2188 = vmatmul.bf16.gmra.mxu1 %v3315_v34  ;;  %2287 = vmatmul.bf16.gmra.mxu2 %v3319_v9  ;;  %v3920_v61 = vunpack.c.l.bf16 %v4055_v24 }
 0x293   :  { %v2583_v35 = vadd.f32 %v3917_v10, %v2444_v53  ;;  %v4056_v53 = vld [vmem:[%s5859_s3 + $0x48] sm:$0xff]  }
 0x294   :  { %2485 = vmatmul.bf16.gmra.mxu0 %v3327_v23  ;;  %v2248_v3 = vpop.f32.mrf.mxu2 }
 0x295   :  { %v2619_v36 = vmax.f32 %v2583_v35, 0.0  ;;  %v2249_v42 = vadd.f32 %v2248_v3, %v2150_v60 }
 0x296   :  { %v2151_v49 = vpop.f32.mrf.mxu1  ;;  %v5750_v40 = vpop.f32.mrf.mxu3 }
 0x297   :  { %v3996_v18 = vpack.c.bf16 %v2619_v36, %v2618_v54  ;;  %v2348_v27 = vadd.f32 %v5682_v19, %v2249_v42  ;;  %v3812_v19 = vld [vmem:[%s5858_s0 + $0x500] sm:$0xf0]  ;;  %v2152_v37 = vadd.f32 %v2151_v49, %v5109_v39  ;;  %v3924_v54 = vunpack.c.l.bf16 %v4056_v53 }
 0x298   :  { %v3355_v46 = vor.u32 %v3812_v19, %v3354_v32 }
 0x299   :  { %v2448_v5 = vpop.f32.mrf.mxu0  ;;  %4071 = vst [vmem:[%s5860_s4 + $0x38] sm:$0xff] %v3996_v18   ;;  %v2447_v8 = vadd.f32 %v2446_v12, %v2348_v27  ;;  %v3925_v18 = vunpack.c.h.bf16 %v4056_v53 }
 0x29b   :  { %v2584_v16 = vadd.f32 %v3920_v61, %v2447_v8 }
 0x29c   :  { %v2250_v48 = vpop.f32.mrf.mxu2 }
 0x29d   :  { %v2251_v45 = vadd.f32 %v2250_v48, %v2152_v37  ;;  %v2620_v29 = vmax.f32 %v2584_v16, 0.0  ;;  %v4057_v48 = vld [vmem:[%s5859_s3 + $0x50] sm:$0xff]  }
 0x29e   :  { %v2154_v51 = vpop.f32.mrf.mxu1  ;;  %v2359_v13 = vpop.f32.mrf.mxu3 }
 0x29f   :  { %v2350_v50 = vadd.f32 %v5717_v63, %v2251_v45  ;;  %v2155_v34 = vadd.f32 %v2154_v51, %v5119_v14 }
 0x2a1   :  { %v2451_v39 = vpop.f32.mrf.mxu0  ;;  %v2449_v17 = vadd.f32 %v2448_v5, %v2350_v50  ;;  %2193 = vmatmul.bf16.gmra.mxu1 %v3351_v31  ;;  %2292 = vmatmul.bf16.gmra.mxu2 %v3355_v46  ;;  %v3928_v31 = vunpack.c.l.bf16 %v4057_v48  ;;  %v3929_v50 = vunpack.c.h.bf16 %v4057_v48 }
 0x2a3   :  { %v2585_v57 = vadd.f32 %v3921_v62, %v2449_v17 }
 0x2a4   :  { %2490 = vmatmul.bf16.gmra.mxu0 %v3363_v33  ;;  %v2253_v9 = vpop.f32.mrf.mxu2 }
 0x2a5   :  { %v2621_v23 = vmax.f32 %v2585_v57, 0.0  ;;  %v2254_v43 = vadd.f32 %v2253_v9, %v2155_v34 }
 0x2a6   :  { %v2156_v10 = vpop.f32.mrf.mxu1  ;;  %v2362_v60 = vpop.f32.mrf.mxu3 }
 0x2a7   :  { %v4001_v12 = vpack.c.bf16 %v2621_v23, %v2620_v29  ;;  %v2353_v63 = vadd.f32 %v5720_v26, %v2254_v43  ;;  %v2157_v35 = vadd.f32 %v2156_v10, %v5147_v59 }
 0x2a9   :  { %v2453_v38 = vpop.f32.mrf.mxu0  ;;  %4072 = vst [vmem:[%s5860_s4 + $0x40] sm:$0xff] %v4001_v12   ;;  %v2452_v3 = vadd.f32 %v2451_v39, %v2353_v63  ;;  %v4058_v12 = vld [vmem:[%s5859_s3 + $0x58] sm:$0xff]  }
 0x2ab   :  { %v2586_v27 = vadd.f32 %v3924_v54, %v2452_v3 }
 0x2ac   :  { %v2255_v14 = vpop.f32.mrf.mxu2 }
 0x2ad   :  { %v2256_v36 = vadd.f32 %v2255_v14, %v2157_v35  ;;  %v2622_v32 = vmax.f32 %v2586_v27, 0.0  ;;  %v3932_v35 = vunpack.c.l.bf16 %v4058_v12 }
 0x2ae   :  { %v2159_v42 = vpop.f32.mrf.mxu1  ;;  %v2364_v59 = vpop.f32.mrf.mxu3 }
 0x2af   :  { %v2355_v49 = vadd.f32 %v2354_v21, %v2256_v36  ;;  %v2160_v26 = vadd.f32 %v2159_v42, %v5157_v41  ;;  %v3933_v36 = vunpack.c.h.bf16 %v4058_v12 }
 0x2b1   :  { %v2456_v5 = vpop.f32.mrf.mxu0  ;;  %v2454_v24 = vadd.f32 %v2453_v38, %v2355_v49 }
 0x2b3   :  { %v2587_v15 = vadd.f32 %v3925_v18, %v2454_v24 }
 0x2b4   :  { %v2258_v2 = vpop.f32.mrf.mxu2 }
 0x2b5   :  { %v2623_v19 = vmax.f32 %v2587_v15, 0.0  ;;  %v2259_v37 = vadd.f32 %v2258_v2, %v2160_v26 }
 0x2b6   :  { %v2161_v1 = vpop.f32.mrf.mxu1  ;;  %v2367_v39 = vpop.f32.mrf.mxu3 }
 0x2b7   :  { %v4006_v47 = vpack.c.bf16 %v2623_v19, %v2622_v32  ;;  %v2358_v21 = vadd.f32 %v5750_v40, %v2259_v37  ;;  %v2162_v41 = vadd.f32 %v2161_v1, %v5185_v7  ;;  %v4059_v1 = vld [vmem:[%s5859_s3 + $0x60] sm:$0xff]  }
 0x2b9   :  { %v2458_v61 = vpop.f32.mrf.mxu0  ;;  %4073 = vst [vmem:[%s5860_s4 + $0x48] sm:$0xff] %v4006_v47   ;;  %v2457_v45 = vadd.f32 %v2456_v5, %v2358_v21 }
 0x2bb   :  { %v2588_v16 = vadd.f32 %v3928_v31, %v2457_v45  ;;  %v3937_v45 = vunpack.c.h.bf16 %v4059_v1 }
 0x2bc   :  { %v2260_v8 = vpop.f32.mrf.mxu2 }
 0x2bd   :  { %v2261_v46 = vadd.f32 %v2260_v8, %v2162_v41  ;;  %v2624_v9 = vmax.f32 %v2588_v16, 0.0 }
 0x2be   :  { %v2164_v51 = vpop.f32.mrf.mxu1  ;;  %v2369_v38 = vpop.f32.mrf.mxu3 }
 0x2bf   :  { %v2360_v33 = vadd.f32 %v2359_v13, %v2261_v46  ;;  %v2165_v40 = vadd.f32 %v2164_v51, %v5195_v11 }
 0x2c1   :  { %v2461_v62 = vpop.f32.mrf.mxu0  ;;  %v2459_v17 = vadd.f32 %v2458_v61, %v2360_v33  ;;  %v3936_v61 = vunpack.c.l.bf16 %v4059_v1 }
 0x2c3   :  { %v2589_v57 = vadd.f32 %v3929_v50, %v2459_v17 }
 0x2c4   :  { %v2263_v34 = vpop.f32.mrf.mxu2 }
 0x2c5   :  { %v2625_v29 = vmax.f32 %v2589_v57, 0.0  ;;  %v2264_v23 = vadd.f32 %v2263_v34, %v2165_v40 }
 0x2c6   :  { %v2166_v43 = vpop.f32.mrf.mxu1  ;;  %v2372_v24 = vpop.f32.mrf.mxu3 }
 0x2c7   :  { %v4011_v7 = vpack.c.bf16 %v2625_v29, %v2624_v9  ;;  %v2363_v13 = vadd.f32 %v2362_v60, %v2264_v23  ;;  %v2167_v63 = vadd.f32 %v2166_v43, %v5223_v20  ;;  %v4060_v29 = vld [vmem:[%s5859_s3 + $0x68] sm:$0xff]  }
 0x2c9   :  { %v2463_v10 = vpop.f32.mrf.mxu0  ;;  %4074 = vst [vmem:[%s5860_s4 + $0x50] sm:$0xff] %v4011_v7   ;;  %v2462_v53 = vadd.f32 %v2461_v62, %v2363_v13  ;;  %v3940_v7 = vunpack.c.l.bf16 %v4060_v29 }
 0x2cb   :  { %v2590_v49 = vadd.f32 %v3932_v35, %v2462_v53 }
 0x2cc   :  { %v2265_v11 = vpop.f32.mrf.mxu2 }
 0x2cd   :  { %v2266_v14 = vadd.f32 %v2265_v11, %v2167_v63  ;;  %v2626_v15 = vmax.f32 %v2590_v49, 0.0 }
 0x2ce   :  { %v2169_v3 = vpop.f32.mrf.mxu1  ;;  %v2374_v41 = vpop.f32.mrf.mxu3 }
 0x2cf   :  { %v2365_v54 = vadd.f32 %v2364_v59, %v2266_v14  ;;  %v2170_v60 = vadd.f32 %v2169_v3, %v5233_v44 }
 0x2d1   :  { %v2466_v42 = vpop.f32.mrf.mxu0  ;;  %v2464_v18 = vadd.f32 %v2463_v10, %v2365_v54 }
 0x2d3   :  { %v2591_v5 = vadd.f32 %v3933_v36, %v2464_v18 }
 0x2d4   :  { %v2268_v27 = vpop.f32.mrf.mxu2 }
 0x2d5   :  { %v2627_v26 = vmax.f32 %v2591_v5, 0.0  ;;  %v2269_v2 = vadd.f32 %v2268_v27, %v2170_v60  ;;  %v4061_v27 = vld [vmem:[%s5859_s3 + $0x70] sm:$0xff]  }
 0x2d6   :  { %v2171_v32 = vpop.f32.mrf.mxu1  ;;  %v2377_v34 = vpop.f32.mrf.mxu3 }
 0x2d7   :  { %v4016_v20 = vpack.c.bf16 %v2627_v26, %v2626_v15  ;;  %v2368_v37 = vadd.f32 %v2367_v39, %v2269_v2  ;;  %v2172_v59 = vadd.f32 %v2171_v32, %v5261_v55  ;;  %v3944_v2 = vunpack.c.l.bf16 %v4061_v27 }
 0x2d9   :  { %v2468_v19 = vpop.f32.mrf.mxu0  ;;  %4075 = vst [vmem:[%s5860_s4 + $0x58] sm:$0xff] %v4016_v20   ;;  %v2467_v47 = vadd.f32 %v2466_v42, %v2368_v37  ;;  %v3945_v37 = vunpack.c.h.bf16 %v4061_v27 }
 0x2db   :  { %v2592_v46 = vadd.f32 %v3936_v61, %v2467_v47 }
 0x2dc   :  { %v2270_v44 = vpop.f32.mrf.mxu2 }
 0x2dd   :  { %v2271_v21 = vadd.f32 %v2270_v44, %v2172_v59  ;;  %v2628_v39 = vmax.f32 %v2592_v46, 0.0 }
 0x2de   :  { %v2174_v48 = vpop.f32.mrf.mxu1  ;;  %v2379_v35 = vpop.f32.mrf.mxu3 }
 0x2df   :  { %v2370_v8 = vadd.f32 %v2369_v38, %v2271_v21  ;;  %v2175_v50 = vadd.f32 %v2174_v48, %v5271_v0  ;;  %v3941_v38 = vunpack.c.h.bf16 %v4060_v29 }
 0x2e1   :  { %v2471_v31 = vpop.f32.mrf.mxu0  ;;  %v2469_v51 = vadd.f32 %v2468_v19, %v2370_v8 }
 0x2e3   :  { %v2593_v33 = vadd.f32 %v3937_v45, %v2469_v51 }
 0x2e4   :  { %v2273_v62 = vpop.f32.mrf.mxu2 }
 0x2e5   :  { %v2629_v16 = vmax.f32 %v2593_v33, 0.0  ;;  %v2274_v17 = vadd.f32 %v2273_v62, %v2175_v50  ;;  %v4062_v33 = vld [vmem:[%s5859_s3 + $0x78] sm:$0xff]  }
 0x2e6   :  { %v2176_v57 = vpop.f32.mrf.mxu1 }
 0x2e7   :  { %v4021_v55 = vpack.c.bf16 %v2629_v16, %v2628_v39  ;;  %v2373_v9 = vadd.f32 %v2372_v24, %v2274_v17  ;;  %v2177_v23 = vadd.f32 %v2176_v57, %v5299_v25  ;;  %v3948_v39 = vunpack.c.l.bf16 %v4062_v33 }
 0x2e9   :  { %v2473_v40 = vpop.f32.mrf.mxu0  ;;  %4076 = vst [vmem:[%s5860_s4 + $0x60] sm:$0xff] %v4021_v55   ;;  %v2472_v43 = vadd.f32 %v2471_v31, %v2373_v9  ;;  %v3949_v55 = vunpack.c.h.bf16 %v4062_v33 }
 0x2eb   :  { %v2594_v11 = vadd.f32 %v3940_v7, %v2472_v43 }
 0x2ec   :  { %v2275_v0 = vpop.f32.mrf.mxu2 }
 0x2ed   :  { %v2276_v10 = vadd.f32 %v2275_v0, %v2177_v23  ;;  %v2630_v36 = vmax.f32 %v2594_v11, 0.0 }
 0x2ee   :  { %v2179_v13 = vpop.f32.mrf.mxu1 }
 0x2ef   :  { %v2375_v12 = vadd.f32 %v2374_v41, %v2276_v10  ;;  %v2180_v3 = vadd.f32 %v2179_v13, %v5314_v4  ;;  %v2382_v4 = vpop.f32.mrf.mxu3 }
 0x2f1   :  { %v2476_v63 = vpop.f32.mrf.mxu0  ;;  %v2474_v53 = vadd.f32 %v2473_v40, %v2375_v12 }
 0x2f3   :  { %v2595_v14 = vadd.f32 %v3941_v38, %v2474_v53 }
 0x2f4   :  { %v2278_v54 = vpop.f32.mrf.mxu2 }
 0x2f5   :  { %v2631_v42 = vmax.f32 %v2595_v14, 0.0  ;;  %v2279_v49 = vadd.f32 %v2278_v54, %v2180_v3 }
 0x2f6   :  { %v2181_v18 = vpop.f32.mrf.mxu1 }
 0x2f7   :  { %v4026_v25 = vpack.c.bf16 %v2631_v42, %v2630_v36  ;;  %v2378_v60 = vadd.f32 %v2377_v34, %v2279_v49  ;;  %v2182_v24 = vadd.f32 %v2181_v18, %v5342_v22  ;;  %v2384_v22 = vpop.f32.mrf.mxu3 }
 0x2f9   :  { %v2478_v5 = vpop.f32.mrf.mxu0  ;;  %4077 = vst [vmem:[%s5860_s4 + $0x68] sm:$0xff] %v4026_v25   ;;  %v2477_v26 = vadd.f32 %v2476_v63, %v2378_v60  ;;  %v4063_v63 = vld [vmem:[%s5859_s3 + $0x80] sm:$0xff]  }
 0x2fa   :  { %v3952_v3 = vunpack.c.l.bf16 %v4063_v63  ;;  %v3953_v49 = vunpack.c.h.bf16 %v4063_v63 }
 0x2fb   :  { %v2596_v59 = vadd.f32 %v3944_v2, %v2477_v26 }
 0x2fc   :  { %v2280_v15 = vpop.f32.mrf.mxu2 }
 0x2fd   :  { %v2281_v32 = vadd.f32 %v2280_v15, %v2182_v24  ;;  %v2632_v48 = vmax.f32 %v2596_v59, 0.0 }
 0x2fe   :  { %v2184_v20 = vpop.f32.mrf.mxu1 }
 0x2ff   :  { %v2380_v19 = vadd.f32 %v2379_v35, %v2281_v32  ;;  %v2185_v61 = vadd.f32 %v2184_v20, %v5352_v58  ;;  %v2387_v40 = vpop.f32.mrf.mxu3 }
 0x301   :  { %v2481_v1 = vpop.f32.mrf.mxu0  ;;  %v2479_v44 = vadd.f32 %v2478_v5, %v2380_v19  ;;  %v4064_v19 = vld [vmem:[%s5859_s3 + $0x88] sm:$0xff]  }
 0x302   :  { %v3956_v59 = vunpack.c.l.bf16 %v4064_v19 }
 0x303   :  { %v2597_v47 = vadd.f32 %v3945_v37, %v2479_v44 }
 0x304   :  { %v2283_v21 = vpop.f32.mrf.mxu2 }
 0x305   :  { %v2633_v41 = vmax.f32 %v2597_v47, 0.0  ;;  %v2284_v8 = vadd.f32 %v2283_v21, %v2185_v61  ;;  %v3957_v21 = vunpack.c.h.bf16 %v4064_v19 }
 0x306   :  { %v2186_v45 = vpop.f32.mrf.mxu1 }
 0x307   :  { %v4031_v31 = vpack.c.bf16 %v2633_v41, %v2632_v48  ;;  %v2383_v51 = vadd.f32 %v2382_v4, %v2284_v8  ;;  %v2187_v50 = vadd.f32 %v2186_v45, %v5380_v6  ;;  %v2389_v11 = vpop.f32.mrf.mxu3 }
 0x309   :  { %v2483_v46 = vpop.f32.mrf.mxu0  ;;  %4078 = vst [vmem:[%s5860_s4 + $0x70] sm:$0xff] %v4031_v31   ;;  %v2482_v62 = vadd.f32 %v2481_v1, %v2383_v51 }
 0x30b   :  { %v2598_v34 = vadd.f32 %v3948_v39, %v2482_v62 }
 0x30c   :  { %v2285_v58 = vpop.f32.mrf.mxu2 }
 0x30d   :  { %v2286_v16 = vadd.f32 %v2285_v58, %v2187_v50  ;;  %v2634_v7 = vmax.f32 %v2598_v34, 0.0 }
 0x30e   :  { %v2189_v17 = vpop.f32.mrf.mxu1 }
 0x30f   :  { %v2385_v57 = vadd.f32 %v2384_v22, %v2286_v16  ;;  %v2190_v0 = vadd.f32 %v2189_v17, %v5390_v30  ;;  %v2392_v27 = vpop.f32.mrf.mxu3 }
 0x311   :  { %v2484_v9 = vadd.f32 %v2483_v46, %v2385_v57  ;;  %v2486_v29 = vpop.f32.mrf.mxu0 }
 0x313   :  { %v2599_v23 = vadd.f32 %v3949_v55, %v2484_v9 }
 0x314   :  { %v2288_v43 = vpop.f32.mrf.mxu2 }
 0x315   :  { %v2635_v10 = vmax.f32 %v2599_v23, 0.0  ;;  %v2289_v13 = vadd.f32 %v2288_v43, %v2190_v0 }
 0x316   :  { %v2191_v12 = vpop.f32.mrf.mxu1 }
 0x317   :  { %v4036_v6 = vpack.c.bf16 %v2635_v10, %v2634_v7  ;;  %v2388_v38 = vadd.f32 %v2387_v40, %v2289_v13  ;;  %v2192_v53 = vadd.f32 %v2191_v12, %v5418_v56  ;;  %v2394_v47 = vpop.f32.mrf.mxu3 }
 0x319   :  { %4079 = vst [vmem:[%s5860_s4 + $0x78] sm:$0xff] %v4036_v6   ;;  %v2488_v35 = vpop.f32.mrf.mxu0  ;;  %v2487_v14 = vadd.f32 %v2486_v29, %v2388_v38 }
 0x31b   :  { %v2600_v18 = vadd.f32 %v3952_v3, %v2487_v14 }
 0x31c   :  { %v2290_v30 = vpop.f32.mrf.mxu2 }
 0x31d   :  { %v2291_v54 = vadd.f32 %v2290_v30, %v2192_v53  ;;  %v2636_v15 = vmax.f32 %v2600_v18, 0.0 }
 0x31e   :  { %v2194_v36 = vpop.f32.mrf.mxu1 }
 0x31f   :  { %v2390_v42 = vadd.f32 %v2389_v11, %v2291_v54  ;;  %v2195_v60 = vadd.f32 %v2194_v36, %v5428_v52 }
 0x321   :  { %v2489_v25 = vadd.f32 %v2488_v35, %v2390_v42  ;;  %v2491_v2 = vpop.f32.mrf.mxu0 }
 0x323   :  { %v2601_v5 = vadd.f32 %v3953_v49, %v2489_v25 }
 0x324   :  { %v2293_v24 = vpop.f32.mrf.mxu2 }
 0x325   :  { %v2637_v4 = vmax.f32 %v2601_v5, 0.0  ;;  %v2294_v26 = vadd.f32 %v2293_v24, %v2195_v60 }
 0x326   :  { %v2196_v32 = vpop.f32.mrf.mxu1 }
 0x327   :  { %v4041_v56 = vpack.c.bf16 %v2637_v4, %v2636_v15  ;;  %v2393_v20 = vadd.f32 %v2392_v27, %v2294_v26  ;;  %v2197_v37 = vadd.f32 %v2196_v32, %v5454_v28 }
 0x329   :  { %4080 = vst [vmem:[%s5860_s4 + $0x80] sm:$0xff] %v4041_v56   ;;  %v2492_v1 = vadd.f32 %v2491_v2, %v2393_v20  ;;  %v2493_v48 = vpop.f32.mrf.mxu0 }
 0x32b   :  { %v2602_v41 = vadd.f32 %v3956_v59, %v2492_v1 }
 0x32c   :  { %v2295_v52 = vpop.f32.mrf.mxu2 }
 0x32d   :  { %v2296_v44 = vadd.f32 %v2295_v52, %v2197_v37  ;;  %v2638_v22 = vmax.f32 %v2602_v41, 0.0 }
 0x32f   :  { %v2395_v61 = vadd.f32 %v2394_v47, %v2296_v44 }
 0x331   :  { %v2494_v8 = vadd.f32 %v2493_v48, %v2395_v61 }
 0x333   :  { %v2603_v45 = vadd.f32 %v3957_v21, %v2494_v8 }
 0x335   :  { %v2639_v31 = vmax.f32 %v2603_v45, 0.0 }
 0x337   :  { %v4046_v46 = vpack.c.bf16 %v2639_v31, %v2638_v22 }
 0x339   :  { %4081 = vst [vmem:[%s5860_s4 + $0x88] sm:$0xff] %v4046_v46  }

// kernel: custom_resnet4_forward.9
= control target key start
LH: loop header
LB: loop body
LE: loop exit
PB: predicated region body
PF: predicated region fallthrough
CT: control target
= control target key end

     0   :  { %s1724_s1 = inlined_call_operand.vmem [shape: bf16[1152,128], index: 1, kind: input, shape index: {}]   ;;  %s1725_s0 = inlined_call_operand.vmem [shape: bf16[32,1152], index: 0, kind: input, shape index: {}]   ;;  %s1726_s2 = inlined_call_operand.vmem [shape: f32[1,128], index: 2, kind: input, shape index: {}]   ;;  %s1727_s3 = inlined_call_operand.vmem [shape: bf16[32,128], index: 3, kind: output, shape index: {}]  }
   0x1   :  { %v1278_v0 = vld [vmem:[%s1724_s1 + $0x38] sm:$0xff]  ;;  %v1277_v4 = vld [vmem:[%s1724_s1 + $0x30] sm:$0xff]  ;;  %v1276_v8 = vld [vmem:[%s1724_s1 + $0x28] sm:$0xff] }
   0x2   :  { %v1286_v1 = vld [vmem:[%s1724_s1 + $0x78] sm:$0xff]  ;;  %706 = vmatpush.bf16.msra.mxu0 %v1278_v0  ;;  %v1285_v5 = vld [vmem:[%s1724_s1 + $0x70] sm:$0xff]  ;;  %v1284_v9 = vld [vmem:[%s1724_s1 + $0x68] sm:$0xff] }
   0x3   :  { %v1294_v2 = vld [vmem:[%s1724_s1 + $0xb8] sm:$0xff]  ;;  %725 = vmatpush.bf16.msra.mxu1 %v1286_v1  ;;  %v1293_v6 = vld [vmem:[%s1724_s1 + $0xb0] sm:$0xff]  ;;  %v1292_v10 = vld [vmem:[%s1724_s1 + $0xa8] sm:$0xff] }
   0x4   :  { %v1302_v3 = vld [vmem:[%s1724_s1 + $0xf8] sm:$0xff]  ;;  %744 = vmatpush.bf16.msra.mxu2 %v1294_v2  ;;  %v1301_v7 = vld [vmem:[%s1724_s1 + $0xf0] sm:$0xff]  ;;  %v1300_v11 = vld [vmem:[%s1724_s1 + $0xe8] sm:$0xff] }
   0x5   :  { %763 = vmatpush.bf16.msra.mxu3 %v1302_v3  ;;  %v1275_v12 = vld [vmem:[%s1724_s1 + $0x20] sm:$0xff]  ;;  %v1274_v16 = vld [vmem:[%s1724_s1 + $0x18] sm:$0xff]  ;;  %v1273_v20 = vld [vmem:[%s1724_s1 + $0x10] sm:$0xff] }
   0x6   :  { %707 = vmatpush.bf16.msra.mxu0 %v1277_v4  ;;  %v1283_v13 = vld [vmem:[%s1724_s1 + $0x60] sm:$0xff]  ;;  %v1282_v17 = vld [vmem:[%s1724_s1 + $0x58] sm:$0xff]  ;;  %v1281_v21 = vld [vmem:[%s1724_s1 + $0x50] sm:$0xff] }
   0x7   :  { %726 = vmatpush.bf16.msra.mxu1 %v1285_v5  ;;  %v1291_v14 = vld [vmem:[%s1724_s1 + $0xa0] sm:$0xff]  ;;  %v1290_v18 = vld [vmem:[%s1724_s1 + $0x98] sm:$0xff]  ;;  %v1289_v22 = vld [vmem:[%s1724_s1 + $0x90] sm:$0xff] }
   0x8   :  { %745 = vmatpush.bf16.msra.mxu2 %v1293_v6  ;;  %v1299_v15 = vld [vmem:[%s1724_s1 + $0xe0] sm:$0xff]  ;;  %v1298_v19 = vld [vmem:[%s1724_s1 + $0xd8] sm:$0xff]  ;;  %v1297_v23 = vld [vmem:[%s1724_s1 + $0xd0] sm:$0xff] }
   0x9   :  { %764 = vmatpush.bf16.msra.mxu3 %v1301_v7  ;;  %v1272_v24 = vld [vmem:[%s1724_s1 + $0x8] sm:$0xff]  ;;  %v1271_v28 = vld [vmem:[%s1724_s1] sm:$0xff]  ;;  %v905_v39 = vld [vmem:[%s1725_s0 + $0x2c] sm:$0xf0] }
   0xa   :  { %708 = vmatpush.bf16.msra.mxu0 %v1276_v8  ;;  %v1280_v25 = vld [vmem:[%s1724_s1 + $0x48] sm:$0xff]  ;;  %v1279_v29 = vld [vmem:[%s1724_s1 + $0x40] sm:$0xff]  ;;  %v1310_v40 = vld [vmem:[%s1724_s1 + $0x138] sm:$0xff] }
   0xb   :  { %727 = vmatpush.bf16.msra.mxu1 %v1284_v9  ;;  %v1288_v26 = vld [vmem:[%s1724_s1 + $0x88] sm:$0xff]  ;;  %v1287_v30 = vld [vmem:[%s1724_s1 + $0x80] sm:$0xff]  ;;  %v1318_v41 = vld [vmem:[%s1724_s1 + $0x178] sm:$0xff] }
   0xc   :  { %746 = vmatpush.bf16.msra.mxu2 %v1292_v10  ;;  %v1296_v27 = vld [vmem:[%s1724_s1 + $0xc8] sm:$0xff]  ;;  %v1295_v31 = vld [vmem:[%s1724_s1 + $0xc0] sm:$0xff]  ;;  %v1326_v46 = vld [vmem:[%s1724_s1 + $0x1b8] sm:$0xff] }
   0xd   :  { %765 = vmatpush.bf16.msra.mxu3 %v1300_v11  ;;  %v895_v32 = vld [vmem:[%s1725_s0] sm:$0xf]  ;;  %v1257_v33 = vld [vmem:[%s1725_s0 + $0x20] sm:$0xf0]  ;;  %v897_v35 = vld [vmem:[%s1725_s0 + $0x24] sm:$0xf0] }
   0xe   :  { %709 = vmatpush.bf16.msra.mxu0 %v1275_v12  ;;  %v1253_v34 = vld [vmem:[%s1725_s0 + $0x4] sm:$0xf]  ;;  %v903_v36 = vld [vmem:[%s1725_s0 + $0x8] sm:$0xf]  ;;  %v1258_v37 = vld [vmem:[%s1725_s0 + $0x28] sm:$0xf0]  ;;  %v896_v42 = vor.u32 %v1257_v33, %v895_v32 }
   0xf   :  { %728 = vmatpush.bf16.msra.mxu1 %v1283_v13  ;;  %v1254_v38 = vld [vmem:[%s1725_s0 + $0xc] sm:$0xf]  ;;  %v900_v43 = vor.u32 %v1253_v34, %v897_v35  ;;  %v904_v44 = vor.u32 %v1258_v37, %v903_v36  ;;  %v1334_v47 = vld [vmem:[%s1724_s1 + $0x1f8] sm:$0xff]  ;;  %v1309_v48 = vld [vmem:[%s1724_s1 + $0x130] sm:$0xff] }
  0x10   :  { %747 = vmatpush.bf16.msra.mxu2 %v1291_v14  ;;  %v908_v45 = vor.u32 %v1254_v38, %v905_v39  ;;  %v1317_v49 = vld [vmem:[%s1724_s1 + $0x170] sm:$0xff]  ;;  %v1308_v52 = vld [vmem:[%s1724_s1 + $0x128] sm:$0xff]  ;;  %v1307_v56 = vld [vmem:[%s1724_s1 + $0x120] sm:$0xff] }
  0x11   :  { %766 = vmatpush.bf16.msra.mxu3 %v1299_v15  ;;  %v1325_v50 = vld [vmem:[%s1724_s1 + $0x1b0] sm:$0xff]  ;;  %v1316_v53 = vld [vmem:[%s1724_s1 + $0x168] sm:$0xff]  ;;  %v1315_v57 = vld [vmem:[%s1724_s1 + $0x160] sm:$0xff] }
  0x12   :  { %710 = vmatpush.bf16.msra.mxu0 %v1274_v16  ;;  %v1333_v51 = vld [vmem:[%s1724_s1 + $0x1f0] sm:$0xff]  ;;  %v1324_v54 = vld [vmem:[%s1724_s1 + $0x1a8] sm:$0xff]  ;;  %v1323_v58 = vld [vmem:[%s1724_s1 + $0x1a0] sm:$0xff] }
  0x13   :  { %729 = vmatpush.bf16.msra.mxu1 %v1282_v17  ;;  %v1332_v55 = vld [vmem:[%s1724_s1 + $0x1e8] sm:$0xff]  ;;  %v1331_v59 = vld [vmem:[%s1724_s1 + $0x1e0] sm:$0xff]  ;;  %v933_v63 = vld [vmem:[%s1725_s0 + $0x6c] sm:$0xf0] }
  0x14   :  { %748 = vmatpush.bf16.msra.mxu2 %v1290_v18  ;;  %v931_v60 = vld [vmem:[%s1725_s0 + $0x48] sm:$0xf]  ;;  %v1266_v61 = vld [vmem:[%s1725_s0 + $0x68] sm:$0xf0]  ;;  %v939_v0 = vld [vmem:[%s1725_s0 + $0x50] sm:$0xf] }
  0x15   :  { %767 = vmatpush.bf16.msra.mxu3 %v1298_v19  ;;  %v1262_v62 = vld [vmem:[%s1725_s0 + $0x4c] sm:$0xf]  ;;  %v1267_v1 = vld [vmem:[%s1725_s0 + $0x70] sm:$0xf0]  ;;  %v941_v3 = vld [vmem:[%s1725_s0 + $0x74] sm:$0xf0]  ;;  %v932_v6 = vor.u32 %v1266_v61, %v931_v60 }
  0x16   :  { %711 = vmatpush.bf16.msra.mxu0 %v1273_v20  ;;  %v1263_v2 = vld [vmem:[%s1725_s0 + $0x54] sm:$0xf]  ;;  %v1306_v4 = vld [vmem:[%s1724_s1 + $0x118] sm:$0xff]  ;;  %v936_v7 = vor.u32 %v1262_v62, %v933_v63  ;;  %v940_v8 = vor.u32 %v1267_v1, %v939_v0  ;;  %v1304_v16 = vld [vmem:[%s1724_s1 + $0x108] sm:$0xff] }
  0x17   :  { %730 = vmatpush.bf16.msra.mxu1 %v1281_v21  ;;  %v1314_v5 = vld [vmem:[%s1724_s1 + $0x158] sm:$0xff]  ;;  %v944_v9 = vor.u32 %v1263_v2, %v941_v3  ;;  %v1305_v12 = vld [vmem:[%s1724_s1 + $0x110] sm:$0xff]  ;;  %v1312_v17 = vld [vmem:[%s1724_s1 + $0x148] sm:$0xff] }
  0x18   :  { %749 = vmatpush.bf16.msra.mxu2 %v1289_v22  ;;  %v1322_v10 = vld [vmem:[%s1724_s1 + $0x198] sm:$0xff]  ;;  %v1313_v13 = vld [vmem:[%s1724_s1 + $0x150] sm:$0xff]  ;;  %v1320_v18 = vld [vmem:[%s1724_s1 + $0x188] sm:$0xff] }
  0x19   :  { %768 = vmatpush.bf16.msra.mxu3 %v1297_v23  ;;  %v1330_v11 = vld [vmem:[%s1724_s1 + $0x1d8] sm:$0xff]  ;;  %v1321_v14 = vld [vmem:[%s1724_s1 + $0x190] sm:$0xff]  ;;  %v1328_v19 = vld [vmem:[%s1724_s1 + $0x1c8] sm:$0xff] }
  0x1a   :  { %712 = vmatpush.bf16.msra.mxu0 %v1272_v24  ;;  %v1329_v15 = vld [vmem:[%s1724_s1 + $0x1d0] sm:$0xff]  ;;  %v1303_v20 = vld [vmem:[%s1724_s1 + $0x100] sm:$0xff]  ;;  %v1340_v38 = vld [vmem:[%s1724_s1 + $0x228] sm:$0xff] }
  0x1b   :  { %731 = vmatpush.bf16.msra.mxu1 %v1280_v25  ;;  %v1311_v21 = vld [vmem:[%s1724_s1 + $0x140] sm:$0xff]  ;;  %v911_v24 = vld [vmem:[%s1725_s0 + $0x10] sm:$0xf]  ;;  %v1259_v25 = vld [vmem:[%s1725_s0 + $0x30] sm:$0xf0] }
  0x1c   :  { %750 = vmatpush.bf16.msra.mxu2 %v1288_v26  ;;  %v1319_v22 = vld [vmem:[%s1724_s1 + $0x180] sm:$0xff]  ;;  %v1342_v26 = vld [vmem:[%s1724_s1 + $0x238] sm:$0xff]  ;;  %v912_v33 = vor.u32 %v1259_v25, %v911_v24  ;;  %v1341_v37 = vld [vmem:[%s1724_s1 + $0x230] sm:$0xff] }
  0x1d   :  { %769 = vmatpush.bf16.msra.mxu3 %v1296_v27  ;;  %v1327_v23 = vld [vmem:[%s1724_s1 + $0x1c0] sm:$0xff]  ;;  %v1255_v27 = vld [vmem:[%s1725_s0 + $0x14] sm:$0xf] }
  0x1e   :  { %713 = vmatpush.bf16.msra.mxu0 %v1271_v28  ;;  %v913_v28 = vld [vmem:[%s1725_s0 + $0x34] sm:$0xf0]  ;;  %v921_v32 = vld [vmem:[%s1725_s0 + $0x3c] sm:$0xf0] }
  0x1f   :  { %732 = vmatpush.bf16.msra.mxu1 %v1279_v29  ;;  %v919_v29 = vld [vmem:[%s1725_s0 + $0x18] sm:$0xf]  ;;  %v916_v34 = vor.u32 %v1255_v27, %v913_v28  ;;  %v1339_v39 = vld [vmem:[%s1724_s1 + $0x220] sm:$0xff] }
  0x20   :  { %751 = vmatpush.bf16.msra.mxu2 %v1287_v30  ;;  %v1260_v30 = vld [vmem:[%s1725_s0 + $0x38] sm:$0xf0] }
  0x21   :  { %770 = vmatpush.bf16.msra.mxu3 %v1295_v31  ;;  %714 = vmatmul.bf16.vlgmr.msra.gmra.mxu0 %v896_v42  ;;  %v1256_v31 = vld [vmem:[%s1725_s0 + $0x1c] sm:$0xf]  ;;  %v920_v35 = vor.u32 %v1260_v30, %v919_v29 }
  0x22   :  { %782 = vmatpush.bf16.msrb.mxu0 %v1310_v40  ;;  %733 = vmatmul.bf16.vlgmr.msra.gmra.mxu1 %v900_v43  ;;  %v924_v36 = vor.u32 %v1256_v31, %v921_v32  ;;  %v947_v40 = vld [vmem:[%s1725_s0 + $0x58] sm:$0xf]  ;;  %v1264_v42 = vld [vmem:[%s1725_s0 + $0x5c] sm:$0xf]  ;;  %v949_v43 = vld [vmem:[%s1725_s0 + $0x7c] sm:$0xf0] }
  0x23   :  { %801 = vmatpush.bf16.msrb.mxu1 %v1318_v41  ;;  %752 = vmatmul.bf16.vlgmr.msra.gmra.mxu2 %v904_v44  ;;  %v1268_v41 = vld [vmem:[%s1725_s0 + $0x78] sm:$0xf0]  ;;  %v955_v44 = vld [vmem:[%s1725_s0 + $0x60] sm:$0xf] }
  0x24   :  { %771 = vmatmul.bf16.vlgmr.msra.gmra.mxu3 %v908_v45  ;;  %820 = vmatpush.bf16.msrb.mxu2 %v1326_v46  ;;  %v1269_v45 = vld [vmem:[%s1725_s0 + $0x80] sm:$0xf0] }
  0x25   :  { %839 = vmatpush.bf16.msrb.mxu3 %v1334_v47  ;;  %v1265_v46 = vld [vmem:[%s1725_s0 + $0x64] sm:$0xf]  ;;  %v957_v47 = vld [vmem:[%s1725_s0 + $0x84] sm:$0xf0] }
  0x26   :  { %783 = vmatpush.bf16.msrb.mxu0 %v1309_v48  ;;  %v1338_v48 = vld [vmem:[%s1724_s1 + $0x218] sm:$0xff] }
  0x27   :  { %802 = vmatpush.bf16.msrb.mxu1 %v1317_v49  ;;  %v948_v49 = vor.u32 %v1268_v41, %v947_v40 }
  0x28   :  { %821 = vmatpush.bf16.msrb.mxu2 %v1325_v50  ;;  %v952_v50 = vor.u32 %v1264_v42, %v949_v43 }
  0x29   :  { %840 = vmatpush.bf16.msrb.mxu3 %v1333_v51  ;;  %v956_v51 = vor.u32 %v1269_v45, %v955_v44 }
  0x2a   :  { %784 = vmatpush.bf16.msrb.mxu0 %v1308_v52  ;;  %v960_v52 = vor.u32 %v1265_v46, %v957_v47 }
  0x2b   :  { %803 = vmatpush.bf16.msrb.mxu1 %v1316_v53  ;;  %v1337_v53 = vld [vmem:[%s1724_s1 + $0x210] sm:$0xff] }
  0x2c   :  { %822 = vmatpush.bf16.msrb.mxu2 %v1324_v54  ;;  %v1336_v54 = vld [vmem:[%s1724_s1 + $0x208] sm:$0xff] }
  0x2d   :  { %841 = vmatpush.bf16.msrb.mxu3 %v1332_v55  ;;  %v1335_v55 = vld [vmem:[%s1724_s1 + $0x200] sm:$0xff] }
  0x2e   :  { %785 = vmatpush.bf16.msrb.mxu0 %v1307_v56  ;;  %v927_v56 = vld [vmem:[%s1725_s0 + $0x20] sm:$0xf] }
  0x2f   :  { %804 = vmatpush.bf16.msrb.mxu1 %v1315_v57  ;;  %v1261_v57 = vld [vmem:[%s1725_s0 + $0x40] sm:$0xf0] }
  0x30   :  { %823 = vmatpush.bf16.msrb.mxu2 %v1323_v58  ;;  %v963_v58 = vld [vmem:[%s1725_s0 + $0x68] sm:$0xf]  ;;  %v928_v60 = vor.u32 %v1261_v57, %v927_v56 }
  0x31   :  { %842 = vmatpush.bf16.msrb.mxu3 %v1331_v59  ;;  %719 = vmatmul.bf16.gmra.mxu0 %v932_v6  ;;  %v1270_v59 = vld [vmem:[%s1725_s0 + $0x88] sm:$0xf0] }
  0x32   :  { %786 = vmatpush.bf16.msrb.mxu0 %v1306_v4  ;;  %738 = vmatmul.bf16.gmra.mxu1 %v936_v7  ;;  %v964_v61 = vor.u32 %v1270_v59, %v963_v58 }
  0x33   :  { %805 = vmatpush.bf16.msrb.mxu1 %v1314_v5  ;;  %757 = vmatmul.bf16.gmra.mxu2 %v940_v8 }
  0x34   :  { %776 = vmatmul.bf16.gmra.mxu3 %v944_v9  ;;  %824 = vmatpush.bf16.msrb.mxu2 %v1322_v10 }
  0x35   :  { %843 = vmatpush.bf16.msrb.mxu3 %v1330_v11 }
  0x36   :  { %787 = vmatpush.bf16.msrb.mxu0 %v1305_v12 }
  0x37   :  { %806 = vmatpush.bf16.msrb.mxu1 %v1313_v13 }
  0x38   :  { %825 = vmatpush.bf16.msrb.mxu2 %v1321_v14 }
  0x39   :  { %844 = vmatpush.bf16.msrb.mxu3 %v1329_v15 }
  0x3a   :  { %788 = vmatpush.bf16.msrb.mxu0 %v1304_v16 }
  0x3b   :  { %807 = vmatpush.bf16.msrb.mxu1 %v1312_v17 }
  0x3c   :  { %826 = vmatpush.bf16.msrb.mxu2 %v1320_v18 }
  0x3d   :  { %845 = vmatpush.bf16.msrb.mxu3 %v1328_v19 }
  0x3e   :  { %789 = vmatpush.bf16.msrb.mxu0 %v1303_v20  ;;  %v1362_v20 = vld [vmem:[%s1726_s2] ss:$0 sm:$0xff] }
  0x3f   :  { %808 = vmatpush.bf16.msrb.mxu1 %v1311_v21 }
  0x40   :  { %827 = vmatpush.bf16.msrb.mxu2 %v1319_v22 }
  0x41   :  { %846 = vmatpush.bf16.msrb.mxu3 %v1327_v23  ;;  %790 = vmatmul.bf16.vlgmr.msrb.gmra.mxu0 %v912_v33 }
  0x42   :  { %858 = vmatpush.bf16.msra.mxu0 %v1342_v26  ;;  %809 = vmatmul.bf16.vlgmr.msrb.gmra.mxu1 %v916_v34 }
  0x43   :  { %1354 = vmatpush.bf16.msra.mxu1 %v1342_v26  ;;  %828 = vmatmul.bf16.vlgmr.msrb.gmra.mxu2 %v920_v35 }
  0x44   :  { %847 = vmatmul.bf16.vlgmr.msrb.gmra.mxu3 %v924_v36 }
  0x46   :  { %859 = vmatpush.bf16.msra.mxu0 %v1341_v37 }
  0x47   :  { %1355 = vmatpush.bf16.msra.mxu1 %v1341_v37 }
  0x4a   :  { %860 = vmatpush.bf16.msra.mxu0 %v1340_v38 }
  0x4b   :  { %1356 = vmatpush.bf16.msra.mxu1 %v1340_v38 }
  0x4e   :  { %861 = vmatpush.bf16.msra.mxu0 %v1339_v39 }
  0x4f   :  { %1357 = vmatpush.bf16.msra.mxu1 %v1339_v39 }
  0x51   :  { %795 = vmatmul.bf16.gmra.mxu0 %v948_v49 }
  0x52   :  { %862 = vmatpush.bf16.msra.mxu0 %v1338_v48  ;;  %814 = vmatmul.bf16.gmra.mxu1 %v952_v50 }
  0x53   :  { %1358 = vmatpush.bf16.msra.mxu1 %v1338_v48  ;;  %833 = vmatmul.bf16.gmra.mxu2 %v956_v51 }
  0x54   :  { %852 = vmatmul.bf16.gmra.mxu3 %v960_v52 }
  0x56   :  { %863 = vmatpush.bf16.msra.mxu0 %v1337_v53 }
  0x57   :  { %1359 = vmatpush.bf16.msra.mxu1 %v1337_v53 }
  0x5a   :  { %864 = vmatpush.bf16.msra.mxu0 %v1336_v54 }
  0x5b   :  { %1360 = vmatpush.bf16.msra.mxu1 %v1336_v54 }
  0x5e   :  { %865 = vmatpush.bf16.msra.mxu0 %v1335_v55 }
  0x5f   :  { %1361 = vmatpush.bf16.msra.mxu1 %v1335_v55 }
  0x61   :  { %866 = vmatmul.bf16.vlgmr.msra.gmra.mxu0 %v928_v60 }
  0x62   :  { %871 = vmatmul.bf16.vlgmr.msra.gmra.mxu1 %v964_v61 }
  0x9e   :  { %v715_v62 = vpop.f32.mrf.mxu0 }
  0x9f   :  { %v734_v63 = vpop.f32.mrf.mxu1  ;;  %v716_v21 = vadd.f32 %v1362_v20, %v715_v62 }
  0xa1   :  { %v735_v26 = vadd.f32 %v734_v63, %v716_v21 }
  0xa6   :  { %v753_v0 = vpop.f32.mrf.mxu2  ;;  %v717_v2 = vpop.f32.mrf.mxu0 }
  0xa7   :  { %v772_v1 = vpop.f32.mrf.mxu3  ;;  %v736_v3 = vpop.f32.mrf.mxu1  ;;  %v718_v27 = vadd.f32 %v1362_v20, %v717_v2  ;;  %v754_v31 = vadd.f32 %v753_v0, %v735_v26 }
  0xa9   :  { %v737_v33 = vadd.f32 %v736_v3, %v718_v27  ;;  %v773_v35 = vadd.f32 %v772_v1, %v754_v31 }
  0xae   :  { %v755_v4 = vpop.f32.mrf.mxu2  ;;  %v720_v6 = vpop.f32.mrf.mxu0 }
  0xaf   :  { %v774_v5 = vpop.f32.mrf.mxu3  ;;  %v739_v7 = vpop.f32.mrf.mxu1  ;;  %v721_v22 = vadd.f32 %v1362_v20, %v720_v6  ;;  %v756_v36 = vadd.f32 %v755_v4, %v737_v33 }
  0xb1   :  { %v740_v29 = vadd.f32 %v739_v7, %v721_v22  ;;  %v775_v44 = vadd.f32 %v774_v5, %v756_v36 }
  0xb6   :  { %v758_v8 = vpop.f32.mrf.mxu2  ;;  %v722_v10 = vpop.f32.mrf.mxu0 }
  0xb7   :  { %v777_v9 = vpop.f32.mrf.mxu3  ;;  %v741_v11 = vpop.f32.mrf.mxu1  ;;  %v723_v28 = vadd.f32 %v1362_v20, %v722_v10  ;;  %v759_v32 = vadd.f32 %v758_v8, %v740_v29 }
  0xb9   :  { %v742_v34 = vadd.f32 %v741_v11, %v723_v28  ;;  %v778_v39 = vadd.f32 %v777_v9, %v759_v32 }
  0xbe   :  { %v760_v12 = vpop.f32.mrf.mxu2  ;;  %v791_v14 = vpop.f32.mrf.mxu0 }
  0xbf   :  { %v779_v13 = vpop.f32.mrf.mxu3  ;;  %v810_v15 = vpop.f32.mrf.mxu1  ;;  %v761_v37 = vadd.f32 %v760_v12, %v742_v34  ;;  %v792_v42 = vadd.f32 %v791_v14, %v773_v35 }
  0xc1   :  { %v780_v45 = vadd.f32 %v779_v13, %v761_v37  ;;  %v811_v47 = vadd.f32 %v810_v15, %v792_v42 }
  0xc6   :  { %v829_v16 = vpop.f32.mrf.mxu2  ;;  %v793_v18 = vpop.f32.mrf.mxu0 }
  0xc7   :  { %v848_v17 = vpop.f32.mrf.mxu3  ;;  %v812_v19 = vpop.f32.mrf.mxu1  ;;  %v794_v48 = vadd.f32 %v793_v18, %v775_v44  ;;  %v830_v51 = vadd.f32 %v829_v16, %v811_v47 }
  0xc9   :  { %v813_v56 = vadd.f32 %v812_v19, %v794_v48  ;;  %v849_v58 = vadd.f32 %v848_v17, %v830_v51 }
  0xce   :  { %v831_v23 = vpop.f32.mrf.mxu2  ;;  %v796_v24 = vpop.f32.mrf.mxu0 }
  0xcf   :  { %v815_v25 = vpop.f32.mrf.mxu1  ;;  %v850_v30 = vpop.f32.mrf.mxu3  ;;  %v797_v43 = vadd.f32 %v796_v24, %v778_v39  ;;  %v832_v59 = vadd.f32 %v831_v23, %v813_v56 }
  0xd1   :  { %v816_v50 = vadd.f32 %v815_v25, %v797_v43  ;;  %v851_v1 = vadd.f32 %v850_v30, %v832_v59 }
  0xd6   :  { %v834_v38 = vpop.f32.mrf.mxu2  ;;  %v798_v40 = vpop.f32.mrf.mxu0 }
  0xd7   :  { %v817_v41 = vpop.f32.mrf.mxu1  ;;  %v853_v46 = vpop.f32.mrf.mxu3  ;;  %v799_v49 = vadd.f32 %v798_v40, %v780_v45  ;;  %v835_v53 = vadd.f32 %v834_v38, %v816_v50 }
  0xd9   :  { %v818_v57 = vadd.f32 %v817_v41, %v799_v49  ;;  %v854_v61 = vadd.f32 %v853_v46, %v835_v53 }
  0xde   :  { %v836_v52 = vpop.f32.mrf.mxu2  ;;  %v867_v54 = vpop.f32.mrf.mxu0 }
  0xdf   :  { %v872_v55 = vpop.f32.mrf.mxu1  ;;  %v837_v60 = vadd.f32 %v836_v52, %v818_v57  ;;  %v868_v62 = vadd.f32 %v867_v54, %v849_v58  ;;  %v855_v63 = vpop.f32.mrf.mxu3 }
  0xe0   :  { %v873_v0 = vadd.f32 %v872_v55, %v854_v61 }
  0xe1   :  { %v856_v2 = vadd.f32 %v855_v63, %v837_v60  ;;  %1363 = vtanh.f32 %v868_v62 }
  0xe2   :  { %1365 = vtanh.f32 %v873_v0 }
  0xe6   :  { %v869_v3 = vpop.f32.mrf.mxu0 }
  0xe7   :  { %v874_v4 = vpop.f32.mrf.mxu1  ;;  %v870_v5 = vadd.f32 %v869_v3, %v851_v1  ;;  %v1364_v7 = vpop.eup %1363 }
  0xe8   :  { %v875_v6 = vadd.f32 %v874_v4, %v856_v2  ;;  %v1366_v8 = vpop.eup %1365 }
  0xe9   :  { %1367 = vtanh.f32 %v870_v5 }
  0xea   :  { %1369 = vtanh.f32 %v875_v6 }
  0xef   :  { %v1368_v9 = vpop.eup %1367 }
  0xf0   :  { %v1370_v10 = vpop.eup %1369  ;;  %v1346_v11 = vpack.c.bf16 %v1368_v9, %v1364_v7 }
  0xf1   :  { %v1351_v12 = vpack.c.bf16 %v1370_v10, %v1366_v8 }
  0xf2   :  { %1347 = vst [vmem:[%s1727_s3] sm:$0xff] %v1346_v11  }
  0xf3   :  { %1353 = vst [vmem:[%s1727_s3 + $0x8] sm:$0xff] %v1351_v12  }

// kernel: custom_resnet4_forward.11
= control target key start
LH: loop header
LB: loop body
LE: loop exit
PB: predicated region body
PF: predicated region fallthrough
CT: control target
= control target key end

     0   :  { %s4069_s1 = inlined_call_operand.vmem [shape: bf16[128,1024], index: 1, kind: input, shape index: {}]   ;;  %s4070_s0 = inlined_call_operand.vmem [shape: bf16[8,128], index: 0, kind: input, shape index: {}]   ;;  %s4071_s3 = inlined_call_operand.vmem [shape: bf16[1024,256], index: 3, kind: input, shape index: {}]   ;;  %s4072_s2 = inlined_call_operand.vmem [shape: f32[1,1024], index: 2, kind: input, shape index: {}]   ;;  %s4073_s6 = inlined_call_operand.vmem [shape: f32[1,128], index: 6, kind: input, shape index: {}]   ;;  %s4074_s5 = inlined_call_operand.vmem [shape: bf16[256,128], index: 5, kind: input, shape index: {}]   ;;  %s4075_s4 = inlined_call_operand.vmem [shape: f32[1,256], index: 4, kind: input, shape index: {}]   ;;  %s4076_s7 = inlined_call_operand.vmem [shape: f32[8,256], index: 7, kind: output, shape index: {0}]   ;;  %s4077_s8 = inlined_call_operand.vmem [shape: f32[8,128], index: 8, kind: output, shape index: {1}]  }
   0x1   :  { %v1932_v0 = vld [vmem:[%s4069_s1 + $0x1c0] sm:$0xf]  ;;  %v2594_v2 = vld [vmem:[%s4069_s1 + $0x1c4] sm:$0xf]  ;;  %v1940_v5 = vld [vmem:[%s4069_s1 + $0x1c8] sm:$0xf] }
   0x2   :  { %v2598_v1 = vld [vmem:[%s4069_s1 + $0x1dc] sm:$0xf0]  ;;  %v1934_v4 = vld [vmem:[%s4069_s1 + $0x1e0] sm:$0xf0]  ;;  %v2599_v6 = vld [vmem:[%s4069_s1 + $0x1e4] sm:$0xf0] }
   0x3   :  { %v1933_v3 = vor.u32 %v2598_v1, %v1932_v0  ;;  %v1937_v7 = vor.u32 %v2594_v2, %v1934_v4  ;;  %v1941_v8 = vor.u32 %v2599_v6, %v1940_v5  ;;  %v2595_v9 = vld [vmem:[%s4069_s1 + $0x1cc] sm:$0xf]  ;;  %v1900_v11 = vld [vmem:[%s4069_s1 + $0x180] sm:$0xf]  ;;  %v2586_v14 = vld [vmem:[%s4069_s1 + $0x184] sm:$0xf] }
   0x4   :  { %v1942_v10 = vld [vmem:[%s4069_s1 + $0x1e8] sm:$0xf0]  ;;  %v2590_v13 = vld [vmem:[%s4069_s1 + $0x19c] sm:$0xf0]  ;;  %v1902_v15 = vld [vmem:[%s4069_s1 + $0x1a0] sm:$0xf0] }
   0x5   :  { %431 = vmatpush.bf16.msra.mxu0 %v1933_v3  ;;  %v1945_v12 = vor.u32 %v2595_v9, %v1942_v10  ;;  %444 = vmatpush.bf16.msra.mxu1 %v1937_v7  ;;  %v1901_v16 = vor.u32 %v2590_v13, %v1900_v11  ;;  %v1905_v17 = vor.u32 %v2586_v14, %v1902_v15  ;;  %v1908_v18 = vld [vmem:[%s4069_s1 + $0x188] sm:$0xf]  ;;  %v2587_v20 = vld [vmem:[%s4069_s1 + $0x18c] sm:$0xf]  ;;  %v1868_v23 = vld [vmem:[%s4069_s1 + $0x140] sm:$0xf] }
   0x6   :  { %457 = vmatpush.bf16.msra.mxu2 %v1941_v8  ;;  %v2591_v19 = vld [vmem:[%s4069_s1 + $0x1a4] sm:$0xf0]  ;;  %v1910_v22 = vld [vmem:[%s4069_s1 + $0x1a8] sm:$0xf0]  ;;  %v2582_v24 = vld [vmem:[%s4069_s1 + $0x15c] sm:$0xf0] }
   0x7   :  { %470 = vmatpush.bf16.msra.mxu3 %v1945_v12  ;;  %v1909_v21 = vor.u32 %v2591_v19, %v1908_v18  ;;  %v1913_v25 = vor.u32 %v2587_v20, %v1910_v22  ;;  %v2578_v26 = vld [vmem:[%s4069_s1 + $0x144] sm:$0xf]  ;;  %v1876_v28 = vld [vmem:[%s4069_s1 + $0x148] sm:$0xf]  ;;  %v1869_v29 = vor.u32 %v2582_v24, %v1868_v23  ;;  %v2579_v31 = vld [vmem:[%s4069_s1 + $0x14c] sm:$0xf] }
   0x8   :  { %v1870_v27 = vld [vmem:[%s4069_s1 + $0x160] sm:$0xf0]  ;;  %v2583_v30 = vld [vmem:[%s4069_s1 + $0x164] sm:$0xf0]  ;;  %v1878_v32 = vld [vmem:[%s4069_s1 + $0x168] sm:$0xf0] }
   0x9   :  { %432 = vmatpush.bf16.msra.mxu0 %v1901_v16  ;;  %445 = vmatpush.bf16.msra.mxu1 %v1905_v17  ;;  %v1873_v33 = vor.u32 %v2578_v26, %v1870_v27  ;;  %v1877_v34 = vor.u32 %v2583_v30, %v1876_v28  ;;  %v1836_v35 = vld [vmem:[%s4069_s1 + $0x100] sm:$0xf]  ;;  %v2570_v37 = vld [vmem:[%s4069_s1 + $0x104] sm:$0xf]  ;;  %v1881_v38 = vor.u32 %v2579_v31, %v1878_v32  ;;  %v1844_v40 = vld [vmem:[%s4069_s1 + $0x108] sm:$0xf] }
   0xa   :  { %458 = vmatpush.bf16.msra.mxu2 %v1909_v21  ;;  %v2574_v36 = vld [vmem:[%s4069_s1 + $0x11c] sm:$0xf0]  ;;  %v1838_v39 = vld [vmem:[%s4069_s1 + $0x120] sm:$0xf0]  ;;  %v2575_v41 = vld [vmem:[%s4069_s1 + $0x124] sm:$0xf0] }
   0xb   :  { %471 = vmatpush.bf16.msra.mxu3 %v1913_v25  ;;  %v2571_v42 = vld [vmem:[%s4069_s1 + $0x10c] sm:$0xf]  ;;  %v1837_v44 = vor.u32 %v2574_v36, %v1836_v35  ;;  %v1841_v45 = vor.u32 %v2570_v37, %v1838_v39  ;;  %v1845_v46 = vor.u32 %v2575_v41, %v1844_v40  ;;  %v1804_v47 = vld [vmem:[%s4069_s1 + $0xc0] sm:$0xf]  ;;  %v2562_v49 = vld [vmem:[%s4069_s1 + $0xc4] sm:$0xf] }
   0xc   :  { %v1846_v43 = vld [vmem:[%s4069_s1 + $0x128] sm:$0xf0]  ;;  %v2566_v48 = vld [vmem:[%s4069_s1 + $0xdc] sm:$0xf0]  ;;  %v1806_v51 = vld [vmem:[%s4069_s1 + $0xe0] sm:$0xf0] }
   0xd   :  { %433 = vmatpush.bf16.msra.mxu0 %v1869_v29  ;;  %446 = vmatpush.bf16.msra.mxu1 %v1873_v33  ;;  %v1849_v50 = vor.u32 %v2571_v42, %v1846_v43  ;;  %v1812_v52 = vld [vmem:[%s4069_s1 + $0xc8] sm:$0xf]  ;;  %v2563_v54 = vld [vmem:[%s4069_s1 + $0xcc] sm:$0xf]  ;;  %v1805_v56 = vor.u32 %v2566_v48, %v1804_v47  ;;  %v1809_v57 = vor.u32 %v2562_v49, %v1806_v51  ;;  %v1772_v59 = vld [vmem:[%s4069_s1 + $0x80] sm:$0xf] }
   0xe   :  { %459 = vmatpush.bf16.msra.mxu2 %v1877_v34  ;;  %v2567_v53 = vld [vmem:[%s4069_s1 + $0xe4] sm:$0xf0]  ;;  %v1814_v55 = vld [vmem:[%s4069_s1 + $0xe8] sm:$0xf0]  ;;  %v2558_v60 = vld [vmem:[%s4069_s1 + $0x9c] sm:$0xf0] }
   0xf   :  { %472 = vmatpush.bf16.msra.mxu3 %v1881_v38  ;;  %v1813_v58 = vor.u32 %v2567_v53, %v1812_v52  ;;  %v2554_v61 = vld [vmem:[%s4069_s1 + $0x84] sm:$0xf]  ;;  %v1817_v62 = vor.u32 %v2563_v54, %v1814_v55  ;;  %v1780_v0 = vld [vmem:[%s4069_s1 + $0x88] sm:$0xf]  ;;  %v2555_v2 = vld [vmem:[%s4069_s1 + $0x8c] sm:$0xf]  ;;  %v1773_v4 = vor.u32 %v2558_v60, %v1772_v59 }
  0x10   :  { %v1774_v63 = vld [vmem:[%s4069_s1 + $0xa0] sm:$0xf0]  ;;  %v2559_v1 = vld [vmem:[%s4069_s1 + $0xa4] sm:$0xf0]  ;;  %v1782_v3 = vld [vmem:[%s4069_s1 + $0xa8] sm:$0xf0] }
  0x11   :  { %434 = vmatpush.bf16.msra.mxu0 %v1837_v44  ;;  %447 = vmatpush.bf16.msra.mxu1 %v1841_v45  ;;  %v1777_v5 = vor.u32 %v2554_v61, %v1774_v63  ;;  %v1781_v6 = vor.u32 %v2559_v1, %v1780_v0  ;;  %v1740_v7 = vld [vmem:[%s4069_s1 + $0x40] sm:$0xf]  ;;  %v2546_v9 = vld [vmem:[%s4069_s1 + $0x44] sm:$0xf]  ;;  %v1785_v10 = vor.u32 %v2555_v2, %v1782_v3  ;;  %v1748_v12 = vld [vmem:[%s4069_s1 + $0x48] sm:$0xf] }
  0x12   :  { %460 = vmatpush.bf16.msra.mxu2 %v1845_v46  ;;  %v2550_v8 = vld [vmem:[%s4069_s1 + $0x5c] sm:$0xf0]  ;;  %v1742_v11 = vld [vmem:[%s4069_s1 + $0x60] sm:$0xf0]  ;;  %v2551_v13 = vld [vmem:[%s4069_s1 + $0x64] sm:$0xf0] }
  0x13   :  { %473 = vmatpush.bf16.msra.mxu3 %v1849_v50  ;;  %v2547_v14 = vld [vmem:[%s4069_s1 + $0x4c] sm:$0xf]  ;;  %v1741_v16 = vor.u32 %v2550_v8, %v1740_v7  ;;  %v1708_v17 = vld [vmem:[%s4069_s1] sm:$0xf]  ;;  %v1745_v19 = vor.u32 %v2546_v9, %v1742_v11  ;;  %v1749_v20 = vor.u32 %v2551_v13, %v1748_v12  ;;  %v2538_v21 = vld [vmem:[%s4069_s1 + $0x4] sm:$0xf] }
  0x14   :  { %v1750_v15 = vld [vmem:[%s4069_s1 + $0x68] sm:$0xf0]  ;;  %v2542_v18 = vld [vmem:[%s4069_s1 + $0x1c] sm:$0xf0]  ;;  %v1710_v22 = vld [vmem:[%s4069_s1 + $0x20] sm:$0xf0] }
  0x15   :  { %435 = vmatpush.bf16.msra.mxu0 %v1805_v56  ;;  %448 = vmatpush.bf16.msra.mxu1 %v1809_v57  ;;  %v1716_v23 = vld [vmem:[%s4069_s1 + $0x8] sm:$0xf]  ;;  %v1753_v24 = vor.u32 %v2547_v14, %v1750_v15  ;;  %v2539_v26 = vld [vmem:[%s4069_s1 + $0xc] sm:$0xf]  ;;  %v1948_v28 = vld [vmem:[%s4069_s1 + $0x1d0] sm:$0xf]  ;;  %v1709_v31 = vor.u32 %v2542_v18, %v1708_v17  ;;  %v1713_v35 = vor.u32 %v2538_v21, %v1710_v22 }
  0x16   :  { %461 = vmatpush.bf16.msra.mxu2 %v1813_v58  ;;  %v2543_v25 = vld [vmem:[%s4069_s1 + $0x24] sm:$0xf0]  ;;  %v1718_v27 = vld [vmem:[%s4069_s1 + $0x28] sm:$0xf0]  ;;  %v2600_v29 = vld [vmem:[%s4069_s1 + $0x1ec] sm:$0xf0] }
  0x17   :  { %474 = vmatpush.bf16.msra.mxu3 %v1817_v62  ;;  %v2596_v30 = vld [vmem:[%s4069_s1 + $0x1d4] sm:$0xf]  ;;  %v1956_v33 = vld [vmem:[%s4069_s1 + $0x1d8] sm:$0xf]  ;;  %v1717_v36 = vor.u32 %v2543_v25, %v1716_v23  ;;  %v2597_v37 = vld [vmem:[%s4069_s1 + $0x1dc] sm:$0xf]  ;;  %v1721_v39 = vor.u32 %v2539_v26, %v1718_v27  ;;  %v1949_v40 = vor.u32 %v2600_v29, %v1948_v28 }
  0x18   :  { %v1950_v32 = vld [vmem:[%s4069_s1 + $0x1f0] sm:$0xf0]  ;;  %v2601_v34 = vld [vmem:[%s4069_s1 + $0x1f4] sm:$0xf0]  ;;  %v1958_v38 = vld [vmem:[%s4069_s1 + $0x1f8] sm:$0xf0] }
  0x19   :  { %436 = vmatpush.bf16.msra.mxu0 %v1773_v4  ;;  %449 = vmatpush.bf16.msra.mxu1 %v1777_v5  ;;  %v1953_v41 = vor.u32 %v2596_v30, %v1950_v32  ;;  %v1957_v42 = vor.u32 %v2601_v34, %v1956_v33  ;;  %v1916_v43 = vld [vmem:[%s4069_s1 + $0x190] sm:$0xf]  ;;  %v2588_v45 = vld [vmem:[%s4069_s1 + $0x194] sm:$0xf]  ;;  %v1961_v46 = vor.u32 %v2597_v37, %v1958_v38  ;;  %v1924_v48 = vld [vmem:[%s4069_s1 + $0x198] sm:$0xf] }
  0x1a   :  { %462 = vmatpush.bf16.msra.mxu2 %v1781_v6  ;;  %v2592_v44 = vld [vmem:[%s4069_s1 + $0x1ac] sm:$0xf0]  ;;  %v1918_v47 = vld [vmem:[%s4069_s1 + $0x1b0] sm:$0xf0]  ;;  %v2593_v49 = vld [vmem:[%s4069_s1 + $0x1b4] sm:$0xf0] }
  0x1b   :  { %475 = vmatpush.bf16.msra.mxu3 %v1785_v10  ;;  %v3033_v50 = vld [vmem:[%s4070_s0] sm:$0xf]  ;;  %v2589_v51 = vld [vmem:[%s4069_s1 + $0x19c] sm:$0xf]  ;;  %v1917_v53 = vor.u32 %v2592_v44, %v1916_v43  ;;  %v1921_v54 = vor.u32 %v2588_v45, %v1918_v47  ;;  %v1925_v55 = vor.u32 %v2593_v49, %v1924_v48  ;;  %v1884_v56 = vld [vmem:[%s4069_s1 + $0x150] sm:$0xf] }
  0x1c   :  { %v1926_v52 = vld [vmem:[%s4069_s1 + $0x1b8] sm:$0xf0]  ;;  %v2584_v57 = vld [vmem:[%s4069_s1 + $0x16c] sm:$0xf0]  ;;  %v2580_v58 = vld [vmem:[%s4069_s1 + $0x154] sm:$0xf] }
  0x1d   :  { %437 = vmatpush.bf16.msra.mxu0 %v1741_v16  ;;  %450 = vmatpush.bf16.msra.mxu1 %v1745_v19  ;;  %v1929_v59 = vor.u32 %v2589_v51, %v1926_v52  ;;  %v1886_v60 = vld [vmem:[%s4069_s1 + $0x170] sm:$0xf0]  ;;  %v1892_v61 = vld [vmem:[%s4069_s1 + $0x158] sm:$0xf]  ;;  %v2581_v63 = vld [vmem:[%s4069_s1 + $0x15c] sm:$0xf]  ;;  %v1885_v1 = vor.u32 %v2584_v57, %v1884_v56 }
  0x1e   :  { %463 = vmatpush.bf16.msra.mxu2 %v1749_v20  ;;  %v2585_v62 = vld [vmem:[%s4069_s1 + $0x174] sm:$0xf0]  ;;  %v1894_v0 = vld [vmem:[%s4069_s1 + $0x178] sm:$0xf0]  ;;  %v1889_v2 = vor.u32 %v2580_v58, %v1886_v60  ;;  %v1852_v4 = vld [vmem:[%s4069_s1 + $0x110] sm:$0xf] }
  0x1f   :  { %476 = vmatpush.bf16.msra.mxu3 %v1753_v24  ;;  %v1893_v3 = vor.u32 %v2585_v62, %v1892_v61  ;;  %v2576_v5 = vld [vmem:[%s4069_s1 + $0x12c] sm:$0xf0]  ;;  %v2572_v6 = vld [vmem:[%s4069_s1 + $0x114] sm:$0xf]  ;;  %v1897_v7 = vor.u32 %v2581_v63, %v1894_v0  ;;  %v1860_v9 = vld [vmem:[%s4069_s1 + $0x118] sm:$0xf] }
  0x20   :  { %v1854_v8 = vld [vmem:[%s4069_s1 + $0x130] sm:$0xf0]  ;;  %v2577_v10 = vld [vmem:[%s4069_s1 + $0x134] sm:$0xf0]  ;;  %v2573_v11 = vld [vmem:[%s4069_s1 + $0x11c] sm:$0xf]  ;;  %v1853_v13 = vor.u32 %v2576_v5, %v1852_v4 }
  0x21   :  { %438 = vmatpush.bf16.msra.mxu0 %v1709_v31  ;;  %451 = vmatpush.bf16.msra.mxu1 %v1713_v35  ;;  %v1862_v12 = vld [vmem:[%s4069_s1 + $0x138] sm:$0xf0]  ;;  %v1857_v14 = vor.u32 %v2572_v6, %v1854_v8  ;;  %v1861_v15 = vor.u32 %v2577_v10, %v1860_v9  ;;  %v1820_v16 = vld [vmem:[%s4069_s1 + $0xd0] sm:$0xf]  ;;  %v2564_v18 = vld [vmem:[%s4069_s1 + $0xd4] sm:$0xf] }
  0x22   :  { %464 = vmatpush.bf16.msra.mxu2 %v1717_v36  ;;  %v2568_v17 = vld [vmem:[%s4069_s1 + $0xec] sm:$0xf0]  ;;  %v1865_v19 = vor.u32 %v2573_v11, %v1862_v12  ;;  %v1822_v20 = vld [vmem:[%s4069_s1 + $0xf0] sm:$0xf0]  ;;  %v1828_v21 = vld [vmem:[%s4069_s1 + $0xd8] sm:$0xf] }
  0x23   :  { %477 = vmatpush.bf16.msra.mxu3 %v1721_v39  ;;  %v2569_v22 = vld [vmem:[%s4069_s1 + $0xf4] sm:$0xf0]  ;;  %v2565_v23 = vld [vmem:[%s4069_s1 + $0xdc] sm:$0xf]  ;;  %v1821_v25 = vor.u32 %v2568_v17, %v1820_v16  ;;  %v1825_v26 = vor.u32 %v2564_v18, %v1822_v20  ;;  %v1788_v28 = vld [vmem:[%s4069_s1 + $0x90] sm:$0xf] }
  0x24   :  { %439 = vmatmul.bf16.vlgmr.msra.gmra.mxu0 %v3033_v50  ;;  %452 = vmatmul.bf16.vlgmr.msra.gmra.mxu1 %v3033_v50  ;;  %v1830_v24 = vld [vmem:[%s4069_s1 + $0xf8] sm:$0xf0]  ;;  %v1829_v27 = vor.u32 %v2569_v22, %v1828_v21  ;;  %v2560_v29 = vld [vmem:[%s4069_s1 + $0xac] sm:$0xf0]  ;;  %v2556_v30 = vld [vmem:[%s4069_s1 + $0x94] sm:$0xf] }
  0x25   :  { %483 = vmatpush.bf16.msrb.mxu0 %v1949_v40  ;;  %496 = vmatpush.bf16.msrb.mxu1 %v1953_v41  ;;  %v1833_v31 = vor.u32 %v2565_v23, %v1830_v24  ;;  %v1790_v32 = vld [vmem:[%s4069_s1 + $0xb0] sm:$0xf0]  ;;  %v1796_v33 = vld [vmem:[%s4069_s1 + $0x98] sm:$0xf]  ;;  %v2557_v35 = vld [vmem:[%s4069_s1 + $0x9c] sm:$0xf]  ;;  %v1789_v37 = vor.u32 %v2560_v29, %v1788_v28 }
  0x26   :  { %509 = vmatpush.bf16.msrb.mxu2 %v1957_v42  ;;  %478 = vmatmul.bf16.vlgmr.msra.gmra.mxu3 %v3033_v50  ;;  %v2561_v34 = vld [vmem:[%s4069_s1 + $0xb4] sm:$0xf0]  ;;  %v1798_v36 = vld [vmem:[%s4069_s1 + $0xb8] sm:$0xf0]  ;;  %v1793_v38 = vor.u32 %v2556_v30, %v1790_v32  ;;  %v1756_v40 = vld [vmem:[%s4069_s1 + $0x50] sm:$0xf] }
  0x27   :  { %522 = vmatpush.bf16.msrb.mxu3 %v1961_v46  ;;  %465 = vmatmul.bf16.vlgmr.msra.gmra.mxu2 %v3033_v50  ;;  %v1797_v39 = vor.u32 %v2561_v34, %v1796_v33  ;;  %v2552_v41 = vld [vmem:[%s4069_s1 + $0x6c] sm:$0xf0]  ;;  %v2548_v42 = vld [vmem:[%s4069_s1 + $0x54] sm:$0xf]  ;;  %v1801_v43 = vor.u32 %v2557_v35, %v1798_v36  ;;  %v1764_v45 = vld [vmem:[%s4069_s1 + $0x58] sm:$0xf] }
  0x28   :  { %v1758_v44 = vld [vmem:[%s4069_s1 + $0x70] sm:$0xf0]  ;;  %v2553_v46 = vld [vmem:[%s4069_s1 + $0x74] sm:$0xf0]  ;;  %v2549_v47 = vld [vmem:[%s4069_s1 + $0x5c] sm:$0xf]  ;;  %v1757_v49 = vor.u32 %v2552_v41, %v1756_v40 }
  0x29   :  { %484 = vmatpush.bf16.msrb.mxu0 %v1917_v53  ;;  %497 = vmatpush.bf16.msrb.mxu1 %v1921_v54  ;;  %v1766_v48 = vld [vmem:[%s4069_s1 + $0x78] sm:$0xf0]  ;;  %v1724_v51 = vld [vmem:[%s4069_s1 + $0x10] sm:$0xf]  ;;  %v1761_v52 = vor.u32 %v2548_v42, %v1758_v44  ;;  %v1765_v53 = vor.u32 %v2553_v46, %v1764_v45  ;;  %v1726_v56 = vld [vmem:[%s4069_s1 + $0x30] sm:$0xf0] }
  0x2a   :  { %510 = vmatpush.bf16.msrb.mxu2 %v1925_v55  ;;  %v2544_v54 = vld [vmem:[%s4069_s1 + $0x2c] sm:$0xf0]  ;;  %v2540_v55 = vld [vmem:[%s4069_s1 + $0x14] sm:$0xf]  ;;  %v1769_v57 = vor.u32 %v2549_v47, %v1766_v48  ;;  %v1732_v58 = vld [vmem:[%s4069_s1 + $0x18] sm:$0xf] }
  0x2b   :  { %523 = vmatpush.bf16.msrb.mxu3 %v1929_v59  ;;  %v2545_v59 = vld [vmem:[%s4069_s1 + $0x34] sm:$0xf0]  ;;  %v2541_v60 = vld [vmem:[%s4069_s1 + $0x1c] sm:$0xf]  ;;  %v2020_v62 = vld [vmem:[%s4071_s3 + $0x70] sm:$0xf]  ;;  %v1725_v0 = vor.u32 %v2544_v54, %v1724_v51 }
  0x2c   :  { %v1734_v61 = vld [vmem:[%s4069_s1 + $0x38] sm:$0xf0]  ;;  %v2617_v63 = vld [vmem:[%s4071_s3 + $0x74] sm:$0xf0]  ;;  %v1733_v4 = vor.u32 %v2545_v59, %v1732_v58  ;;  %v2148_v8 = vld [vmem:[%s4071_s3 + $0x170] sm:$0xf] }
  0x2d   :  { %485 = vmatpush.bf16.msrb.mxu0 %v1885_v1  ;;  %498 = vmatpush.bf16.msrb.mxu1 %v1889_v2  ;;  %v2084_v1 = vld [vmem:[%s4071_s3 + $0xf0] sm:$0xf]  ;;  %v2633_v2 = vld [vmem:[%s4071_s3 + $0xf4] sm:$0xf0]  ;;  %v1737_v5 = vor.u32 %v2541_v60, %v1734_v61  ;;  %v2021_v6 = vor.u32 %v2617_v63, %v2020_v62  ;;  %v2615_v11 = vld [vmem:[%s4071_s3 + $0x64] sm:$0xf0] }
  0x2e   :  { %511 = vmatpush.bf16.msrb.mxu2 %v1893_v3  ;;  %v1729_v3 = vor.u32 %v2540_v55, %v1726_v56  ;;  %v2649_v9 = vld [vmem:[%s4071_s3 + $0x174] sm:$0xf0]  ;;  %v2085_v10 = vor.u32 %v2633_v2, %v2084_v1  ;;  %v2212_v12 = vld [vmem:[%s4071_s3 + $0x1f0] sm:$0xf]  ;;  %v2140_v20 = vld [vmem:[%s4071_s3 + $0x160] sm:$0xf] }
  0x2f   :  { %524 = vmatpush.bf16.msrb.mxu3 %v1897_v7  ;;  %v2012_v7 = vld [vmem:[%s4071_s3 + $0x60] sm:$0xf]  ;;  %v2149_v16 = vor.u32 %v2649_v9, %v2148_v8  ;;  %v2647_v21 = vld [vmem:[%s4071_s3 + $0x164] sm:$0xf0]  ;;  %v2613_v23 = vld [vmem:[%s4071_s3 + $0x54] sm:$0xf0] }
  0x30   :  { %v2013_v17 = vor.u32 %v2615_v11, %v2012_v7  ;;  %v2204_v24 = vld [vmem:[%s4071_s3 + $0x1e0] sm:$0xf]  ;;  %v2141_v28 = vor.u32 %v2647_v21, %v2140_v20  ;;  %v2132_v32 = vld [vmem:[%s4071_s3 + $0x150] sm:$0xf]  ;;  %v2645_v33 = vld [vmem:[%s4071_s3 + $0x154] sm:$0xf0] }
  0x31   :  { %486 = vmatpush.bf16.msrb.mxu0 %v1853_v13  ;;  %499 = vmatpush.bf16.msrb.mxu1 %v1857_v14  ;;  %v2665_v13 = vld [vmem:[%s4071_s3 + $0x1f4] sm:$0xf0]  ;;  %v2076_v14 = vld [vmem:[%s4071_s3 + $0xe0] sm:$0xf]  ;;  %v2611_v34 = vld [vmem:[%s4071_s3 + $0x44] sm:$0xf0] }
  0x32   :  { %512 = vmatpush.bf16.msrb.mxu2 %v1861_v15  ;;  %v2631_v15 = vld [vmem:[%s4071_s3 + $0xe4] sm:$0xf0]  ;;  %v2213_v18 = vor.u32 %v2665_v13, %v2212_v12  ;;  %v2196_v35 = vld [vmem:[%s4071_s3 + $0x1d0] sm:$0xf]  ;;  %v2661_v36 = vld [vmem:[%s4071_s3 + $0x1d4] sm:$0xf0] }
  0x33   :  { %525 = vmatpush.bf16.msrb.mxu3 %v1865_v19  ;;  %v2004_v19 = vld [vmem:[%s4071_s3 + $0x50] sm:$0xf]  ;;  %v2077_v22 = vor.u32 %v2631_v15, %v2076_v14  ;;  %v2197_v41 = vor.u32 %v2661_v36, %v2196_v35  ;;  %v2643_v44 = vld [vmem:[%s4071_s3 + $0x144] sm:$0xf0]  ;;  %v2609_v46 = vld [vmem:[%s4071_s3 + $0x34] sm:$0xf0] }
  0x34   :  { %v2005_v29 = vor.u32 %v2613_v23, %v2004_v19  ;;  %v1988_v42 = vld [vmem:[%s4071_s3 + $0x30] sm:$0xf]  ;;  %v2188_v47 = vld [vmem:[%s4071_s3 + $0x1c0] sm:$0xf]  ;;  %v2659_v48 = vld [vmem:[%s4071_s3 + $0x1c4] sm:$0xf0] }
  0x35   :  { %487 = vmatpush.bf16.msrb.mxu0 %v1821_v25  ;;  %500 = vmatpush.bf16.msrb.mxu1 %v1825_v26  ;;  %v2663_v25 = vld [vmem:[%s4071_s3 + $0x1e4] sm:$0xf0]  ;;  %v2068_v26 = vld [vmem:[%s4071_s3 + $0xd0] sm:$0xf]  ;;  %v2625_v51 = vld [vmem:[%s4071_s3 + $0xb4] sm:$0xf0]  ;;  %v2189_v54 = vor.u32 %v2659_v48, %v2188_v47 }
  0x36   :  { %513 = vmatpush.bf16.msrb.mxu2 %v1829_v27  ;;  %v2629_v27 = vld [vmem:[%s4071_s3 + $0xd4] sm:$0xf0]  ;;  %v2205_v30 = vor.u32 %v2663_v25, %v2204_v24  ;;  %v1980_v55 = vld [vmem:[%s4071_s3 + $0x20] sm:$0xf]  ;;  %v2116_v56 = vld [vmem:[%s4071_s3 + $0x130] sm:$0xf] }
  0x37   :  { %526 = vmatpush.bf16.msrb.mxu3 %v1833_v31  ;;  %v1996_v31 = vld [vmem:[%s4071_s3 + $0x40] sm:$0xf]  ;;  %v2607_v59 = vld [vmem:[%s4071_s3 + $0x24] sm:$0xf0]  ;;  %v2180_v60 = vld [vmem:[%s4071_s3 + $0x1b0] sm:$0xf] }
  0x38   :  { %v1997_v40 = vor.u32 %v2611_v34, %v1996_v31  ;;  %v2657_v61 = vld [vmem:[%s4071_s3 + $0x1b4] sm:$0xf0]  ;;  %v2044_v62 = vld [vmem:[%s4071_s3 + $0xa0] sm:$0xf]  ;;  %v2623_v63 = vld [vmem:[%s4071_s3 + $0xa4] sm:$0xf0]  ;;  %v1981_v1 = vor.u32 %v2607_v59, %v1980_v55 }
  0x39   :  { %488 = vmatpush.bf16.msrb.mxu0 %v1789_v37  ;;  %501 = vmatpush.bf16.msrb.mxu1 %v1793_v38  ;;  %v2060_v37 = vld [vmem:[%s4071_s3 + $0xc0] sm:$0xf]  ;;  %v2627_v38 = vld [vmem:[%s4071_s3 + $0xc4] sm:$0xf0]  ;;  %v2181_v2 = vor.u32 %v2657_v61, %v2180_v60  ;;  %v2605_v7 = vld [vmem:[%s4071_s3 + $0x14] sm:$0xf0] }
  0x3a   :  { %514 = vmatpush.bf16.msrb.mxu2 %v1797_v39  ;;  %v2133_v39 = vor.u32 %v2645_v33, %v2132_v32  ;;  %v2061_v45 = vor.u32 %v2627_v38, %v2060_v37  ;;  %v2172_v8 = vld [vmem:[%s4071_s3 + $0x1a0] sm:$0xf]  ;;  %v2655_v9 = vld [vmem:[%s4071_s3 + $0x1a4] sm:$0xf0]  ;;  %v2621_v11 = vld [vmem:[%s4071_s3 + $0x94] sm:$0xf0] }
  0x3b   :  { %527 = vmatpush.bf16.msrb.mxu3 %v1801_v43  ;;  %v2124_v43 = vld [vmem:[%s4071_s3 + $0x140] sm:$0xf]  ;;  %v2173_v15 = vor.u32 %v2655_v9, %v2172_v8  ;;  %v2164_v21 = vld [vmem:[%s4071_s3 + $0x190] sm:$0xf]  ;;  %v2619_v23 = vld [vmem:[%s4071_s3 + $0x84] sm:$0xf0] }
  0x3c   :  { %v1964_v13 = vld [vmem:[%s4071_s3] sm:$0xf]  ;;  %v2276_v24 = vld [vmem:[%s4071_s3 + $0x270] sm:$0xf]  ;;  %v2681_v25 = vld [vmem:[%s4071_s3 + $0x274] sm:$0xf0] }
  0x3d   :  { %489 = vmatpush.bf16.msrb.mxu0 %v1757_v49  ;;  %502 = vmatpush.bf16.msrb.mxu1 %v1761_v52  ;;  %v2052_v49 = vld [vmem:[%s4071_s3 + $0xb0] sm:$0xf]  ;;  %v2125_v52 = vor.u32 %v2643_v44, %v2124_v43  ;;  %v2028_v20 = vld [vmem:[%s4071_s3 + $0x80] sm:$0xf]  ;;  %v2635_v33 = vld [vmem:[%s4071_s3 + $0x104] sm:$0xf0]  ;;  %v2277_v35 = vor.u32 %v2681_v25, %v2276_v24 }
  0x3e   :  { %515 = vmatpush.bf16.msrb.mxu2 %v1765_v53  ;;  %v1989_v53 = vor.u32 %v2609_v46, %v1988_v42  ;;  %v2053_v58 = vor.u32 %v2625_v51, %v2052_v49  ;;  %v2268_v31 = vld [vmem:[%s4071_s3 + $0x260] sm:$0xf]  ;;  %v2029_v34 = vor.u32 %v2619_v23, %v2028_v20  ;;  %v2651_v36 = vld [vmem:[%s4071_s3 + $0x184] sm:$0xf0]  ;;  %v2404_v37 = vld [vmem:[%s4071_s3 + $0x370] sm:$0xf] }
  0x3f   :  { %528 = vmatpush.bf16.msrb.mxu3 %v1769_v57  ;;  %v2641_v57 = vld [vmem:[%s4071_s3 + $0x134] sm:$0xf0]  ;;  %v2092_v32 = vld [vmem:[%s4071_s3 + $0x100] sm:$0xf]  ;;  %v2695_v44 = vld [vmem:[%s4071_s3 + $0x2e4] sm:$0xf0] }
  0x40   :  { %v2713_v38 = vld [vmem:[%s4071_s3 + $0x374] sm:$0xf0]  ;;  %v2332_v43 = vld [vmem:[%s4071_s3 + $0x2e0] sm:$0xf]  ;;  %v2260_v51 = vld [vmem:[%s4071_s3 + $0x250] sm:$0xf] }
  0x41   :  { %490 = vmatpush.bf16.msrb.mxu0 %v1725_v0  ;;  %503 = vmatpush.bf16.msrb.mxu1 %v1729_v3  ;;  %v2117_v0 = vor.u32 %v2641_v57, %v2116_v56  ;;  %v1972_v3 = vld [vmem:[%s4071_s3 + $0x10] sm:$0xf]  ;;  %v2729_v42 = vld [vmem:[%s4071_s3 + $0x3f4] sm:$0xf0]  ;;  %v2405_v47 = vor.u32 %v2713_v38, %v2404_v37  ;;  %v2460_v56 = vld [vmem:[%s4071_s3 + $0x3e0] sm:$0xf] }
  0x42   :  { %516 = vmatpush.bf16.msrb.mxu2 %v1733_v4  ;;  %v2108_v4 = vld [vmem:[%s4071_s3 + $0x120] sm:$0xf]  ;;  %v1973_v14 = vor.u32 %v2605_v7, %v1972_v3  ;;  %v2677_v55 = vld [vmem:[%s4071_s3 + $0x254] sm:$0xf0]  ;;  %v2727_v57 = vld [vmem:[%s4071_s3 + $0x3e4] sm:$0xf0] }
  0x43   :  { %529 = vmatpush.bf16.msrb.mxu3 %v1737_v5  ;;  %v2639_v5 = vld [vmem:[%s4071_s3 + $0x124] sm:$0xf0]  ;;  %v2693_v59 = vld [vmem:[%s4071_s3 + $0x2d4] sm:$0xf0]  ;;  %v2261_v61 = vor.u32 %v2677_v55, %v2260_v51  ;;  %v2236_v24 = vld [vmem:[%s4071_s3 + $0x220] sm:$0xf] }
  0x44   :  { %491 = vmatmul.bf16.vlgmr.msrb.gmra.mxu0 %v3033_v50  ;;  %504 = vmatmul.bf16.vlgmr.msrb.gmra.mxu1 %v3033_v50  ;;  %v2109_v12 = vor.u32 %v2639_v5, %v2108_v4  ;;  %v2675_v3 = vld [vmem:[%s4071_s3 + $0x244] sm:$0xf0]  ;;  %v2452_v4 = vld [vmem:[%s4071_s3 + $0x3d0] sm:$0xf]  ;;  %v2725_v5 = vld [vmem:[%s4071_s3 + $0x3d4] sm:$0xf0] }
  0x45   :  { %1325 = vmatpush.bf16.msra.mxu0 %v2021_v6  ;;  %1338 = vmatpush.bf16.msra.mxu1 %v2085_v10  ;;  %v2045_v6 = vor.u32 %v2623_v63, %v2044_v62  ;;  %v2036_v10 = vld [vmem:[%s4071_s3 + $0x90] sm:$0xf]  ;;  %v2461_v62 = vor.u32 %v2727_v57, %v2460_v56  ;;  %v2252_v63 = vld [vmem:[%s4071_s3 + $0x240] sm:$0xf]  ;;  %v2691_v7 = vld [vmem:[%s4071_s3 + $0x2c4] sm:$0xf0] }
  0x46   :  { %517 = vmatmul.bf16.vlgmr.msrb.gmra.mxu2 %v3033_v50  ;;  %530 = vmatmul.bf16.vlgmr.msrb.gmra.mxu3 %v3033_v50  ;;  %v2069_v50 = vor.u32 %v2629_v27, %v2068_v26  ;;  %v2037_v19 = vor.u32 %v2621_v11, %v2036_v10  ;;  %v2340_v26 = vld [vmem:[%s4071_s3 + $0x2f0] sm:$0xf]  ;;  %v2697_v27 = vld [vmem:[%s4071_s3 + $0x2f4] sm:$0xf0]  ;;  %v2253_v9 = vor.u32 %v2675_v3, %v2252_v63  ;;  %v2671_v25 = vld [vmem:[%s4071_s3 + $0x224] sm:$0xf0] }
  0x47   :  { %1351 = vmatpush.bf16.msra.mxu2 %v2149_v16  ;;  %1364 = vmatpush.bf16.msra.mxu3 %v2213_v18  ;;  %v2603_v16 = vld [vmem:[%s4071_s3 + $0x4] sm:$0xf0]  ;;  %v2637_v18 = vld [vmem:[%s4071_s3 + $0x114] sm:$0xf0]  ;;  %v2453_v10 = vor.u32 %v2725_v5, %v2452_v4  ;;  %v2244_v11 = vld [vmem:[%s4071_s3 + $0x230] sm:$0xf] }
  0x48   :  { %v2292_v38 = vld [vmem:[%s4071_s3 + $0x290] sm:$0xf]  ;;  %v2701_v55 = vld [vmem:[%s4071_s3 + $0x314] sm:$0xf0]  ;;  %v2412_v63 = vld [vmem:[%s4071_s3 + $0x380] sm:$0xf] }
  0x49   :  { %1326 = vmatpush.bf16.msra.mxu0 %v2013_v17  ;;  %1339 = vmatpush.bf16.msra.mxu1 %v2077_v22  ;;  %v2100_v17 = vld [vmem:[%s4071_s3 + $0x110] sm:$0xf]  ;;  %v2653_v22 = vld [vmem:[%s4071_s3 + $0x194] sm:$0xf0] }
  0x4a   :  { %v2420_v56 = vld [vmem:[%s4071_s3 + $0x390] sm:$0xf] }
  0x4b   :  { %1352 = vmatpush.bf16.msra.mxu2 %v2141_v28  ;;  %1365 = vmatpush.bf16.msra.mxu3 %v2205_v30  ;;  %v2101_v28 = vor.u32 %v2637_v18, %v2100_v17  ;;  %v2165_v30 = vor.u32 %v2653_v22, %v2164_v21  ;;  %v2723_v17 = vld [vmem:[%s4071_s3 + $0x3c4] sm:$0xf0]  ;;  %v2308_v18 = vld [vmem:[%s4071_s3 + $0x2b0] sm:$0xf] }
  0x4d   :  { %1327 = vmatpush.bf16.msra.mxu0 %v2005_v29  ;;  %1340 = vmatpush.bf16.msra.mxu1 %v2069_v50  ;;  %v1965_v29 = vor.u32 %v2603_v16, %v1964_v13  ;;  %v2156_v50 = vld [vmem:[%s4071_s3 + $0x180] sm:$0xf]  ;;  %v2707_v13 = vld [vmem:[%s4071_s3 + $0x344] sm:$0xf0] }
  0x4e   :  { %v2157_v46 = vor.u32 %v2651_v36, %v2156_v50  ;;  %v2444_v16 = vld [vmem:[%s4071_s3 + $0x3c0] sm:$0xf]  ;;  %v2721_v50 = vld [vmem:[%s4071_s3 + $0x3b4] sm:$0xf0] }
  0x4f   :  { %1353 = vmatpush.bf16.msra.mxu2 %v2133_v39  ;;  %1366 = vmatpush.bf16.msra.mxu3 %v2197_v41  ;;  %v2341_v39 = vor.u32 %v2697_v27, %v2340_v26  ;;  %v2468_v41 = vld [vmem:[%s4071_s3 + $0x3f0] sm:$0xf]  ;;  %v2445_v22 = vor.u32 %v2723_v17, %v2444_v16  ;;  %v2300_v26 = vld [vmem:[%s4071_s3 + $0x2a0] sm:$0xf]  ;;  %v2687_v27 = vld [vmem:[%s4071_s3 + $0x2a4] sm:$0xf0] }
  0x50   :  { %v2469_v49 = vor.u32 %v2729_v42, %v2468_v41  ;;  %v2669_v36 = vld [vmem:[%s4071_s3 + $0x214] sm:$0xf0]  ;;  %v2364_v41 = vld [vmem:[%s4071_s3 + $0x320] sm:$0xf]  ;;  %v2703_v42 = vld [vmem:[%s4071_s3 + $0x324] sm:$0xf0] }
  0x51   :  { %1328 = vmatpush.bf16.msra.mxu0 %v1997_v40  ;;  %1341 = vmatpush.bf16.msra.mxu1 %v2061_v45  ;;  %v2679_v40 = vld [vmem:[%s4071_s3 + $0x264] sm:$0xf0]  ;;  %v2093_v45 = vor.u32 %v2635_v33, %v2092_v32  ;;  %v2436_v32 = vld [vmem:[%s4071_s3 + $0x3b0] sm:$0xf] }
  0x52   :  { %v2269_v48 = vor.u32 %v2679_v40, %v2268_v31  ;;  %v2705_v31 = vld [vmem:[%s4071_s3 + $0x334] sm:$0xf0] }
  0x53   :  { %1354 = vmatpush.bf16.msra.mxu2 %v2125_v52  ;;  %1367 = vmatpush.bf16.msra.mxu3 %v2189_v54  ;;  %v2396_v52 = vld [vmem:[%s4071_s3 + $0x360] sm:$0xf]  ;;  %v2333_v54 = vor.u32 %v2695_v44, %v2332_v43  ;;  %v2365_v44 = vor.u32 %v2703_v42, %v2364_v41 }
  0x54   :  { %v2428_v43 = vld [vmem:[%s4071_s3 + $0x3a0] sm:$0xf] }
  0x55   :  { %1329 = vmatpush.bf16.msra.mxu0 %v1989_v53  ;;  %1342 = vmatpush.bf16.msra.mxu1 %v2053_v58  ;;  %v2711_v53 = vld [vmem:[%s4071_s3 + $0x364] sm:$0xf0]  ;;  %v2324_v58 = vld [vmem:[%s4071_s3 + $0x2d0] sm:$0xf] }
  0x56   :  { %v2397_v60 = vor.u32 %v2711_v53, %v2396_v52  ;;  %v2683_v52 = vld [vmem:[%s4071_s3 + $0x284] sm:$0xf0] }
  0x57   :  { %1355 = vmatpush.bf16.msra.mxu2 %v2117_v0  ;;  %1368 = vmatpush.bf16.msra.mxu3 %v2181_v2  ;;  %v2388_v0 = vld [vmem:[%s4071_s3 + $0x350] sm:$0xf]  ;;  %v2325_v2 = vor.u32 %v2693_v59, %v2324_v58  ;;  %v2717_v58 = vld [vmem:[%s4071_s3 + $0x394] sm:$0xf0] }
  0x58   :  { %v2421_v59 = vor.u32 %v2717_v58, %v2420_v56 }
  0x59   :  { %1330 = vmatpush.bf16.msra.mxu0 %v1981_v1  ;;  %1343 = vmatpush.bf16.msra.mxu1 %v2045_v6  ;;  %v2709_v1 = vld [vmem:[%s4071_s3 + $0x354] sm:$0xf0]  ;;  %v2316_v6 = vld [vmem:[%s4071_s3 + $0x2c0] sm:$0xf] }
  0x5a   :  { %v2389_v8 = vor.u32 %v2709_v1, %v2388_v0  ;;  %v2715_v0 = vld [vmem:[%s4071_s3 + $0x384] sm:$0xf0] }
  0x5b   :  { %1356 = vmatpush.bf16.msra.mxu2 %v2109_v12  ;;  %1369 = vmatpush.bf16.msra.mxu3 %v2173_v15  ;;  %v2380_v12 = vld [vmem:[%s4071_s3 + $0x340] sm:$0xf]  ;;  %v2673_v15 = vld [vmem:[%s4071_s3 + $0x234] sm:$0xf0]  ;;  %v2413_v1 = vor.u32 %v2715_v0, %v2412_v63  ;;  %v2660_v63 = vld [vmem:[%s4071_s3 + $0x1d4] sm:$0xf] }
  0x5c   :  { %v2381_v20 = vor.u32 %v2707_v13, %v2380_v12  ;;  %v2245_v21 = vor.u32 %v2673_v15, %v2244_v11  ;;  %v2632_v12 = vld [vmem:[%s4071_s3 + $0xf4] sm:$0xf]  ;;  %v2086_v13 = vld [vmem:[%s4071_s3 + $0xf8] sm:$0xf0] }
  0x5d   :  { %1331 = vmatpush.bf16.msra.mxu0 %v1973_v14  ;;  %1344 = vmatpush.bf16.msra.mxu1 %v2037_v19  ;;  %v2317_v14 = vor.u32 %v2691_v7, %v2316_v6  ;;  %v2689_v19 = vld [vmem:[%s4071_s3 + $0x2b4] sm:$0xf0]  ;;  %v2198_v0 = vld [vmem:[%s4071_s3 + $0x1d8] sm:$0xf0] }
  0x5e   :  { %v2309_v23 = vor.u32 %v2689_v19, %v2308_v18 }
  0x5f   :  { %1357 = vmatpush.bf16.msra.mxu2 %v2101_v28  ;;  %1370 = vmatpush.bf16.msra.mxu3 %v2165_v30  ;;  %v2237_v28 = vor.u32 %v2671_v25, %v2236_v24  ;;  %v2372_v30 = vld [vmem:[%s4071_s3 + $0x330] sm:$0xf] }
  0x60   :  { %v2373_v33 = vor.u32 %v2705_v31, %v2372_v30  ;;  %v2150_v30 = vld [vmem:[%s4071_s3 + $0x178] sm:$0xf0]  ;;  %v2664_v31 = vld [vmem:[%s4071_s3 + $0x1f4] sm:$0xf] }
  0x61   :  { %1332 = vmatpush.bf16.msra.mxu0 %v1965_v29  ;;  %1345 = vmatpush.bf16.msra.mxu1 %v2029_v34  ;;  %v2301_v29 = vor.u32 %v2687_v27, %v2300_v26  ;;  %v2437_v34 = vor.u32 %v2721_v50, %v2436_v32  ;;  %v2630_v26 = vld [vmem:[%s4071_s3 + $0xe4] sm:$0xf]  ;;  %v2078_v27 = vld [vmem:[%s4071_s3 + $0xe8] sm:$0xf0]  ;;  %v2214_v32 = vld [vmem:[%s4071_s3 + $0x1f8] sm:$0xf0] }
  0x62   :  { %v2217_v42 = vor.u32 %v2664_v31, %v2214_v32  ;;  %v2604_v32 = vld [vmem:[%s4071_s3 + $0x14] sm:$0xf] }
  0x63   :  { %1358 = vmatpush.bf16.msra.mxu2 %v2093_v45  ;;  %1371 = vmatpush.bf16.msra.mxu3 %v2157_v46  ;;  %v2719_v45 = vld [vmem:[%s4071_s3 + $0x3a4] sm:$0xf0] }
  0x64   :  { %v2429_v46 = vor.u32 %v2719_v45, %v2428_v43  ;;  %v2628_v43 = vld [vmem:[%s4071_s3 + $0xd4] sm:$0xf]  ;;  %v2646_v45 = vld [vmem:[%s4071_s3 + $0x164] sm:$0xf] }
  0x65   :  { %1377 = vmatpush.bf16.msrb.mxu0 %v2277_v35  ;;  %1390 = vmatpush.bf16.msrb.mxu1 %v2341_v39  ;;  %v2228_v35 = vld [vmem:[%s4071_s3 + $0x210] sm:$0xf]  ;;  %v2685_v39 = vld [vmem:[%s4071_s3 + $0x294] sm:$0xf0] }
  0x66   :  { %v2229_v37 = vor.u32 %v2669_v36, %v2228_v35  ;;  %v2293_v40 = vor.u32 %v2685_v39, %v2292_v38  ;;  %v2612_v38 = vld [vmem:[%s4071_s3 + $0x54] sm:$0xf]  ;;  %v2006_v39 = vld [vmem:[%s4071_s3 + $0x58] sm:$0xf0] }
  0x67   :  { %1403 = vmatpush.bf16.msrb.mxu2 %v2405_v47  ;;  %1416 = vmatpush.bf16.msrb.mxu3 %v2469_v49  ;;  %v2220_v47 = vld [vmem:[%s4071_s3 + $0x200] sm:$0xf] }
  0x68   :  { %v2284_v49 = vld [vmem:[%s4071_s3 + $0x280] sm:$0xf] }
  0x69   :  { %1378 = vmatpush.bf16.msrb.mxu0 %v2269_v48  ;;  %1391 = vmatpush.bf16.msrb.mxu1 %v2333_v54  ;;  %v2667_v48 = vld [vmem:[%s4071_s3 + $0x204] sm:$0xf0]  ;;  %v2285_v53 = vor.u32 %v2683_v52, %v2284_v49  ;;  %v2356_v54 = vld [vmem:[%s4071_s3 + $0x310] sm:$0xf]  ;;  %v2206_v49 = vld [vmem:[%s4071_s3 + $0x1e8] sm:$0xf0] }
  0x6a   :  { %v2221_v51 = vor.u32 %v2667_v48, %v2220_v47  ;;  %v2357_v57 = vor.u32 %v2701_v55, %v2356_v54  ;;  %v2142_v47 = vld [vmem:[%s4071_s3 + $0x168] sm:$0xf0]  ;;  %v2662_v48 = vld [vmem:[%s4071_s3 + $0x1e4] sm:$0xf] }
  0x6b   :  { %1404 = vmatpush.bf16.msrb.mxu2 %v2397_v60  ;;  %1417 = vmatpush.bf16.msrb.mxu3 %v2461_v62  ;;  %v2348_v60 = vld [vmem:[%s4071_s3 + $0x300] sm:$0xf]  ;;  %v2610_v54 = vld [vmem:[%s4071_s3 + $0x44] sm:$0xf]  ;;  %v1998_v55 = vld [vmem:[%s4071_s3 + $0x48] sm:$0xf0]  ;;  %v2209_v58 = vor.u32 %v2662_v48, %v2206_v49 }
  0x6d   :  { %1379 = vmatpush.bf16.msrb.mxu0 %v2261_v61  ;;  %1392 = vmatpush.bf16.msrb.mxu1 %v2325_v2  ;;  %v2699_v61 = vld [vmem:[%s4071_s3 + $0x304] sm:$0xf0]  ;;  %v3580_v2 = vld [vmem:[%s4072_s2] sm:$0xff] }
  0x6e   :  { %v2349_v62 = vor.u32 %v2699_v61, %v2348_v60  ;;  %v95_v3 = vperm.slane %v3580_v2, 0  ;;  %v96_v4 = vperm.slane %v3580_v2, 1  ;;  %v97_v11 = vperm.slane %v3580_v2, 2  ;;  %v2062_v60 = vld [vmem:[%s4071_s3 + $0xc8] sm:$0xf0] }
  0x6f   :  { %1405 = vmatpush.bf16.msrb.mxu2 %v2389_v8  ;;  %1418 = vmatpush.bf16.msrb.mxu3 %v2453_v10  ;;  %v2616_v8 = vld [vmem:[%s4071_s3 + $0x74] sm:$0xf]  ;;  %v98_v15 = vperm.slane %v3580_v2, 3  ;;  %v100_v31 = vperm.slane %v3580_v2, 5 }
  0x70   :  { %v2644_v61 = vld [vmem:[%s4071_s3 + $0x154] sm:$0xf] }
  0x71   :  { %1380 = vmatpush.bf16.msrb.mxu0 %v2253_v9  ;;  %1393 = vmatpush.bf16.msrb.mxu1 %v2317_v14  ;;  %v2022_v9 = vld [vmem:[%s4071_s3 + $0x78] sm:$0xf0] }
  0x72   :  { %v2025_v17 = vor.u32 %v2616_v8, %v2022_v9  ;;  %v2624_v8 = vld [vmem:[%s4071_s3 + $0xb4] sm:$0xf]  ;;  %v2054_v9 = vld [vmem:[%s4071_s3 + $0xb8] sm:$0xf0] }
  0x73   :  { %1406 = vmatpush.bf16.msrb.mxu2 %v2381_v20  ;;  %1419 = vmatpush.bf16.msrb.mxu3 %v2445_v22  ;;  %v2089_v20 = vor.u32 %v2632_v12, %v2086_v13  ;;  %v2014_v22 = vld [vmem:[%s4071_s3 + $0x68] sm:$0xf0]  ;;  %v2658_v12 = vld [vmem:[%s4071_s3 + $0x1c4] sm:$0xf] }
  0x74   :  { %v2190_v13 = vld [vmem:[%s4071_s3 + $0x1c8] sm:$0xf0] }
  0x75   :  { %1381 = vmatpush.bf16.msrb.mxu0 %v2245_v21  ;;  %1394 = vmatpush.bf16.msrb.mxu1 %v2309_v23  ;;  %v2614_v21 = vld [vmem:[%s4071_s3 + $0x64] sm:$0xf] }
  0x77   :  { %1407 = vmatpush.bf16.msrb.mxu2 %v2373_v33  ;;  %1420 = vmatpush.bf16.msrb.mxu3 %v2437_v34  ;;  %v2017_v34 = vor.u32 %v2614_v21, %v2014_v22  ;;  %v2622_v21 = vld [vmem:[%s4071_s3 + $0xa4] sm:$0xf]  ;;  %v2046_v22 = vld [vmem:[%s4071_s3 + $0xa8] sm:$0xf0] }
  0x79   :  { %1382 = vmatpush.bf16.msrb.mxu0 %v2237_v28  ;;  %1395 = vmatpush.bf16.msrb.mxu1 %v2301_v29  ;;  %v2648_v28 = vld [vmem:[%s4071_s3 + $0x174] sm:$0xf] }
  0x7a   :  { %v2153_v41 = vor.u32 %v2648_v28, %v2150_v30  ;;  %v99_v30 = vperm.slane %v3580_v2, 4 }
  0x7b   :  { %1408 = vmatpush.bf16.msrb.mxu2 %v2365_v44  ;;  %1421 = vmatpush.bf16.msrb.mxu3 %v2429_v46  ;;  %v2070_v44 = vld [vmem:[%s4071_s3 + $0xd8] sm:$0xf0] }
  0x7d   :  { %1383 = vmatpush.bf16.msrb.mxu0 %v2229_v37  ;;  %1396 = vmatpush.bf16.msrb.mxu1 %v2293_v40  ;;  %v2081_v37 = vor.u32 %v2630_v26, %v2078_v27  ;;  %v2656_v26 = vld [vmem:[%s4071_s3 + $0x1b4] sm:$0xf]  ;;  %v2182_v27 = vld [vmem:[%s4071_s3 + $0x1b8] sm:$0xf0] }
  0x7f   :  { %1409 = vmatpush.bf16.msrb.mxu2 %v2357_v57  ;;  %1422 = vmatpush.bf16.msrb.mxu3 %v2421_v59  ;;  %v2145_v57 = vor.u32 %v2646_v45, %v2142_v47  ;;  %v2626_v59 = vld [vmem:[%s4071_s3 + $0xc4] sm:$0xf]  ;;  %v1966_v45 = vld [vmem:[%s4071_s3 + $0x8] sm:$0xf0] }
  0x81   :  { %1384 = vmatpush.bf16.msrb.mxu0 %v2221_v51  ;;  %1397 = vmatpush.bf16.msrb.mxu1 %v2285_v53  ;;  %v2009_v51 = vor.u32 %v2612_v38, %v2006_v39  ;;  %v2073_v53 = vor.u32 %v2628_v43, %v2070_v44  ;;  %v2110_v38 = vld [vmem:[%s4071_s3 + $0x128] sm:$0xf0]  ;;  %v2654_v39 = vld [vmem:[%s4071_s3 + $0x1a4] sm:$0xf] }
  0x82   :  { %v2602_v44 = vld [vmem:[%s4071_s3 + $0x4] sm:$0xf] }
  0x83   :  { %1410 = vmatpush.bf16.msrb.mxu2 %v2349_v62  ;;  %1423 = vmatpush.bf16.msrb.mxu3 %v2413_v1  ;;  %v2134_v62 = vld [vmem:[%s4071_s3 + $0x158] sm:$0xf0]  ;;  %v2001_v1 = vor.u32 %v2610_v54, %v1998_v55 }
  0xa1   :  { %v440_v5 = vpop.f32.mrf.mxu0  ;;  %v453_v7 = vpop.f32.mrf.mxu1 }
  0xa2   :  { %v441_v6 = vadd.f32 %v440_v5, %v95_v3  ;;  %v454_v10 = vadd.f32 %v453_v7, %v96_v4  ;;  %v2065_v3 = vor.u32 %v2626_v59, %v2062_v60  ;;  %v2608_v4 = vld [vmem:[%s4071_s3 + $0x34] sm:$0xf]  ;;  %v1990_v5 = vld [vmem:[%s4071_s3 + $0x38] sm:$0xf0]  ;;  %v2201_v7 = vor.u32 %v2660_v63, %v2198_v0 }
  0xa3   :  { %v2342_v59 = vld [vmem:[%s4071_s3 + $0x2f8] sm:$0xf0]  ;;  %v101_v0 = vperm.slane %v3580_v2, 6 }
  0xa4   :  { %v535_v14 = vmax.f32 %v441_v6, 0.0  ;;  %v536_v16 = vmax.f32 %v454_v10, 0.0  ;;  %v2137_v6 = vor.u32 %v2644_v61, %v2134_v62  ;;  %v2642_v10 = vld [vmem:[%s4071_s3 + $0x144] sm:$0xf]  ;;  %v2636_v61 = vld [vmem:[%s4071_s3 + $0x114] sm:$0xf] }
  0xa5   :  { %v2102_v62 = vld [vmem:[%s4071_s3 + $0x118] sm:$0xf0] }
  0xa6   :  { %v3598_v18 = vpack.c.bf16 %v535_v14, %v535_v14  ;;  %v3606_v23 = vpack.c.bf16 %v536_v16, %v536_v16  ;;  %v1993_v14 = vor.u32 %v2608_v4, %v1990_v5  ;;  %v2606_v16 = vld [vmem:[%s4071_s3 + $0x24] sm:$0xf]  ;;  %v2166_v4 = vld [vmem:[%s4071_s3 + $0x198] sm:$0xf0] }
  0xa8   :  { %1333 = vmatmul.bf16.vlgmr.msra.gmra.mxu0 %v3598_v18  ;;  %1346 = vmatmul.bf16.vlgmr.msra.gmra.mxu1 %v3606_v23 }
  0xa9   :  { %v479_v25 = vpop.f32.mrf.mxu3  ;;  %1429 = vmatpush.bf16.msra.mxu0 %v2025_v17  ;;  %v442_v50 = vpop.f32.mrf.mxu0  ;;  %1442 = vmatpush.bf16.msra.mxu1 %v2089_v20  ;;  %v1982_v17 = vld [vmem:[%s4071_s3 + $0x28] sm:$0xf0]  ;;  %v2193_v20 = vor.u32 %v2658_v12, %v2190_v13  ;;  %v2678_v12 = vld [vmem:[%s4071_s3 + $0x264] sm:$0xf] }
  0xaa   :  { %v466_v19 = vpop.f32.mrf.mxu2  ;;  %v480_v29 = vadd.f32 %v479_v25, %v98_v15  ;;  %v455_v36 = vpop.f32.mrf.mxu1  ;;  %v2057_v15 = vor.u32 %v2624_v8, %v2054_v9  ;;  %v2118_v25 = vld [vmem:[%s4071_s3 + $0x138] sm:$0xf0]  ;;  %v1985_v28 = vor.u32 %v2606_v16, %v1982_v17  ;;  %v2270_v13 = vld [vmem:[%s4071_s3 + $0x268] sm:$0xf0]  ;;  %v2634_v17 = vld [vmem:[%s4071_s3 + $0x104] sm:$0xf] }
  0xab   :  { %v467_v24 = vadd.f32 %v466_v19, %v97_v11  ;;  %v2126_v11 = vld [vmem:[%s4071_s3 + $0x148] sm:$0xf0]  ;;  %v2038_v36 = vld [vmem:[%s4071_s3 + $0x98] sm:$0xf0] }
  0xac   :  { %v538_v35 = vmax.f32 %v480_v29, 0.0  ;;  %v2129_v19 = vor.u32 %v2642_v10, %v2126_v11  ;;  %v2049_v29 = vor.u32 %v2622_v21, %v2046_v22  ;;  %v2105_v11 = vor.u32 %v2636_v61, %v2102_v62  ;;  %v2334_v16 = vld [vmem:[%s4071_s3 + $0x2e8] sm:$0xf0] }
  0xad   :  { %v537_v33 = vmax.f32 %v467_v24, 0.0  ;;  %1430 = vmatpush.bf16.msra.mxu0 %v2017_v34  ;;  %1443 = vmatpush.bf16.msra.mxu1 %v2081_v37  ;;  %v2640_v24 = vld [vmem:[%s4071_s3 + $0x134] sm:$0xf]  ;;  %v2185_v34 = vor.u32 %v2656_v26, %v2182_v27  ;;  %v2638_v37 = vld [vmem:[%s4071_s3 + $0x124] sm:$0xf] }
  0xae   :  { %v3645_v46 = vpack.c.bf16 %v538_v35, %v538_v35  ;;  %v2121_v50 = vor.u32 %v2640_v24, %v2118_v25  ;;  %v2620_v35 = vld [vmem:[%s4071_s3 + $0x94] sm:$0xf]  ;;  %v2113_v55 = vor.u32 %v2638_v37, %v2110_v38  ;;  %v2650_v24 = vld [vmem:[%s4071_s3 + $0x184] sm:$0xf]  ;;  %v2158_v25 = vld [vmem:[%s4071_s3 + $0x188] sm:$0xf0] }
  0xaf   :  { %v3634_v40 = vpack.c.bf16 %v537_v33, %v537_v33  ;;  %v1974_v33 = vld [vmem:[%s4071_s3 + $0x18] sm:$0xf0]  ;;  %v2041_v49 = vor.u32 %v2620_v35, %v2038_v36  ;;  %v2712_v26 = vld [vmem:[%s4071_s3 + $0x374] sm:$0xf] }
  0xb0   :  { %1372 = vmatmul.bf16.vlgmr.msra.gmra.mxu3 %v3645_v46  ;;  %v1977_v43 = vor.u32 %v2604_v32, %v1974_v33  ;;  %v2470_v32 = vld [vmem:[%s4071_s3 + $0x3f8] sm:$0xf0]  ;;  %v2692_v38 = vld [vmem:[%s4071_s3 + $0x2d4] sm:$0xf] }
  0xb1   :  { %1359 = vmatmul.bf16.vlgmr.msra.gmra.mxu2 %v3634_v40  ;;  %v481_v56 = vpop.f32.mrf.mxu3  ;;  %1468 = vmatpush.bf16.msra.mxu3 %v2217_v42  ;;  %v2262_v35 = vld [vmem:[%s4071_s3 + $0x258] sm:$0xf0] }
  0xb2   :  { %v468_v52 = vpop.f32.mrf.mxu2  ;;  %1455 = vmatpush.bf16.msra.mxu2 %v2153_v41  ;;  %1431 = vmatpush.bf16.msra.mxu0 %v2009_v51  ;;  %v2174_v41 = vld [vmem:[%s4071_s3 + $0x1a8] sm:$0xf0]  ;;  %v2618_v51 = vld [vmem:[%s4071_s3 + $0x84] sm:$0xf] }
  0xb3   :  { %1444 = vmatpush.bf16.msra.mxu1 %v2073_v53  ;;  %v2030_v52 = vld [vmem:[%s4071_s3 + $0x88] sm:$0xf0]  ;;  %v2680_v53 = vld [vmem:[%s4071_s3 + $0x274] sm:$0xf]  ;;  %v2177_v56 = vor.u32 %v2654_v39, %v2174_v41  ;;  %v2326_v39 = vld [vmem:[%s4071_s3 + $0x2d8] sm:$0xf0] }
  0xb5   :  { %1469 = vmatpush.bf16.msra.mxu3 %v2209_v58  ;;  %v2696_v58 = vld [vmem:[%s4071_s3 + $0x2f4] sm:$0xf] }
  0xb6   :  { %1456 = vmatpush.bf16.msra.mxu2 %v2145_v57  ;;  %1432 = vmatpush.bf16.msra.mxu0 %v2001_v1  ;;  %v2278_v57 = vld [vmem:[%s4071_s3 + $0x278] sm:$0xf0]  ;;  %v1969_v1 = vor.u32 %v2602_v44, %v1966_v45  ;;  %v2345_v10 = vor.u32 %v2696_v58, %v2342_v59  ;;  %v2318_v58 = vld [vmem:[%s4071_s3 + $0x2c8] sm:$0xf0] }
  0xb7   :  { %1445 = vmatpush.bf16.msra.mxu1 %v2065_v3  ;;  %v2652_v3 = vld [vmem:[%s4071_s3 + $0x194] sm:$0xf]  ;;  %v2281_v8 = vor.u32 %v2680_v53, %v2278_v57  ;;  %v2462_v53 = vld [vmem:[%s4071_s3 + $0x3e8] sm:$0xf0]  ;;  %v2690_v57 = vld [vmem:[%s4071_s3 + $0x2c4] sm:$0xf] }
  0xb9   :  { %1470 = vmatpush.bf16.msra.mxu3 %v2201_v7  ;;  %v2033_v7 = vor.u32 %v2618_v51, %v2030_v52  ;;  %v2726_v51 = vld [vmem:[%s4071_s3 + $0x3e4] sm:$0xf]  ;;  %v2329_v52 = vor.u32 %v2692_v38, %v2326_v39 }
  0xba   :  { %1457 = vmatpush.bf16.msra.mxu2 %v2137_v6  ;;  %1433 = vmatpush.bf16.msra.mxu0 %v1993_v14  ;;  %v102_v6 = vperm.slane %v3580_v2, 7  ;;  %v2694_v2 = vld [vmem:[%s4071_s3 + $0x2e4] sm:$0xf]  ;;  %v2465_v61 = vor.u32 %v2726_v51, %v2462_v53 }
  0xbb   :  { %1446 = vmatpush.bf16.msra.mxu1 %v2057_v15  ;;  %v2169_v15 = vor.u32 %v2652_v3, %v2166_v4  ;;  %v2321_v3 = vor.u32 %v2690_v57, %v2318_v58  ;;  %v2454_v4 = vld [vmem:[%s4071_s3 + $0x3d8] sm:$0xf0]  ;;  %v2718_v38 = vld [vmem:[%s4071_s3 + $0x3a4] sm:$0xf] }
  0xbc   :  { %v2698_v58 = vld [vmem:[%s4071_s3 + $0x304] sm:$0xf] }
  0xbd   :  { %1471 = vmatpush.bf16.msra.mxu3 %v2193_v20 }
  0xbe   :  { %1458 = vmatpush.bf16.msra.mxu2 %v2129_v19  ;;  %1434 = vmatpush.bf16.msra.mxu0 %v1985_v28  ;;  %v2094_v19 = vld [vmem:[%s4071_s3 + $0x108] sm:$0xf0] }
  0xbf   :  { %1447 = vmatpush.bf16.msra.mxu1 %v2049_v29  ;;  %v2273_v29 = vor.u32 %v2678_v12, %v2270_v13  ;;  %v2097_v37 = vor.u32 %v2634_v17, %v2094_v19  ;;  %v2446_v17 = vld [vmem:[%s4071_s3 + $0x3c8] sm:$0xf0]  ;;  %v2670_v19 = vld [vmem:[%s4071_s3 + $0x224] sm:$0xf] }
  0xc1   :  { %v492_v42 = vpop.f32.mrf.mxu0  ;;  %v505_v48 = vpop.f32.mrf.mxu1  ;;  %1472 = vmatpush.bf16.msra.mxu3 %v2185_v34  ;;  %v2676_v34 = vld [vmem:[%s4071_s3 + $0x254] sm:$0xf] }
  0xc2   :  { %v493_v47 = vadd.f32 %v492_v42, %v99_v30  ;;  %v506_v54 = vadd.f32 %v505_v48, %v100_v31  ;;  %1459 = vmatpush.bf16.msra.mxu2 %v2121_v50  ;;  %1435 = vmatpush.bf16.msra.mxu0 %v1977_v43  ;;  %v2406_v30 = vld [vmem:[%s4071_s3 + $0x378] sm:$0xf0]  ;;  %v2728_v31 = vld [vmem:[%s4071_s3 + $0x3f4] sm:$0xf]  ;;  %v2337_v50 = vor.u32 %v2694_v2, %v2334_v16  ;;  %v2710_v48 = vld [vmem:[%s4071_s3 + $0x364] sm:$0xf] }
  0xc3   :  { %1448 = vmatpush.bf16.msra.mxu1 %v2041_v49  ;;  %v2161_v42 = vor.u32 %v2650_v24, %v2158_v25  ;;  %v2409_v43 = vor.u32 %v2712_v26, %v2406_v30  ;;  %v2473_v45 = vor.u32 %v2728_v31, %v2470_v32  ;;  %v2398_v49 = vld [vmem:[%s4071_s3 + $0x368] sm:$0xf0]  ;;  %v2706_v2 = vld [vmem:[%s4071_s3 + $0x344] sm:$0xf]  ;;  %v2668_v30 = vld [vmem:[%s4071_s3 + $0x214] sm:$0xf] }
  0xc4   :  { %v539_v60 = vmax.f32 %v493_v47, 0.0  ;;  %v540_v63 = vmax.f32 %v506_v54, 0.0  ;;  %v2265_v47 = vor.u32 %v2676_v34, %v2262_v35  ;;  %v2674_v54 = vld [vmem:[%s4071_s3 + $0x244] sm:$0xf]  ;;  %v2230_v31 = vld [vmem:[%s4071_s3 + $0x218] sm:$0xf0] }
  0xc5   :  { %1473 = vmatpush.bf16.msra.mxu3 %v2177_v56  ;;  %v2684_v32 = vld [vmem:[%s4071_s3 + $0x294] sm:$0xf]  ;;  %v2233_v35 = vor.u32 %v2668_v30, %v2230_v31 }
  0xc6   :  { %v3793_v5 = vpack.c.bf16 %v539_v60, %v539_v60  ;;  %v3796_v9 = vpack.c.bf16 %v540_v63, %v540_v63  ;;  %1460 = vmatpush.bf16.msra.mxu2 %v2113_v55  ;;  %1436 = vmatpush.bf16.msra.mxu0 %v1969_v1  ;;  %v2254_v55 = vld [vmem:[%s4071_s3 + $0x248] sm:$0xf0]  ;;  %v2401_v60 = vor.u32 %v2710_v48, %v2398_v49  ;;  %v2708_v63 = vld [vmem:[%s4071_s3 + $0x354] sm:$0xf] }
  0xc7   :  { %1449 = vmatpush.bf16.msra.mxu1 %v2033_v7  ;;  %v2257_v62 = vor.u32 %v2674_v54, %v2254_v55  ;;  %v2724_v1 = vld [vmem:[%s4071_s3 + $0x3d4] sm:$0xf]  ;;  %v2246_v7 = vld [vmem:[%s4071_s3 + $0x238] sm:$0xf0] }
  0xc8   :  { %1385 = vmatmul.bf16.vlgmr.msrb.gmra.mxu0 %v3793_v5  ;;  %1398 = vmatmul.bf16.vlgmr.msrb.gmra.mxu1 %v3796_v9  ;;  %v2457_v12 = vor.u32 %v2724_v1, %v2454_v4  ;;  %v2716_v54 = vld [vmem:[%s4071_s3 + $0x394] sm:$0xf]  ;;  %v2422_v55 = vld [vmem:[%s4071_s3 + $0x398] sm:$0xf0] }
  0xc9   :  { %v518_v14 = vpop.f32.mrf.mxu2  ;;  %v531_v21 = vpop.f32.mrf.mxu3  ;;  %1474 = vmatpush.bf16.msra.mxu3 %v2169_v15  ;;  %v2722_v15 = vld [vmem:[%s4071_s3 + $0x3c4] sm:$0xf]  ;;  %v2425_v57 = vor.u32 %v2716_v54, %v2422_v55 }
  0xca   :  { %v519_v20 = vadd.f32 %v518_v14, %v101_v0  ;;  %v494_v22 = vpop.f32.mrf.mxu0  ;;  %v532_v27 = vadd.f32 %v531_v21, %v102_v6  ;;  %1481 = vmatpush.bf16.msrb.mxu0 %v2281_v8  ;;  %v507_v28 = vpop.f32.mrf.mxu1  ;;  %1461 = vmatpush.bf16.msra.mxu2 %v2105_v11  ;;  %v2390_v0 = vld [vmem:[%s4071_s3 + $0x358] sm:$0xf0]  ;;  %v2672_v6 = vld [vmem:[%s4071_s3 + $0x234] sm:$0xf]  ;;  %v2382_v14 = vld [vmem:[%s4071_s3 + $0x348] sm:$0xf0]  ;;  %v2449_v25 = vor.u32 %v2722_v15, %v2446_v17 }
  0xcb   :  { %1494 = vmatpush.bf16.msrb.mxu1 %v2345_v10  ;;  %v2688_v8 = vld [vmem:[%s4071_s3 + $0x2b4] sm:$0xf]  ;;  %v2310_v10 = vld [vmem:[%s4071_s3 + $0x2b8] sm:$0xf0]  ;;  %v2393_v11 = vor.u32 %v2708_v63, %v2390_v0  ;;  %v2249_v13 = vor.u32 %v2672_v6, %v2246_v7  ;;  %v2686_v21 = vld [vmem:[%s4071_s3 + $0x2a4] sm:$0xf]  ;;  %v2385_v24 = vor.u32 %v2706_v2, %v2382_v14 }
  0xcc   :  { %v541_v33 = vmax.f32 %v519_v20, 0.0  ;;  %v542_v36 = vmax.f32 %v532_v27, 0.0  ;;  %v2313_v16 = vor.u32 %v2688_v8, %v2310_v10  ;;  %v2238_v20 = vld [vmem:[%s4071_s3 + $0x228] sm:$0xf0]  ;;  %v2374_v27 = vld [vmem:[%s4071_s3 + $0x338] sm:$0xf0] }
  0xcd   :  { %1475 = vmatpush.bf16.msra.mxu3 %v2161_v42  ;;  %v2302_v22 = vld [vmem:[%s4071_s3 + $0x2a8] sm:$0xf0]  ;;  %v2241_v26 = vor.u32 %v2670_v19, %v2238_v20  ;;  %v2720_v28 = vld [vmem:[%s4071_s3 + $0x3b4] sm:$0xf]  ;;  %v2737_v0 = vld [vmem:[%s4074_s5 + $0x38] sm:$0xff] }
  0xce   :  { %v3848_v41 = vpack.c.bf16 %v541_v33, %v541_v33  ;;  %v3850_v44 = vpack.c.bf16 %v542_v36, %v542_v36  ;;  %1482 = vmatpush.bf16.msrb.mxu0 %v2273_v29  ;;  %1462 = vmatpush.bf16.msra.mxu2 %v2097_v37  ;;  %v2305_v29 = vor.u32 %v2686_v21, %v2302_v22  ;;  %v2294_v33 = vld [vmem:[%s4071_s3 + $0x298] sm:$0xf0]  ;;  %v2702_v36 = vld [vmem:[%s4071_s3 + $0x324] sm:$0xf]  ;;  %v2366_v37 = vld [vmem:[%s4071_s3 + $0x328] sm:$0xf0] }
  0xcf   :  { %1495 = vmatpush.bf16.msrb.mxu1 %v2337_v50  ;;  %v2297_v39 = vor.u32 %v2684_v32, %v2294_v33  ;;  %v2430_v42 = vld [vmem:[%s4071_s3 + $0x3a8] sm:$0xf0]  ;;  %v2369_v48 = vor.u32 %v2702_v36, %v2366_v37  ;;  %v2732_v10 = vld [vmem:[%s4074_s5 + $0x10] sm:$0xff]  ;;  %v2730_v15 = vld [vmem:[%s4074_s5] sm:$0xff] }
  0xd0   :  { %1411 = vmatmul.bf16.vlgmr.msrb.gmra.mxu2 %v3848_v41  ;;  %1424 = vmatmul.bf16.vlgmr.msrb.gmra.mxu3 %v3850_v44  ;;  %v2433_v49 = vor.u32 %v2718_v38, %v2430_v42  ;;  %v2745_v17 = vld [vmem:[%s4074_s5 + $0x78] sm:$0xff]  ;;  %v2744_v21 = vld [vmem:[%s4074_s5 + $0x70] sm:$0xff]  ;;  %v2739_v37 = vld [vmem:[%s4074_s5 + $0x48] sm:$0xff] }
  0xd1   :  { %v520_v56 = vpop.f32.mrf.mxu2  ;;  %v533_v59 = vpop.f32.mrf.mxu3  ;;  %1520 = vmatpush.bf16.msrb.mxu3 %v2473_v45  ;;  %v2222_v45 = vld [vmem:[%s4071_s3 + $0x208] sm:$0xf0] }
  0xd2   :  { %1507 = vmatpush.bf16.msrb.mxu2 %v2409_v43  ;;  %1483 = vmatpush.bf16.msrb.mxu0 %v2265_v47  ;;  %v2666_v43 = vld [vmem:[%s4071_s3 + $0x204] sm:$0xf]  ;;  %v2350_v59 = vld [vmem:[%s4071_s3 + $0x308] sm:$0xf0] }
  0xd3   :  { %1496 = vmatpush.bf16.msrb.mxu1 %v2329_v52  ;;  %v2682_v47 = vld [vmem:[%s4071_s3 + $0x284] sm:$0xf]  ;;  %v2225_v51 = vor.u32 %v2666_v43, %v2222_v45  ;;  %v2700_v52 = vld [vmem:[%s4071_s3 + $0x314] sm:$0xf] }
  0xd5   :  { %1521 = vmatpush.bf16.msrb.mxu3 %v2465_v61  ;;  %v2414_v61 = vld [vmem:[%s4071_s3 + $0x388] sm:$0xf0] }
  0xd6   :  { %1508 = vmatpush.bf16.msrb.mxu2 %v2401_v60  ;;  %1484 = vmatpush.bf16.msrb.mxu0 %v2257_v62  ;;  %v2714_v60 = vld [vmem:[%s4071_s3 + $0x384] sm:$0xf]  ;;  %v2353_v62 = vor.u32 %v2698_v58, %v2350_v59 }
  0xd7   :  { %1497 = vmatpush.bf16.msrb.mxu1 %v2321_v3  ;;  %v2417_v63 = vor.u32 %v2714_v60, %v2414_v61 }
  0xd8   :  { %1437 = vmatmul.bf16.vlgmr.msra.gmra.mxu0 %v3598_v18  ;;  %1450 = vmatmul.bf16.vlgmr.msra.gmra.mxu1 %v3606_v23  ;;  %v2704_v18 = vld [vmem:[%s4071_s3 + $0x334] sm:$0xf]  ;;  %v2438_v23 = vld [vmem:[%s4071_s3 + $0x3b8] sm:$0xf0] }
  0xd9   :  { %1522 = vmatpush.bf16.msrb.mxu3 %v2457_v12  ;;  %v2377_v50 = vor.u32 %v2704_v18, %v2374_v27  ;;  %v2441_v34 = vor.u32 %v2720_v28, %v2438_v23  ;;  %v2731_v12 = vld [vmem:[%s4074_s5 + $0x8] sm:$0xff]  ;;  %v2742_v18 = vld [vmem:[%s4074_s5 + $0x60] sm:$0xff]  ;;  %v2741_v23 = vld [vmem:[%s4074_s5 + $0x58] sm:$0xff] }
  0xda   :  { %1509 = vmatpush.bf16.msrb.mxu2 %v2393_v11  ;;  %1485 = vmatpush.bf16.msrb.mxu0 %v2249_v13  ;;  %v679_v11 = vld [vmem:[%s4075_s4] sm:$0x3] }
  0xdb   :  { %1498 = vmatpush.bf16.msrb.mxu1 %v2313_v16  ;;  %v681_v13 = vperm.slane %v679_v11, 0  ;;  %v682_v42 = vperm.slane %v679_v11, 1 }
  0xdd   :  { %1523 = vmatpush.bf16.msrb.mxu3 %v2449_v25  ;;  %v2743_v25 = vld [vmem:[%s4074_s5 + $0x68] sm:$0xff] }
  0xde   :  { %1510 = vmatpush.bf16.msrb.mxu2 %v2385_v24  ;;  %1486 = vmatpush.bf16.msrb.mxu0 %v2241_v26 }
  0xdf   :  { %1499 = vmatpush.bf16.msrb.mxu1 %v2305_v29 }
  0xe0   :  { %1463 = vmatmul.bf16.vlgmr.msra.gmra.mxu2 %v3634_v40  ;;  %1476 = vmatmul.bf16.vlgmr.msra.gmra.mxu3 %v3645_v46  ;;  %v2286_v40 = vld [vmem:[%s4071_s3 + $0x288] sm:$0xf0]  ;;  %v2358_v46 = vld [vmem:[%s4071_s3 + $0x318] sm:$0xf0] }
  0xe1   :  { %1524 = vmatpush.bf16.msrb.mxu3 %v2441_v34  ;;  %v2289_v53 = vor.u32 %v2682_v47, %v2286_v40  ;;  %v2361_v56 = vor.u32 %v2700_v52, %v2358_v46  ;;  %v2738_v47 = vld [vmem:[%s4074_s5 + $0x40] sm:$0xff] }
  0xe2   :  { %1511 = vmatpush.bf16.msrb.mxu2 %v2377_v50  ;;  %1487 = vmatpush.bf16.msrb.mxu0 %v2233_v35  ;;  %v2740_v35 = vld [vmem:[%s4074_s5 + $0x50] sm:$0xff] }
  0xe3   :  { %1500 = vmatpush.bf16.msrb.mxu1 %v2297_v39 }
  0xe5   :  { %1525 = vmatpush.bf16.msrb.mxu3 %v2433_v49 }
  0xe6   :  { %1512 = vmatpush.bf16.msrb.mxu2 %v2369_v48  ;;  %1488 = vmatpush.bf16.msrb.mxu0 %v2225_v51 }
  0xe7   :  { %1501 = vmatpush.bf16.msrb.mxu1 %v2289_v53 }
  0xe9   :  { %1489 = vmatmul.bf16.vlgmr.msrb.gmra.mxu0 %v3793_v5  ;;  %1526 = vmatpush.bf16.msrb.mxu3 %v2425_v57  ;;  %v2736_v5 = vld [vmem:[%s4074_s5 + $0x30] sm:$0xff] }
  0xea   :  { %1513 = vmatpush.bf16.msrb.mxu2 %v2361_v56  ;;  %1502 = vmatmul.bf16.vlgmr.msrb.gmra.mxu1 %v3796_v9  ;;  %v2735_v9 = vld [vmem:[%s4074_s5 + $0x28] sm:$0xff] }
  0xeb   :  { %1671 = vmatpush.bf16.msra.mxu0 %v2737_v0  ;;  %1684 = vmatpush.bf16.msra.mxu1 %v2745_v17 }
  0xed   :  { %1527 = vmatpush.bf16.msrb.mxu3 %v2417_v63 }
  0xee   :  { %1514 = vmatpush.bf16.msrb.mxu2 %v2353_v62 }
  0xef   :  { %1672 = vmatpush.bf16.msra.mxu0 %v2736_v5  ;;  %1685 = vmatpush.bf16.msra.mxu1 %v2744_v21 }
  0xf0   :  { %1528 = vmatmul.bf16.vlgmr.msrb.gmra.mxu3 %v3850_v44  ;;  %v2733_v44 = vld [vmem:[%s4074_s5 + $0x18] sm:$0xff] }
  0xf1   :  { %1515 = vmatmul.bf16.vlgmr.msrb.gmra.mxu2 %v3848_v41  ;;  %v2734_v41 = vld [vmem:[%s4074_s5 + $0x20] sm:$0xff] }
  0xf3   :  { %1673 = vmatpush.bf16.msra.mxu0 %v2735_v9  ;;  %1686 = vmatpush.bf16.msra.mxu1 %v2743_v25 }
  0xf7   :  { %1674 = vmatpush.bf16.msra.mxu0 %v2734_v41  ;;  %1687 = vmatpush.bf16.msra.mxu1 %v2742_v18 }
  0xfb   :  { %1675 = vmatpush.bf16.msra.mxu0 %v2733_v44  ;;  %1688 = vmatpush.bf16.msra.mxu1 %v2741_v23 }
  0xff   :  { %1676 = vmatpush.bf16.msra.mxu0 %v2732_v10  ;;  %1689 = vmatpush.bf16.msra.mxu1 %v2740_v35 }
 0x103   :  { %1677 = vmatpush.bf16.msra.mxu0 %v2731_v12  ;;  %1690 = vmatpush.bf16.msra.mxu1 %v2739_v37 }
 0x107   :  { %1678 = vmatpush.bf16.msra.mxu0 %v2730_v15  ;;  %1691 = vmatpush.bf16.msra.mxu1 %v2738_v47 }
 0x125   :  { %v1334_v1 = vpop.f32.mrf.mxu0  ;;  %v1347_v3 = vpop.f32.mrf.mxu1 }
 0x126   :  { %v1335_v16 = vadd.f32 %v1334_v1, %v681_v13 }
 0x128   :  { %v1348_v19 = vadd.f32 %v1347_v3, %v1335_v16 }
 0x12d   :  { %v1336_v4 = vpop.f32.mrf.mxu0  ;;  %v1349_v6 = vpop.f32.mrf.mxu1 }
 0x133   :  { %v1373_v8 = vpop.f32.mrf.mxu3 }
 0x134   :  { %v1360_v7 = vpop.f32.mrf.mxu2 }
 0x135   :  { %v1361_v24 = vadd.f32 %v1360_v7, %v1348_v19  ;;  %v2746_v7 = vld [vmem:[%s4073_s6] ss:$0 sm:$0xff] }
 0x137   :  { %v1374_v26 = vadd.f32 %v1373_v8, %v1361_v24 }
 0x13b   :  { %v1375_v14 = vpop.f32.mrf.mxu3 }
 0x13c   :  { %v1362_v2 = vpop.f32.mrf.mxu2 }
 0x145   :  { %v1386_v20 = vpop.f32.mrf.mxu0  ;;  %v1399_v22 = vpop.f32.mrf.mxu1 }
 0x146   :  { %v1387_v27 = vadd.f32 %v1386_v20, %v1374_v26 }
 0x148   :  { %v1400_v30 = vadd.f32 %v1399_v22, %v1387_v27 }
 0x14d   :  { %v1388_v28 = vpop.f32.mrf.mxu0  ;;  %v1401_v29 = vpop.f32.mrf.mxu1 }
 0x153   :  { %v1412_v31 = vpop.f32.mrf.mxu2  ;;  %v1425_v33 = vpop.f32.mrf.mxu3 }
 0x154   :  { %v1413_v32 = vadd.f32 %v1412_v31, %v1400_v30 }
 0x155   :  { %v1438_v34 = vpop.f32.mrf.mxu0  ;;  %v1451_v36 = vpop.f32.mrf.mxu1 }
 0x156   :  { %v1426_v50 = vadd.f32 %v1425_v33, %v1413_v32  ;;  %v1439_v49 = vadd.f32 %v1438_v34, %v682_v42 }
 0x158   :  { %2747 = vtanh.f32 %v1426_v50  ;;  %v1452_v46 = vadd.f32 %v1451_v36, %v1439_v49 }
 0x15b   :  { %v1414_v38 = vpop.f32.mrf.mxu2  ;;  %v1427_v39 = vpop.f32.mrf.mxu3 }
 0x15d   :  { %v1440_v45 = vpop.f32.mrf.mxu0  ;;  %v1453_v40 = vpop.f32.mrf.mxu1 }
 0x15e   :  { %v2748_v43 = vpop.eup %2747 }
 0x15f   :  { %1569 = vst [vmem:[%s4076_s7] sm:$0xff] %v2748_v43  ;;  %v1535_v48 = vpack.c.bf16 %v2748_v43, %v2748_v43 }
 0x161   :  { %1679 = vmatmul.bf16.vlgmr.msra.gmra.mxu0 %v1535_v48 }
 0x163   :  { %v1464_v51 = vpop.f32.mrf.mxu2  ;;  %v1477_v52 = vpop.f32.mrf.mxu3 }
 0x164   :  { %v1465_v53 = vadd.f32 %v1464_v51, %v1452_v46 }
 0x166   :  { %v1490_v54 = vpop.f32.mrf.mxu0  ;;  %v1478_v56 = vadd.f32 %v1477_v52, %v1465_v53 }
 0x167   :  { %v1503_v55 = vpop.f32.mrf.mxu1 }
 0x168   :  { %v1491_v59 = vadd.f32 %v1490_v54, %v1478_v56 }
 0x16a   :  { %v1504_v62 = vadd.f32 %v1503_v55, %v1491_v59 }
 0x16b   :  { %v1466_v57 = vpop.f32.mrf.mxu2  ;;  %v1479_v58 = vpop.f32.mrf.mxu3 }
 0x16e   :  { %v1492_v60 = vpop.f32.mrf.mxu0 }
 0x16f   :  { %v1505_v61 = vpop.f32.mrf.mxu1 }
 0x173   :  { %v1529_v5 = vpop.f32.mrf.mxu3 }
 0x174   :  { %v1516_v63 = vpop.f32.mrf.mxu2 }
 0x175   :  { %v1517_v0 = vadd.f32 %v1516_v63, %v1504_v62 }
 0x177   :  { %v1530_v9 = vadd.f32 %v1529_v5, %v1517_v0 }
 0x179   :  { %2749 = vtanh.f32 %v1530_v9 }
 0x17b   :  { %v1531_v3 = vpop.f32.mrf.mxu3 }
 0x17c   :  { %v1518_v1 = vpop.f32.mrf.mxu2 }
 0x17f   :  { %v2750_v41 = vpop.eup %2749 }
 0x180   :  { %1570 = vst [vmem:[%s4076_s7 + $0x8] sm:$0xff] %v2750_v41  ;;  %v1536_v44 = vpack.c.bf16 %v2750_v41, %v2750_v41 }
 0x182   :  { %1692 = vmatmul.bf16.vlgmr.msra.gmra.mxu1 %v1536_v44 }
 0x1de   :  { %v1680_v4 = vpop.f32.mrf.mxu0 }
 0x1df   :  { %v1681_v8 = vadd.f32 %v2746_v7, %v1680_v4 }
 0x1e6   :  { %v1682_v6 = vpop.f32.mrf.mxu0 }
 0x1ff   :  { %v1693_v10 = vpop.f32.mrf.mxu1 }
 0x200   :  { %v1694_v11 = vadd.f32 %v1693_v10, %v1681_v8 }
 0x202   :  { %1697 = vst [vmem:[%s4077_s8] sm:$0xff] %v1694_v11 }
 0x207   :  { %v1695_v12 = vpop.f32.mrf.mxu1 }

// kernel: custom_resnet4_forward.10
= control target key start
LH: loop header
LB: loop body
LE: loop exit
PB: predicated region body
PF: predicated region fallthrough
CT: control target
= control target key end

     0   :  { %s1375_s1 = inlined_call_operand.vmem [shape: bf16[1152,128], index: 1, kind: input, shape index: {}]   ;;  %s1376_s2 = inlined_call_operand.vmem [shape: f32[1,128], index: 2, kind: input, shape index: {}]   ;;  %s1377_s0 = inlined_call_operand.vmem [shape: bf16[8,1152], index: 0, kind: input, shape index: {}]   ;;  %s1378_s3 = inlined_call_operand.vmem [shape: bf16[8,128], index: 3, kind: output, shape index: {}]  }
   0x1   :  { %v1050_v0 = vld [vmem:[%s1375_s1 + $0x38] sm:$0xff]  ;;  %v1049_v4 = vld [vmem:[%s1375_s1 + $0x30] sm:$0xff]  ;;  %v1048_v8 = vld [vmem:[%s1375_s1 + $0x28] sm:$0xff] }
   0x2   :  { %v1066_v1 = vld [vmem:[%s1375_s1 + $0xb8] sm:$0xff]  ;;  %631 = vmatpush.bf16.msra.mxu0 %v1050_v0  ;;  %v1065_v5 = vld [vmem:[%s1375_s1 + $0xb0] sm:$0xff]  ;;  %v1064_v9 = vld [vmem:[%s1375_s1 + $0xa8] sm:$0xff] }
   0x3   :  { %v1074_v2 = vld [vmem:[%s1375_s1 + $0xf8] sm:$0xff]  ;;  %657 = vmatpush.bf16.msra.mxu2 %v1066_v1  ;;  %v1073_v6 = vld [vmem:[%s1375_s1 + $0xf0] sm:$0xff]  ;;  %v1072_v10 = vld [vmem:[%s1375_s1 + $0xe8] sm:$0xff] }
   0x4   :  { %v1058_v3 = vld [vmem:[%s1375_s1 + $0x78] sm:$0xff]  ;;  %670 = vmatpush.bf16.msra.mxu3 %v1074_v2  ;;  %v1057_v7 = vld [vmem:[%s1375_s1 + $0x70] sm:$0xff]  ;;  %v1056_v11 = vld [vmem:[%s1375_s1 + $0x68] sm:$0xff] }
   0x5   :  { %644 = vmatpush.bf16.msra.mxu1 %v1058_v3  ;;  %v1047_v12 = vld [vmem:[%s1375_s1 + $0x20] sm:$0xff]  ;;  %v1046_v16 = vld [vmem:[%s1375_s1 + $0x18] sm:$0xff]  ;;  %v1045_v20 = vld [vmem:[%s1375_s1 + $0x10] sm:$0xff] }
   0x6   :  { %632 = vmatpush.bf16.msra.mxu0 %v1049_v4  ;;  %v1063_v13 = vld [vmem:[%s1375_s1 + $0xa0] sm:$0xff]  ;;  %v1062_v17 = vld [vmem:[%s1375_s1 + $0x98] sm:$0xff]  ;;  %v1061_v21 = vld [vmem:[%s1375_s1 + $0x90] sm:$0xff] }
   0x7   :  { %658 = vmatpush.bf16.msra.mxu2 %v1065_v5  ;;  %v1071_v14 = vld [vmem:[%s1375_s1 + $0xe0] sm:$0xff]  ;;  %v1070_v18 = vld [vmem:[%s1375_s1 + $0xd8] sm:$0xff]  ;;  %v1069_v22 = vld [vmem:[%s1375_s1 + $0xd0] sm:$0xff] }
   0x8   :  { %671 = vmatpush.bf16.msra.mxu3 %v1073_v6  ;;  %v1055_v15 = vld [vmem:[%s1375_s1 + $0x60] sm:$0xff]  ;;  %v1054_v19 = vld [vmem:[%s1375_s1 + $0x58] sm:$0xff]  ;;  %v1053_v23 = vld [vmem:[%s1375_s1 + $0x50] sm:$0xff] }
   0x9   :  { %645 = vmatpush.bf16.msra.mxu1 %v1057_v7  ;;  %v1044_v24 = vld [vmem:[%s1375_s1 + $0x8] sm:$0xff]  ;;  %v14_v29 = vld [vmem:[%s1377_s0] sm:$0xff]  ;;  %v1082_v34 = vld [vmem:[%s1375_s1 + $0x138] sm:$0xff] }
   0xa   :  { %633 = vmatpush.bf16.msra.mxu0 %v1048_v8  ;;  %v1060_v25 = vld [vmem:[%s1375_s1 + $0x88] sm:$0xff]  ;;  %v1043_v30 = vld [vmem:[%s1375_s1] sm:$0xff]  ;;  %v172_v33 = vunpack.c.l.b16 %v14_v29  ;;  %v1098_v35 = vld [vmem:[%s1375_s1 + $0x1b8] sm:$0xff]  ;;  %v173_v39 = vunpack.c.h.b16 %v14_v29 }
   0xb   :  { %659 = vmatpush.bf16.msra.mxu2 %v1064_v9  ;;  %v1068_v26 = vld [vmem:[%s1375_s1 + $0xc8] sm:$0xff]  ;;  %v1059_v31 = vld [vmem:[%s1375_s1 + $0x80] sm:$0xff]  ;;  %v1106_v40 = vld [vmem:[%s1375_s1 + $0x1f8] sm:$0xff] }
   0xc   :  { %672 = vmatpush.bf16.msra.mxu3 %v1072_v10  ;;  %v1052_v27 = vld [vmem:[%s1375_s1 + $0x48] sm:$0xff]  ;;  %v1067_v36 = vld [vmem:[%s1375_s1 + $0xc0] sm:$0xff]  ;;  %v1090_v41 = vld [vmem:[%s1375_s1 + $0x178] sm:$0xff]  ;;  %v181_v43 = vpack.c.b16 %v172_v33, %v172_v33  ;;  %v182_v47 = vpack.c.b16 %v173_v39, %v173_v39 }
   0xd   :  { %646 = vmatpush.bf16.msra.mxu1 %v1056_v11  ;;  %v15_v28 = vld [vmem:[%s1377_s0 + $0x8] sm:$0xff]  ;;  %v1051_v37 = vld [vmem:[%s1375_s1 + $0x40] sm:$0xff]  ;;  %v1081_v44 = vld [vmem:[%s1375_s1 + $0x130] sm:$0xff] }
   0xe   :  { %634 = vmatpush.bf16.msra.mxu0 %v1047_v12  ;;  %v174_v32 = vunpack.c.l.b16 %v15_v28  ;;  %v175_v38 = vunpack.c.h.b16 %v15_v28  ;;  %v1097_v45 = vld [vmem:[%s1375_s1 + $0x1b0] sm:$0xff]  ;;  %v1080_v50 = vld [vmem:[%s1375_s1 + $0x128] sm:$0xff]  ;;  %v1079_v54 = vld [vmem:[%s1375_s1 + $0x120] sm:$0xff] }
   0xf   :  { %660 = vmatpush.bf16.msra.mxu2 %v1063_v13  ;;  %v1105_v48 = vld [vmem:[%s1375_s1 + $0x1f0] sm:$0xff]  ;;  %v1096_v51 = vld [vmem:[%s1375_s1 + $0x1a8] sm:$0xff]  ;;  %v1095_v55 = vld [vmem:[%s1375_s1 + $0x1a0] sm:$0xff] }
  0x10   :  { %673 = vmatpush.bf16.msra.mxu3 %v1071_v14  ;;  %v183_v42 = vpack.c.b16 %v174_v32, %v174_v32  ;;  %v184_v46 = vpack.c.b16 %v175_v38, %v175_v38  ;;  %v1089_v49 = vld [vmem:[%s1375_s1 + $0x170] sm:$0xff]  ;;  %v1104_v52 = vld [vmem:[%s1375_s1 + $0x1e8] sm:$0xff]  ;;  %v1103_v56 = vld [vmem:[%s1375_s1 + $0x1e0] sm:$0xff] }
  0x11   :  { %647 = vmatpush.bf16.msra.mxu1 %v1055_v15  ;;  %v1088_v53 = vld [vmem:[%s1375_s1 + $0x168] sm:$0xff]  ;;  %v1087_v57 = vld [vmem:[%s1375_s1 + $0x160] sm:$0xff]  ;;  %v1078_v58 = vld [vmem:[%s1375_s1 + $0x118] sm:$0xff] }
  0x12   :  { %635 = vmatpush.bf16.msra.mxu0 %v1046_v16  ;;  %v1094_v59 = vld [vmem:[%s1375_s1 + $0x198] sm:$0xff]  ;;  %v1077_v62 = vld [vmem:[%s1375_s1 + $0x110] sm:$0xff]  ;;  %v1076_v2 = vld [vmem:[%s1375_s1 + $0x108] sm:$0xff] }
  0x13   :  { %661 = vmatpush.bf16.msra.mxu2 %v1062_v17  ;;  %v1102_v60 = vld [vmem:[%s1375_s1 + $0x1d8] sm:$0xff]  ;;  %v1093_v63 = vld [vmem:[%s1375_s1 + $0x190] sm:$0xff]  ;;  %v1092_v3 = vld [vmem:[%s1375_s1 + $0x188] sm:$0xff] }
  0x14   :  { %674 = vmatpush.bf16.msra.mxu3 %v1070_v18  ;;  %v1086_v61 = vld [vmem:[%s1375_s1 + $0x158] sm:$0xff]  ;;  %v1101_v0 = vld [vmem:[%s1375_s1 + $0x1d0] sm:$0xff]  ;;  %v1100_v6 = vld [vmem:[%s1375_s1 + $0x1c8] sm:$0xff] }
  0x15   :  { %648 = vmatpush.bf16.msra.mxu1 %v1054_v19  ;;  %v1085_v1 = vld [vmem:[%s1375_s1 + $0x150] sm:$0xff]  ;;  %v17_v4 = vld [vmem:[%s1377_s0 + $0x18] sm:$0xff]  ;;  %v1084_v7 = vld [vmem:[%s1375_s1 + $0x148] sm:$0xff] }
  0x16   :  { %636 = vmatpush.bf16.msra.mxu0 %v1045_v20  ;;  %v16_v5 = vld [vmem:[%s1377_s0 + $0x10] sm:$0xff]  ;;  %v178_v8 = vunpack.c.l.b16 %v17_v4  ;;  %v1075_v10 = vld [vmem:[%s1375_s1 + $0x100] sm:$0xff]  ;;  %v1114_v12 = vld [vmem:[%s1375_s1 + $0x238] sm:$0xff]  ;;  %v179_v13 = vunpack.c.h.b16 %v17_v4 }
  0x17   :  { %662 = vmatpush.bf16.msra.mxu2 %v1061_v21  ;;  %v176_v9 = vunpack.c.l.b16 %v16_v5  ;;  %v1091_v11 = vld [vmem:[%s1375_s1 + $0x180] sm:$0xff]  ;;  %v177_v16 = vunpack.c.h.b16 %v16_v5  ;;  %v1113_v19 = vld [vmem:[%s1375_s1 + $0x230] sm:$0xff] }
  0x18   :  { %675 = vmatpush.bf16.msra.mxu3 %v1069_v22  ;;  %v1099_v14 = vld [vmem:[%s1375_s1 + $0x1c0] sm:$0xff]  ;;  %v187_v17 = vpack.c.b16 %v178_v8, %v178_v8  ;;  %v188_v20 = vpack.c.b16 %v179_v13, %v179_v13  ;;  %v1112_v22 = vld [vmem:[%s1375_s1 + $0x228] sm:$0xff] }
  0x19   :  { %649 = vmatpush.bf16.msra.mxu1 %v1053_v23  ;;  %v1083_v15 = vld [vmem:[%s1375_s1 + $0x140] sm:$0xff]  ;;  %v185_v18 = vpack.c.b16 %v176_v9, %v176_v9  ;;  %v186_v21 = vpack.c.b16 %v177_v16, %v177_v16 }
  0x1a   :  { %637 = vmatpush.bf16.msra.mxu0 %v1044_v24  ;;  %v1111_v23 = vld [vmem:[%s1375_s1 + $0x220] sm:$0xff]  ;;  %v1110_v24 = vld [vmem:[%s1375_s1 + $0x218] sm:$0xff] }
  0x1b   :  { %663 = vmatpush.bf16.msra.mxu2 %v1060_v25  ;;  %v1109_v25 = vld [vmem:[%s1375_s1 + $0x210] sm:$0xff]  ;;  %v1107_v29 = vld [vmem:[%s1375_s1 + $0x200] sm:$0xff] }
  0x1c   :  { %676 = vmatpush.bf16.msra.mxu3 %v1068_v26  ;;  %v1108_v26 = vld [vmem:[%s1375_s1 + $0x208] sm:$0xff]  ;;  %v1115_v39 = vld [vmem:[%s1376_s2] ss:$0 sm:$0xff] }
  0x1d   :  { %650 = vmatpush.bf16.msra.mxu1 %v1052_v27  ;;  %v18_v27 = vld [vmem:[%s1377_s0 + $0x20] sm:$0xf] }
  0x1e   :  { %638 = vmatpush.bf16.msra.mxu0 %v1043_v30  ;;  %v180_v28 = vunpack.c.l.b16 %v18_v27 }
  0x1f   :  { %664 = vmatpush.bf16.msra.mxu2 %v1059_v31 }
  0x20   :  { %677 = vmatpush.bf16.msra.mxu3 %v1067_v36  ;;  %v189_v30 = vpack.c.b16 %v180_v28, %v180_v28 }
  0x21   :  { %651 = vmatpush.bf16.msra.mxu1 %v1051_v37  ;;  %639 = vmatmul.bf16.vlgmr.msra.gmra.mxu0 %v181_v43 }
  0x22   :  { %683 = vmatpush.bf16.msrb.mxu0 %v1082_v34  ;;  %665 = vmatmul.bf16.vlgmr.msra.gmra.mxu2 %v183_v42 }
  0x23   :  { %709 = vmatpush.bf16.msrb.mxu2 %v1098_v35  ;;  %678 = vmatmul.bf16.vlgmr.msra.gmra.mxu3 %v184_v46 }
  0x24   :  { %722 = vmatpush.bf16.msrb.mxu3 %v1106_v40  ;;  %652 = vmatmul.bf16.vlgmr.msra.gmra.mxu1 %v182_v47 }
  0x25   :  { %696 = vmatpush.bf16.msrb.mxu1 %v1090_v41 }
  0x26   :  { %684 = vmatpush.bf16.msrb.mxu0 %v1081_v44 }
  0x27   :  { %710 = vmatpush.bf16.msrb.mxu2 %v1097_v45 }
  0x28   :  { %723 = vmatpush.bf16.msrb.mxu3 %v1105_v48 }
  0x29   :  { %697 = vmatpush.bf16.msrb.mxu1 %v1089_v49 }
  0x2a   :  { %685 = vmatpush.bf16.msrb.mxu0 %v1080_v50 }
  0x2b   :  { %711 = vmatpush.bf16.msrb.mxu2 %v1096_v51 }
  0x2c   :  { %724 = vmatpush.bf16.msrb.mxu3 %v1104_v52 }
  0x2d   :  { %698 = vmatpush.bf16.msrb.mxu1 %v1088_v53 }
  0x2e   :  { %686 = vmatpush.bf16.msrb.mxu0 %v1079_v54 }
  0x2f   :  { %712 = vmatpush.bf16.msrb.mxu2 %v1095_v55 }
  0x30   :  { %725 = vmatpush.bf16.msrb.mxu3 %v1103_v56 }
  0x31   :  { %699 = vmatpush.bf16.msrb.mxu1 %v1087_v57 }
  0x32   :  { %687 = vmatpush.bf16.msrb.mxu0 %v1078_v58 }
  0x33   :  { %713 = vmatpush.bf16.msrb.mxu2 %v1094_v59 }
  0x34   :  { %726 = vmatpush.bf16.msrb.mxu3 %v1102_v60 }
  0x35   :  { %700 = vmatpush.bf16.msrb.mxu1 %v1086_v61 }
  0x36   :  { %688 = vmatpush.bf16.msrb.mxu0 %v1077_v62 }
  0x37   :  { %714 = vmatpush.bf16.msrb.mxu2 %v1093_v63 }
  0x38   :  { %727 = vmatpush.bf16.msrb.mxu3 %v1101_v0 }
  0x39   :  { %701 = vmatpush.bf16.msrb.mxu1 %v1085_v1 }
  0x3a   :  { %689 = vmatpush.bf16.msrb.mxu0 %v1076_v2 }
  0x3b   :  { %715 = vmatpush.bf16.msrb.mxu2 %v1092_v3 }
  0x3c   :  { %728 = vmatpush.bf16.msrb.mxu3 %v1100_v6 }
  0x3d   :  { %702 = vmatpush.bf16.msrb.mxu1 %v1084_v7 }
  0x3e   :  { %690 = vmatpush.bf16.msrb.mxu0 %v1075_v10 }
  0x3f   :  { %716 = vmatpush.bf16.msrb.mxu2 %v1091_v11 }
  0x40   :  { %729 = vmatpush.bf16.msrb.mxu3 %v1099_v14 }
  0x41   :  { %703 = vmatpush.bf16.msrb.mxu1 %v1083_v15  ;;  %691 = vmatmul.bf16.vlgmr.msrb.gmra.mxu0 %v185_v18 }
  0x42   :  { %735 = vmatpush.bf16.msra.mxu0 %v1114_v12  ;;  %717 = vmatmul.bf16.vlgmr.msrb.gmra.mxu2 %v187_v17 }
  0x43   :  { %730 = vmatmul.bf16.vlgmr.msrb.gmra.mxu3 %v188_v20 }
  0x44   :  { %704 = vmatmul.bf16.vlgmr.msrb.gmra.mxu1 %v186_v21 }
  0x46   :  { %736 = vmatpush.bf16.msra.mxu0 %v1113_v19 }
  0x4a   :  { %737 = vmatpush.bf16.msra.mxu0 %v1112_v22 }
  0x4e   :  { %738 = vmatpush.bf16.msra.mxu0 %v1111_v23 }
  0x52   :  { %739 = vmatpush.bf16.msra.mxu0 %v1110_v24 }
  0x56   :  { %740 = vmatpush.bf16.msra.mxu0 %v1109_v25 }
  0x5a   :  { %741 = vmatpush.bf16.msra.mxu0 %v1108_v26 }
  0x5e   :  { %742 = vmatpush.bf16.msra.mxu0 %v1107_v29 }
  0x61   :  { %743 = vmatmul.bf16.vlgmr.msra.gmra.mxu0 %v189_v30 }
  0x9e   :  { %v640_v31 = vpop.f32.mrf.mxu0 }
  0x9f   :  { %v641_v40 = vadd.f32 %v1115_v39, %v640_v31 }
  0xa1   :  { %v653_v32 = vpop.f32.mrf.mxu1 }
  0xa2   :  { %v654_v43 = vadd.f32 %v653_v32, %v641_v40 }
  0xa5   :  { %v666_v33 = vpop.f32.mrf.mxu2 }
  0xa6   :  { %v679_v34 = vpop.f32.mrf.mxu3  ;;  %v642_v35 = vpop.f32.mrf.mxu0  ;;  %v667_v45 = vadd.f32 %v666_v33, %v654_v43 }
  0xa8   :  { %v680_v49 = vadd.f32 %v679_v34, %v667_v45 }
  0xa9   :  { %v655_v36 = vpop.f32.mrf.mxu1 }
  0xad   :  { %v668_v37 = vpop.f32.mrf.mxu2 }
  0xae   :  { %v681_v38 = vpop.f32.mrf.mxu3 }
  0xbe   :  { %v692_v41 = vpop.f32.mrf.mxu0 }
  0xbf   :  { %v693_v51 = vadd.f32 %v692_v41, %v680_v49 }
  0xc1   :  { %v705_v42 = vpop.f32.mrf.mxu1 }
  0xc2   :  { %v706_v53 = vadd.f32 %v705_v42, %v693_v51 }
  0xc5   :  { %v718_v44 = vpop.f32.mrf.mxu2 }
  0xc6   :  { %v731_v46 = vpop.f32.mrf.mxu3  ;;  %v694_v47 = vpop.f32.mrf.mxu0  ;;  %v719_v54 = vadd.f32 %v718_v44, %v706_v53 }
  0xc8   :  { %v732_v55 = vadd.f32 %v731_v46, %v719_v54 }
  0xc9   :  { %v707_v48 = vpop.f32.mrf.mxu1 }
  0xcd   :  { %v720_v50 = vpop.f32.mrf.mxu2 }
  0xce   :  { %v733_v52 = vpop.f32.mrf.mxu3 }
  0xde   :  { %v744_v56 = vpop.f32.mrf.mxu0 }
  0xdf   :  { %v745_v57 = vadd.f32 %v744_v56, %v732_v55 }
  0xe1   :  { %1116 = vtanh.f32 %v745_v57 }
  0xe6   :  { %v746_v58 = vpop.f32.mrf.mxu0 }
  0xe7   :  { %v1117_v59 = vpop.eup %1116 }
  0xe8   :  { %v749_v60 = vpack.c.bf16 %v1117_v59, %v1117_v59 }
  0xea   :  { %750 = vst [vmem:[%s1378_s3] sm:$0xf] %v749_v60 }

</bundles_post_ra>
